<compile_context>
chip_gen: v5e
topology: v5e:2x2
jax: 0.10.0
libtpu: 0.0.40
codegen_flags: <defaults>
</compile_context>

<pallas_src>
import functools

import jax
import jax.numpy as jnp
from jax.experimental import pallas as pl
from jax.experimental.pallas import tpu as pltpu

VGG16_CFG = [64, 64, "M", 128, 128, "M", 256, 256, 256, "M",
             512, 512, 512, "M", 512, 512, 512, "M"]


def _round_up(x, m):
    return (x + m - 1) // m * m


@functools.lru_cache(maxsize=1)
def _tpu_profile():
    """Per-generation tile sizes and VMEM budget."""
    kind = ""
    try:
        kind = (jax.devices()[0].device_kind or "").lower()
    except Exception:
        pass
    if "v7" in kind:
        # 64 MiB physical VMEM per TensorCore on v7x -> leave headroom.
        return {"tm": 512, "tn": 512, "vmem": 48 * 1024 * 1024}
    if "v6" in kind:
        return {"tm": 512, "tn": 512, "vmem": 64 * 1024 * 1024}
    if "v5e" in kind or "v5 lite" in kind or "lite" in kind:
        # 128x128 MXU, single vst slot -> 128-wide output tiles.
        return {"tm": 128, "tn": 128, "vmem": 64 * 1024 * 1024}
    # Unknown / older chip: conservative defaults.
    return {"tm": 256, "tn": 256, "vmem": None}


# ---------------------------------------------------------------------------
# Pallas kernels
# ---------------------------------------------------------------------------
def _conv3x3_tap_kernel(a_ref, w_ref, b_ref, o_ref, acc_ref):
    # a: (tm, Cin) bf16   w: (Cin, tn) bf16   b: (1, tn) f32
    # o: (tm, tn) bf16    acc: (tm, tn) f32 scratch
    t = pl.program_id(2)

    @pl.when(t == 0)
    def _init():
        acc_ref[...] = jnp.zeros_like(acc_ref)

    acc_ref[...] += jnp.dot(a_ref[...], w_ref[...],
                            preferred_element_type=jnp.float32)

    @pl.when(t == pl.num_programs(2) - 1)
    def _finalize():
        o_ref[...] = jnp.maximum(acc_ref[...] + b_ref[...], 0.0
                                 ).astype(o_ref.dtype)


def _maxpool2x2_kernel(x_ref, o_ref):
    # x: (2*tho, Wo, 2*C)   o: (tho, Wo, C)
    tho, wo, c = o_ref.shape
    x = x_ref[...].reshape(tho, 2, wo, 2 * c)            # split leading dim only
    r = jnp.maximum(x[:, 0], x[:, 1])                    # vertical pair max
    o_ref[...] = jnp.maximum(r[:, :, :c], r[:, :, c:])   # horizontal pair max


def _global_maxpool_l2norm_kernel(x_ref, o_ref):
    # x: (H, W, C) bf16 -> AdaptiveMaxPool2d(1) -> L2 normalize -> (1, C) f32
    x = x_ref[...].astype(jnp.float32)
    v = jnp.max(x, axis=(0, 1), keepdims=True)[0]        # (1, C)
    nrm = jnp.sqrt(jnp.sum(v * v, axis=-1, keepdims=True))
    o_ref[...] = v / jnp.maximum(nrm, 1e-12)


# ---------------------------------------------------------------------------
# Layer wrappers
# ---------------------------------------------------------------------------
def conv3x3_relu(x, w, b, cfg):
    """3x3 stride-1 pad-1 conv + ReLU.

    x: (N,H,W,Cin) bf16; w: (3,3,kCin,Cout) f32; b: (Cout,) f32.
    Cin may exceed kCin (channel padding of the previous layer) and Cout is
    padded up to a multiple of 128 -- padded channels carry exact zeros.
    """
    n, h, wd, cin = x.shape
    kcin, cout = w.shape[2], w.shape[3]
    cout_p = _round_up(cout, 128)

    # Zero-pad weights/bias: extra input channels see zero weights, extra
    # output channels become ReLU(0) = 0 and stay inert downstream.
    w = jnp.pad(w, ((0, 0), (0, 0), (0, cin - kcin), (0, cout_p - cout)))
    b = jnp.pad(b, (0, cout_p - cout))
    wm = w.reshape(9, cin, cout_p).astype(jnp.bfloat16)
    bm = b.reshape(1, cout_p).astype(jnp.float32)

    # 9 shifted tap views stacked to (9, M, Cin) bf16 (each grid step only
    # loads a (tm, Cin) slice of one tap).
    xp = jnp.pad(x, ((0, 0), (1, 1), (1, 1), (0, 0)))
    m = n * h * wd
    taps = jnp.stack(
        [xp[:, dy:dy + h, dx:dx + wd, :].reshape(m, cin)
         for dy in range(3) for dx in range(3)], axis=0)

    tm = min(cfg["tm"], _round_up(m, 8))
    m_pad = _round_up(m, tm)
    if m_pad != m:
        taps = jnp.pad(taps, ((0, 0), (0, m_pad - m), (0, 0)))
    tn = min(cfg["tn"], cout_p)

    out = pl.pallas_call(
        _conv3x3_tap_kernel,
        out_shape=jax.ShapeDtypeStruct((m_pad, cout_p), jnp.bfloat16),
        grid=(m_pad // tm, cout_p // tn, 9),
        in_specs=[
            pl.BlockSpec((None, tm, cin), lambda i, j, t: (t, i, 0)),
            pl.BlockSpec((None, cin, tn), lambda i, j, t: (t, 0, j)),
            pl.BlockSpec((1, tn), lambda i, j, t: (0, j)),
        ],
        out_specs=pl.BlockSpec((tm, tn), lambda i, j, t: (i, j)),
        scratch_shapes=[pltpu.VMEM((tm, tn), jnp.float32)],
        compiler_params=pltpu.CompilerParams(
            dimension_semantics=("parallel", "parallel", "arbitrary"),
            vmem_limit_bytes=cfg["vmem"]),
    )(taps, wm, bm)
    return out[:m].reshape(n, h, wd, cout_p)


def maxpool2x2(x, cfg):
    """nn.MaxPool2d(kernel_size=2, stride=2) on NHWC (floor semantics)."""
    n, h, w, c = x.shape
    ho, wo = h // 2, w // 2
    x = x[:, :2 * ho, :2 * wo, :]
    # Metadata-only reshape: channels of horizontally adjacent pixels share a row.
    xr = x.reshape(n, 2 * ho, wo, 2 * c)

    # Largest divisor of Ho whose input block stays around <= 2 MiB.
    row_bytes = 2 * wo * 2 * c * x.dtype.itemsize
    cap = max(1, (2 * 1024 * 1024) // max(1, row_bytes))
    tho = 1
    for d in range(1, ho + 1):
        if ho % d == 0 and d <= cap:
            tho = d

    return pl.pallas_call(
        _maxpool2x2_kernel,
        out_shape=jax.ShapeDtypeStruct((n, ho, wo, c), x.dtype),
        grid=(n, ho // tho),
        in_specs=[pl.BlockSpec((None, 2 * tho, wo, 2 * c),
                               lambda i, j: (i, j, 0, 0))],
        out_specs=pl.BlockSpec((None, tho, wo, c), lambda i, j: (i, j, 0, 0)),
        compiler_params=pltpu.CompilerParams(
            dimension_semantics=("parallel", "parallel"),
            vmem_limit_bytes=cfg["vmem"]),
    )(xr)


def global_maxpool_l2norm(x, cfg):
    n, h, w, c = x.shape
    out = pl.pallas_call(
        _global_maxpool_l2norm_kernel,
        out_shape=jax.ShapeDtypeStruct((n, 1, c), jnp.float32),
        grid=(n,),
        in_specs=[pl.BlockSpec((None, h, w, c), lambda i: (i, 0, 0, 0))],
        out_specs=pl.BlockSpec((None, 1, c), lambda i: (i, 0, 0)),
        compiler_params=pltpu.CompilerParams(
            dimension_semantics=("parallel",),
            vmem_limit_bytes=cfg["vmem"]),
    )(x)
    return out.reshape(n, c)


# ---------------------------------------------------------------------------
# Parameters (deterministic He init, VGG16 shapes)
# ---------------------------------------------------------------------------
def init_vgg16_params(key):
    params = []
    cin = 3
    idx = 0
    for v in VGG16_CFG:
        if v == "M":
            continue
        kw, kb = jax.random.split(jax.random.fold_in(key, idx))
        scale = jnp.sqrt(2.0 / (9.0 * cin)).astype(jnp.float32)
        w = scale * jax.random.normal(kw, (3, 3, cin, v), dtype=jnp.float32)
        b = 0.01 * jax.random.normal(kb, (v,), dtype=jnp.float32)
        params.append((w, b))
        cin = v
        idx += 1
    return params


# ---------------------------------------------------------------------------
# Full forward pass (matches VGG_Network.forward semantics)
# ---------------------------------------------------------------------------
@jax.jit
def vgg_network_forward(x_nchw, params):
    cfg = _tpu_profile()  # static Python values, resolved at trace time
    x = jnp.transpose(x_nchw, (0, 2, 3, 1)).astype(jnp.bfloat16)  # NCHW -> NHWC
    pi = 0
    for v in VGG16_CFG:
        if v == "M":
            x = maxpool2x2(x, cfg)
        else:
            w, b = params[pi]
            x = conv3x3_relu(x, w, b, cfg)
            pi += 1
    # AdaptiveMaxPool2d(1).view(-1, 512) + F.normalize  ->  (N, 512)
    return global_maxpool_l2norm(x, cfg)


if __name__ == "__main__":
    key = jax.random.PRNGKey(0)
    params = init_vgg16_params(jax.random.fold_in(key, 1))
    # Smallest spatial size that survives the 5 max-pools of vgg16.features
    x = jax.random.normal(jax.random.fold_in(key, 2), (2, 3, 32, 32),
                          dtype=jnp.float32)
    out = vgg_network_forward(x, params)
    out = jax.block_until_ready(out)
    assert out.shape == (2, 512)
    assert bool(jnp.all(jnp.isfinite(out)))
    print("KERNEL_OK")
</pallas_src>

<mosaic_0001>
module attributes {stable_mosaic.version = 11 : i64} {
  func.func @_conv3x3_tap_kernel(%arg0: i32, %arg1: i32, %arg2: i32, %arg3: memref<1x256x3xbf16, #tpu.memory_space<vmem>>, %arg4: memref<1x3x128xbf16, #tpu.memory_space<vmem>>, %arg5: memref<1x128xf32, #tpu.memory_space<vmem>>, %arg6: memref<256x128xbf16, #tpu.memory_space<vmem>>, %arg7: memref<256x128xf32, #tpu.memory_space<vmem>>) attributes {dimension_semantics = [#tpu.dimension_semantics<parallel>, #tpu.dimension_semantics<parallel>, #tpu.dimension_semantics<arbitrary>], iteration_bounds = array<i64: 8, 1, 9>, scalar_prefetch = 0 : i64, scratch_operands = 1 : i64, tpu.core_type = #tpu.core_type<tc>, window_params = [{transform_indices = @transform_0, window_bounds = array<i64: 1, 256, 3>}, {transform_indices = @transform_1, window_bounds = array<i64: 1, 3, 128>}, {transform_indices = @transform_2, window_bounds = array<i64: 1, 128>}, {transform_indices = @transform_3, window_bounds = array<i64: 256, 128>}]} {
    %c0_i32 = arith.constant 0 : i32
    %0 = arith.cmpi eq, %arg2, %c0_i32 : i32
    %1 = arith.extui %0 : i1 to i32
    %c0_i32_0 = arith.constant 0 : i32
    %2 = arith.cmpi ne, %1, %c0_i32_0 : i32
    scf.if %2 {
      %cst_11 = arith.constant 0.000000e+00 : f32
      %14 = vector.broadcast %cst_11 : f32 to vector<256x128xf32>
      %c0_12 = arith.constant 0 : index
      %c0_13 = arith.constant 0 : index
      %15 = vector.load %arg7[%c0_12, %c0_13] : memref<256x128xf32, #tpu.memory_space<vmem>>, vector<256x128xf32>
      tpu.vector_store %arg7[%c0_12, %c0_13], %14 {strides = array<i32>} : memref<256x128xf32, #tpu.memory_space<vmem>>, vector<256x128xf32>,
    } else {
    }
    %c0 = arith.constant 0 : index
    %c0_1 = arith.constant 0 : index
    %3 = vector.load %arg7[%c0, %c0_1] : memref<256x128xf32, #tpu.memory_space<vmem>>, vector<256x128xf32>
    %c0_2 = arith.constant 0 : index
    %c0_3 = arith.constant 0 : index
    %c0_4 = arith.constant 0 : index
    %4 = vector.load %arg3[%c0_2, %c0_3, %c0_4] : memref<1x256x3xbf16, #tpu.memory_space<vmem>>, vector<1x256x3xbf16>
    %5 = vector.shape_cast %4 : vector<1x256x3xbf16> to vector<256x3xbf16>
    %c0_5 = arith.constant 0 : index
    %c0_6 = arith.constant 0 : index
    %c0_7 = arith.constant 0 : index
    %6 = vector.load %arg4[%c0_5, %c0_6, %c0_7] : memref<1x3x128xbf16, #tpu.memory_space<vmem>>, vector<1x3x128xbf16>
    %7 = vector.shape_cast %6 : vector<1x3x128xbf16> to vector<3x128xbf16>
    %cst = arith.constant dense<0.000000e+00> : vector<256x128xf32>
    %8 = tpu.matmul %5, %7, %cst {dimension_numbers = #tpu.dot_dimension_numbers<[1], [0], [0], [1], [0, 0, 1, 1], [], []>} : vector<256x3xbf16>, vector<3x128xbf16>, vector<256x128xf32> -> vector<256x128xf32>
    %9 = arith.addf %3, %8 : vector<256x128xf32>
    %c0_8 = arith.constant 0 : index
    %c0_9 = arith.constant 0 : index
    %10 = vector.load %arg7[%c0_8, %c0_9] : memref<256x128xf32, #tpu.memory_space<vmem>>, vector<256x128xf32>
    tpu.vector_store %arg7[%c0_8, %c0_9], %9 {strides = array<i32>} : memref<256x128xf32, #tpu.memory_space<vmem>>, vector<256x128xf32>,
    %c8_i32 = arith.constant 8 : i32
    %11 = arith.cmpi eq, %arg2, %c8_i32 : i32
    %12 = arith.extui %11 : i1 to i32
    %c0_i32_10 = arith.constant 0 : i32
    %13 = arith.cmpi ne, %12, %c0_i32_10 : i32
    scf.if %13 {
      %c0_11 = arith.constant 0 : index
      %c0_12 = arith.constant 0 : index
      %14 = vector.load %arg7[%c0_11, %c0_12] : memref<256x128xf32, #tpu.memory_space<vmem>>, vector<256x128xf32>
      %c0_13 = arith.constant 0 : index
      %c0_14 = arith.constant 0 : index
      %15 = vector.load %arg5[%c0_13, %c0_14] : memref<1x128xf32, #tpu.memory_space<vmem>>, vector<1x128xf32>
      %16 = vector.broadcast %15 : vector<1x128xf32> to vector<256x128xf32>
      %17 = arith.addf %14, %16 : vector<256x128xf32>
      %cst_15 = arith.constant 0.000000e+00 : f32
      %18 = vector.broadcast %cst_15 : f32 to vector<256x128xf32>
      %19 = arith.maximumf %17, %18 : vector<256x128xf32>
      %20 = arith.truncf %19 : vector<256x128xf32> to vector<256x128xbf16>
      %c0_16 = arith.constant 0 : index
      %c0_17 = arith.constant 0 : index
      %21 = vector.load %arg6[%c0_16, %c0_17] : memref<256x128xbf16, #tpu.memory_space<vmem>>, vector<256x128xbf16>
      tpu.vector_store %arg6[%c0_16, %c0_17], %20 {strides = array<i32>} : memref<256x128xbf16, #tpu.memory_space<vmem>>, vector<256x128xbf16>,
    } else {
    }
    return
  }
  func.func @transform_0(%arg0: i32, %arg1: i32, %arg2: i32) -> (i32, i32, i32) {
    %c0_i32 = arith.constant 0 : i32
    %c0_i32_0 = arith.constant 0 : i32
    return %arg2, %arg0, %c0_i32 : i32, i32, i32
  }
  func.func @transform_1(%arg0: i32, %arg1: i32, %arg2: i32) -> (i32, i32, i32) {
    %c0_i32 = arith.constant 0 : i32
    %c0_i32_0 = arith.constant 0 : i32
    return %arg2, %c0_i32, %arg1 : i32, i32, i32
  }
  func.func @transform_2(%arg0: i32, %arg1: i32, %arg2: i32) -> (i32, i32) {
    %c0_i32 = arith.constant 0 : i32
    %c0_i32_0 = arith.constant 0 : i32
    return %c0_i32, %arg1 : i32, i32
  }
  func.func @transform_3(%arg0: i32, %arg1: i32, %arg2: i32) -> (i32, i32) {
    %c0_i32 = arith.constant 0 : i32
    return %arg0, %arg1 : i32, i32
  }
}

module attributes {stable_mosaic.version = 11 : i64} {
  func.func @_maxpool2x2_kernel(%arg0: i32, %arg1: i32, %arg2: memref<1x32x16x256xbf16, #tpu.memory_space<vmem>>, %arg3: memref<1x16x16x128xbf16, #tpu.memory_space<vmem>>) attributes {dimension_semantics = [#tpu.dimension_semantics<parallel>, #tpu.dimension_semantics<parallel>], iteration_bounds = array<i64: 2, 1>, scalar_prefetch = 0 : i64, scratch_operands = 0 : i64, tpu.core_type = #tpu.core_type<tc>, window_params = [{transform_indices = @transform_0, window_bounds = array<i64: 1, 32, 16, 256>}, {transform_indices = @transform_1, window_bounds = array<i64: 1, 16, 16, 128>}]} {
    %c0 = arith.constant 0 : index
    %c0_0 = arith.constant 0 : index
    %c0_1 = arith.constant 0 : index
    %c0_2 = arith.constant 0 : index
    %0 = vector.load %arg2[%c0, %c0_0, %c0_1, %c0_2] : memref<1x32x16x256xbf16, #tpu.memory_space<vmem>>, vector<1x32x16x256xbf16>
    %1 = vector.shape_cast %0 : vector<1x32x16x256xbf16> to vector<32x16x256xbf16>
    %2 = vector.shape_cast %1 : vector<32x16x256xbf16> to vector<16x2x16x256xbf16>
    %3 = vector.extract_strided_slice %2 {offsets = [0, 0, 0, 0], sizes = [16, 1, 16, 256], strides = [1, 1, 1, 1]} : vector<16x2x16x256xbf16> to vector<16x1x16x256xbf16>
    %4 = vector.shape_cast %3 : vector<16x1x16x256xbf16> to vector<16x16x256xbf16>
    %5 = vector.extract_strided_slice %2 {offsets = [0, 1, 0, 0], sizes = [16, 1, 16, 256], strides = [1, 1, 1, 1]} : vector<16x2x16x256xbf16> to vector<16x1x16x256xbf16>
    %6 = vector.shape_cast %5 : vector<16x1x16x256xbf16> to vector<16x16x256xbf16>
    %7 = arith.maximumf %4, %6 : vector<16x16x256xbf16>
    %8 = vector.extract_strided_slice %7 {offsets = [0, 0, 0], sizes = [16, 16, 128], strides = [1, 1, 1]} : vector<16x16x256xbf16> to vector<16x16x128xbf16>
    %9 = vector.extract_strided_slice %7 {offsets = [0, 0, 128], sizes = [16, 16, 128], strides = [1, 1, 1]} : vector<16x16x256xbf16> to vector<16x16x128xbf16>
    %10 = arith.maximumf %8, %9 : vector<16x16x128xbf16>
    %c0_3 = arith.constant 0 : index
    %c0_4 = arith.constant 0 : index
    %c0_5 = arith.constant 0 : index
    %c0_6 = arith.constant 0 : index
    %11 = vector.load %arg3[%c0_3, %c0_4, %c0_5, %c0_6] : memref<1x16x16x128xbf16, #tpu.memory_space<vmem>>, vector<1x16x16x128xbf16>
    %12 = vector.shape_cast %11 : vector<1x16x16x128xbf16> to vector<16x16x128xbf16>
    %13 = vector.shape_cast %10 : vector<16x16x128xbf16> to vector<1x16x16x128xbf16>
    tpu.vector_store %arg3[%c0_3, %c0_4, %c0_5, %c0_6], %13 {strides = array<i32>} : memref<1x16x16x128xbf16, #tpu.memory_space<vmem>>, vector<1x16x16x128xbf16>,
    return
  }
  func.func @transform_0(%arg0: i32, %arg1: i32) -> (i32, i32, i32, i32) {
    %c0_i32 = arith.constant 0 : i32
    %c0_i32_0 = arith.constant 0 : i32
    %c0_i32_1 = arith.constant 0 : i32
    return %arg0, %arg1, %c0_i32, %c0_i32_0 : i32, i32, i32, i32
  }
  func.func @transform_1(%arg0: i32, %arg1: i32) -> (i32, i32, i32, i32) {
    %c0_i32 = arith.constant 0 : i32
    %c0_i32_0 = arith.constant 0 : i32
    %c0_i32_1 = arith.constant 0 : i32
    return %arg0, %arg1, %c0_i32, %c0_i32_0 : i32, i32, i32, i32
  }
}

module attributes {stable_mosaic.version = 11 : i64} {
  func.func @_conv3x3_tap_kernel(%arg0: i32, %arg1: i32, %arg2: i32, %arg3: memref<1x256x128xbf16, #tpu.memory_space<vmem>>, %arg4: memref<1x128x128xbf16, #tpu.memory_space<vmem>>, %arg5: memref<1x128xf32, #tpu.memory_space<vmem>>, %arg6: memref<256x128xbf16, #tpu.memory_space<vmem>>, %arg7: memref<256x128xf32, #tpu.memory_space<vmem>>) attributes {dimension_semantics = [#tpu.dimension_semantics<parallel>, #tpu.dimension_semantics<parallel>, #tpu.dimension_semantics<arbitrary>], iteration_bounds = array<i64: 8, 1, 9>, scalar_prefetch = 0 : i64, scratch_operands = 1 : i64, tpu.core_type = #tpu.core_type<tc>, window_params = [{transform_indices = @transform_0, window_bounds = array<i64: 1, 256, 128>}, {transform_indices = @transform_1, window_bounds = array<i64: 1, 128, 128>}, {transform_indices = @transform_2, window_bounds = array<i64: 1, 128>}, {transform_indices = @transform_3, window_bounds = array<i64: 256, 128>}]} {
    %c0_i32 = arith.constant 0 : i32
    %0 = arith.cmpi eq, %arg2, %c0_i32 : i32
    %1 = arith.extui %0 : i1 to i32
    %c0_i32_0 = arith.constant 0 : i32
    %2 = arith.cmpi ne, %1, %c0_i32_0 : i32
    scf.if %2 {
      %cst_11 = arith.constant 0.000000e+00 : f32
      %14 = vector.broadcast %cst_11 : f32 to vector<256x128xf32>
      %c0_12 = arith.constant 0 : index
      %c0_13 = arith.constant 0 : index
      %15 = vector.load %arg7[%c0_12, %c0_13] : memref<256x128xf32, #tpu.memory_space<vmem>>, vector<256x128xf32>
      tpu.vector_store %arg7[%c0_12, %c0_13], %14 {strides = array<i32>} : memref<256x128xf32, #tpu.memory_space<vmem>>, vector<256x128xf32>,
    } else {
    }
    %c0 = arith.constant 0 : index
    %c0_1 = arith.constant 0 : index
    %3 = vector.load %arg7[%c0, %c0_1] : memref<256x128xf32, #tpu.memory_space<vmem>>, vector<256x128xf32>
    %c0_2 = arith.constant 0 : index
    %c0_3 = arith.constant 0 : index
    %c0_4 = arith.constant 0 : index
    %4 = vector.load %arg3[%c0_2, %c0_3, %c0_4] : memref<1x256x128xbf16, #tpu.memory_space<vmem>>, vector<1x256x128xbf16>
    %5 = vector.shape_cast %4 : vector<1x256x128xbf16> to vector<256x128xbf16>
    %c0_5 = arith.constant 0 : index
    %c0_6 = arith.constant 0 : index
    %c0_7 = arith.constant 0 : index
    %6 = vector.load %arg4[%c0_5, %c0_6, %c0_7] : memref<1x128x128xbf16, #tpu.memory_space<vmem>>, vector<1x128x128xbf16>
    %7 = vector.shape_cast %6 : vector<1x128x128xbf16> to vector<128x128xbf16>
    %cst = arith.constant dense<0.000000e+00> : vector<256x128xf32>
    %8 = tpu.matmul %5, %7, %cst {dimension_numbers = #tpu.dot_dimension_numbers<[1], [0], [0], [1], [0, 0, 1, 1], [], []>} : vector<256x128xbf16>, vector<128x128xbf16>, vector<256x128xf32> -> vector<256x128xf32>
    %9 = arith.addf %3, %8 : vector<256x128xf32>
    %c0_8 = arith.constant 0 : index
    %c0_9 = arith.constant 0 : index
    %10 = vector.load %arg7[%c0_8, %c0_9] : memref<256x128xf32, #tpu.memory_space<vmem>>, vector<256x128xf32>
    tpu.vector_store %arg7[%c0_8, %c0_9], %9 {strides = array<i32>} : memref<256x128xf32, #tpu.memory_space<vmem>>, vector<256x128xf32>,
    %c8_i32 = arith.constant 8 : i32
    %11 = arith.cmpi eq, %arg2, %c8_i32 : i32
    %12 = arith.extui %11 : i1 to i32
    %c0_i32_10 = arith.constant 0 : i32
    %13 = arith.cmpi ne, %12, %c0_i32_10 : i32
    scf.if %13 {
      %c0_11 = arith.constant 0 : index
      %c0_12 = arith.constant 0 : index
      %14 = vector.load %arg7[%c0_11, %c0_12] : memref<256x128xf32, #tpu.memory_space<vmem>>, vector<256x128xf32>
      %c0_13 = arith.constant 0 : index
      %c0_14 = arith.constant 0 : index
      %15 = vector.load %arg5[%c0_13, %c0_14] : memref<1x128xf32, #tpu.memory_space<vmem>>, vector<1x128xf32>
      %16 = vector.broadcast %15 : vector<1x128xf32> to vector<256x128xf32>
      %17 = arith.addf %14, %16 : vector<256x128xf32>
      %cst_15 = arith.constant 0.000000e+00 : f32
      %18 = vector.broadcast %cst_15 : f32 to vector<256x128xf32>
      %19 = arith.maximumf %17, %18 : vector<256x128xf32>
      %20 = arith.truncf %19 : vector<256x128xf32> to vector<256x128xbf16>
      %c0_16 = arith.constant 0 : index
      %c0_17 = arith.constant 0 : index
      %21 = vector.load %arg6[%c0_16, %c0_17] : memref<256x128xbf16, #tpu.memory_space<vmem>>, vector<256x128xbf16>
      tpu.vector_store %arg6[%c0_16, %c0_17], %20 {strides = array<i32>} : memref<256x128xbf16, #tpu.memory_space<vmem>>, vector<256x128xbf16>,
    } else {
    }
    return
  }
  func.func @transform_0(%arg0: i32, %arg1: i32, %arg2: i32) -> (i32, i32, i32) {
    %c0_i32 = arith.constant 0 : i32
    %c0_i32_0 = arith.constant 0 : i32
    return %arg2, %arg0, %c0_i32 : i32, i32, i32
  }
  func.func @transform_1(%arg0: i32, %arg1: i32, %arg2: i32) -> (i32, i32, i32) {
    %c0_i32 = arith.constant 0 : i32
    %c0_i32_0 = arith.constant 0 : i32
    return %arg2, %c0_i32, %arg1 : i32, i32, i32
  }
  func.func @transform_2(%arg0: i32, %arg1: i32, %arg2: i32) -> (i32, i32) {
    %c0_i32 = arith.constant 0 : i32
    %c0_i32_0 = arith.constant 0 : i32
    return %c0_i32, %arg1 : i32, i32
  }
  func.func @transform_3(%arg0: i32, %arg1: i32, %arg2: i32) -> (i32, i32) {
    %c0_i32 = arith.constant 0 : i32
    return %arg0, %arg1 : i32, i32
  }
}

module attributes {stable_mosaic.version = 11 : i64} {
  func.func @_conv3x3_tap_kernel(%arg0: i32, %arg1: i32, %arg2: i32, %arg3: memref<1x256x128xbf16, #tpu.memory_space<vmem>>, %arg4: memref<1x128x128xbf16, #tpu.memory_space<vmem>>, %arg5: memref<1x128xf32, #tpu.memory_space<vmem>>, %arg6: memref<256x128xbf16, #tpu.memory_space<vmem>>, %arg7: memref<256x128xf32, #tpu.memory_space<vmem>>) attributes {dimension_semantics = [#tpu.dimension_semantics<parallel>, #tpu.dimension_semantics<parallel>, #tpu.dimension_semantics<arbitrary>], iteration_bounds = array<i64: 2, 1, 9>, scalar_prefetch = 0 : i64, scratch_operands = 1 : i64, tpu.core_type = #tpu.core_type<tc>, window_params = [{transform_indices = @transform_0, window_bounds = array<i64: 1, 256, 128>}, {transform_indices = @transform_1, window_bounds = array<i64: 1, 128, 128>}, {transform_indices = @transform_2, window_bounds = array<i64: 1, 128>}, {transform_indices = @transform_3, window_bounds = array<i64: 256, 128>}]} {
    %c0_i32 = arith.constant 0 : i32
    %0 = arith.cmpi eq, %arg2, %c0_i32 : i32
    %1 = arith.extui %0 : i1 to i32
    %c0_i32_0 = arith.constant 0 : i32
    %2 = arith.cmpi ne, %1, %c0_i32_0 : i32
    scf.if %2 {
      %cst_11 = arith.constant 0.000000e+00 : f32
      %14 = vector.broadcast %cst_11 : f32 to vector<256x128xf32>
      %c0_12 = arith.constant 0 : index
      %c0_13 = arith.constant 0 : index
      %15 = vector.load %arg7[%c0_12, %c0_13] : memref<256x128xf32, #tpu.memory_space<vmem>>, vector<256x128xf32>
      tpu.vector_store %arg7[%c0_12, %c0_13], %14 {strides = array<i32>} : memref<256x128xf32, #tpu.memory_space<vmem>>, vector<256x128xf32>,
    } else {
    }
    %c0 = arith.constant 0 : index
    %c0_1 = arith.constant 0 : index
    %3 = vector.load %arg7[%c0, %c0_1] : memref<256x128xf32, #tpu.memory_space<vmem>>, vector<256x128xf32>
    %c0_2 = arith.constant 0 : index
    %c0_3 = arith.constant 0 : index
    %c0_4 = arith.constant 0 : index
    %4 = vector.load %arg3[%c0_2, %c0_3, %c0_4] : memref<1x256x128xbf16, #tpu.memory_space<vmem>>, vector<1x256x128xbf16>
    %5 = vector.shape_cast %4 : vector<1x256x128xbf16> to vector<256x128xbf16>
    %c0_5 = arith.constant 0 : index
    %c0_6 = arith.constant 0 : index
    %c0_7 = arith.constant 0 : index
    %6 = vector.load %arg4[%c0_5, %c0_6, %c0_7] : memref<1x128x128xbf16, #tpu.memory_space<vmem>>, vector<1x128x128xbf16>
    %7 = vector.shape_cast %6 : vector<1x128x128xbf16> to vector<128x128xbf16>
    %cst = arith.constant dense<0.000000e+00> : vector<256x128xf32>
    %8 = tpu.matmul %5, %7, %cst {dimension_numbers = #tpu.dot_dimension_numbers<[1], [0], [0], [1], [0, 0, 1, 1], [], []>} : vector<256x128xbf16>, vector<128x128xbf16>, vector<256x128xf32> -> vector<256x128xf32>
    %9 = arith.addf %3, %8 : vector<256x128xf32>
    %c0_8 = arith.constant 0 : index
    %c0_9 = arith.constant 0 : index
    %10 = vector.load %arg7[%c0_8, %c0_9] : memref<256x128xf32, #tpu.memory_space<vmem>>, vector<256x128xf32>
    tpu.vector_store %arg7[%c0_8, %c0_9], %9 {strides = array<i32>} : memref<256x128xf32, #tpu.memory_space<vmem>>, vector<256x128xf32>,
    %c8_i32 = arith.constant 8 : i32
    %11 = arith.cmpi eq, %arg2, %c8_i32 : i32
    %12 = arith.extui %11 : i1 to i32
    %c0_i32_10 = arith.constant 0 : i32
    %13 = arith.cmpi ne, %12, %c0_i32_10 : i32
    scf.if %13 {
      %c0_11 = arith.constant 0 : index
      %c0_12 = arith.constant 0 : index
      %14 = vector.load %arg7[%c0_11, %c0_12] : memref<256x128xf32, #tpu.memory_space<vmem>>, vector<256x128xf32>
      %c0_13 = arith.constant 0 : index
      %c0_14 = arith.constant 0 : index
      %15 = vector.load %arg5[%c0_13, %c0_14] : memref<1x128xf32, #tpu.memory_space<vmem>>, vector<1x128xf32>
      %16 = vector.broadcast %15 : vector<1x128xf32> to vector<256x128xf32>
      %17 = arith.addf %14, %16 : vector<256x128xf32>
      %cst_15 = arith.constant 0.000000e+00 : f32
      %18 = vector.broadcast %cst_15 : f32 to vector<256x128xf32>
      %19 = arith.maximumf %17, %18 : vector<256x128xf32>
      %20 = arith.truncf %19 : vector<256x128xf32> to vector<256x128xbf16>
      %c0_16 = arith.constant 0 : index
      %c0_17 = arith.constant 0 : index
      %21 = vector.load %arg6[%c0_16, %c0_17] : memref<256x128xbf16, #tpu.memory_space<vmem>>, vector<256x128xbf16>
      tpu.vector_store %arg6[%c0_16, %c0_17], %20 {strides = array<i32>} : memref<256x128xbf16, #tpu.memory_space<vmem>>, vector<256x128xbf16>,
    } else {
    }
    return
  }
  func.func @transform_0(%arg0: i32, %arg1: i32, %arg2: i32) -> (i32, i32, i32) {
    %c0_i32 = arith.constant 0 : i32
    %c0_i32_0 = arith.constant 0 : i32
    return %arg2, %arg0, %c0_i32 : i32, i32, i32
  }
  func.func @transform_1(%arg0: i32, %arg1: i32, %arg2: i32) -> (i32, i32, i32) {
    %c0_i32 = arith.constant 0 : i32
    %c0_i32_0 = arith.constant 0 : i32
    return %arg2, %c0_i32, %arg1 : i32, i32, i32
  }
  func.func @transform_2(%arg0: i32, %arg1: i32, %arg2: i32) -> (i32, i32) {
    %c0_i32 = arith.constant 0 : i32
    %c0_i32_0 = arith.constant 0 : i32
    return %c0_i32, %arg1 : i32, i32
  }
  func.func @transform_3(%arg0: i32, %arg1: i32, %arg2: i32) -> (i32, i32) {
    %c0_i32 = arith.constant 0 : i32
    return %arg0, %arg1 : i32, i32
  }
}

module attributes {stable_mosaic.version = 11 : i64} {
  func.func @_maxpool2x2_kernel(%arg0: i32, %arg1: i32, %arg2: memref<1x16x8x256xbf16, #tpu.memory_space<vmem>>, %arg3: memref<1x8x8x128xbf16, #tpu.memory_space<vmem>>) attributes {dimension_semantics = [#tpu.dimension_semantics<parallel>, #tpu.dimension_semantics<parallel>], iteration_bounds = array<i64: 2, 1>, scalar_prefetch = 0 : i64, scratch_operands = 0 : i64, tpu.core_type = #tpu.core_type<tc>, window_params = [{transform_indices = @transform_0, window_bounds = array<i64: 1, 16, 8, 256>}, {transform_indices = @transform_1, window_bounds = array<i64: 1, 8, 8, 128>}]} {
    %c0 = arith.constant 0 : index
    %c0_0 = arith.constant 0 : index
    %c0_1 = arith.constant 0 : index
    %c0_2 = arith.constant 0 : index
    %0 = vector.load %arg2[%c0, %c0_0, %c0_1, %c0_2] : memref<1x16x8x256xbf16, #tpu.memory_space<vmem>>, vector<1x16x8x256xbf16>
    %1 = vector.shape_cast %0 : vector<1x16x8x256xbf16> to vector<16x8x256xbf16>
    %2 = vector.shape_cast %1 : vector<16x8x256xbf16> to vector<8x2x8x256xbf16>
    %3 = vector.extract_strided_slice %2 {offsets = [0, 0, 0, 0], sizes = [8, 1, 8, 256], strides = [1, 1, 1, 1]} : vector<8x2x8x256xbf16> to vector<8x1x8x256xbf16>
    %4 = vector.shape_cast %3 : vector<8x1x8x256xbf16> to vector<8x8x256xbf16>
    %5 = vector.extract_strided_slice %2 {offsets = [0, 1, 0, 0], sizes = [8, 1, 8, 256], strides = [1, 1, 1, 1]} : vector<8x2x8x256xbf16> to vector<8x1x8x256xbf16>
    %6 = vector.shape_cast %5 : vector<8x1x8x256xbf16> to vector<8x8x256xbf16>
    %7 = arith.maximumf %4, %6 : vector<8x8x256xbf16>
    %8 = vector.extract_strided_slice %7 {offsets = [0, 0, 0], sizes = [8, 8, 128], strides = [1, 1, 1]} : vector<8x8x256xbf16> to vector<8x8x128xbf16>
    %9 = vector.extract_strided_slice %7 {offsets = [0, 0, 128], sizes = [8, 8, 128], strides = [1, 1, 1]} : vector<8x8x256xbf16> to vector<8x8x128xbf16>
    %10 = arith.maximumf %8, %9 : vector<8x8x128xbf16>
    %c0_3 = arith.constant 0 : index
    %c0_4 = arith.constant 0 : index
    %c0_5 = arith.constant 0 : index
    %c0_6 = arith.constant 0 : index
    %11 = vector.load %arg3[%c0_3, %c0_4, %c0_5, %c0_6] : memref<1x8x8x128xbf16, #tpu.memory_space<vmem>>, vector<1x8x8x128xbf16>
    %12 = vector.shape_cast %11 : vector<1x8x8x128xbf16> to vector<8x8x128xbf16>
    %13 = vector.shape_cast %10 : vector<8x8x128xbf16> to vector<1x8x8x128xbf16>
    tpu.vector_store %arg3[%c0_3, %c0_4, %c0_5, %c0_6], %13 {strides = array<i32>} : memref<1x8x8x128xbf16, #tpu.memory_space<vmem>>, vector<1x8x8x128xbf16>,
    return
  }
  func.func @transform_0(%arg0: i32, %arg1: i32) -> (i32, i32, i32, i32) {
    %c0_i32 = arith.constant 0 : i32
    %c0_i32_0 = arith.constant 0 : i32
    %c0_i32_1 = arith.constant 0 : i32
    return %arg0, %arg1, %c0_i32, %c0_i32_0 : i32, i32, i32, i32
  }
  func.func @transform_1(%arg0: i32, %arg1: i32) -> (i32, i32, i32, i32) {
    %c0_i32 = arith.constant 0 : i32
    %c0_i32_0 = arith.constant 0 : i32
    %c0_i32_1 = arith.constant 0 : i32
    return %arg0, %arg1, %c0_i32, %c0_i32_0 : i32, i32, i32, i32
  }
}

module attributes {stable_mosaic.version = 11 : i64} {
  func.func @_conv3x3_tap_kernel(%arg0: i32, %arg1: i32, %arg2: i32, %arg3: memref<1x128x128xbf16, #tpu.memory_space<vmem>>, %arg4: memref<1x128x256xbf16, #tpu.memory_space<vmem>>, %arg5: memref<1x256xf32, #tpu.memory_space<vmem>>, %arg6: memref<128x256xbf16, #tpu.memory_space<vmem>>, %arg7: memref<128x256xf32, #tpu.memory_space<vmem>>) attributes {dimension_semantics = [#tpu.dimension_semantics<parallel>, #tpu.dimension_semantics<parallel>, #tpu.dimension_semantics<arbitrary>], iteration_bounds = array<i64: 1, 1, 9>, scalar_prefetch = 0 : i64, scratch_operands = 1 : i64, tpu.core_type = #tpu.core_type<tc>, window_params = [{transform_indices = @transform_0, window_bounds = array<i64: 1, 128, 128>}, {transform_indices = @transform_1, window_bounds = array<i64: 1, 128, 256>}, {transform_indices = @transform_2, window_bounds = array<i64: 1, 256>}, {transform_indices = @transform_3, window_bounds = array<i64: 128, 256>}]} {
    %c0_i32 = arith.constant 0 : i32
    %0 = arith.cmpi eq, %arg2, %c0_i32 : i32
    %1 = arith.extui %0 : i1 to i32
    %c0_i32_0 = arith.constant 0 : i32
    %2 = arith.cmpi ne, %1, %c0_i32_0 : i32
    scf.if %2 {
      %cst_11 = arith.constant 0.000000e+00 : f32
      %14 = vector.broadcast %cst_11 : f32 to vector<128x256xf32>
      %c0_12 = arith.constant 0 : index
      %c0_13 = arith.constant 0 : index
      %15 = vector.load %arg7[%c0_12, %c0_13] : memref<128x256xf32, #tpu.memory_space<vmem>>, vector<128x256xf32>
      tpu.vector_store %arg7[%c0_12, %c0_13], %14 {strides = array<i32>} : memref<128x256xf32, #tpu.memory_space<vmem>>, vector<128x256xf32>,
    } else {
    }
    %c0 = arith.constant 0 : index
    %c0_1 = arith.constant 0 : index
    %3 = vector.load %arg7[%c0, %c0_1] : memref<128x256xf32, #tpu.memory_space<vmem>>, vector<128x256xf32>
    %c0_2 = arith.constant 0 : index
    %c0_3 = arith.constant 0 : index
    %c0_4 = arith.constant 0 : index
    %4 = vector.load %arg3[%c0_2, %c0_3, %c0_4] : memref<1x128x128xbf16, #tpu.memory_space<vmem>>, vector<1x128x128xbf16>
    %5 = vector.shape_cast %4 : vector<1x128x128xbf16> to vector<128x128xbf16>
    %c0_5 = arith.constant 0 : index
    %c0_6 = arith.constant 0 : index
    %c0_7 = arith.constant 0 : index
    %6 = vector.load %arg4[%c0_5, %c0_6, %c0_7] : memref<1x128x256xbf16, #tpu.memory_space<vmem>>, vector<1x128x256xbf16>
    %7 = vector.shape_cast %6 : vector<1x128x256xbf16> to vector<128x256xbf16>
    %cst = arith.constant dense<0.000000e+00> : vector<128x256xf32>
    %8 = tpu.matmul %5, %7, %cst {dimension_numbers = #tpu.dot_dimension_numbers<[1], [0], [0], [1], [0, 0, 1, 1], [], []>} : vector<128x128xbf16>, vector<128x256xbf16>, vector<128x256xf32> -> vector<128x256xf32>
    %9 = arith.addf %3, %8 : vector<128x256xf32>
    %c0_8 = arith.constant 0 : index
    %c0_9 = arith.constant 0 : index
    %10 = vector.load %arg7[%c0_8, %c0_9] : memref<128x256xf32, #tpu.memory_space<vmem>>, vector<128x256xf32>
    tpu.vector_store %arg7[%c0_8, %c0_9], %9 {strides = array<i32>} : memref<128x256xf32, #tpu.memory_space<vmem>>, vector<128x256xf32>,
    %c8_i32 = arith.constant 8 : i32
    %11 = arith.cmpi eq, %arg2, %c8_i32 : i32
    %12 = arith.extui %11 : i1 to i32
    %c0_i32_10 = arith.constant 0 : i32
    %13 = arith.cmpi ne, %12, %c0_i32_10 : i32
    scf.if %13 {
      %c0_11 = arith.constant 0 : index
      %c0_12 = arith.constant 0 : index
      %14 = vector.load %arg7[%c0_11, %c0_12] : memref<128x256xf32, #tpu.memory_space<vmem>>, vector<128x256xf32>
      %c0_13 = arith.constant 0 : index
      %c0_14 = arith.constant 0 : index
      %15 = vector.load %arg5[%c0_13, %c0_14] : memref<1x256xf32, #tpu.memory_space<vmem>>, vector<1x256xf32>
      %16 = vector.broadcast %15 : vector<1x256xf32> to vector<128x256xf32>
      %17 = arith.addf %14, %16 : vector<128x256xf32>
      %cst_15 = arith.constant 0.000000e+00 : f32
      %18 = vector.broadcast %cst_15 : f32 to vector<128x256xf32>
      %19 = arith.maximumf %17, %18 : vector<128x256xf32>
      %20 = arith.truncf %19 : vector<128x256xf32> to vector<128x256xbf16>
      %c0_16 = arith.constant 0 : index
      %c0_17 = arith.constant 0 : index
      %21 = vector.load %arg6[%c0_16, %c0_17] : memref<128x256xbf16, #tpu.memory_space<vmem>>, vector<128x256xbf16>
      tpu.vector_store %arg6[%c0_16, %c0_17], %20 {strides = array<i32>} : memref<128x256xbf16, #tpu.memory_space<vmem>>, vector<128x256xbf16>,
    } else {
    }
    return
  }
  func.func @transform_0(%arg0: i32, %arg1: i32, %arg2: i32) -> (i32, i32, i32) {
    %c0_i32 = arith.constant 0 : i32
    %c0_i32_0 = arith.constant 0 : i32
    return %arg2, %arg0, %c0_i32 : i32, i32, i32
  }
  func.func @transform_1(%arg0: i32, %arg1: i32, %arg2: i32) -> (i32, i32, i32) {
    %c0_i32 = arith.constant 0 : i32
    %c0_i32_0 = arith.constant 0 : i32
    return %arg2, %c0_i32, %arg1 : i32, i32, i32
  }
  func.func @transform_2(%arg0: i32, %arg1: i32, %arg2: i32) -> (i32, i32) {
    %c0_i32 = arith.constant 0 : i32
    %c0_i32_0 = arith.constant 0 : i32
    return %c0_i32, %arg1 : i32, i32
  }
  func.func @transform_3(%arg0: i32, %arg1: i32, %arg2: i32) -> (i32, i32) {
    %c0_i32 = arith.constant 0 : i32
    return %arg0, %arg1 : i32, i32
  }
}

module attributes {stable_mosaic.version = 11 : i64} {
  func.func @_conv3x3_tap_kernel(%arg0: i32, %arg1: i32, %arg2: i32, %arg3: memref<1x128x256xbf16, #tpu.memory_space<vmem>>, %arg4: memref<1x256x256xbf16, #tpu.memory_space<vmem>>, %arg5: memref<1x256xf32, #tpu.memory_space<vmem>>, %arg6: memref<128x256xbf16, #tpu.memory_space<vmem>>, %arg7: memref<128x256xf32, #tpu.memory_space<vmem>>) attributes {dimension_semantics = [#tpu.dimension_semantics<parallel>, #tpu.dimension_semantics<parallel>, #tpu.dimension_semantics<arbitrary>], iteration_bounds = array<i64: 1, 1, 9>, scalar_prefetch = 0 : i64, scratch_operands = 1 : i64, tpu.core_type = #tpu.core_type<tc>, window_params = [{transform_indices = @transform_0, window_bounds = array<i64: 1, 128, 256>}, {transform_indices = @transform_1, window_bounds = array<i64: 1, 256, 256>}, {transform_indices = @transform_2, window_bounds = array<i64: 1, 256>}, {transform_indices = @transform_3, window_bounds = array<i64: 128, 256>}]} {
    %c0_i32 = arith.constant 0 : i32
    %0 = arith.cmpi eq, %arg2, %c0_i32 : i32
    %1 = arith.extui %0 : i1 to i32
    %c0_i32_0 = arith.constant 0 : i32
    %2 = arith.cmpi ne, %1, %c0_i32_0 : i32
    scf.if %2 {
      %cst_11 = arith.constant 0.000000e+00 : f32
      %14 = vector.broadcast %cst_11 : f32 to vector<128x256xf32>
      %c0_12 = arith.constant 0 : index
      %c0_13 = arith.constant 0 : index
      %15 = vector.load %arg7[%c0_12, %c0_13] : memref<128x256xf32, #tpu.memory_space<vmem>>, vector<128x256xf32>
      tpu.vector_store %arg7[%c0_12, %c0_13], %14 {strides = array<i32>} : memref<128x256xf32, #tpu.memory_space<vmem>>, vector<128x256xf32>,
    } else {
    }
    %c0 = arith.constant 0 : index
    %c0_1 = arith.constant 0 : index
    %3 = vector.load %arg7[%c0, %c0_1] : memref<128x256xf32, #tpu.memory_space<vmem>>, vector<128x256xf32>
    %c0_2 = arith.constant 0 : index
    %c0_3 = arith.constant 0 : index
    %c0_4 = arith.constant 0 : index
    %4 = vector.load %arg3[%c0_2, %c0_3, %c0_4] : memref<1x128x256xbf16, #tpu.memory_space<vmem>>, vector<1x128x256xbf16>
    %5 = vector.shape_cast %4 : vector<1x128x256xbf16> to vector<128x256xbf16>
    %c0_5 = arith.constant 0 : index
    %c0_6 = arith.constant 0 : index
    %c0_7 = arith.constant 0 : index
    %6 = vector.load %arg4[%c0_5, %c0_6, %c0_7] : memref<1x256x256xbf16, #tpu.memory_space<vmem>>, vector<1x256x256xbf16>
    %7 = vector.shape_cast %6 : vector<1x256x256xbf16> to vector<256x256xbf16>
    %cst = arith.constant dense<0.000000e+00> : vector<128x256xf32>
    %8 = tpu.matmul %5, %7, %cst {dimension_numbers = #tpu.dot_dimension_numbers<[1], [0], [0], [1], [0, 0, 1, 1], [], []>} : vector<128x256xbf16>, vector<256x256xbf16>, vector<128x256xf32> -> vector<128x256xf32>
    %9 = arith.addf %3, %8 : vector<128x256xf32>
    %c0_8 = arith.constant 0 : index
    %c0_9 = arith.constant 0 : index
    %10 = vector.load %arg7[%c0_8, %c0_9] : memref<128x256xf32, #tpu.memory_space<vmem>>, vector<128x256xf32>
    tpu.vector_store %arg7[%c0_8, %c0_9], %9 {strides = array<i32>} : memref<128x256xf32, #tpu.memory_space<vmem>>, vector<128x256xf32>,
    %c8_i32 = arith.constant 8 : i32
    %11 = arith.cmpi eq, %arg2, %c8_i32 : i32
    %12 = arith.extui %11 : i1 to i32
    %c0_i32_10 = arith.constant 0 : i32
    %13 = arith.cmpi ne, %12, %c0_i32_10 : i32
    scf.if %13 {
      %c0_11 = arith.constant 0 : index
      %c0_12 = arith.constant 0 : index
      %14 = vector.load %arg7[%c0_11, %c0_12] : memref<128x256xf32, #tpu.memory_space<vmem>>, vector<128x256xf32>
      %c0_13 = arith.constant 0 : index
      %c0_14 = arith.constant 0 : index
      %15 = vector.load %arg5[%c0_13, %c0_14] : memref<1x256xf32, #tpu.memory_space<vmem>>, vector<1x256xf32>
      %16 = vector.broadcast %15 : vector<1x256xf32> to vector<128x256xf32>
      %17 = arith.addf %14, %16 : vector<128x256xf32>
      %cst_15 = arith.constant 0.000000e+00 : f32
      %18 = vector.broadcast %cst_15 : f32 to vector<128x256xf32>
      %19 = arith.maximumf %17, %18 : vector<128x256xf32>
      %20 = arith.truncf %19 : vector<128x256xf32> to vector<128x256xbf16>
      %c0_16 = arith.constant 0 : index
      %c0_17 = arith.constant 0 : index
      %21 = vector.load %arg6[%c0_16, %c0_17] : memref<128x256xbf16, #tpu.memory_space<vmem>>, vector<128x256xbf16>
      tpu.vector_store %arg6[%c0_16, %c0_17], %20 {strides = array<i32>} : memref<128x256xbf16, #tpu.memory_space<vmem>>, vector<128x256xbf16>,
    } else {
    }
    return
  }
  func.func @transform_0(%arg0: i32, %arg1: i32, %arg2: i32) -> (i32, i32, i32) {
    %c0_i32 = arith.constant 0 : i32
    %c0_i32_0 = arith.constant 0 : i32
    return %arg2, %arg0, %c0_i32 : i32, i32, i32
  }
  func.func @transform_1(%arg0: i32, %arg1: i32, %arg2: i32) -> (i32, i32, i32) {
    %c0_i32 = arith.constant 0 : i32
    %c0_i32_0 = arith.constant 0 : i32
    return %arg2, %c0_i32, %arg1 : i32, i32, i32
  }
  func.func @transform_2(%arg0: i32, %arg1: i32, %arg2: i32) -> (i32, i32) {
    %c0_i32 = arith.constant 0 : i32
    %c0_i32_0 = arith.constant 0 : i32
    return %c0_i32, %arg1 : i32, i32
  }
  func.func @transform_3(%arg0: i32, %arg1: i32, %arg2: i32) -> (i32, i32) {
    %c0_i32 = arith.constant 0 : i32
    return %arg0, %arg1 : i32, i32
  }
}

module attributes {stable_mosaic.version = 11 : i64} {
  func.func @_maxpool2x2_kernel(%arg0: i32, %arg1: i32, %arg2: memref<1x8x4x512xbf16, #tpu.memory_space<vmem>>, %arg3: memref<1x4x4x256xbf16, #tpu.memory_space<vmem>>) attributes {dimension_semantics = [#tpu.dimension_semantics<parallel>, #tpu.dimension_semantics<parallel>], iteration_bounds = array<i64: 2, 1>, scalar_prefetch = 0 : i64, scratch_operands = 0 : i64, tpu.core_type = #tpu.core_type<tc>, window_params = [{transform_indices = @transform_0, window_bounds = array<i64: 1, 8, 4, 512>}, {transform_indices = @transform_1, window_bounds = array<i64: 1, 4, 4, 256>}]} {
    %c0 = arith.constant 0 : index
    %c0_0 = arith.constant 0 : index
    %c0_1 = arith.constant 0 : index
    %c0_2 = arith.constant 0 : index
    %0 = vector.load %arg2[%c0, %c0_0, %c0_1, %c0_2] : memref<1x8x4x512xbf16, #tpu.memory_space<vmem>>, vector<1x8x4x512xbf16>
    %1 = vector.shape_cast %0 : vector<1x8x4x512xbf16> to vector<8x4x512xbf16>
    %2 = vector.shape_cast %1 : vector<8x4x512xbf16> to vector<4x2x4x512xbf16>
    %3 = vector.extract_strided_slice %2 {offsets = [0, 0, 0, 0], sizes = [4, 1, 4, 512], strides = [1, 1, 1, 1]} : vector<4x2x4x512xbf16> to vector<4x1x4x512xbf16>
    %4 = vector.shape_cast %3 : vector<4x1x4x512xbf16> to vector<4x4x512xbf16>
    %5 = vector.extract_strided_slice %2 {offsets = [0, 1, 0, 0], sizes = [4, 1, 4, 512], strides = [1, 1, 1, 1]} : vector<4x2x4x512xbf16> to vector<4x1x4x512xbf16>
    %6 = vector.shape_cast %5 : vector<4x1x4x512xbf16> to vector<4x4x512xbf16>
    %7 = arith.maximumf %4, %6 : vector<4x4x512xbf16>
    %8 = vector.extract_strided_slice %7 {offsets = [0, 0, 0], sizes = [4, 4, 256], strides = [1, 1, 1]} : vector<4x4x512xbf16> to vector<4x4x256xbf16>
    %9 = vector.extract_strided_slice %7 {offsets = [0, 0, 256], sizes = [4, 4, 256], strides = [1, 1, 1]} : vector<4x4x512xbf16> to vector<4x4x256xbf16>
    %10 = arith.maximumf %8, %9 : vector<4x4x256xbf16>
    %c0_3 = arith.constant 0 : index
    %c0_4 = arith.constant 0 : index
    %c0_5 = arith.constant 0 : index
    %c0_6 = arith.constant 0 : index
    %11 = vector.load %arg3[%c0_3, %c0_4, %c0_5, %c0_6] : memref<1x4x4x256xbf16, #tpu.memory_space<vmem>>, vector<1x4x4x256xbf16>
    %12 = vector.shape_cast %11 : vector<1x4x4x256xbf16> to vector<4x4x256xbf16>
    %13 = vector.shape_cast %10 : vector<4x4x256xbf16> to vector<1x4x4x256xbf16>
    tpu.vector_store %arg3[%c0_3, %c0_4, %c0_5, %c0_6], %13 {strides = array<i32>} : memref<1x4x4x256xbf16, #tpu.memory_space<vmem>>, vector<1x4x4x256xbf16>,
    return
  }
  func.func @transform_0(%arg0: i32, %arg1: i32) -> (i32, i32, i32, i32) {
    %c0_i32 = arith.constant 0 : i32
    %c0_i32_0 = arith.constant 0 : i32
    %c0_i32_1 = arith.constant 0 : i32
    return %arg0, %arg1, %c0_i32, %c0_i32_0 : i32, i32, i32, i32
  }
  func.func @transform_1(%arg0: i32, %arg1: i32) -> (i32, i32, i32, i32) {
    %c0_i32 = arith.constant 0 : i32
    %c0_i32_0 = arith.constant 0 : i32
    %c0_i32_1 = arith.constant 0 : i32
    return %arg0, %arg1, %c0_i32, %c0_i32_0 : i32, i32, i32, i32
  }
}

module attributes {stable_mosaic.version = 11 : i64} {
  func.func @_conv3x3_tap_kernel(%arg0: i32, %arg1: i32, %arg2: i32, %arg3: memref<1x32x256xbf16, #tpu.memory_space<vmem>>, %arg4: memref<1x256x256xbf16, #tpu.memory_space<vmem>>, %arg5: memref<1x256xf32, #tpu.memory_space<vmem>>, %arg6: memref<32x256xbf16, #tpu.memory_space<vmem>>, %arg7: memref<32x256xf32, #tpu.memory_space<vmem>>) attributes {dimension_semantics = [#tpu.dimension_semantics<parallel>, #tpu.dimension_semantics<parallel>, #tpu.dimension_semantics<arbitrary>], iteration_bounds = array<i64: 1, 2, 9>, scalar_prefetch = 0 : i64, scratch_operands = 1 : i64, tpu.core_type = #tpu.core_type<tc>, window_params = [{transform_indices = @transform_0, window_bounds = array<i64: 1, 32, 256>}, {transform_indices = @transform_1, window_bounds = array<i64: 1, 256, 256>}, {transform_indices = @transform_2, window_bounds = array<i64: 1, 256>}, {transform_indices = @transform_3, window_bounds = array<i64: 32, 256>}]} {
    %c0_i32 = arith.constant 0 : i32
    %0 = arith.cmpi eq, %arg2, %c0_i32 : i32
    %1 = arith.extui %0 : i1 to i32
    %c0_i32_0 = arith.constant 0 : i32
    %2 = arith.cmpi ne, %1, %c0_i32_0 : i32
    scf.if %2 {
      %cst_11 = arith.constant 0.000000e+00 : f32
      %14 = vector.broadcast %cst_11 : f32 to vector<32x256xf32>
      %c0_12 = arith.constant 0 : index
      %c0_13 = arith.constant 0 : index
      %15 = vector.load %arg7[%c0_12, %c0_13] : memref<32x256xf32, #tpu.memory_space<vmem>>, vector<32x256xf32>
      tpu.vector_store %arg7[%c0_12, %c0_13], %14 {strides = array<i32>} : memref<32x256xf32, #tpu.memory_space<vmem>>, vector<32x256xf32>,
    } else {
    }
    %c0 = arith.constant 0 : index
    %c0_1 = arith.constant 0 : index
    %3 = vector.load %arg7[%c0, %c0_1] : memref<32x256xf32, #tpu.memory_space<vmem>>, vector<32x256xf32>
    %c0_2 = arith.constant 0 : index
    %c0_3 = arith.constant 0 : index
    %c0_4 = arith.constant 0 : index
    %4 = vector.load %arg3[%c0_2, %c0_3, %c0_4] : memref<1x32x256xbf16, #tpu.memory_space<vmem>>, vector<1x32x256xbf16>
    %5 = vector.shape_cast %4 : vector<1x32x256xbf16> to vector<32x256xbf16>
    %c0_5 = arith.constant 0 : index
    %c0_6 = arith.constant 0 : index
    %c0_7 = arith.constant 0 : index
    %6 = vector.load %arg4[%c0_5, %c0_6, %c0_7] : memref<1x256x256xbf16, #tpu.memory_space<vmem>>, vector<1x256x256xbf16>
    %7 = vector.shape_cast %6 : vector<1x256x256xbf16> to vector<256x256xbf16>
    %cst = arith.constant dense<0.000000e+00> : vector<32x256xf32>
    %8 = tpu.matmul %5, %7, %cst {dimension_numbers = #tpu.dot_dimension_numbers<[1], [0], [0], [1], [0, 0, 1, 1], [], []>} : vector<32x256xbf16>, vector<256x256xbf16>, vector<32x256xf32> -> vector<32x256xf32>
    %9 = arith.addf %3, %8 : vector<32x256xf32>
    %c0_8 = arith.constant 0 : index
    %c0_9 = arith.constant 0 : index
    %10 = vector.load %arg7[%c0_8, %c0_9] : memref<32x256xf32, #tpu.memory_space<vmem>>, vector<32x256xf32>
    tpu.vector_store %arg7[%c0_8, %c0_9], %9 {strides = array<i32>} : memref<32x256xf32, #tpu.memory_space<vmem>>, vector<32x256xf32>,
    %c8_i32 = arith.constant 8 : i32
    %11 = arith.cmpi eq, %arg2, %c8_i32 : i32
    %12 = arith.extui %11 : i1 to i32
    %c0_i32_10 = arith.constant 0 : i32
    %13 = arith.cmpi ne, %12, %c0_i32_10 : i32
    scf.if %13 {
      %c0_11 = arith.constant 0 : index
      %c0_12 = arith.constant 0 : index
      %14 = vector.load %arg7[%c0_11, %c0_12] : memref<32x256xf32, #tpu.memory_space<vmem>>, vector<32x256xf32>
      %c0_13 = arith.constant 0 : index
      %c0_14 = arith.constant 0 : index
      %15 = vector.load %arg5[%c0_13, %c0_14] : memref<1x256xf32, #tpu.memory_space<vmem>>, vector<1x256xf32>
      %16 = vector.broadcast %15 : vector<1x256xf32> to vector<32x256xf32>
      %17 = arith.addf %14, %16 : vector<32x256xf32>
      %cst_15 = arith.constant 0.000000e+00 : f32
      %18 = vector.broadcast %cst_15 : f32 to vector<32x256xf32>
      %19 = arith.maximumf %17, %18 : vector<32x256xf32>
      %20 = arith.truncf %19 : vector<32x256xf32> to vector<32x256xbf16>
      %c0_16 = arith.constant 0 : index
      %c0_17 = arith.constant 0 : index
      %21 = vector.load %arg6[%c0_16, %c0_17] : memref<32x256xbf16, #tpu.memory_space<vmem>>, vector<32x256xbf16>
      tpu.vector_store %arg6[%c0_16, %c0_17], %20 {strides = array<i32>} : memref<32x256xbf16, #tpu.memory_space<vmem>>, vector<32x256xbf16>,
    } else {
    }
    return
  }
  func.func @transform_0(%arg0: i32, %arg1: i32, %arg2: i32) -> (i32, i32, i32) {
    %c0_i32 = arith.constant 0 : i32
    %c0_i32_0 = arith.constant 0 : i32
    return %arg2, %arg0, %c0_i32 : i32, i32, i32
  }
  func.func @transform_1(%arg0: i32, %arg1: i32, %arg2: i32) -> (i32, i32, i32) {
    %c0_i32 = arith.constant 0 : i32
    %c0_i32_0 = arith.constant 0 : i32
    return %arg2, %c0_i32, %arg1 : i32, i32, i32
  }
  func.func @transform_2(%arg0: i32, %arg1: i32, %arg2: i32) -> (i32, i32) {
    %c0_i32 = arith.constant 0 : i32
    %c0_i32_0 = arith.constant 0 : i32
    return %c0_i32, %arg1 : i32, i32
  }
  func.func @transform_3(%arg0: i32, %arg1: i32, %arg2: i32) -> (i32, i32) {
    %c0_i32 = arith.constant 0 : i32
    return %arg0, %arg1 : i32, i32
  }
}

module attributes {stable_mosaic.version = 11 : i64} {
  func.func @_conv3x3_tap_kernel(%arg0: i32, %arg1: i32, %arg2: i32, %arg3: memref<1x32x512xbf16, #tpu.memory_space<vmem>>, %arg4: memref<1x512x256xbf16, #tpu.memory_space<vmem>>, %arg5: memref<1x256xf32, #tpu.memory_space<vmem>>, %arg6: memref<32x256xbf16, #tpu.memory_space<vmem>>, %arg7: memref<32x256xf32, #tpu.memory_space<vmem>>) attributes {dimension_semantics = [#tpu.dimension_semantics<parallel>, #tpu.dimension_semantics<parallel>, #tpu.dimension_semantics<arbitrary>], iteration_bounds = array<i64: 1, 2, 9>, scalar_prefetch = 0 : i64, scratch_operands = 1 : i64, tpu.core_type = #tpu.core_type<tc>, window_params = [{transform_indices = @transform_0, window_bounds = array<i64: 1, 32, 512>}, {transform_indices = @transform_1, window_bounds = array<i64: 1, 512, 256>}, {transform_indices = @transform_2, window_bounds = array<i64: 1, 256>}, {transform_indices = @transform_3, window_bounds = array<i64: 32, 256>}]} {
    %c0_i32 = arith.constant 0 : i32
    %0 = arith.cmpi eq, %arg2, %c0_i32 : i32
    %1 = arith.extui %0 : i1 to i32
    %c0_i32_0 = arith.constant 0 : i32
    %2 = arith.cmpi ne, %1, %c0_i32_0 : i32
    scf.if %2 {
      %cst_11 = arith.constant 0.000000e+00 : f32
      %14 = vector.broadcast %cst_11 : f32 to vector<32x256xf32>
      %c0_12 = arith.constant 0 : index
      %c0_13 = arith.constant 0 : index
      %15 = vector.load %arg7[%c0_12, %c0_13] : memref<32x256xf32, #tpu.memory_space<vmem>>, vector<32x256xf32>
      tpu.vector_store %arg7[%c0_12, %c0_13], %14 {strides = array<i32>} : memref<32x256xf32, #tpu.memory_space<vmem>>, vector<32x256xf32>,
    } else {
    }
    %c0 = arith.constant 0 : index
    %c0_1 = arith.constant 0 : index
    %3 = vector.load %arg7[%c0, %c0_1] : memref<32x256xf32, #tpu.memory_space<vmem>>, vector<32x256xf32>
    %c0_2 = arith.constant 0 : index
    %c0_3 = arith.constant 0 : index
    %c0_4 = arith.constant 0 : index
    %4 = vector.load %arg3[%c0_2, %c0_3, %c0_4] : memref<1x32x512xbf16, #tpu.memory_space<vmem>>, vector<1x32x512xbf16>
    %5 = vector.shape_cast %4 : vector<1x32x512xbf16> to vector<32x512xbf16>
    %c0_5 = arith.constant 0 : index
    %c0_6 = arith.constant 0 : index
    %c0_7 = arith.constant 0 : index
    %6 = vector.load %arg4[%c0_5, %c0_6, %c0_7] : memref<1x512x256xbf16, #tpu.memory_space<vmem>>, vector<1x512x256xbf16>
    %7 = vector.shape_cast %6 : vector<1x512x256xbf16> to vector<512x256xbf16>
    %cst = arith.constant dense<0.000000e+00> : vector<32x256xf32>
    %8 = tpu.matmul %5, %7, %cst {dimension_numbers = #tpu.dot_dimension_numbers<[1], [0], [0], [1], [0, 0, 1, 1], [], []>} : vector<32x512xbf16>, vector<512x256xbf16>, vector<32x256xf32> -> vector<32x256xf32>
    %9 = arith.addf %3, %8 : vector<32x256xf32>
    %c0_8 = arith.constant 0 : index
    %c0_9 = arith.constant 0 : index
    %10 = vector.load %arg7[%c0_8, %c0_9] : memref<32x256xf32, #tpu.memory_space<vmem>>, vector<32x256xf32>
    tpu.vector_store %arg7[%c0_8, %c0_9], %9 {strides = array<i32>} : memref<32x256xf32, #tpu.memory_space<vmem>>, vector<32x256xf32>,
    %c8_i32 = arith.constant 8 : i32
    %11 = arith.cmpi eq, %arg2, %c8_i32 : i32
    %12 = arith.extui %11 : i1 to i32
    %c0_i32_10 = arith.constant 0 : i32
    %13 = arith.cmpi ne, %12, %c0_i32_10 : i32
    scf.if %13 {
      %c0_11 = arith.constant 0 : index
      %c0_12 = arith.constant 0 : index
      %14 = vector.load %arg7[%c0_11, %c0_12] : memref<32x256xf32, #tpu.memory_space<vmem>>, vector<32x256xf32>
      %c0_13 = arith.constant 0 : index
      %c0_14 = arith.constant 0 : index
      %15 = vector.load %arg5[%c0_13, %c0_14] : memref<1x256xf32, #tpu.memory_space<vmem>>, vector<1x256xf32>
      %16 = vector.broadcast %15 : vector<1x256xf32> to vector<32x256xf32>
      %17 = arith.addf %14, %16 : vector<32x256xf32>
      %cst_15 = arith.constant 0.000000e+00 : f32
      %18 = vector.broadcast %cst_15 : f32 to vector<32x256xf32>
      %19 = arith.maximumf %17, %18 : vector<32x256xf32>
      %20 = arith.truncf %19 : vector<32x256xf32> to vector<32x256xbf16>
      %c0_16 = arith.constant 0 : index
      %c0_17 = arith.constant 0 : index
      %21 = vector.load %arg6[%c0_16, %c0_17] : memref<32x256xbf16, #tpu.memory_space<vmem>>, vector<32x256xbf16>
      tpu.vector_store %arg6[%c0_16, %c0_17], %20 {strides = array<i32>} : memref<32x256xbf16, #tpu.memory_space<vmem>>, vector<32x256xbf16>,
    } else {
    }
    return
  }
  func.func @transform_0(%arg0: i32, %arg1: i32, %arg2: i32) -> (i32, i32, i32) {
    %c0_i32 = arith.constant 0 : i32
    %c0_i32_0 = arith.constant 0 : i32
    return %arg2, %arg0, %c0_i32 : i32, i32, i32
  }
  func.func @transform_1(%arg0: i32, %arg1: i32, %arg2: i32) -> (i32, i32, i32) {
    %c0_i32 = arith.constant 0 : i32
    %c0_i32_0 = arith.constant 0 : i32
    return %arg2, %c0_i32, %arg1 : i32, i32, i32
  }
  func.func @transform_2(%arg0: i32, %arg1: i32, %arg2: i32) -> (i32, i32) {
    %c0_i32 = arith.constant 0 : i32
    %c0_i32_0 = arith.constant 0 : i32
    return %c0_i32, %arg1 : i32, i32
  }
  func.func @transform_3(%arg0: i32, %arg1: i32, %arg2: i32) -> (i32, i32) {
    %c0_i32 = arith.constant 0 : i32
    return %arg0, %arg1 : i32, i32
  }
}

module attributes {stable_mosaic.version = 11 : i64} {
  func.func @_maxpool2x2_kernel(%arg0: i32, %arg1: i32, %arg2: memref<1x4x2x1024xbf16, #tpu.memory_space<vmem>>, %arg3: memref<1x2x2x512xbf16, #tpu.memory_space<vmem>>) attributes {dimension_semantics = [#tpu.dimension_semantics<parallel>, #tpu.dimension_semantics<parallel>], iteration_bounds = array<i64: 2, 1>, scalar_prefetch = 0 : i64, scratch_operands = 0 : i64, tpu.core_type = #tpu.core_type<tc>, window_params = [{transform_indices = @transform_0, window_bounds = array<i64: 1, 4, 2, 1024>}, {transform_indices = @transform_1, window_bounds = array<i64: 1, 2, 2, 512>}]} {
    %c0 = arith.constant 0 : index
    %c0_0 = arith.constant 0 : index
    %c0_1 = arith.constant 0 : index
    %c0_2 = arith.constant 0 : index
    %0 = vector.load %arg2[%c0, %c0_0, %c0_1, %c0_2] : memref<1x4x2x1024xbf16, #tpu.memory_space<vmem>>, vector<1x4x2x1024xbf16>
    %1 = vector.shape_cast %0 : vector<1x4x2x1024xbf16> to vector<4x2x1024xbf16>
    %2 = vector.shape_cast %1 : vector<4x2x1024xbf16> to vector<2x2x2x1024xbf16>
    %3 = vector.extract_strided_slice %2 {offsets = [0, 0, 0, 0], sizes = [2, 1, 2, 1024], strides = [1, 1, 1, 1]} : vector<2x2x2x1024xbf16> to vector<2x1x2x1024xbf16>
    %4 = vector.shape_cast %3 : vector<2x1x2x1024xbf16> to vector<2x2x1024xbf16>
    %5 = vector.extract_strided_slice %2 {offsets = [0, 1, 0, 0], sizes = [2, 1, 2, 1024], strides = [1, 1, 1, 1]} : vector<2x2x2x1024xbf16> to vector<2x1x2x1024xbf16>
    %6 = vector.shape_cast %5 : vector<2x1x2x1024xbf16> to vector<2x2x1024xbf16>
    %7 = arith.maximumf %4, %6 : vector<2x2x1024xbf16>
    %8 = vector.extract_strided_slice %7 {offsets = [0, 0, 0], sizes = [2, 2, 512], strides = [1, 1, 1]} : vector<2x2x1024xbf16> to vector<2x2x512xbf16>
    %9 = vector.extract_strided_slice %7 {offsets = [0, 0, 512], sizes = [2, 2, 512], strides = [1, 1, 1]} : vector<2x2x1024xbf16> to vector<2x2x512xbf16>
    %10 = arith.maximumf %8, %9 : vector<2x2x512xbf16>
    %c0_3 = arith.constant 0 : index
    %c0_4 = arith.constant 0 : index
    %c0_5 = arith.constant 0 : index
    %c0_6 = arith.constant 0 : index
    %11 = vector.load %arg3[%c0_3, %c0_4, %c0_5, %c0_6] : memref<1x2x2x512xbf16, #tpu.memory_space<vmem>>, vector<1x2x2x512xbf16>
    %12 = vector.shape_cast %11 : vector<1x2x2x512xbf16> to vector<2x2x512xbf16>
    %13 = vector.shape_cast %10 : vector<2x2x512xbf16> to vector<1x2x2x512xbf16>
    tpu.vector_store %arg3[%c0_3, %c0_4, %c0_5, %c0_6], %13 {strides = array<i32>} : memref<1x2x2x512xbf16, #tpu.memory_space<vmem>>, vector<1x2x2x512xbf16>,
    return
  }
  func.func @transform_0(%arg0: i32, %arg1: i32) -> (i32, i32, i32, i32) {
    %c0_i32 = arith.constant 0 : i32
    %c0_i32_0 = arith.constant 0 : i32
    %c0_i32_1 = arith.constant 0 : i32
    return %arg0, %arg1, %c0_i32, %c0_i32_0 : i32, i32, i32, i32
  }
  func.func @transform_1(%arg0: i32, %arg1: i32) -> (i32, i32, i32, i32) {
    %c0_i32 = arith.constant 0 : i32
    %c0_i32_0 = arith.constant 0 : i32
    %c0_i32_1 = arith.constant 0 : i32
    return %arg0, %arg1, %c0_i32, %c0_i32_0 : i32, i32, i32, i32
  }
}

module attributes {stable_mosaic.version = 11 : i64} {
  func.func @_maxpool2x2_kernel(%arg0: i32, %arg1: i32, %arg2: memref<1x2x1x1024xbf16, #tpu.memory_space<vmem>>, %arg3: memref<1x1x1x512xbf16, #tpu.memory_space<vmem>>) attributes {dimension_semantics = [#tpu.dimension_semantics<parallel>, #tpu.dimension_semantics<parallel>], iteration_bounds = array<i64: 2, 1>, scalar_prefetch = 0 : i64, scratch_operands = 0 : i64, tpu.core_type = #tpu.core_type<tc>, window_params = [{transform_indices = @transform_0, window_bounds = array<i64: 1, 2, 1, 1024>}, {transform_indices = @transform_1, window_bounds = array<i64: 1, 1, 1, 512>}]} {
    %c0 = arith.constant 0 : index
    %c0_0 = arith.constant 0 : index
    %c0_1 = arith.constant 0 : index
    %c0_2 = arith.constant 0 : index
    %0 = vector.load %arg2[%c0, %c0_0, %c0_1, %c0_2] : memref<1x2x1x1024xbf16, #tpu.memory_space<vmem>>, vector<1x2x1x1024xbf16>
    %1 = vector.shape_cast %0 : vector<1x2x1x1024xbf16> to vector<2x1x1024xbf16>
    %2 = vector.shape_cast %1 : vector<2x1x1024xbf16> to vector<1x2x1x1024xbf16>
    %3 = vector.extract_strided_slice %2 {offsets = [0, 0, 0, 0], sizes = [1, 1, 1, 1024], strides = [1, 1, 1, 1]} : vector<1x2x1x1024xbf16> to vector<1x1x1x1024xbf16>
    %4 = vector.shape_cast %3 : vector<1x1x1x1024xbf16> to vector<1x1x1024xbf16>
    %5 = vector.extract_strided_slice %2 {offsets = [0, 1, 0, 0], sizes = [1, 1, 1, 1024], strides = [1, 1, 1, 1]} : vector<1x2x1x1024xbf16> to vector<1x1x1x1024xbf16>
    %6 = vector.shape_cast %5 : vector<1x1x1x1024xbf16> to vector<1x1x1024xbf16>
    %7 = arith.maximumf %4, %6 : vector<1x1x1024xbf16>
    %8 = vector.extract_strided_slice %7 {offsets = [0, 0, 0], sizes = [1, 1, 512], strides = [1, 1, 1]} : vector<1x1x1024xbf16> to vector<1x1x512xbf16>
    %9 = vector.extract_strided_slice %7 {offsets = [0, 0, 512], sizes = [1, 1, 512], strides = [1, 1, 1]} : vector<1x1x1024xbf16> to vector<1x1x512xbf16>
    %10 = arith.maximumf %8, %9 : vector<1x1x512xbf16>
    %c0_3 = arith.constant 0 : index
    %c0_4 = arith.constant 0 : index
    %c0_5 = arith.constant 0 : index
    %c0_6 = arith.constant 0 : index
    %11 = vector.load %arg3[%c0_3, %c0_4, %c0_5, %c0_6] : memref<1x1x1x512xbf16, #tpu.memory_space<vmem>>, vector<1x1x1x512xbf16>
    %12 = vector.shape_cast %11 : vector<1x1x1x512xbf16> to vector<1x1x512xbf16>
    %13 = vector.shape_cast %10 : vector<1x1x512xbf16> to vector<1x1x1x512xbf16>
    tpu.vector_store %arg3[%c0_3, %c0_4, %c0_5, %c0_6], %13 {strides = array<i32>} : memref<1x1x1x512xbf16, #tpu.memory_space<vmem>>, vector<1x1x1x512xbf16>,
    return
  }
  func.func @transform_0(%arg0: i32, %arg1: i32) -> (i32, i32, i32, i32) {
    %c0_i32 = arith.constant 0 : i32
    %c0_i32_0 = arith.constant 0 : i32
    %c0_i32_1 = arith.constant 0 : i32
    return %arg0, %arg1, %c0_i32, %c0_i32_0 : i32, i32, i32, i32
  }
  func.func @transform_1(%arg0: i32, %arg1: i32) -> (i32, i32, i32, i32) {
    %c0_i32 = arith.constant 0 : i32
    %c0_i32_0 = arith.constant 0 : i32
    %c0_i32_1 = arith.constant 0 : i32
    return %arg0, %arg1, %c0_i32, %c0_i32_0 : i32, i32, i32, i32
  }
}

module attributes {stable_mosaic.version = 11 : i64} {
  func.func @_global_maxpool_l2norm_kernel(%arg0: i32, %arg1: memref<1x1x1x512xbf16, #tpu.memory_space<vmem>>, %arg2: memref<1x1x512xf32, #tpu.memory_space<vmem>>) attributes {dimension_semantics = [#tpu.dimension_semantics<parallel>], iteration_bounds = array<i64: 2>, scalar_prefetch = 0 : i64, scratch_operands = 0 : i64, tpu.core_type = #tpu.core_type<tc>, window_params = [{transform_indices = @transform_0, window_bounds = array<i64: 1, 1, 1, 512>}, {transform_indices = @transform_1, window_bounds = array<i64: 1, 1, 512>}]} {
    %c0 = arith.constant 0 : index
    %c0_0 = arith.constant 0 : index
    %c0_1 = arith.constant 0 : index
    %c0_2 = arith.constant 0 : index
    %0 = vector.load %arg1[%c0, %c0_0, %c0_1, %c0_2] : memref<1x1x1x512xbf16, #tpu.memory_space<vmem>>, vector<1x1x1x512xbf16>
    %1 = vector.shape_cast %0 : vector<1x1x1x512xbf16> to vector<1x1x512xbf16>
    %2 = arith.extf %1 : vector<1x1x512xbf16> to vector<1x1x512xf32>
    %cst = arith.constant dense<0xFF800000> : vector<512xf32>
    %3 = vector.multi_reduction <maximumf>, %2, %cst [0, 1] : vector<1x1x512xf32> to vector<512xf32>
    %4 = vector.shape_cast %3 : vector<512xf32> to vector<1x1x512xf32>
    %5 = vector.shape_cast %4 : vector<1x1x512xf32> to vector<1x512xf32>
    %6 = arith.mulf %5, %5 : vector<1x512xf32>
    %cst_3 = arith.constant dense<0.000000e+00> : vector<1xf32>
    %7 = vector.multi_reduction <add>, %6, %cst_3 [1] : vector<1x512xf32> to vector<1xf32>
    %8 = vector.shape_cast %7 : vector<1xf32> to vector<1x1xf32>
    %9 = math.sqrt %8 : vector<1x1xf32>
    %cst_4 = arith.constant 9.99999996E-13 : f32
    %10 = vector.broadcast %cst_4 : f32 to vector<1x1xf32>
    %11 = arith.maximumf %9, %10 : vector<1x1xf32>
    %12 = vector.broadcast %11 : vector<1x1xf32> to vector<1x512xf32>
    %13 = arith.divf %5, %12 : vector<1x512xf32>
    %c0_5 = arith.constant 0 : index
    %c0_6 = arith.constant 0 : index
    %c0_7 = arith.constant 0 : index
    %14 = vector.load %arg2[%c0_5, %c0_6, %c0_7] : memref<1x1x512xf32, #tpu.memory_space<vmem>>, vector<1x1x512xf32>
    %15 = vector.shape_cast %14 : vector<1x1x512xf32> to vector<1x512xf32>
    %16 = vector.shape_cast %13 : vector<1x512xf32> to vector<1x1x512xf32>
    tpu.vector_store %arg2[%c0_5, %c0_6, %c0_7], %16 {strides = array<i32>} : memref<1x1x512xf32, #tpu.memory_space<vmem>>, vector<1x1x512xf32>,
    return
  }
  func.func @transform_0(%arg0: i32) -> (i32, i32, i32, i32) {
    %c0_i32 = arith.constant 0 : i32
    %c0_i32_0 = arith.constant 0 : i32
    %c0_i32_1 = arith.constant 0 : i32
    %c0_i32_2 = arith.constant 0 : i32
    return %arg0, %c0_i32, %c0_i32_0, %c0_i32_1 : i32, i32, i32, i32
  }
  func.func @transform_1(%arg0: i32) -> (i32, i32, i32) {
    %c0_i32 = arith.constant 0 : i32
    %c0_i32_0 = arith.constant 0 : i32
    %c0_i32_1 = arith.constant 0 : i32
    return %arg0, %c0_i32, %c0_i32_0 : i32, i32, i32
  }
}

module attributes {stable_mosaic.version = 11 : i64} {
  func.func @_conv3x3_tap_kernel(%arg0: i32, %arg1: i32, %arg2: i32, %arg3: memref<1x8x512xbf16, #tpu.memory_space<vmem>>, %arg4: memref<1x512x256xbf16, #tpu.memory_space<vmem>>, %arg5: memref<1x256xf32, #tpu.memory_space<vmem>>, %arg6: memref<8x256xbf16, #tpu.memory_space<vmem>>, %arg7: memref<8x256xf32, #tpu.memory_space<vmem>>) attributes {dimension_semantics = [#tpu.dimension_semantics<parallel>, #tpu.dimension_semantics<parallel>, #tpu.dimension_semantics<arbitrary>], iteration_bounds = array<i64: 1, 2, 9>, scalar_prefetch = 0 : i64, scratch_operands = 1 : i64, tpu.core_type = #tpu.core_type<tc>, window_params = [{transform_indices = @transform_0, window_bounds = array<i64: 1, 8, 512>}, {transform_indices = @transform_1, window_bounds = array<i64: 1, 512, 256>}, {transform_indices = @transform_2, window_bounds = array<i64: 1, 256>}, {transform_indices = @transform_3, window_bounds = array<i64: 8, 256>}]} {
    %c0_i32 = arith.constant 0 : i32
    %0 = arith.cmpi eq, %arg2, %c0_i32 : i32
    %1 = arith.extui %0 : i1 to i32
    %c0_i32_0 = arith.constant 0 : i32
    %2 = arith.cmpi ne, %1, %c0_i32_0 : i32
    scf.if %2 {
      %cst_11 = arith.constant 0.000000e+00 : f32
      %14 = vector.broadcast %cst_11 : f32 to vector<8x256xf32>
      %c0_12 = arith.constant 0 : index
      %c0_13 = arith.constant 0 : index
      %15 = vector.load %arg7[%c0_12, %c0_13] : memref<8x256xf32, #tpu.memory_space<vmem>>, vector<8x256xf32>
      tpu.vector_store %arg7[%c0_12, %c0_13], %14 {strides = array<i32>} : memref<8x256xf32, #tpu.memory_space<vmem>>, vector<8x256xf32>,
    } else {
    }
    %c0 = arith.constant 0 : index
    %c0_1 = arith.constant 0 : index
    %3 = vector.load %arg7[%c0, %c0_1] : memref<8x256xf32, #tpu.memory_space<vmem>>, vector<8x256xf32>
    %c0_2 = arith.constant 0 : index
    %c0_3 = arith.constant 0 : index
    %c0_4 = arith.constant 0 : index
    %4 = vector.load %arg3[%c0_2, %c0_3, %c0_4] : memref<1x8x512xbf16, #tpu.memory_space<vmem>>, vector<1x8x512xbf16>
    %5 = vector.shape_cast %4 : vector<1x8x512xbf16> to vector<8x512xbf16>
    %c0_5 = arith.constant 0 : index
    %c0_6 = arith.constant 0 : index
    %c0_7 = arith.constant 0 : index
    %6 = vector.load %arg4[%c0_5, %c0_6, %c0_7] : memref<1x512x256xbf16, #tpu.memory_space<vmem>>, vector<1x512x256xbf16>
    %7 = vector.shape_cast %6 : vector<1x512x256xbf16> to vector<512x256xbf16>
    %cst = arith.constant dense<0.000000e+00> : vector<8x256xf32>
    %8 = tpu.matmul %5, %7, %cst {dimension_numbers = #tpu.dot_dimension_numbers<[1], [0], [0], [1], [0, 0, 1, 1], [], []>} : vector<8x512xbf16>, vector<512x256xbf16>, vector<8x256xf32> -> vector<8x256xf32>
    %9 = arith.addf %3, %8 : vector<8x256xf32>
    %c0_8 = arith.constant 0 : index
    %c0_9 = arith.constant 0 : index
    %10 = vector.load %arg7[%c0_8, %c0_9] : memref<8x256xf32, #tpu.memory_space<vmem>>, vector<8x256xf32>
    tpu.vector_store %arg7[%c0_8, %c0_9], %9 {strides = array<i32>} : memref<8x256xf32, #tpu.memory_space<vmem>>, vector<8x256xf32>,
    %c8_i32 = arith.constant 8 : i32
    %11 = arith.cmpi eq, %arg2, %c8_i32 : i32
    %12 = arith.extui %11 : i1 to i32
    %c0_i32_10 = arith.constant 0 : i32
    %13 = arith.cmpi ne, %12, %c0_i32_10 : i32
    scf.if %13 {
      %c0_11 = arith.constant 0 : index
      %c0_12 = arith.constant 0 : index
      %14 = vector.load %arg7[%c0_11, %c0_12] : memref<8x256xf32, #tpu.memory_space<vmem>>, vector<8x256xf32>
      %c0_13 = arith.constant 0 : index
      %c0_14 = arith.constant 0 : index
      %15 = vector.load %arg5[%c0_13, %c0_14] : memref<1x256xf32, #tpu.memory_space<vmem>>, vector<1x256xf32>
      %16 = vector.broadcast %15 : vector<1x256xf32> to vector<8x256xf32>
      %17 = arith.addf %14, %16 : vector<8x256xf32>
      %cst_15 = arith.constant 0.000000e+00 : f32
      %18 = vector.broadcast %cst_15 : f32 to vector<8x256xf32>
      %19 = arith.maximumf %17, %18 : vector<8x256xf32>
      %20 = arith.truncf %19 : vector<8x256xf32> to vector<8x256xbf16>
      %c0_16 = arith.constant 0 : index
      %c0_17 = arith.constant 0 : index
      %21 = vector.load %arg6[%c0_16, %c0_17] : memref<8x256xbf16, #tpu.memory_space<vmem>>, vector<8x256xbf16>
      tpu.vector_store %arg6[%c0_16, %c0_17], %20 {strides = array<i32>} : memref<8x256xbf16, #tpu.memory_space<vmem>>, vector<8x256xbf16>,
    } else {
    }
    return
  }
  func.func @transform_0(%arg0: i32, %arg1: i32, %arg2: i32) -> (i32, i32, i32) {
    %c0_i32 = arith.constant 0 : i32
    %c0_i32_0 = arith.constant 0 : i32
    return %arg2, %arg0, %c0_i32 : i32, i32, i32
  }
  func.func @transform_1(%arg0: i32, %arg1: i32, %arg2: i32) -> (i32, i32, i32) {
    %c0_i32 = arith.constant 0 : i32
    %c0_i32_0 = arith.constant 0 : i32
    return %arg2, %c0_i32, %arg1 : i32, i32, i32
  }
  func.func @transform_2(%arg0: i32, %arg1: i32, %arg2: i32) -> (i32, i32) {
    %c0_i32 = arith.constant 0 : i32
    %c0_i32_0 = arith.constant 0 : i32
    return %c0_i32, %arg1 : i32, i32
  }
  func.func @transform_3(%arg0: i32, %arg1: i32, %arg2: i32) -> (i32, i32) {
    %c0_i32 = arith.constant 0 : i32
    return %arg0, %arg1 : i32, i32
  }
}

</mosaic_0001>

<bundles_post_ra>
// kernel: vgg_network_forward.19
= control target key start
LH: loop header
LB: loop body
LE: loop exit
PB: predicated region body
PF: predicated region fallthrough
CT: control target
= control target key end

     0   :  { %s1245_s12 = smov 0   ;;  %s1247_s13 = smov 0   ;;  %s1397_s0 = inlined_call_operand.vmem [shape: bf16[9,2048,3], index: 0, kind: input, shape index: {}]   ;;  %s1398_s1 = inlined_call_operand.vmem [shape: bf16[9,3,128], index: 1, kind: input, shape index: {}]   ;;  %s1399_s2 = inlined_call_operand.vmem [shape: f32[1,128], index: 2, kind: input, shape index: {}]   ;;  %s1400_s3 = inlined_call_operand.vmem [shape: bf16[2048,128], index: 3, kind: output, shape index: {}]  }
   0x1   :  { %s1249_s14 = smov 0   ;;  %s1251_s15 = smov 0  }
   0x2   :  { %s1253_s16 = smov 0  }
   0x3 LB: > { %s25_s17 = sadd.s32 1, %s1213_s14  ;;  %s32_s18 = sadd.s32 1, %s1217_s15  ;;  %s1221_s16 = sphi %s1253_s16, %s13_s16   ;;  %s1217_s15 = sphi %s1251_s15, %s1404_s15   ;;  %s1213_s14 = sphi %s1249_s14, %s1403_s14   ;;  %s1209_s13 = sphi %s1247_s13, %s1402_s13   ;;  %s1205_s12 = sphi %s1245_s12, %s1401_s12  }
   0x4   : > { %p26_p0 = scmp.ge.s32.totalorder %s25_s17, 9  ;;  %p935_p1 = scmp.ge.s32.totalorder %s1221_s16, 1 }
   0x5   : > { %p187_p2 = scmp.lt.s32.totalorder %s1221_s16, 73 }
   0x6   : > { %s1406_s17 = smov (%p26_p0, %s25_s17), 0  ;;  %s1408_s18 = smov (!%p26_p0, %s32_s18), %s1217_s15 }
   0x7   : > { %p188_p3 = pnand %p935_p1, %p187_p2  ;;  %p34_p4 = scmp.ge.s32.totalorder %s1408_s18, 8 }
   0x8   : > { %s936_s19 = sshll.u32 (!%p188_p3), %s1209_s13, 5  ;;  %p229_p5 = scmp.lt.s32.totalorder (!%p188_p3), %s1205_s12, 8 }
   0x9   : > { %s1410_s18 = smov (%p34_p4, %s1408_s18), 0  ;;  %191 = sbr.rel (%p188_p3) target bundleno = 280 (0x118), region = 32 }
   0xa   : > { %p231_p6 = scmp.lt.s32.totalorder (!%p188_p3), %s936_s19, 255  ;;  %p942_p7 = scmp.ne.s32.totalorder (!%p188_p3), %s1205_s12, 0 }
   0xe   : > { %s230_s20 = scalar_select %p229_p5, %s1205_s12, 8 }
   0xf   : > { %s1412_s19 = smov (!%p231_p6, %s936_s19), 255  ;;  %261 = sbr.rel (%p942_p7) target bundleno = 53 (0x35), region = 36 }
  0x10   : > { %s937_s21 = sshll.u32 %s230_s20, 8  ;;  %s939_s22 = sshll.u32 %s230_s20, 1 }
  0x11   : > { %s234_s23 = sadd.s32 %s937_s21, %s1412_s19  ;;  %s1282_s26 = scalar_lea.vmem %s1398_s1, %s939_s22 }
  0x12   : > { %s938_s27 = sshll.u32 %s234_s23, 2  ;;  %s941_s28 = sshll.u32 %s1412_s19, 2 }
  0x13   : > { %s1287_s4 = scalar_lea.vmem %s1397_s0, %s938_s27  ;;  %s1292_s7 = scalar_lea.vmem %s1400_s3, %s941_s28 }
  0x14   : > { %v1223_v0 = vmov 0.0  }
  0x15   : > { %262 = vst [vmem:[#allocation2 + $0xb0] sm:$0xff] %v1223_v0 }
  0x16   : > { %263 = vst [vmem:[#allocation2] sm:$0xff] %v1223_v0 }
  0x17   : > { %264 = vst [vmem:[#allocation2 + $0xd8] sm:$0xff] %v1223_v0 }
  0x18   : > { %265 = vst [vmem:[#allocation2 + $0x18] sm:$0xff] %v1223_v0 }
  0x19   : > { %266 = vst [vmem:[#allocation2 + $0x50] sm:$0xff] %v1223_v0 }
  0x1a   : > { %267 = vst [vmem:[#allocation2 + $0x68] sm:$0xff] %v1223_v0 }
  0x1b   : > { %268 = vst [vmem:[#allocation2 + $0x30] sm:$0xff] %v1223_v0 }
  0x1c   : > { %269 = vst [vmem:[#allocation2 + $0x48] sm:$0xff] %v1223_v0 }
  0x1d   : > { %270 = vst [vmem:[#allocation2 + $0x80] sm:$0xff] %v1223_v0 }
  0x1e   : > { %271 = vst [vmem:[#allocation2 + $0x88] sm:$0xff] %v1223_v0 }
  0x1f   : > { %272 = vst [vmem:[#allocation2 + $0xe8] sm:$0xff] %v1223_v0 }
  0x20   : > { %273 = vst [vmem:[#allocation2 + $0xb8] sm:$0xff] %v1223_v0 }
  0x21   : > { %274 = vst [vmem:[#allocation2 + $0x60] sm:$0xff] %v1223_v0 }
  0x22   : > { %275 = vst [vmem:[#allocation2 + $0xf0] sm:$0xff] %v1223_v0 }
  0x23   : > { %276 = vst [vmem:[#allocation2 + $0x8] sm:$0xff] %v1223_v0 }
  0x24   : > { %277 = vst [vmem:[#allocation2 + $0x78] sm:$0xff] %v1223_v0 }
  0x25   : > { %278 = vst [vmem:[#allocation2 + $0x38] sm:$0xff] %v1223_v0 }
  0x26   : > { %279 = vst [vmem:[#allocation2 + $0x58] sm:$0xff] %v1223_v0 }
  0x27   : > { %280 = vst [vmem:[#allocation2 + $0x40] sm:$0xff] %v1223_v0 }
  0x28   : > { %281 = vst [vmem:[#allocation2 + $0xc8] sm:$0xff] %v1223_v0 }
  0x29   : > { %282 = vst [vmem:[#allocation2 + $0xe0] sm:$0xff] %v1223_v0 }
  0x2a   : > { %283 = vst [vmem:[#allocation2 + $0x90] sm:$0xff] %v1223_v0 }
  0x2b   : > { %284 = vst [vmem:[#allocation2 + $0x70] sm:$0xff] %v1223_v0 }
  0x2c   : > { %285 = vst [vmem:[#allocation2 + $0xc0] sm:$0xff] %v1223_v0 }
  0x2d   : > { %286 = vst [vmem:[#allocation2 + $0xa8] sm:$0xff] %v1223_v0 }
  0x2e   : > { %287 = vst [vmem:[#allocation2 + $0xd0] sm:$0xff] %v1223_v0 }
  0x2f   : > { %288 = vst [vmem:[#allocation2 + $0x10] sm:$0xff] %v1223_v0 }
  0x30   : > { %289 = vst [vmem:[#allocation2 + $0x28] sm:$0xff] %v1223_v0 }
  0x31   : > { %290 = vst [vmem:[#allocation2 + $0xa0] sm:$0xff] %v1223_v0 }
  0x32   : > { %291 = vst [vmem:[#allocation2 + $0xf8] sm:$0xff] %v1223_v0 }
  0x33   : > { %292 = vst [vmem:[#allocation2 + $0x20] sm:$0xff] %v1223_v0 }
  0x34   : > { %293 = vst [vmem:[#allocation2 + $0x98] sm:$0xff] %v1223_v0 }
  0x35 PF: > { %v358_v1 = vld [vmem:[%s1282_s26] sm:$0x3]  ;;  %vm488_vm0 = vcmask 1040384   ;;  %vm489_vm1 = vcmask 1041408   ;;  %v1224_v2 = vmov 65535   ;;  %vm439_vm2 = vcmask 23552  }
  0x36   : > { %v490_v3 = vsel %vm488_vm0, 4294967295, %v1224_v2  ;;  %v1026_v6 = vld [vmem:[%s1287_s4] sm:$0xff]  ;;  %v1027_v10 = vld [vmem:[%s1287_s4 + $0x8] sm:$0xff]  ;;  %v1028_v14 = vld [vmem:[%s1287_s4 + $0x10] sm:$0xff]  ;;  %p1023_p8 = scmp.ne.s32.totalorder %s1205_s12, 8 }
  0x37   : > { %v491_v4 = vsel %vm489_vm1, %v490_v3, 0  ;;  %v1030_v7 = vld [vmem:[%s1287_s4 + $0x20] sm:$0xff]  ;;  %v1031_v11 = vld [vmem:[%s1287_s4 + $0x28] sm:$0xff]  ;;  %v1032_v15 = vld [vmem:[%s1287_s4 + $0x30] sm:$0xff] }
  0x38   : > { %v493_v5 = vand.u32 %v491_v4, %v358_v1  ;;  %v1034_v8 = vld [vmem:[%s1287_s4 + $0x40] sm:$0xff]  ;;  %v1035_v12 = vld [vmem:[%s1287_s4 + $0x48] sm:$0xff]  ;;  %v1036_v16 = vld [vmem:[%s1287_s4 + $0x50] sm:$0xff] }
  0x39   : > { %v1038_v9 = vld [vmem:[%s1287_s4 + $0x60] sm:$0xff]  ;;  %v1039_v13 = vld [vmem:[%s1287_s4 + $0x68] sm:$0xff]  ;;  %v1040_v17 = vld [vmem:[%s1287_s4 + $0x70] sm:$0xff] }
  0x3a   : > { %502 = vmatpush.bf16.msra.mxu0 %v493_v5  ;;  %1137 = vmatpush.bf16.msra.mxu1 %v493_v5  ;;  %v1029_v18 = vld [vmem:[%s1287_s4 + $0x18] sm:$0xff]  ;;  %v294_v22 = vld [vmem:[#allocation2 + $0xb0] sm:$0xff]  ;;  %v302_v23 = vld [vmem:[#allocation2 + $0x80] sm:$0xff] }
  0x3b   : > { %1138 = vmatpush.bf16.msra.mxu2 %v493_v5  ;;  %1139 = vmatpush.bf16.msra.mxu3 %v493_v5  ;;  %v1033_v19 = vld [vmem:[%s1287_s4 + $0x38] sm:$0xff]  ;;  %v318_v29 = vld [vmem:[#allocation2 + $0xa8] sm:$0xff]  ;;  %v295_v30 = vld [vmem:[#allocation2] sm:$0xff] }
  0x3c   : > { %v1037_v20 = vld [vmem:[%s1287_s4 + $0x58] sm:$0xff]  ;;  %v303_v31 = vld [vmem:[#allocation2 + $0x88] sm:$0xff]  ;;  %v319_v41 = vld [vmem:[#allocation2 + $0xd0] sm:$0xff] }
  0x3d   : > { %1007 = vmatmul.msk.bf16.vlgmr.msra.gmra.mxu0 %vm439_vm2, %v1026_v6  ;;  %1011 = vmatmul.msk.bf16.vlgmr.msra.gmra.mxu1 %vm439_vm2, %v1030_v7  ;;  %v1041_v21 = vld [vmem:[%s1287_s4 + $0x78] sm:$0xff]  ;;  %v304_v43 = vld [vmem:[#allocation2 + $0xe8] sm:$0xff]  ;;  %v312_v52 = vld [vmem:[#allocation2 + $0x40] sm:$0xff] }
  0x3e   : > { %1015 = vmatmul.msk.bf16.vlgmr.msra.gmra.mxu2 %vm439_vm2, %v1034_v8  ;;  %1019 = vmatmul.msk.bf16.vlgmr.msra.gmra.mxu3 %vm439_vm2, %v1038_v9  ;;  %v310_v28 = vld [vmem:[#allocation2 + $0x38] sm:$0xff]  ;;  %v320_v53 = vld [vmem:[#allocation2 + $0x10] sm:$0xff]  ;;  %v313_v0 = vld [vmem:[#allocation2 + $0xc8] sm:$0xff] }
  0x3f   : > { %v311_v40 = vld [vmem:[#allocation2 + $0x58] sm:$0xff]  ;;  %v321_v1 = vld [vmem:[#allocation2 + $0x28] sm:$0xff]  ;;  %v298_v2 = vld [vmem:[#allocation2 + $0x50] sm:$0xff] }
  0x40   : > { %v296_v42 = vld [vmem:[#allocation2 + $0xd8] sm:$0xff]  ;;  %v306_v3 = vld [vmem:[#allocation2 + $0x60] sm:$0xff] }
  0x41   : > { %v297_v54 = vld [vmem:[#allocation2 + $0x18] sm:$0xff] }
  0x42   : > { %v305_v55 = vld [vmem:[#allocation2 + $0xb8] sm:$0xff] }
  0x4d   : > { %1008 = vmatmul.msk.bf16.gmra.mxu0 %vm439_vm2, %v1027_v10  ;;  %1012 = vmatmul.msk.bf16.gmra.mxu1 %vm439_vm2, %v1031_v11 }
  0x4e   : > { %1016 = vmatmul.msk.bf16.gmra.mxu2 %vm439_vm2, %v1035_v12  ;;  %1020 = vmatmul.msk.bf16.gmra.mxu3 %vm439_vm2, %v1039_v13  ;;  %v314_v12 = vld [vmem:[#allocation2 + $0xe0] sm:$0xff] }
  0x4f   : > { %v322_v13 = vld [vmem:[#allocation2 + $0xa0] sm:$0xff] }
  0x5d   : > { %1009 = vmatmul.msk.bf16.gmra.mxu0 %vm439_vm2, %v1028_v14  ;;  %1013 = vmatmul.msk.bf16.gmra.mxu1 %vm439_vm2, %v1032_v15  ;;  %v299_v14 = vld [vmem:[#allocation2 + $0x68] sm:$0xff]  ;;  %v307_v15 = vld [vmem:[#allocation2 + $0xf0] sm:$0xff] }
  0x5e   : > { %1017 = vmatmul.msk.bf16.gmra.mxu2 %vm439_vm2, %v1036_v16  ;;  %1021 = vmatmul.msk.bf16.gmra.mxu3 %vm439_vm2, %v1040_v17 }
  0x6d   : > { %1010 = vmatmul.msk.bf16.gmra.mxu0 %vm439_vm2, %v1029_v18  ;;  %1014 = vmatmul.msk.bf16.gmra.mxu1 %vm439_vm2, %v1033_v19 }
  0x6e   : > { %1018 = vmatmul.msk.bf16.gmra.mxu2 %vm439_vm2, %v1037_v20  ;;  %1022 = vmatmul.msk.bf16.gmra.mxu3 %vm439_vm2, %v1041_v21 }
  0xba   : > { %v504_v24 = vpop.f32.mrf.mxu0  ;;  %v524_v25 = vpop.f32.mrf.mxu1 }
  0xbb   : > { %v584_v26 = vadd.f32 %v504_v24, %v294_v22  ;;  %v592_v27 = vadd.f32 %v524_v25, %v302_v23  ;;  %v315_v24 = vld [vmem:[#allocation2 + $0x90] sm:$0xff]  ;;  %v323_v25 = vld [vmem:[#allocation2 + $0xf8] sm:$0xff] }
  0xbd   : > { %616 = vst [vmem:[#allocation2 + $0xb0] sm:$0xff] %v584_v26  ;;  %v300_v26 = vld [vmem:[#allocation2 + $0x30] sm:$0xff] }
  0xbe   : > { %624 = vst [vmem:[#allocation2 + $0x80] sm:$0xff] %v592_v27  ;;  %v308_v27 = vld [vmem:[#allocation2 + $0x8] sm:$0xff] }
  0xc1   : > { %v544_v32 = vpop.f32.mrf.mxu2  ;;  %v564_v33 = vpop.f32.mrf.mxu3 }
  0xc2   : > { %v600_v34 = vadd.f32 %v544_v32, %v310_v28  ;;  %v608_v35 = vadd.f32 %v564_v33, %v318_v29  ;;  %v506_v36 = vpop.f32.mrf.mxu0  ;;  %v526_v37 = vpop.f32.mrf.mxu1 }
  0xc3   : > { %v585_v38 = vadd.f32 %v506_v36, %v295_v30  ;;  %v593_v39 = vadd.f32 %v526_v37, %v303_v31  ;;  %v316_v36 = vld [vmem:[#allocation2 + $0x70] sm:$0xff]  ;;  %v324_v37 = vld [vmem:[#allocation2 + $0x20] sm:$0xff] }
  0xc4   : > { %632 = vst [vmem:[#allocation2 + $0x38] sm:$0xff] %v600_v34 }
  0xc5   : > { %640 = vst [vmem:[#allocation2 + $0xa8] sm:$0xff] %v608_v35 }
  0xc6   : > { %617 = vst [vmem:[#allocation2] sm:$0xff] %v585_v38  ;;  %v301_v38 = vld [vmem:[#allocation2 + $0x48] sm:$0xff] }
  0xc7   : > { %625 = vst [vmem:[#allocation2 + $0x88] sm:$0xff] %v593_v39  ;;  %v309_v39 = vld [vmem:[#allocation2 + $0x78] sm:$0xff] }
  0xc9   : > { %v546_v44 = vpop.f32.mrf.mxu2  ;;  %v566_v45 = vpop.f32.mrf.mxu3 }
  0xca   : > { %v601_v46 = vadd.f32 %v546_v44, %v311_v40  ;;  %v609_v47 = vadd.f32 %v566_v45, %v319_v41  ;;  %v509_v48 = vpop.f32.mrf.mxu0  ;;  %v529_v49 = vpop.f32.mrf.mxu1 }
  0xcb   : > { %v586_v50 = vadd.f32 %v509_v48, %v296_v42  ;;  %v594_v51 = vadd.f32 %v529_v49, %v304_v43  ;;  %v317_v48 = vld [vmem:[#allocation2 + $0xc0] sm:$0xff]  ;;  %v325_v49 = vld [vmem:[#allocation2 + $0x98] sm:$0xff] }
  0xcc   : > { %633 = vst [vmem:[#allocation2 + $0x58] sm:$0xff] %v601_v46 }
  0xcd   : > { %641 = vst [vmem:[#allocation2 + $0xd0] sm:$0xff] %v609_v47 }
  0xce   : > { %618 = vst [vmem:[#allocation2 + $0xd8] sm:$0xff] %v586_v50 }
  0xcf   : > { %626 = vst [vmem:[#allocation2 + $0xe8] sm:$0xff] %v594_v51 }
  0xd1   : > { %v549_v56 = vpop.f32.mrf.mxu2  ;;  %v569_v57 = vpop.f32.mrf.mxu3 }
  0xd2   : > { %v602_v58 = vadd.f32 %v549_v56, %v312_v52  ;;  %v610_v59 = vadd.f32 %v569_v57, %v320_v53  ;;  %v511_v60 = vpop.f32.mrf.mxu0  ;;  %v531_v61 = vpop.f32.mrf.mxu1 }
  0xd3   : > { %v587_v62 = vadd.f32 %v511_v60, %v297_v54  ;;  %v595_v63 = vadd.f32 %v531_v61, %v305_v55 }
  0xd4   : > { %634 = vst [vmem:[#allocation2 + $0x40] sm:$0xff] %v602_v58 }
  0xd5   : > { %642 = vst [vmem:[#allocation2 + $0x10] sm:$0xff] %v610_v59 }
  0xd6   : > { %619 = vst [vmem:[#allocation2 + $0x18] sm:$0xff] %v587_v62 }
  0xd7   : > { %627 = vst [vmem:[#allocation2 + $0xb8] sm:$0xff] %v595_v63 }
  0xd9   : > { %v551_v4 = vpop.f32.mrf.mxu2  ;;  %v571_v5 = vpop.f32.mrf.mxu3 }
  0xda   : > { %v603_v6 = vadd.f32 %v551_v4, %v313_v0  ;;  %v611_v7 = vadd.f32 %v571_v5, %v321_v1  ;;  %v514_v8 = vpop.f32.mrf.mxu0  ;;  %v534_v9 = vpop.f32.mrf.mxu1 }
  0xdb   : > { %v588_v10 = vadd.f32 %v514_v8, %v298_v2  ;;  %v596_v11 = vadd.f32 %v534_v9, %v306_v3 }
  0xdc   : > { %635 = vst [vmem:[#allocation2 + $0xc8] sm:$0xff] %v603_v6 }
  0xdd   : > { %643 = vst [vmem:[#allocation2 + $0x28] sm:$0xff] %v611_v7 }
  0xde   : > { %620 = vst [vmem:[#allocation2 + $0x50] sm:$0xff] %v588_v10 }
  0xdf   : > { %628 = vst [vmem:[#allocation2 + $0x60] sm:$0xff] %v596_v11 }
  0xe1   : > { %v554_v16 = vpop.f32.mrf.mxu2  ;;  %v574_v17 = vpop.f32.mrf.mxu3 }
  0xe2   : > { %v604_v18 = vadd.f32 %v554_v16, %v314_v12  ;;  %v612_v19 = vadd.f32 %v574_v17, %v322_v13  ;;  %v516_v20 = vpop.f32.mrf.mxu0  ;;  %v536_v21 = vpop.f32.mrf.mxu1 }
  0xe3   : > { %v589_v22 = vadd.f32 %v516_v20, %v299_v14  ;;  %v597_v23 = vadd.f32 %v536_v21, %v307_v15 }
  0xe4   : > { %636 = vst [vmem:[#allocation2 + $0xe0] sm:$0xff] %v604_v18 }
  0xe5   : > { %644 = vst [vmem:[#allocation2 + $0xa0] sm:$0xff] %v612_v19 }
  0xe6   : > { %621 = vst [vmem:[#allocation2 + $0x68] sm:$0xff] %v589_v22 }
  0xe7   : > { %629 = vst [vmem:[#allocation2 + $0xf0] sm:$0xff] %v597_v23 }
  0xe9   : > { %v556_v28 = vpop.f32.mrf.mxu2  ;;  %v576_v29 = vpop.f32.mrf.mxu3 }
  0xea   : > { %v605_v30 = vadd.f32 %v556_v28, %v315_v24  ;;  %v613_v31 = vadd.f32 %v576_v29, %v323_v25  ;;  %v519_v32 = vpop.f32.mrf.mxu0  ;;  %v539_v33 = vpop.f32.mrf.mxu1 }
  0xeb   : > { %v590_v34 = vadd.f32 %v519_v32, %v300_v26  ;;  %v598_v35 = vadd.f32 %v539_v33, %v308_v27 }
  0xec   : > { %637 = vst [vmem:[#allocation2 + $0x90] sm:$0xff] %v605_v30 }
  0xed   : > { %645 = vst [vmem:[#allocation2 + $0xf8] sm:$0xff] %v613_v31 }
  0xee   : > { %622 = vst [vmem:[#allocation2 + $0x30] sm:$0xff] %v590_v34 }
  0xef   : > { %630 = vst [vmem:[#allocation2 + $0x8] sm:$0xff] %v598_v35 }
  0xf1   : > { %v559_v40 = vpop.f32.mrf.mxu2  ;;  %v579_v41 = vpop.f32.mrf.mxu3 }
  0xf2   : > { %v606_v42 = vadd.f32 %v559_v40, %v316_v36  ;;  %v614_v43 = vadd.f32 %v579_v41, %v324_v37  ;;  %v521_v44 = vpop.f32.mrf.mxu0  ;;  %v541_v45 = vpop.f32.mrf.mxu1 }
  0xf3   : > { %v591_v46 = vadd.f32 %v521_v44, %v301_v38  ;;  %v599_v47 = vadd.f32 %v541_v45, %v309_v39 }
  0xf4   : > { %638 = vst [vmem:[#allocation2 + $0x70] sm:$0xff] %v606_v42 }
  0xf5   : > { %646 = vst [vmem:[#allocation2 + $0x20] sm:$0xff] %v614_v43 }
  0xf6   : > { %623 = vst [vmem:[#allocation2 + $0x48] sm:$0xff] %v591_v46 }
  0xf7   : > { %631 = vst [vmem:[#allocation2 + $0x78] sm:$0xff] %v599_v47 }
  0xf9   : > { %v561_v50 = vpop.f32.mrf.mxu2  ;;  %v581_v51 = vpop.f32.mrf.mxu3  ;;  %651 = sbr.rel (%p1023_p8) target bundleno = 280 (0x118), region = 40 }
  0xfa   : > { %v607_v52 = vadd.f32 %v561_v50, %v317_v48  ;;  %v615_v53 = vadd.f32 %v581_v51, %v325_v49 }
  0xfc   : > { %639 = vst [vmem:[#allocation2 + $0xc0] sm:$0xff] %v607_v52 }
  0xfd   : > { %647 = vst [vmem:[#allocation2 + $0x98] sm:$0xff] %v615_v53 }
  0xfe   : > { %v652_v54 = vld [vmem:[#allocation2 + $0xb0] sm:$0xff]  ;;  %v653_v55 = vld [vmem:[#allocation2] sm:$0xff]  ;;  %v654_v57 = vld [vmem:[#allocation2 + $0xd8] sm:$0xff] }
  0xff   : > { %v1332_v56 = vld [vmem:[%s1399_s2] ss:$0 sm:$0xff]  ;;  %v655_v58 = vld [vmem:[#allocation2 + $0x18] sm:$0xff]  ;;  %v656_v59 = vld [vmem:[#allocation2 + $0x50] sm:$0xff] }
 0x100   : > { %v657_v60 = vld [vmem:[#allocation2 + $0x68] sm:$0xff]  ;;  %v658_v61 = vld [vmem:[#allocation2 + $0x30] sm:$0xff]  ;;  %v688_v62 = vadd.f32 %v1332_v56, %v652_v54  ;;  %v689_v63 = vadd.f32 %v1332_v56, %v653_v55  ;;  %v690_v0 = vadd.f32 %v1332_v56, %v654_v57  ;;  %v691_v1 = vadd.f32 %v1332_v56, %v655_v58  ;;  %v660_v7 = vld [vmem:[#allocation2 + $0x80] sm:$0xff] }
 0x101   : > { %v659_v2 = vld [vmem:[#allocation2 + $0x48] sm:$0xff]  ;;  %v692_v3 = vadd.f32 %v1332_v56, %v656_v59  ;;  %v693_v4 = vadd.f32 %v1332_v56, %v657_v60  ;;  %v694_v5 = vadd.f32 %v1332_v56, %v658_v61  ;;  %v663_v14 = vld [vmem:[#allocation2 + $0xb8] sm:$0xff]  ;;  %v664_v19 = vld [vmem:[#allocation2 + $0x60] sm:$0xff]  ;;  %v696_v23 = vadd.f32 %v1332_v56, %v660_v7 }
 0x102   : > { %v695_v6 = vadd.f32 %v1332_v56, %v659_v2  ;;  %v661_v8 = vld [vmem:[#allocation2 + $0x88] sm:$0xff]  ;;  %v720_v9 = vmax.f32 %v688_v62, 0.0  ;;  %v721_v10 = vmax.f32 %v689_v63, 0.0  ;;  %v722_v11 = vmax.f32 %v690_v0, 0.0  ;;  %v665_v20 = vld [vmem:[#allocation2 + $0xf0] sm:$0xff]  ;;  %v667_v26 = vld [vmem:[#allocation2 + $0x78] sm:$0xff] }
 0x103   : > { %v723_v12 = vmax.f32 %v691_v1, 0.0  ;;  %v662_v13 = vld [vmem:[#allocation2 + $0xe8] sm:$0xff]  ;;  %v724_v15 = vmax.f32 %v692_v3, 0.0  ;;  %v725_v16 = vmax.f32 %v693_v4, 0.0  ;;  %v726_v17 = vmax.f32 %v694_v5, 0.0  ;;  %v668_v31 = vld [vmem:[#allocation2 + $0x38] sm:$0xff] }
 0x104   : > { %v727_v18 = vmax.f32 %v695_v6, 0.0  ;;  %v1045_v21 = vpack.c.bf16 %v721_v10, %v720_v9  ;;  %v697_v24 = vadd.f32 %v1332_v56, %v661_v8  ;;  %v666_v25 = vld [vmem:[#allocation2 + $0x8] sm:$0xff]  ;;  %v698_v29 = vadd.f32 %v1332_v56, %v662_v13  ;;  %v669_v36 = vld [vmem:[#allocation2 + $0x58] sm:$0xff]  ;;  %v670_v41 = vld [vmem:[#allocation2 + $0x40] sm:$0xff] }
 0x105   : > { %v1050_v22 = vpack.c.bf16 %v723_v12, %v722_v11  ;;  %v1055_v27 = vpack.c.bf16 %v725_v16, %v724_v15  ;;  %v699_v30 = vadd.f32 %v1332_v56, %v663_v14  ;;  %v728_v32 = vmax.f32 %v696_v23, 0.0  ;;  %v671_v42 = vld [vmem:[#allocation2 + $0xc8] sm:$0xff]  ;;  %v672_v47 = vld [vmem:[#allocation2 + $0xe0] sm:$0xff]  ;;  %v673_v48 = vld [vmem:[#allocation2 + $0x90] sm:$0xff] }
 0x106   : > { %v1060_v28 = vpack.c.bf16 %v727_v18, %v726_v17  ;;  %1046 = vst [vmem:[%s1292_s7] sm:$0xff] %v1045_v21   ;;  %v729_v33 = vmax.f32 %v697_v24, 0.0  ;;  %v700_v34 = vadd.f32 %v1332_v56, %v664_v19  ;;  %v701_v35 = vadd.f32 %v1332_v56, %v665_v20  ;;  %v674_v53 = vld [vmem:[#allocation2 + $0x70] sm:$0xff]  ;;  %v675_v54 = vld [vmem:[#allocation2 + $0xc0] sm:$0xff]  ;;  %v676_v60 = vld [vmem:[#allocation2 + $0xa8] sm:$0xff] }
 0x107   : > { %1122 = vst [vmem:[%s1292_s7 + $0x8] sm:$0xff] %v1050_v22   ;;  %v730_v37 = vmax.f32 %v698_v29, 0.0  ;;  %v731_v38 = vmax.f32 %v699_v30, 0.0  ;;  %v702_v39 = vadd.f32 %v1332_v56, %v666_v25  ;;  %v703_v40 = vadd.f32 %v1332_v56, %v667_v26  ;;  %v677_v1 = vld [vmem:[#allocation2 + $0xd0] sm:$0xff]  ;;  %v679_v7 = vld [vmem:[#allocation2 + $0x28] sm:$0xff]  ;;  %v680_v12 = vld [vmem:[#allocation2 + $0xa0] sm:$0xff] }
 0x108   : > { %1123 = vst [vmem:[%s1292_s7 + $0x10] sm:$0xff] %v1055_v27   ;;  %v1065_v43 = vpack.c.bf16 %v729_v33, %v728_v32  ;;  %v732_v44 = vmax.f32 %v700_v34, 0.0  ;;  %v733_v45 = vmax.f32 %v701_v35, 0.0  ;;  %v704_v46 = vadd.f32 %v1332_v56, %v668_v31  ;;  %v678_v6 = vld [vmem:[#allocation2 + $0x10] sm:$0xff]  ;;  %v681_v13 = vld [vmem:[#allocation2 + $0xf8] sm:$0xff]  ;;  %v682_v18 = vld [vmem:[#allocation2 + $0x20] sm:$0xff] }
 0x109   : > { %1124 = vst [vmem:[%s1292_s7 + $0x18] sm:$0xff] %v1060_v28   ;;  %v1070_v49 = vpack.c.bf16 %v731_v38, %v730_v37  ;;  %v734_v50 = vmax.f32 %v702_v39, 0.0  ;;  %v735_v51 = vmax.f32 %v703_v40, 0.0  ;;  %v705_v52 = vadd.f32 %v1332_v56, %v669_v36  ;;  %v683_v19 = vld [vmem:[#allocation2 + $0x98] sm:$0xff] }
 0x10a   : > { %1125 = vst [vmem:[%s1292_s7 + $0x20] sm:$0xff] %v1065_v43   ;;  %v1075_v55 = vpack.c.bf16 %v733_v45, %v732_v44  ;;  %v736_v57 = vmax.f32 %v704_v46, 0.0  ;;  %v706_v58 = vadd.f32 %v1332_v56, %v670_v41  ;;  %v707_v59 = vadd.f32 %v1332_v56, %v671_v42 }
 0x10b   : > { %1126 = vst [vmem:[%s1292_s7 + $0x28] sm:$0xff] %v1070_v49   ;;  %v1080_v61 = vpack.c.bf16 %v735_v51, %v734_v50  ;;  %v737_v62 = vmax.f32 %v705_v52, 0.0  ;;  %v708_v63 = vadd.f32 %v1332_v56, %v672_v47  ;;  %v709_v0 = vadd.f32 %v1332_v56, %v673_v48 }
 0x10c   : > { %1127 = vst [vmem:[%s1292_s7 + $0x30] sm:$0xff] %v1075_v55   ;;  %v738_v2 = vmax.f32 %v706_v58, 0.0  ;;  %v739_v3 = vmax.f32 %v707_v59, 0.0  ;;  %v710_v4 = vadd.f32 %v1332_v56, %v674_v53  ;;  %v711_v5 = vadd.f32 %v1332_v56, %v675_v54 }
 0x10d   : > { %1128 = vst [vmem:[%s1292_s7 + $0x38] sm:$0xff] %v1080_v61   ;;  %v1085_v8 = vpack.c.bf16 %v737_v62, %v736_v57  ;;  %v740_v9 = vmax.f32 %v708_v63, 0.0  ;;  %v741_v10 = vmax.f32 %v709_v0, 0.0  ;;  %v712_v11 = vadd.f32 %v1332_v56, %v676_v60 }
 0x10e   : > { %v1090_v14 = vpack.c.bf16 %v739_v3, %v738_v2  ;;  %v742_v15 = vmax.f32 %v710_v4, 0.0  ;;  %v743_v16 = vmax.f32 %v711_v5, 0.0  ;;  %v713_v17 = vadd.f32 %v1332_v56, %v677_v1 }
 0x10f   : > { %1129 = vst [vmem:[%s1292_s7 + $0x40] sm:$0xff] %v1085_v8   ;;  %v1095_v20 = vpack.c.bf16 %v741_v10, %v740_v9  ;;  %v744_v21 = vmax.f32 %v712_v11, 0.0  ;;  %v714_v22 = vadd.f32 %v1332_v56, %v678_v6  ;;  %v715_v23 = vadd.f32 %v1332_v56, %v679_v7 }
 0x110   : > { %1130 = vst [vmem:[%s1292_s7 + $0x48] sm:$0xff] %v1090_v14   ;;  %v1100_v24 = vpack.c.bf16 %v743_v16, %v742_v15  ;;  %v745_v25 = vmax.f32 %v713_v17, 0.0  ;;  %v716_v26 = vadd.f32 %v1332_v56, %v680_v12  ;;  %v717_v27 = vadd.f32 %v1332_v56, %v681_v13 }
 0x111   : > { %1131 = vst [vmem:[%s1292_s7 + $0x50] sm:$0xff] %v1095_v20   ;;  %v746_v28 = vmax.f32 %v714_v22, 0.0  ;;  %v747_v29 = vmax.f32 %v715_v23, 0.0  ;;  %v718_v30 = vadd.f32 %v1332_v56, %v682_v18  ;;  %v719_v31 = vadd.f32 %v1332_v56, %v683_v19 }
 0x112   : > { %1132 = vst [vmem:[%s1292_s7 + $0x58] sm:$0xff] %v1100_v24   ;;  %v1105_v32 = vpack.c.bf16 %v745_v25, %v744_v21  ;;  %v748_v33 = vmax.f32 %v716_v26, 0.0  ;;  %v749_v34 = vmax.f32 %v717_v27, 0.0 }
 0x113   : > { %v1110_v35 = vpack.c.bf16 %v747_v29, %v746_v28  ;;  %v750_v36 = vmax.f32 %v718_v30, 0.0  ;;  %v751_v37 = vmax.f32 %v719_v31, 0.0 }
 0x114   : > { %1133 = vst [vmem:[%s1292_s7 + $0x60] sm:$0xff] %v1105_v32   ;;  %v1115_v38 = vpack.c.bf16 %v749_v34, %v748_v33 }
 0x115   : > { %1134 = vst [vmem:[%s1292_s7 + $0x68] sm:$0xff] %v1110_v35   ;;  %v1120_v39 = vpack.c.bf16 %v751_v37, %v750_v36 }
 0x116   : > { %1135 = vst [vmem:[%s1292_s7 + $0x70] sm:$0xff] %v1115_v38  }
 0x117   : > { %1136 = vst [vmem:[%s1292_s7 + $0x78] sm:$0xff] %v1120_v39  }
 0x118 PF: > { %s13_s16 = sadd.s32 1, %s1221_s16   ;;  %s1401_s12 = smov %s1213_s14 }
 0x119   : > { %p10_p9 = scmp.ge.s32.totalorder %s13_s16, 74   ;;  %s1402_s13 = smov %s1217_s15 }
 0x11a   : > { %s1403_s14 = smov %s1406_s17  ;;  %s1404_s15 = smov %s1410_s18 }
 0x11b   :  { %12 = sbr.rel (!%p10_p9) target bundleno = 3 (0x3), region = 76 }

// kernel: vgg_network_forward.21
= control target key start
LH: loop header
LB: loop body
LE: loop exit
PB: predicated region body
PF: predicated region fallthrough
CT: control target
= control target key end

     0   :  { %s967_s6 = smov 0   ;;  %s969_s7 = smov 0   ;;  %s1088_s0 = inlined_call_operand.vmem [shape: bf16[2,32,16,256], index: 0, kind: input, shape index: {}]   ;;  %s1089_s1 = inlined_call_operand.vmem [shape: bf16[2,16,16,128], index: 1, kind: output, shape index: {}]  }
   0x1   :  { %s971_s8 = smov 0  }
   0x2 LB: > { %s23_s9 = sadd.s32 1, %s951_s7  ;;  %p805_p0 = scmp.ge.s32.totalorder %s955_s8, 1  ;;  %s955_s8 = sphi %s971_s8, %s11_s8   ;;  %s951_s7 = sphi %s969_s7, %s1091_s7   ;;  %s947_s6 = sphi %s967_s6, %s1090_s6  }
   0x3   : > { %p25_p1 = scmp.ge.s32.totalorder %s23_s9, 2  ;;  %p109_p2 = scmp.lt.s32.totalorder %s955_s8, 3 }
   0x5   : > { %s1093_s9 = smov (%p25_p1, %s23_s9), 0  ;;  %p110_p3 = pnand %p805_p0, %p109_p2 }
   0x6   : > { %p140_p4 = scmp.lt.s32.totalorder (!%p110_p3), %s947_s6, 1 }
   0x7   : > { %113 = sbr.rel (%p110_p3) target bundleno = 109 (0x6d), region = 24 }
   0xc   : > { %s1095_s6 = smov (!%p140_p4, %s947_s6), 1 }
   0xd   : > { %s812_s10 = sshll.u32 %s1095_s6, 9  ;;  %s813_s14 = sshll.u32 %s1095_s6, 7 }
   0xe   : > { %s991_s13 = scalar_lea.vmem %s1088_s0, %s812_s10  ;;  %s1011_s17 = scalar_lea.vmem %s1089_s1, %s813_s14 }
   0xf   : > { %v161_v0 = vld [vmem:[%s991_s13] sm:$0xff]  ;;  %v162_v1 = vld [vmem:[%s991_s13 + $0x8] sm:$0xff]  ;;  %v163_v2 = vld [vmem:[%s991_s13 + $0x10] sm:$0xff] }
  0x10   : > { %v164_v3 = vld [vmem:[%s991_s13 + $0x18] sm:$0xff]  ;;  %v225_v4 = vunpack.c.l.bf16 %v161_v0  ;;  %v226_v5 = vunpack.c.h.bf16 %v161_v0  ;;  %v227_v6 = vunpack.c.l.bf16 %v162_v1  ;;  %v228_v7 = vunpack.c.h.bf16 %v162_v1  ;;  %v165_v8 = vld [vmem:[%s991_s13 + $0x20] sm:$0xff]  ;;  %v166_v9 = vld [vmem:[%s991_s13 + $0x28] sm:$0xff] }
  0x11   : > { %v289_v10 = vunpack.c.l.bf16 %v163_v2  ;;  %v290_v11 = vunpack.c.h.bf16 %v163_v2  ;;  %v291_v12 = vunpack.c.l.bf16 %v164_v3  ;;  %v292_v13 = vunpack.c.h.bf16 %v164_v3  ;;  %v167_v14 = vld [vmem:[%s991_s13 + $0x30] sm:$0xff]  ;;  %v168_v15 = vld [vmem:[%s991_s13 + $0x38] sm:$0xff]  ;;  %v169_v20 = vld [vmem:[%s991_s13 + $0x40] sm:$0xff] }
  0x12   : > { %v229_v16 = vunpack.c.l.bf16 %v165_v8  ;;  %v230_v17 = vunpack.c.h.bf16 %v165_v8  ;;  %v231_v18 = vunpack.c.l.bf16 %v166_v9  ;;  %v232_v19 = vunpack.c.h.bf16 %v166_v9  ;;  %v170_v29 = vld [vmem:[%s991_s13 + $0x48] sm:$0xff]  ;;  %v171_v32 = vld [vmem:[%s991_s13 + $0x50] sm:$0xff]  ;;  %v172_v39 = vld [vmem:[%s991_s13 + $0x58] sm:$0xff] }
  0x13   : > { %v353_v21 = vmax.f32 %v225_v4, %v289_v10  ;;  %v354_v22 = vmax.f32 %v226_v5, %v290_v11  ;;  %v355_v23 = vmax.f32 %v227_v6, %v291_v12  ;;  %v356_v24 = vmax.f32 %v228_v7, %v292_v13  ;;  %v173_v52 = vld [vmem:[%s991_s13 + $0x60] sm:$0xff]  ;;  %v174_v57 = vld [vmem:[%s991_s13 + $0x68] sm:$0xff]  ;;  %v175_v1 = vld [vmem:[%s991_s13 + $0x70] sm:$0xff] }
  0x14   : > { %v293_v25 = vunpack.c.l.bf16 %v167_v14  ;;  %v294_v26 = vunpack.c.h.bf16 %v167_v14  ;;  %v295_v27 = vunpack.c.l.bf16 %v168_v15  ;;  %v296_v28 = vunpack.c.h.bf16 %v168_v15  ;;  %v176_v2 = vld [vmem:[%s991_s13 + $0x78] sm:$0xff]  ;;  %v177_v8 = vld [vmem:[%s991_s13 + $0x80] sm:$0xff] }
  0x15   : > { %v417_v30 = vpack.c.bf16 %v354_v22, %v353_v21  ;;  %v418_v31 = vpack.c.bf16 %v356_v24, %v355_v23  ;;  %v233_v33 = vunpack.c.l.bf16 %v169_v20  ;;  %v234_v34 = vunpack.c.h.bf16 %v169_v20 }
  0x16   : > { %v357_v35 = vmax.f32 %v229_v16, %v293_v25  ;;  %v358_v36 = vmax.f32 %v230_v17, %v294_v26  ;;  %v359_v37 = vmax.f32 %v231_v18, %v295_v27  ;;  %v360_v38 = vmax.f32 %v232_v19, %v296_v28  ;;  %v178_v17 = vld [vmem:[%s991_s13 + $0x88] sm:$0xff]  ;;  %v180_v27 = vld [vmem:[%s991_s13 + $0x98] sm:$0xff] }
  0x17   : > { %v513_v40 = vrot.slane %v417_v30, 4  ;;  %v514_v41 = vrot.slane %v418_v31, 4  ;;  %v235_v42 = vunpack.c.l.bf16 %v170_v29  ;;  %v236_v43 = vunpack.c.h.bf16 %v170_v29 }
  0x18   : > { %v419_v44 = vpack.c.bf16 %v358_v36, %v357_v35  ;;  %v420_v45 = vpack.c.bf16 %v360_v38, %v359_v37  ;;  %v297_v46 = vunpack.c.l.bf16 %v171_v32  ;;  %v298_v47 = vunpack.c.h.bf16 %v171_v32  ;;  %v181_v32 = vld [vmem:[%s991_s13 + $0xa0] sm:$0xff] }
  0x19   : > { %v577_v48 = vunpack.c.l.bf16 %v513_v40  ;;  %v578_v49 = vunpack.c.l.bf16 %v514_v41  ;;  %v299_v50 = vunpack.c.l.bf16 %v172_v39  ;;  %v300_v51 = vunpack.c.h.bf16 %v172_v39  ;;  %v182_v41 = vld [vmem:[%s991_s13 + $0xa8] sm:$0xff] }
  0x1a   : > { %v515_v53 = vrot.slane %v419_v44, 4  ;;  %v516_v54 = vrot.slane %v420_v45, 4  ;;  %v361_v55 = vmax.f32 %v233_v33, %v297_v46  ;;  %v362_v56 = vmax.f32 %v234_v34, %v298_v47  ;;  %v183_v45 = vld [vmem:[%s991_s13 + $0xb0] sm:$0xff] }
  0x1b   : > { %v609_v58 = vmax.f32 %v353_v21, %v577_v48  ;;  %v610_v59 = vmax.f32 %v355_v23, %v578_v49  ;;  %v363_v60 = vmax.f32 %v235_v42, %v299_v50  ;;  %v364_v61 = vmax.f32 %v236_v43, %v300_v51  ;;  %v179_v21 = vld [vmem:[%s991_s13 + $0x90] sm:$0xff]  ;;  %v184_v51 = vld [vmem:[%s991_s13 + $0xb8] sm:$0xff] }
  0x1c   : > { %v579_v62 = vunpack.c.l.bf16 %v515_v53  ;;  %v580_v63 = vunpack.c.l.bf16 %v516_v54  ;;  %v421_v0 = vpack.c.bf16 %v362_v56, %v361_v55  ;;  %v237_v3 = vunpack.c.l.bf16 %v173_v52 }
  0x1d   : > { %v817_v4 = vpack.c.bf16 %v610_v59, %v609_v58  ;;  %v422_v5 = vpack.c.bf16 %v364_v61, %v363_v60  ;;  %v238_v6 = vunpack.c.h.bf16 %v173_v52  ;;  %v239_v7 = vunpack.c.l.bf16 %v174_v57 }
  0x1e   : > { %v611_v9 = vmax.f32 %v357_v35, %v579_v62  ;;  %v612_v10 = vmax.f32 %v359_v37, %v580_v63  ;;  %v517_v11 = vrot.slane %v421_v0, 4  ;;  %v240_v12 = vunpack.c.h.bf16 %v174_v57 }
  0x1f   : > { %818 = vst [vmem:[%s1011_s17] sm:$0xff] %v817_v4   ;;  %v518_v13 = vrot.slane %v422_v5, 4  ;;  %v301_v14 = vunpack.c.l.bf16 %v175_v1  ;;  %v302_v15 = vunpack.c.h.bf16 %v175_v1  ;;  %v303_v16 = vunpack.c.l.bf16 %v176_v2  ;;  %v186_v5 = vld [vmem:[%s991_s13 + $0xc8] sm:$0xff] }
  0x20   : > { %v822_v18 = vpack.c.bf16 %v612_v10, %v611_v9  ;;  %v581_v19 = vunpack.c.l.bf16 %v517_v11  ;;  %v304_v20 = vunpack.c.h.bf16 %v176_v2  ;;  %v241_v22 = vunpack.c.l.bf16 %v177_v8  ;;  %v187_v9 = vld [vmem:[%s991_s13 + $0xd0] sm:$0xff] }
  0x21   : > { %v582_v23 = vunpack.c.l.bf16 %v518_v13  ;;  %v365_v24 = vmax.f32 %v237_v3, %v301_v14  ;;  %v366_v25 = vmax.f32 %v238_v6, %v302_v15  ;;  %v367_v26 = vmax.f32 %v239_v7, %v303_v16  ;;  %v188_v14 = vld [vmem:[%s991_s13 + $0xd8] sm:$0xff] }
  0x22   : > { %894 = vst [vmem:[%s1011_s17 + $0x8] sm:$0xff] %v822_v18   ;;  %v613_v28 = vmax.f32 %v361_v55, %v581_v19  ;;  %v368_v29 = vmax.f32 %v240_v12, %v304_v20  ;;  %v242_v30 = vunpack.c.h.bf16 %v177_v8  ;;  %v243_v31 = vunpack.c.l.bf16 %v178_v17  ;;  %v189_v20 = vld [vmem:[%s991_s13 + $0xe0] sm:$0xff] }
  0x23   : > { %v614_v33 = vmax.f32 %v363_v60, %v582_v23  ;;  %v423_v34 = vpack.c.bf16 %v366_v25, %v365_v24  ;;  %v244_v35 = vunpack.c.h.bf16 %v178_v17  ;;  %v305_v36 = vunpack.c.l.bf16 %v179_v21  ;;  %v185_v60 = vld [vmem:[%s991_s13 + $0xc0] sm:$0xff] }
  0x24   : > { %v424_v37 = vpack.c.bf16 %v368_v29, %v367_v26  ;;  %v306_v38 = vunpack.c.h.bf16 %v179_v21  ;;  %v307_v39 = vunpack.c.l.bf16 %v180_v27  ;;  %v308_v40 = vunpack.c.h.bf16 %v180_v27  ;;  %v190_v29 = vld [vmem:[%s991_s13 + $0xe8] sm:$0xff] }
  0x25   : > { %v827_v42 = vpack.c.bf16 %v614_v33, %v613_v28  ;;  %v519_v43 = vrot.slane %v423_v34, 4  ;;  %v369_v44 = vmax.f32 %v241_v22, %v305_v36  ;;  %v245_v46 = vunpack.c.l.bf16 %v181_v32  ;;  %v191_v33 = vld [vmem:[%s991_s13 + $0xf0] sm:$0xff] }
  0x26   : > { %v520_v47 = vrot.slane %v424_v37, 4  ;;  %v370_v48 = vmax.f32 %v242_v30, %v306_v38  ;;  %v371_v49 = vmax.f32 %v243_v31, %v307_v39  ;;  %v372_v50 = vmax.f32 %v244_v35, %v308_v40  ;;  %v192_v39 = vld [vmem:[%s991_s13 + $0xf8] sm:$0xff] }
  0x27   : > { %895 = vst [vmem:[%s1011_s17 + $0x10] sm:$0xff] %v827_v42   ;;  %v583_v52 = vunpack.c.l.bf16 %v519_v43  ;;  %v246_v53 = vunpack.c.h.bf16 %v181_v32  ;;  %v247_v54 = vunpack.c.l.bf16 %v182_v41  ;;  %v248_v55 = vunpack.c.h.bf16 %v182_v41 }
  0x28   : > { %v584_v56 = vunpack.c.l.bf16 %v520_v47  ;;  %v425_v57 = vpack.c.bf16 %v370_v48, %v369_v44  ;;  %v426_v58 = vpack.c.bf16 %v372_v50, %v371_v49  ;;  %v309_v59 = vunpack.c.l.bf16 %v183_v45 }
  0x29   : > { %v615_v61 = vmax.f32 %v365_v24, %v583_v52  ;;  %v310_v62 = vunpack.c.h.bf16 %v183_v45  ;;  %v311_v63 = vunpack.c.l.bf16 %v184_v51  ;;  %v312_v0 = vunpack.c.h.bf16 %v184_v51 }
  0x2a   : > { %v616_v1 = vmax.f32 %v367_v26, %v584_v56  ;;  %v521_v2 = vrot.slane %v425_v57, 4  ;;  %v522_v3 = vrot.slane %v426_v58, 4  ;;  %v373_v4 = vmax.f32 %v245_v46, %v309_v59  ;;  %v195_v57 = vld [vmem:[%s991_s13 + $0x110] sm:$0xff] }
  0x2b   : > { %v374_v6 = vmax.f32 %v246_v53, %v310_v62  ;;  %v375_v7 = vmax.f32 %v247_v54, %v311_v63  ;;  %v376_v8 = vmax.f32 %v248_v55, %v312_v0  ;;  %v249_v10 = vunpack.c.l.bf16 %v185_v60  ;;  %v194_v53 = vld [vmem:[%s991_s13 + $0x108] sm:$0xff]  ;;  %v196_v63 = vld [vmem:[%s991_s13 + $0x118] sm:$0xff] }
  0x2c   : > { %v832_v11 = vpack.c.bf16 %v616_v1, %v615_v61  ;;  %v585_v12 = vunpack.c.l.bf16 %v521_v2  ;;  %v586_v13 = vunpack.c.l.bf16 %v522_v3  ;;  %v250_v15 = vunpack.c.h.bf16 %v185_v60 }
  0x2d   : > { %v427_v16 = vpack.c.bf16 %v374_v6, %v373_v4  ;;  %v428_v17 = vpack.c.bf16 %v376_v8, %v375_v7  ;;  %v251_v18 = vunpack.c.l.bf16 %v186_v5  ;;  %v252_v19 = vunpack.c.h.bf16 %v186_v5 }
  0x2e   : > { %896 = vst [vmem:[%s1011_s17 + $0x18] sm:$0xff] %v832_v11   ;;  %v617_v21 = vmax.f32 %v369_v44, %v585_v12  ;;  %v618_v22 = vmax.f32 %v371_v49, %v586_v13  ;;  %v313_v23 = vunpack.c.l.bf16 %v187_v9  ;;  %v314_v24 = vunpack.c.h.bf16 %v187_v9  ;;  %v193_v44 = vld [vmem:[%s991_s13 + $0x100] sm:$0xff]  ;;  %v198_v13 = vld [vmem:[%s991_s13 + $0x128] sm:$0xff] }
  0x2f   : > { %v523_v25 = vrot.slane %v427_v16, 4  ;;  %v524_v26 = vrot.slane %v428_v17, 4  ;;  %v315_v27 = vunpack.c.l.bf16 %v188_v14  ;;  %v316_v28 = vunpack.c.h.bf16 %v188_v14  ;;  %v199_v17 = vld [vmem:[%s991_s13 + $0x130] sm:$0xff] }
  0x30   : > { %v837_v30 = vpack.c.bf16 %v618_v22, %v617_v21  ;;  %v377_v31 = vmax.f32 %v249_v10, %v313_v23  ;;  %v378_v32 = vmax.f32 %v250_v15, %v314_v24  ;;  %v253_v34 = vunpack.c.l.bf16 %v189_v20  ;;  %v200_v23 = vld [vmem:[%s991_s13 + $0x138] sm:$0xff] }
  0x31   : > { %v587_v35 = vunpack.c.l.bf16 %v523_v25  ;;  %v588_v36 = vunpack.c.l.bf16 %v524_v26  ;;  %v379_v37 = vmax.f32 %v251_v18, %v315_v27  ;;  %v380_v38 = vmax.f32 %v252_v19, %v316_v28 }
  0x32   : > { %897 = vst [vmem:[%s1011_s17 + $0x20] sm:$0xff] %v837_v30   ;;  %v429_v40 = vpack.c.bf16 %v378_v32, %v377_v31  ;;  %v254_v41 = vunpack.c.h.bf16 %v189_v20  ;;  %v255_v42 = vunpack.c.l.bf16 %v190_v29  ;;  %v256_v43 = vunpack.c.h.bf16 %v190_v29  ;;  %v201_v32 = vld [vmem:[%s991_s13 + $0x140] sm:$0xff] }
  0x33   : > { %v619_v45 = vmax.f32 %v373_v4, %v587_v35  ;;  %v620_v46 = vmax.f32 %v375_v7, %v588_v36  ;;  %v430_v47 = vpack.c.bf16 %v380_v38, %v379_v37  ;;  %v317_v48 = vunpack.c.l.bf16 %v191_v33  ;;  %v197_v4 = vld [vmem:[%s991_s13 + $0x120] sm:$0xff] }
  0x34   : > { %v525_v49 = vrot.slane %v429_v40, 4  ;;  %v318_v50 = vunpack.c.h.bf16 %v191_v33  ;;  %v319_v51 = vunpack.c.l.bf16 %v192_v39  ;;  %v320_v52 = vunpack.c.h.bf16 %v192_v39 }
  0x35   : > { %v842_v54 = vpack.c.bf16 %v620_v46, %v619_v45  ;;  %v526_v55 = vrot.slane %v430_v47, 4  ;;  %v381_v56 = vmax.f32 %v253_v34, %v317_v48  ;;  %v257_v58 = vunpack.c.l.bf16 %v193_v44 }
  0x36   : > { %v589_v59 = vunpack.c.l.bf16 %v525_v49  ;;  %v382_v60 = vmax.f32 %v254_v41, %v318_v50  ;;  %v383_v61 = vmax.f32 %v255_v42, %v319_v51  ;;  %v384_v62 = vmax.f32 %v256_v43, %v320_v52  ;;  %v202_v41 = vld [vmem:[%s991_s13 + $0x148] sm:$0xff]  ;;  %v203_v42 = vld [vmem:[%s991_s13 + $0x150] sm:$0xff]  ;;  %v204_v50 = vld [vmem:[%s991_s13 + $0x158] sm:$0xff] }
  0x37   : > { %898 = vst [vmem:[%s1011_s17 + $0x28] sm:$0xff] %v842_v54   ;;  %v590_v0 = vunpack.c.l.bf16 %v526_v55  ;;  %v258_v1 = vunpack.c.h.bf16 %v193_v44  ;;  %v259_v2 = vunpack.c.l.bf16 %v194_v53  ;;  %v260_v3 = vunpack.c.h.bf16 %v194_v53 }
  0x38   : > { %v621_v5 = vmax.f32 %v377_v31, %v589_v59  ;;  %v431_v6 = vpack.c.bf16 %v382_v60, %v381_v56  ;;  %v432_v7 = vpack.c.bf16 %v384_v62, %v383_v61  ;;  %v321_v8 = vunpack.c.l.bf16 %v195_v57 }
  0x39   : > { %v622_v9 = vmax.f32 %v379_v37, %v590_v0  ;;  %v322_v10 = vunpack.c.h.bf16 %v195_v57  ;;  %v323_v11 = vunpack.c.l.bf16 %v196_v63  ;;  %v324_v12 = vunpack.c.h.bf16 %v196_v63 }
  0x3a   : > { %v527_v14 = vrot.slane %v431_v6, 4  ;;  %v528_v15 = vrot.slane %v432_v7, 4  ;;  %v385_v16 = vmax.f32 %v257_v58, %v321_v8  ;;  %v261_v18 = vunpack.c.l.bf16 %v197_v4 }
  0x3b   : > { %v847_v19 = vpack.c.bf16 %v622_v9, %v621_v5  ;;  %v386_v20 = vmax.f32 %v258_v1, %v322_v10  ;;  %v387_v21 = vmax.f32 %v259_v2, %v323_v11  ;;  %v388_v22 = vmax.f32 %v260_v3, %v324_v12  ;;  %v206_v1 = vld [vmem:[%s991_s13 + $0x168] sm:$0xff]  ;;  %v207_v5 = vld [vmem:[%s991_s13 + $0x170] sm:$0xff]  ;;  %v208_v10 = vld [vmem:[%s991_s13 + $0x178] sm:$0xff] }
  0x3c   : > { %v591_v24 = vunpack.c.l.bf16 %v527_v14  ;;  %v592_v25 = vunpack.c.l.bf16 %v528_v15  ;;  %v262_v26 = vunpack.c.h.bf16 %v197_v4  ;;  %v263_v27 = vunpack.c.l.bf16 %v198_v13 }
  0x3d   : > { %899 = vst [vmem:[%s1011_s17 + $0x30] sm:$0xff] %v847_v19   ;;  %v433_v28 = vpack.c.bf16 %v386_v20, %v385_v16  ;;  %v434_v29 = vpack.c.bf16 %v388_v22, %v387_v21  ;;  %v264_v30 = vunpack.c.h.bf16 %v198_v13  ;;  %v325_v31 = vunpack.c.l.bf16 %v199_v17 }
  0x3e   : > { %v623_v33 = vmax.f32 %v381_v56, %v591_v24  ;;  %v624_v34 = vmax.f32 %v383_v61, %v592_v25  ;;  %v326_v35 = vunpack.c.h.bf16 %v199_v17  ;;  %v327_v36 = vunpack.c.l.bf16 %v200_v23  ;;  %v205_v56 = vld [vmem:[%s991_s13 + $0x160] sm:$0xff]  ;;  %v210_v25 = vld [vmem:[%s991_s13 + $0x188] sm:$0xff] }
  0x3f   : > { %v529_v37 = vrot.slane %v433_v28, 4  ;;  %v530_v38 = vrot.slane %v434_v29, 4  ;;  %v328_v39 = vunpack.c.h.bf16 %v200_v23  ;;  %v389_v40 = vmax.f32 %v261_v18, %v325_v31  ;;  %v211_v29 = vld [vmem:[%s991_s13 + $0x190] sm:$0xff] }
  0x40   : > { %v852_v43 = vpack.c.bf16 %v624_v34, %v623_v33  ;;  %v390_v44 = vmax.f32 %v262_v26, %v326_v35  ;;  %v391_v45 = vmax.f32 %v263_v27, %v327_v36  ;;  %v265_v46 = vunpack.c.l.bf16 %v201_v32  ;;  %v212_v35 = vld [vmem:[%s991_s13 + $0x198] sm:$0xff] }
  0x41   : > { %v593_v47 = vunpack.c.l.bf16 %v529_v37  ;;  %v594_v48 = vunpack.c.l.bf16 %v530_v38  ;;  %v392_v49 = vmax.f32 %v264_v30, %v328_v39  ;;  %v266_v51 = vunpack.c.h.bf16 %v201_v32 }
  0x42   : > { %900 = vst [vmem:[%s1011_s17 + $0x38] sm:$0xff] %v852_v43   ;;  %v435_v52 = vpack.c.bf16 %v390_v44, %v389_v40  ;;  %v267_v53 = vunpack.c.l.bf16 %v202_v41  ;;  %v268_v54 = vunpack.c.h.bf16 %v202_v41  ;;  %v329_v55 = vunpack.c.l.bf16 %v203_v42 }
  0x43   : > { %v625_v57 = vmax.f32 %v385_v16, %v593_v47  ;;  %v626_v58 = vmax.f32 %v387_v21, %v594_v48  ;;  %v436_v59 = vpack.c.bf16 %v392_v49, %v391_v45  ;;  %v330_v60 = vunpack.c.h.bf16 %v203_v42  ;;  %v209_v16 = vld [vmem:[%s991_s13 + $0x180] sm:$0xff]  ;;  %v214_v49 = vld [vmem:[%s991_s13 + $0x1a8] sm:$0xff] }
  0x44   : > { %v531_v61 = vrot.slane %v435_v52, 4  ;;  %v331_v62 = vunpack.c.l.bf16 %v204_v50  ;;  %v332_v63 = vunpack.c.h.bf16 %v204_v50  ;;  %v393_v0 = vmax.f32 %v265_v46, %v329_v55 }
  0x45   : > { %v857_v2 = vpack.c.bf16 %v626_v58, %v625_v57  ;;  %v532_v3 = vrot.slane %v436_v59, 4  ;;  %v394_v4 = vmax.f32 %v266_v51, %v330_v60  ;;  %v269_v6 = vunpack.c.l.bf16 %v205_v56  ;;  %v216_v59 = vld [vmem:[%s991_s13 + $0x1b8] sm:$0xff] }
  0x46   : > { %v595_v7 = vunpack.c.l.bf16 %v531_v61  ;;  %v395_v8 = vmax.f32 %v267_v53, %v331_v62  ;;  %v396_v9 = vmax.f32 %v268_v54, %v332_v63  ;;  %v270_v11 = vunpack.c.h.bf16 %v205_v56  ;;  %v215_v53 = vld [vmem:[%s991_s13 + $0x1b0] sm:$0xff] }
  0x47   : > { %901 = vst [vmem:[%s1011_s17 + $0x40] sm:$0xff] %v857_v2   ;;  %v596_v12 = vunpack.c.l.bf16 %v532_v3  ;;  %v437_v13 = vpack.c.bf16 %v394_v4, %v393_v0  ;;  %v271_v14 = vunpack.c.l.bf16 %v206_v1  ;;  %v272_v15 = vunpack.c.h.bf16 %v206_v1 }
  0x48   : > { %v627_v17 = vmax.f32 %v389_v40, %v595_v7  ;;  %v438_v18 = vpack.c.bf16 %v396_v9, %v395_v8  ;;  %v333_v19 = vunpack.c.l.bf16 %v207_v5  ;;  %v334_v20 = vunpack.c.h.bf16 %v207_v5  ;;  %v213_v40 = vld [vmem:[%s991_s13 + $0x1a0] sm:$0xff]  ;;  %v218_v9 = vld [vmem:[%s991_s13 + $0x1c8] sm:$0xff] }
  0x49   : > { %v628_v21 = vmax.f32 %v391_v45, %v596_v12  ;;  %v533_v22 = vrot.slane %v437_v13, 4  ;;  %v335_v23 = vunpack.c.l.bf16 %v208_v10  ;;  %v336_v24 = vunpack.c.h.bf16 %v208_v10  ;;  %v219_v13 = vld [vmem:[%s991_s13 + $0x1d0] sm:$0xff] }
  0x4a   : > { %v534_v26 = vrot.slane %v438_v18, 4  ;;  %v397_v27 = vmax.f32 %v269_v6, %v333_v19  ;;  %v398_v28 = vmax.f32 %v270_v11, %v334_v20  ;;  %v273_v30 = vunpack.c.l.bf16 %v209_v16  ;;  %v220_v19 = vld [vmem:[%s991_s13 + $0x1d8] sm:$0xff] }
  0x4b   : > { %v862_v31 = vpack.c.bf16 %v628_v21, %v627_v17  ;;  %v597_v32 = vunpack.c.l.bf16 %v533_v22  ;;  %v399_v33 = vmax.f32 %v271_v14, %v335_v23  ;;  %v400_v34 = vmax.f32 %v272_v15, %v336_v24 }
  0x4c   : > { %v598_v36 = vunpack.c.l.bf16 %v534_v26  ;;  %v439_v37 = vpack.c.bf16 %v398_v28, %v397_v27  ;;  %v274_v38 = vunpack.c.h.bf16 %v209_v16  ;;  %v275_v39 = vunpack.c.l.bf16 %v210_v25  ;;  %v221_v28 = vld [vmem:[%s991_s13 + $0x1e0] sm:$0xff] }
  0x4d   : > { %902 = vst [vmem:[%s1011_s17 + $0x48] sm:$0xff] %v862_v31   ;;  %v629_v41 = vmax.f32 %v393_v0, %v597_v32  ;;  %v440_v42 = vpack.c.bf16 %v400_v34, %v399_v33  ;;  %v276_v43 = vunpack.c.h.bf16 %v210_v25  ;;  %v337_v44 = vunpack.c.l.bf16 %v211_v29  ;;  %v217_v0 = vld [vmem:[%s991_s13 + $0x1c0] sm:$0xff] }
  0x4e   : > { %v630_v45 = vmax.f32 %v395_v8, %v598_v36  ;;  %v535_v46 = vrot.slane %v439_v37, 4  ;;  %v338_v47 = vunpack.c.h.bf16 %v211_v29  ;;  %v339_v48 = vunpack.c.l.bf16 %v212_v35  ;;  %v222_v37 = vld [vmem:[%s991_s13 + $0x1e8] sm:$0xff] }
  0x4f   : > { %v536_v50 = vrot.slane %v440_v42, 4  ;;  %v340_v51 = vunpack.c.h.bf16 %v212_v35  ;;  %v401_v52 = vmax.f32 %v273_v30, %v337_v44  ;;  %v277_v54 = vunpack.c.l.bf16 %v213_v40 }
  0x50   : > { %v867_v55 = vpack.c.bf16 %v630_v45, %v629_v41  ;;  %v599_v56 = vunpack.c.l.bf16 %v535_v46  ;;  %v402_v57 = vmax.f32 %v274_v38, %v338_v47  ;;  %v403_v58 = vmax.f32 %v275_v39, %v339_v48  ;;  %v223_v41 = vld [vmem:[%s991_s13 + $0x1f0] sm:$0xff]  ;;  %v224_v46 = vld [vmem:[%s991_s13 + $0x1f8] sm:$0xff] }
  0x51   : > { %v600_v60 = vunpack.c.l.bf16 %v536_v50  ;;  %v404_v61 = vmax.f32 %v276_v43, %v340_v51  ;;  %v278_v62 = vunpack.c.h.bf16 %v213_v40  ;;  %v279_v63 = vunpack.c.l.bf16 %v214_v49 }
  0x52   : > { %903 = vst [vmem:[%s1011_s17 + $0x50] sm:$0xff] %v867_v55   ;;  %v631_v1 = vmax.f32 %v397_v27, %v599_v56  ;;  %v441_v2 = vpack.c.bf16 %v402_v57, %v401_v52  ;;  %v280_v3 = vunpack.c.h.bf16 %v214_v49  ;;  %v341_v4 = vunpack.c.l.bf16 %v215_v53 }
  0x53   : > { %v632_v5 = vmax.f32 %v399_v33, %v600_v60  ;;  %v442_v6 = vpack.c.bf16 %v404_v61, %v403_v58  ;;  %v342_v7 = vunpack.c.h.bf16 %v215_v53  ;;  %v343_v8 = vunpack.c.l.bf16 %v216_v59 }
  0x54   : > { %v537_v10 = vrot.slane %v441_v2, 4  ;;  %v344_v11 = vunpack.c.h.bf16 %v216_v59  ;;  %v405_v12 = vmax.f32 %v277_v54, %v341_v4  ;;  %v281_v14 = vunpack.c.l.bf16 %v217_v0 }
  0x55   : > { %v872_v15 = vpack.c.bf16 %v632_v5, %v631_v1  ;;  %v538_v16 = vrot.slane %v442_v6, 4  ;;  %v406_v17 = vmax.f32 %v278_v62, %v342_v7  ;;  %v407_v18 = vmax.f32 %v279_v63, %v343_v8 }
  0x56   : > { %v601_v20 = vunpack.c.l.bf16 %v537_v10  ;;  %v408_v21 = vmax.f32 %v280_v3, %v344_v11  ;;  %v282_v22 = vunpack.c.h.bf16 %v217_v0  ;;  %v283_v23 = vunpack.c.l.bf16 %v218_v9 }
  0x57   : > { %904 = vst [vmem:[%s1011_s17 + $0x58] sm:$0xff] %v872_v15   ;;  %v602_v24 = vunpack.c.l.bf16 %v538_v16  ;;  %v443_v25 = vpack.c.bf16 %v406_v17, %v405_v12  ;;  %v284_v26 = vunpack.c.h.bf16 %v218_v9  ;;  %v345_v27 = vunpack.c.l.bf16 %v219_v13 }
  0x58   : > { %v633_v29 = vmax.f32 %v401_v52, %v601_v20  ;;  %v444_v30 = vpack.c.bf16 %v408_v21, %v407_v18  ;;  %v346_v31 = vunpack.c.h.bf16 %v219_v13  ;;  %v347_v32 = vunpack.c.l.bf16 %v220_v19 }
  0x59   : > { %v634_v33 = vmax.f32 %v403_v58, %v602_v24  ;;  %v539_v34 = vrot.slane %v443_v25, 4  ;;  %v348_v35 = vunpack.c.h.bf16 %v220_v19  ;;  %v409_v36 = vmax.f32 %v281_v14, %v345_v27 }
  0x5a   : > { %v540_v38 = vrot.slane %v444_v30, 4  ;;  %v410_v39 = vmax.f32 %v282_v22, %v346_v31  ;;  %v411_v40 = vmax.f32 %v283_v23, %v347_v32  ;;  %v285_v42 = vunpack.c.l.bf16 %v221_v28 }
  0x5b   : > { %v877_v43 = vpack.c.bf16 %v634_v33, %v633_v29  ;;  %v603_v44 = vunpack.c.l.bf16 %v539_v34  ;;  %v412_v45 = vmax.f32 %v284_v26, %v348_v35  ;;  %v286_v47 = vunpack.c.h.bf16 %v221_v28 }
  0x5c   : > { %v604_v48 = vunpack.c.l.bf16 %v540_v38  ;;  %v445_v49 = vpack.c.bf16 %v410_v39, %v409_v36  ;;  %v287_v50 = vunpack.c.l.bf16 %v222_v37  ;;  %v288_v51 = vunpack.c.h.bf16 %v222_v37 }
  0x5d   : > { %905 = vst [vmem:[%s1011_s17 + $0x60] sm:$0xff] %v877_v43   ;;  %v635_v52 = vmax.f32 %v405_v12, %v603_v44  ;;  %v446_v53 = vpack.c.bf16 %v412_v45, %v411_v40  ;;  %v349_v54 = vunpack.c.l.bf16 %v223_v41  ;;  %v350_v55 = vunpack.c.h.bf16 %v223_v41 }
  0x5e   : > { %v636_v56 = vmax.f32 %v407_v18, %v604_v48  ;;  %v541_v57 = vrot.slane %v445_v49, 4  ;;  %v351_v58 = vunpack.c.l.bf16 %v224_v46  ;;  %v352_v59 = vunpack.c.h.bf16 %v224_v46 }
  0x5f   : > { %v542_v60 = vrot.slane %v446_v53, 4  ;;  %v413_v61 = vmax.f32 %v285_v42, %v349_v54  ;;  %v414_v62 = vmax.f32 %v286_v47, %v350_v55 }
  0x60   : > { %v882_v63 = vpack.c.bf16 %v636_v56, %v635_v52  ;;  %v605_v0 = vunpack.c.l.bf16 %v541_v57  ;;  %v415_v1 = vmax.f32 %v287_v50, %v351_v58  ;;  %v416_v2 = vmax.f32 %v288_v51, %v352_v59 }
  0x61   : > { %v606_v3 = vunpack.c.l.bf16 %v542_v60  ;;  %v447_v4 = vpack.c.bf16 %v414_v62, %v413_v61 }
  0x62   : > { %906 = vst [vmem:[%s1011_s17 + $0x68] sm:$0xff] %v882_v63   ;;  %v637_v5 = vmax.f32 %v409_v36, %v605_v0  ;;  %v448_v6 = vpack.c.bf16 %v416_v2, %v415_v1 }
  0x63   : > { %v638_v7 = vmax.f32 %v411_v40, %v606_v3  ;;  %v543_v8 = vrot.slane %v447_v4, 4 }
  0x64   : > { %v544_v9 = vrot.slane %v448_v6, 4 }
  0x65   : > { %v887_v10 = vpack.c.bf16 %v638_v7, %v637_v5  ;;  %v607_v11 = vunpack.c.l.bf16 %v543_v8 }
  0x66   : > { %v608_v12 = vunpack.c.l.bf16 %v544_v9 }
  0x67   : > { %907 = vst [vmem:[%s1011_s17 + $0x70] sm:$0xff] %v887_v10   ;;  %v639_v13 = vmax.f32 %v413_v61, %v607_v11 }
  0x68   : > { %v640_v14 = vmax.f32 %v415_v1, %v608_v12 }
  0x6a   : > { %v892_v15 = vpack.c.bf16 %v640_v14, %v639_v13 }
  0x6c   : > { %908 = vst [vmem:[%s1011_s17 + $0x78] sm:$0xff] %v892_v15  }
  0x6d PF: > { %s11_s8 = sadd.s32 1, %s955_s8   ;;  %s1090_s6 = smov %s951_s7 }
  0x6e   : > { %p8_p5 = scmp.ge.s32.totalorder %s11_s8, 4   ;;  %s1091_s7 = smov %s1093_s9 }
  0x70   :  { %10 = sbr.rel (!%p8_p5) target bundleno = 2 (0x2), region = 54 }

// kernel: vgg_network_forward.20
= control target key start
LH: loop header
LB: loop body
LE: loop exit
PB: predicated region body
PF: predicated region fallthrough
CT: control target
= control target key end

     0   :  { %s1318_s12 = smov 0   ;;  %s1320_s13 = smov 0   ;;  %s1461_s0 = inlined_call_operand.vmem [shape: bf16[9,2048,128], index: 0, kind: input, shape index: {}]   ;;  %s1462_s1 = inlined_call_operand.vmem [shape: bf16[9,128,128], index: 1, kind: input, shape index: {}]   ;;  %s1463_s2 = inlined_call_operand.vmem [shape: f32[1,128], index: 2, kind: input, shape index: {}]   ;;  %s1464_s3 = inlined_call_operand.vmem [shape: bf16[2048,128], index: 3, kind: output, shape index: {}]  }
   0x1   :  { %s1322_s14 = smov 0   ;;  %s1324_s15 = smov 0  }
   0x2   :  { %s1326_s16 = smov 0  }
   0x3 LB: > { %s25_s17 = sadd.s32 1, %s1287_s14  ;;  %s32_s18 = sadd.s32 1, %s1291_s15  ;;  %s1295_s16 = sphi %s1326_s16, %s13_s16   ;;  %s1291_s15 = sphi %s1324_s15, %s1468_s15   ;;  %s1287_s14 = sphi %s1322_s14, %s1467_s14   ;;  %s1283_s13 = sphi %s1320_s13, %s1466_s13   ;;  %s1279_s12 = sphi %s1318_s12, %s1465_s12  }
   0x4   : > { %p26_p0 = scmp.ge.s32.totalorder %s25_s17, 9  ;;  %p963_p1 = scmp.ge.s32.totalorder %s1295_s16, 1 }
   0x5   : > { %p188_p2 = scmp.lt.s32.totalorder %s1295_s16, 73 }
   0x6   : > { %s1470_s17 = smov (%p26_p0, %s25_s17), 0  ;;  %s1472_s18 = smov (!%p26_p0, %s32_s18), %s1291_s15 }
   0x7   : > { %p189_p3 = pnand %p963_p1, %p188_p2  ;;  %p34_p4 = scmp.ge.s32.totalorder %s1472_s18, 8 }
   0x8   : > { %s964_s19 = sshll.u32 (!%p189_p3), %s1283_s13, 5  ;;  %p231_p5 = scmp.lt.s32.totalorder (!%p189_p3), %s1279_s12, 8 }
   0x9   : > { %s1474_s18 = smov (%p34_p4, %s1472_s18), 0  ;;  %192 = sbr.rel (%p189_p3) target bundleno = 304 (0x130), region = 32 }
   0xa   : > { %p233_p6 = scmp.lt.s32.totalorder (!%p189_p3), %s964_s19, 255  ;;  %p971_p7 = scmp.ne.s32.totalorder (!%p189_p3), %s1279_s12, 0 }
   0xe   : > { %s232_s20 = scalar_select %p231_p5, %s1279_s12, 8 }
   0xf   : > { %s1476_s19 = smov (!%p233_p6, %s964_s19), 255  ;;  %263 = sbr.rel (%p971_p7) target bundleno = 53 (0x35), region = 36 }
  0x10   : > { %s965_s21 = sshll.u32 %s232_s20, 8  ;;  %s1071_s22 = sshll.u32 %s232_s20, 6 }
  0x11   : > { %s236_s23 = sadd.s32 %s965_s21, %s1476_s19  ;;  %s1355_s26 = scalar_lea.vmem %s1462_s1, %s1071_s22 }
  0x12   : > { %s966_s27 = sshll.u32 %s236_s23, 2  ;;  %s970_s28 = sshll.u32 %s1476_s19, 2 }
  0x13   : > { %s1360_s4 = scalar_lea.vmem %s1461_s0, %s966_s27  ;;  %s1365_s7 = scalar_lea.vmem %s1464_s3, %s970_s28 }
  0x14   : > { %v1297_v0 = vmov 0.0  }
  0x15   : > { %264 = vst [vmem:[#allocation2 + $0xb0] sm:$0xff] %v1297_v0 }
  0x16   : > { %265 = vst [vmem:[#allocation2] sm:$0xff] %v1297_v0 }
  0x17   : > { %266 = vst [vmem:[#allocation2 + $0xd8] sm:$0xff] %v1297_v0 }
  0x18   : > { %267 = vst [vmem:[#allocation2 + $0x18] sm:$0xff] %v1297_v0 }
  0x19   : > { %268 = vst [vmem:[#allocation2 + $0x50] sm:$0xff] %v1297_v0 }
  0x1a   : > { %269 = vst [vmem:[#allocation2 + $0x68] sm:$0xff] %v1297_v0 }
  0x1b   : > { %270 = vst [vmem:[#allocation2 + $0x30] sm:$0xff] %v1297_v0 }
  0x1c   : > { %271 = vst [vmem:[#allocation2 + $0x48] sm:$0xff] %v1297_v0 }
  0x1d   : > { %272 = vst [vmem:[#allocation2 + $0x80] sm:$0xff] %v1297_v0 }
  0x1e   : > { %273 = vst [vmem:[#allocation2 + $0x88] sm:$0xff] %v1297_v0 }
  0x1f   : > { %274 = vst [vmem:[#allocation2 + $0xe8] sm:$0xff] %v1297_v0 }
  0x20   : > { %275 = vst [vmem:[#allocation2 + $0xb8] sm:$0xff] %v1297_v0 }
  0x21   : > { %276 = vst [vmem:[#allocation2 + $0x60] sm:$0xff] %v1297_v0 }
  0x22   : > { %277 = vst [vmem:[#allocation2 + $0xf0] sm:$0xff] %v1297_v0 }
  0x23   : > { %278 = vst [vmem:[#allocation2 + $0x8] sm:$0xff] %v1297_v0 }
  0x24   : > { %279 = vst [vmem:[#allocation2 + $0x78] sm:$0xff] %v1297_v0 }
  0x25   : > { %280 = vst [vmem:[#allocation2 + $0x38] sm:$0xff] %v1297_v0 }
  0x26   : > { %281 = vst [vmem:[#allocation2 + $0x58] sm:$0xff] %v1297_v0 }
  0x27   : > { %282 = vst [vmem:[#allocation2 + $0x40] sm:$0xff] %v1297_v0 }
  0x28   : > { %283 = vst [vmem:[#allocation2 + $0xc8] sm:$0xff] %v1297_v0 }
  0x29   : > { %284 = vst [vmem:[#allocation2 + $0xe0] sm:$0xff] %v1297_v0 }
  0x2a   : > { %285 = vst [vmem:[#allocation2 + $0x90] sm:$0xff] %v1297_v0 }
  0x2b   : > { %286 = vst [vmem:[#allocation2 + $0x70] sm:$0xff] %v1297_v0 }
  0x2c   : > { %287 = vst [vmem:[#allocation2 + $0xc0] sm:$0xff] %v1297_v0 }
  0x2d   : > { %288 = vst [vmem:[#allocation2 + $0xa8] sm:$0xff] %v1297_v0 }
  0x2e   : > { %289 = vst [vmem:[#allocation2 + $0xd0] sm:$0xff] %v1297_v0 }
  0x2f   : > { %290 = vst [vmem:[#allocation2 + $0x10] sm:$0xff] %v1297_v0 }
  0x30   : > { %291 = vst [vmem:[#allocation2 + $0x28] sm:$0xff] %v1297_v0 }
  0x31   : > { %292 = vst [vmem:[#allocation2 + $0xa0] sm:$0xff] %v1297_v0 }
  0x32   : > { %293 = vst [vmem:[#allocation2 + $0xf8] sm:$0xff] %v1297_v0 }
  0x33   : > { %294 = vst [vmem:[#allocation2 + $0x20] sm:$0xff] %v1297_v0 }
  0x34   : > { %295 = vst [vmem:[#allocation2 + $0x98] sm:$0xff] %v1297_v0 }
  0x35 PF: > { %v1095_v1 = vld [vmem:[%s1355_s26 + $0x38] sm:$0xff]  ;;  %v1094_v2 = vld [vmem:[%s1355_s26 + $0x30] sm:$0xff]  ;;  %v1093_v3 = vld [vmem:[%s1355_s26 + $0x28] sm:$0xff]  ;;  %p1068_p8 = scmp.ne.s32.totalorder %s1279_s12, 8 }
  0x36   : > { %520 = vmatpush.bf16.msra.mxu0 %v1095_v1  ;;  %1191 = vmatpush.bf16.msra.mxu1 %v1095_v1  ;;  %v1092_v4 = vld [vmem:[%s1355_s26 + $0x20] sm:$0xff]  ;;  %v1091_v5 = vld [vmem:[%s1355_s26 + $0x18] sm:$0xff]  ;;  %v1090_v6 = vld [vmem:[%s1355_s26 + $0x10] sm:$0xff] }
  0x37   : > { %1192 = vmatpush.bf16.msra.mxu2 %v1095_v1  ;;  %1193 = vmatpush.bf16.msra.mxu3 %v1095_v1  ;;  %v1089_v7 = vld [vmem:[%s1355_s26 + $0x8] sm:$0xff]  ;;  %v1088_v8 = vld [vmem:[%s1355_s26] sm:$0xff]  ;;  %v1074_v17 = vld [vmem:[%s1360_s4 + $0x10] sm:$0xff] }
  0x38   : > { %v1072_v9 = vld [vmem:[%s1360_s4] sm:$0xff]  ;;  %v1073_v13 = vld [vmem:[%s1360_s4 + $0x8] sm:$0xff]  ;;  %v1078_v18 = vld [vmem:[%s1360_s4 + $0x30] sm:$0xff] }
  0x39   : > { %v1076_v10 = vld [vmem:[%s1360_s4 + $0x20] sm:$0xff]  ;;  %v1077_v14 = vld [vmem:[%s1360_s4 + $0x28] sm:$0xff]  ;;  %v1082_v19 = vld [vmem:[%s1360_s4 + $0x50] sm:$0xff] }
  0x3a   : > { %521 = vmatpush.bf16.msra.mxu0 %v1094_v2  ;;  %1194 = vmatpush.bf16.msra.mxu1 %v1094_v2  ;;  %v1080_v11 = vld [vmem:[%s1360_s4 + $0x40] sm:$0xff]  ;;  %v1081_v15 = vld [vmem:[%s1360_s4 + $0x48] sm:$0xff]  ;;  %v1086_v20 = vld [vmem:[%s1360_s4 + $0x70] sm:$0xff] }
  0x3b   : > { %1195 = vmatpush.bf16.msra.mxu2 %v1094_v2  ;;  %1196 = vmatpush.bf16.msra.mxu3 %v1094_v2  ;;  %v1084_v12 = vld [vmem:[%s1360_s4 + $0x60] sm:$0xff]  ;;  %v1085_v16 = vld [vmem:[%s1360_s4 + $0x68] sm:$0xff]  ;;  %v1075_v21 = vld [vmem:[%s1360_s4 + $0x18] sm:$0xff] }
  0x3c   : > { %v1079_v22 = vld [vmem:[%s1360_s4 + $0x38] sm:$0xff]  ;;  %v296_v25 = vld [vmem:[#allocation2 + $0xb0] sm:$0xff]  ;;  %v304_v26 = vld [vmem:[#allocation2 + $0x80] sm:$0xff] }
  0x3d   : > { %v1083_v23 = vld [vmem:[%s1360_s4 + $0x58] sm:$0xff]  ;;  %v320_v32 = vld [vmem:[#allocation2 + $0xa8] sm:$0xff]  ;;  %v297_v33 = vld [vmem:[#allocation2] sm:$0xff] }
  0x3e   : > { %522 = vmatpush.bf16.msra.mxu0 %v1093_v3  ;;  %1197 = vmatpush.bf16.msra.mxu1 %v1093_v3  ;;  %v1087_v24 = vld [vmem:[%s1360_s4 + $0x78] sm:$0xff]  ;;  %v305_v34 = vld [vmem:[#allocation2 + $0x88] sm:$0xff]  ;;  %v321_v44 = vld [vmem:[#allocation2 + $0xd0] sm:$0xff] }
  0x3f   : > { %1198 = vmatpush.bf16.msra.mxu2 %v1093_v3  ;;  %1199 = vmatpush.bf16.msra.mxu3 %v1093_v3  ;;  %v312_v31 = vld [vmem:[#allocation2 + $0x38] sm:$0xff]  ;;  %v306_v46 = vld [vmem:[#allocation2 + $0xe8] sm:$0xff]  ;;  %v314_v55 = vld [vmem:[#allocation2 + $0x40] sm:$0xff] }
  0x40   : > { %v313_v43 = vld [vmem:[#allocation2 + $0x58] sm:$0xff]  ;;  %v322_v56 = vld [vmem:[#allocation2 + $0x10] sm:$0xff]  ;;  %v315_v3 = vld [vmem:[#allocation2 + $0xc8] sm:$0xff] }
  0x41   : > { %v298_v45 = vld [vmem:[#allocation2 + $0xd8] sm:$0xff] }
  0x42   : > { %523 = vmatpush.bf16.msra.mxu0 %v1092_v4  ;;  %1200 = vmatpush.bf16.msra.mxu1 %v1092_v4  ;;  %v299_v57 = vld [vmem:[#allocation2 + $0x18] sm:$0xff] }
  0x43   : > { %1201 = vmatpush.bf16.msra.mxu2 %v1092_v4  ;;  %1202 = vmatpush.bf16.msra.mxu3 %v1092_v4  ;;  %v307_v58 = vld [vmem:[#allocation2 + $0xb8] sm:$0xff]  ;;  %v323_v4 = vld [vmem:[#allocation2 + $0x28] sm:$0xff] }
  0x46   : > { %524 = vmatpush.bf16.msra.mxu0 %v1091_v5  ;;  %1203 = vmatpush.bf16.msra.mxu1 %v1091_v5 }
  0x47   : > { %1204 = vmatpush.bf16.msra.mxu2 %v1091_v5  ;;  %1205 = vmatpush.bf16.msra.mxu3 %v1091_v5  ;;  %v300_v5 = vld [vmem:[#allocation2 + $0x50] sm:$0xff] }
  0x4a   : > { %525 = vmatpush.bf16.msra.mxu0 %v1090_v6  ;;  %1206 = vmatpush.bf16.msra.mxu1 %v1090_v6 }
  0x4b   : > { %1207 = vmatpush.bf16.msra.mxu2 %v1090_v6  ;;  %1208 = vmatpush.bf16.msra.mxu3 %v1090_v6  ;;  %v308_v6 = vld [vmem:[#allocation2 + $0x60] sm:$0xff] }
  0x4e   : > { %526 = vmatpush.bf16.msra.mxu0 %v1089_v7  ;;  %1209 = vmatpush.bf16.msra.mxu1 %v1089_v7 }
  0x4f   : > { %1210 = vmatpush.bf16.msra.mxu2 %v1089_v7  ;;  %1211 = vmatpush.bf16.msra.mxu3 %v1089_v7 }
  0x52   : > { %527 = vmatpush.bf16.msra.mxu0 %v1088_v8  ;;  %1212 = vmatpush.bf16.msra.mxu1 %v1088_v8 }
  0x53   : > { %1213 = vmatpush.bf16.msra.mxu2 %v1088_v8  ;;  %1214 = vmatpush.bf16.msra.mxu3 %v1088_v8 }
  0x55   : > { %528 = vmatmul.bf16.vlgmr.msra.gmra.mxu0 %v1072_v9  ;;  %548 = vmatmul.bf16.vlgmr.msra.gmra.mxu1 %v1076_v10 }
  0x56   : > { %568 = vmatmul.bf16.vlgmr.msra.gmra.mxu2 %v1080_v11  ;;  %588 = vmatmul.bf16.vlgmr.msra.gmra.mxu3 %v1084_v12 }
  0x65   : > { %533 = vmatmul.bf16.gmra.mxu0 %v1073_v13  ;;  %553 = vmatmul.bf16.gmra.mxu1 %v1077_v14 }
  0x66   : > { %573 = vmatmul.bf16.gmra.mxu2 %v1081_v15  ;;  %593 = vmatmul.bf16.gmra.mxu3 %v1085_v16  ;;  %v316_v15 = vld [vmem:[#allocation2 + $0xe0] sm:$0xff] }
  0x67   : > { %v324_v16 = vld [vmem:[#allocation2 + $0xa0] sm:$0xff] }
  0x75   : > { %538 = vmatmul.bf16.gmra.mxu0 %v1074_v17  ;;  %558 = vmatmul.bf16.gmra.mxu1 %v1078_v18  ;;  %v301_v17 = vld [vmem:[#allocation2 + $0x68] sm:$0xff]  ;;  %v309_v18 = vld [vmem:[#allocation2 + $0xf0] sm:$0xff] }
  0x76   : > { %578 = vmatmul.bf16.gmra.mxu2 %v1082_v19  ;;  %598 = vmatmul.bf16.gmra.mxu3 %v1086_v20 }
  0x85   : > { %543 = vmatmul.bf16.gmra.mxu0 %v1075_v21  ;;  %563 = vmatmul.bf16.gmra.mxu1 %v1079_v22 }
  0x86   : > { %583 = vmatmul.bf16.gmra.mxu2 %v1083_v23  ;;  %603 = vmatmul.bf16.gmra.mxu3 %v1087_v24 }
  0xd2   : > { %v529_v27 = vpop.f32.mrf.mxu0  ;;  %v549_v28 = vpop.f32.mrf.mxu1 }
  0xd3   : > { %v609_v29 = vadd.f32 %v529_v27, %v296_v25  ;;  %v617_v30 = vadd.f32 %v549_v28, %v304_v26  ;;  %v317_v27 = vld [vmem:[#allocation2 + $0x90] sm:$0xff]  ;;  %v325_v28 = vld [vmem:[#allocation2 + $0xf8] sm:$0xff] }
  0xd5   : > { %641 = vst [vmem:[#allocation2 + $0xb0] sm:$0xff] %v609_v29  ;;  %v302_v29 = vld [vmem:[#allocation2 + $0x30] sm:$0xff] }
  0xd6   : > { %649 = vst [vmem:[#allocation2 + $0x80] sm:$0xff] %v617_v30  ;;  %v310_v30 = vld [vmem:[#allocation2 + $0x8] sm:$0xff] }
  0xd9   : > { %v569_v35 = vpop.f32.mrf.mxu2  ;;  %v589_v36 = vpop.f32.mrf.mxu3 }
  0xda   : > { %v625_v37 = vadd.f32 %v569_v35, %v312_v31  ;;  %v633_v38 = vadd.f32 %v589_v36, %v320_v32  ;;  %v531_v39 = vpop.f32.mrf.mxu0  ;;  %v551_v40 = vpop.f32.mrf.mxu1 }
  0xdb   : > { %v610_v41 = vadd.f32 %v531_v39, %v297_v33  ;;  %v618_v42 = vadd.f32 %v551_v40, %v305_v34  ;;  %v318_v39 = vld [vmem:[#allocation2 + $0x70] sm:$0xff]  ;;  %v326_v40 = vld [vmem:[#allocation2 + $0x20] sm:$0xff] }
  0xdc   : > { %657 = vst [vmem:[#allocation2 + $0x38] sm:$0xff] %v625_v37 }
  0xdd   : > { %665 = vst [vmem:[#allocation2 + $0xa8] sm:$0xff] %v633_v38 }
  0xde   : > { %642 = vst [vmem:[#allocation2] sm:$0xff] %v610_v41  ;;  %v303_v41 = vld [vmem:[#allocation2 + $0x48] sm:$0xff] }
  0xdf   : > { %650 = vst [vmem:[#allocation2 + $0x88] sm:$0xff] %v618_v42  ;;  %v311_v42 = vld [vmem:[#allocation2 + $0x78] sm:$0xff] }
  0xe1   : > { %v571_v47 = vpop.f32.mrf.mxu2  ;;  %v591_v48 = vpop.f32.mrf.mxu3 }
  0xe2   : > { %v626_v49 = vadd.f32 %v571_v47, %v313_v43  ;;  %v634_v50 = vadd.f32 %v591_v48, %v321_v44  ;;  %v534_v51 = vpop.f32.mrf.mxu0  ;;  %v554_v52 = vpop.f32.mrf.mxu1 }
  0xe3   : > { %v611_v53 = vadd.f32 %v534_v51, %v298_v45  ;;  %v619_v54 = vadd.f32 %v554_v52, %v306_v46  ;;  %v319_v51 = vld [vmem:[#allocation2 + $0xc0] sm:$0xff]  ;;  %v327_v52 = vld [vmem:[#allocation2 + $0x98] sm:$0xff] }
  0xe4   : > { %658 = vst [vmem:[#allocation2 + $0x58] sm:$0xff] %v626_v49 }
  0xe5   : > { %666 = vst [vmem:[#allocation2 + $0xd0] sm:$0xff] %v634_v50 }
  0xe6   : > { %643 = vst [vmem:[#allocation2 + $0xd8] sm:$0xff] %v611_v53 }
  0xe7   : > { %651 = vst [vmem:[#allocation2 + $0xe8] sm:$0xff] %v619_v54 }
  0xe9   : > { %v574_v59 = vpop.f32.mrf.mxu2  ;;  %v594_v60 = vpop.f32.mrf.mxu3 }
  0xea   : > { %v627_v61 = vadd.f32 %v574_v59, %v314_v55  ;;  %v635_v62 = vadd.f32 %v594_v60, %v322_v56  ;;  %v536_v63 = vpop.f32.mrf.mxu0  ;;  %v556_v0 = vpop.f32.mrf.mxu1 }
  0xeb   : > { %v612_v1 = vadd.f32 %v536_v63, %v299_v57  ;;  %v620_v2 = vadd.f32 %v556_v0, %v307_v58 }
  0xec   : > { %659 = vst [vmem:[#allocation2 + $0x40] sm:$0xff] %v627_v61 }
  0xed   : > { %667 = vst [vmem:[#allocation2 + $0x10] sm:$0xff] %v635_v62 }
  0xee   : > { %644 = vst [vmem:[#allocation2 + $0x18] sm:$0xff] %v612_v1 }
  0xef   : > { %652 = vst [vmem:[#allocation2 + $0xb8] sm:$0xff] %v620_v2 }
  0xf1   : > { %v576_v7 = vpop.f32.mrf.mxu2  ;;  %v596_v8 = vpop.f32.mrf.mxu3 }
  0xf2   : > { %v628_v9 = vadd.f32 %v576_v7, %v315_v3  ;;  %v636_v10 = vadd.f32 %v596_v8, %v323_v4  ;;  %v539_v11 = vpop.f32.mrf.mxu0  ;;  %v559_v12 = vpop.f32.mrf.mxu1 }
  0xf3   : > { %v613_v13 = vadd.f32 %v539_v11, %v300_v5  ;;  %v621_v14 = vadd.f32 %v559_v12, %v308_v6 }
  0xf4   : > { %660 = vst [vmem:[#allocation2 + $0xc8] sm:$0xff] %v628_v9 }
  0xf5   : > { %668 = vst [vmem:[#allocation2 + $0x28] sm:$0xff] %v636_v10 }
  0xf6   : > { %645 = vst [vmem:[#allocation2 + $0x50] sm:$0xff] %v613_v13 }
  0xf7   : > { %653 = vst [vmem:[#allocation2 + $0x60] sm:$0xff] %v621_v14 }
  0xf9   : > { %v579_v19 = vpop.f32.mrf.mxu2  ;;  %v599_v20 = vpop.f32.mrf.mxu3 }
  0xfa   : > { %v629_v21 = vadd.f32 %v579_v19, %v316_v15  ;;  %v637_v22 = vadd.f32 %v599_v20, %v324_v16  ;;  %v541_v23 = vpop.f32.mrf.mxu0  ;;  %v561_v24 = vpop.f32.mrf.mxu1 }
  0xfb   : > { %v614_v25 = vadd.f32 %v541_v23, %v301_v17  ;;  %v622_v26 = vadd.f32 %v561_v24, %v309_v18 }
  0xfc   : > { %661 = vst [vmem:[#allocation2 + $0xe0] sm:$0xff] %v629_v21 }
  0xfd   : > { %669 = vst [vmem:[#allocation2 + $0xa0] sm:$0xff] %v637_v22 }
  0xfe   : > { %646 = vst [vmem:[#allocation2 + $0x68] sm:$0xff] %v614_v25 }
  0xff   : > { %654 = vst [vmem:[#allocation2 + $0xf0] sm:$0xff] %v622_v26 }
 0x101   : > { %v581_v31 = vpop.f32.mrf.mxu2  ;;  %v601_v32 = vpop.f32.mrf.mxu3 }
 0x102   : > { %v630_v33 = vadd.f32 %v581_v31, %v317_v27  ;;  %v638_v34 = vadd.f32 %v601_v32, %v325_v28  ;;  %v544_v35 = vpop.f32.mrf.mxu0  ;;  %v564_v36 = vpop.f32.mrf.mxu1 }
 0x103   : > { %v615_v37 = vadd.f32 %v544_v35, %v302_v29  ;;  %v623_v38 = vadd.f32 %v564_v36, %v310_v30 }
 0x104   : > { %662 = vst [vmem:[#allocation2 + $0x90] sm:$0xff] %v630_v33 }
 0x105   : > { %670 = vst [vmem:[#allocation2 + $0xf8] sm:$0xff] %v638_v34 }
 0x106   : > { %647 = vst [vmem:[#allocation2 + $0x30] sm:$0xff] %v615_v37 }
 0x107   : > { %655 = vst [vmem:[#allocation2 + $0x8] sm:$0xff] %v623_v38 }
 0x109   : > { %v584_v43 = vpop.f32.mrf.mxu2  ;;  %v604_v44 = vpop.f32.mrf.mxu3 }
 0x10a   : > { %v631_v45 = vadd.f32 %v584_v43, %v318_v39  ;;  %v639_v46 = vadd.f32 %v604_v44, %v326_v40  ;;  %v546_v47 = vpop.f32.mrf.mxu0  ;;  %v566_v48 = vpop.f32.mrf.mxu1 }
 0x10b   : > { %v616_v49 = vadd.f32 %v546_v47, %v303_v41  ;;  %v624_v50 = vadd.f32 %v566_v48, %v311_v42 }
 0x10c   : > { %663 = vst [vmem:[#allocation2 + $0x70] sm:$0xff] %v631_v45 }
 0x10d   : > { %671 = vst [vmem:[#allocation2 + $0x20] sm:$0xff] %v639_v46 }
 0x10e   : > { %648 = vst [vmem:[#allocation2 + $0x48] sm:$0xff] %v616_v49 }
 0x10f   : > { %656 = vst [vmem:[#allocation2 + $0x78] sm:$0xff] %v624_v50 }
 0x111   : > { %v586_v53 = vpop.f32.mrf.mxu2  ;;  %v606_v54 = vpop.f32.mrf.mxu3  ;;  %676 = sbr.rel (%p1068_p8) target bundleno = 304 (0x130), region = 40 }
 0x112   : > { %v632_v55 = vadd.f32 %v586_v53, %v319_v51  ;;  %v640_v56 = vadd.f32 %v606_v54, %v327_v52 }
 0x114   : > { %664 = vst [vmem:[#allocation2 + $0xc0] sm:$0xff] %v632_v55 }
 0x115   : > { %672 = vst [vmem:[#allocation2 + $0x98] sm:$0xff] %v640_v56 }
 0x116   : > { %v677_v57 = vld [vmem:[#allocation2 + $0xb0] sm:$0xff]  ;;  %v678_v58 = vld [vmem:[#allocation2] sm:$0xff]  ;;  %v679_v60 = vld [vmem:[#allocation2 + $0xd8] sm:$0xff] }
 0x117   : > { %v1396_v59 = vld [vmem:[%s1463_s2] ss:$0 sm:$0xff]  ;;  %v680_v61 = vld [vmem:[#allocation2 + $0x18] sm:$0xff]  ;;  %v681_v62 = vld [vmem:[#allocation2 + $0x50] sm:$0xff] }
 0x118   : > { %v682_v63 = vld [vmem:[#allocation2 + $0x68] sm:$0xff]  ;;  %v683_v0 = vld [vmem:[#allocation2 + $0x30] sm:$0xff]  ;;  %v713_v1 = vadd.f32 %v1396_v59, %v677_v57  ;;  %v714_v2 = vadd.f32 %v1396_v59, %v678_v58  ;;  %v715_v3 = vadd.f32 %v1396_v59, %v679_v60  ;;  %v716_v4 = vadd.f32 %v1396_v59, %v680_v61  ;;  %v685_v10 = vld [vmem:[#allocation2 + $0x80] sm:$0xff] }
 0x119   : > { %v684_v5 = vld [vmem:[#allocation2 + $0x48] sm:$0xff]  ;;  %v717_v6 = vadd.f32 %v1396_v59, %v681_v62  ;;  %v718_v7 = vadd.f32 %v1396_v59, %v682_v63  ;;  %v719_v8 = vadd.f32 %v1396_v59, %v683_v0  ;;  %v688_v17 = vld [vmem:[#allocation2 + $0xb8] sm:$0xff]  ;;  %v689_v22 = vld [vmem:[#allocation2 + $0x60] sm:$0xff]  ;;  %v721_v26 = vadd.f32 %v1396_v59, %v685_v10 }
 0x11a   : > { %v720_v9 = vadd.f32 %v1396_v59, %v684_v5  ;;  %v686_v11 = vld [vmem:[#allocation2 + $0x88] sm:$0xff]  ;;  %v745_v12 = vmax.f32 %v713_v1, 0.0  ;;  %v746_v13 = vmax.f32 %v714_v2, 0.0  ;;  %v747_v14 = vmax.f32 %v715_v3, 0.0  ;;  %v690_v23 = vld [vmem:[#allocation2 + $0xf0] sm:$0xff]  ;;  %v692_v29 = vld [vmem:[#allocation2 + $0x78] sm:$0xff] }
 0x11b   : > { %v748_v15 = vmax.f32 %v716_v4, 0.0  ;;  %v687_v16 = vld [vmem:[#allocation2 + $0xe8] sm:$0xff]  ;;  %v749_v18 = vmax.f32 %v717_v6, 0.0  ;;  %v750_v19 = vmax.f32 %v718_v7, 0.0  ;;  %v751_v20 = vmax.f32 %v719_v8, 0.0  ;;  %v693_v34 = vld [vmem:[#allocation2 + $0x38] sm:$0xff] }
 0x11c   : > { %v752_v21 = vmax.f32 %v720_v9, 0.0  ;;  %v1099_v24 = vpack.c.bf16 %v746_v13, %v745_v12  ;;  %v722_v27 = vadd.f32 %v1396_v59, %v686_v11  ;;  %v691_v28 = vld [vmem:[#allocation2 + $0x8] sm:$0xff]  ;;  %v723_v32 = vadd.f32 %v1396_v59, %v687_v16  ;;  %v694_v39 = vld [vmem:[#allocation2 + $0x58] sm:$0xff]  ;;  %v695_v44 = vld [vmem:[#allocation2 + $0x40] sm:$0xff] }
 0x11d   : > { %v1104_v25 = vpack.c.bf16 %v748_v15, %v747_v14  ;;  %v1109_v30 = vpack.c.bf16 %v750_v19, %v749_v18  ;;  %v724_v33 = vadd.f32 %v1396_v59, %v688_v17  ;;  %v753_v35 = vmax.f32 %v721_v26, 0.0  ;;  %v696_v45 = vld [vmem:[#allocation2 + $0xc8] sm:$0xff]  ;;  %v697_v50 = vld [vmem:[#allocation2 + $0xe0] sm:$0xff]  ;;  %v698_v51 = vld [vmem:[#allocation2 + $0x90] sm:$0xff] }
 0x11e   : > { %v1114_v31 = vpack.c.bf16 %v752_v21, %v751_v20  ;;  %1100 = vst [vmem:[%s1365_s7] sm:$0xff] %v1099_v24   ;;  %v754_v36 = vmax.f32 %v722_v27, 0.0  ;;  %v725_v37 = vadd.f32 %v1396_v59, %v689_v22  ;;  %v726_v38 = vadd.f32 %v1396_v59, %v690_v23  ;;  %v699_v56 = vld [vmem:[#allocation2 + $0x70] sm:$0xff]  ;;  %v700_v57 = vld [vmem:[#allocation2 + $0xc0] sm:$0xff]  ;;  %v701_v63 = vld [vmem:[#allocation2 + $0xa8] sm:$0xff] }
 0x11f   : > { %1176 = vst [vmem:[%s1365_s7 + $0x8] sm:$0xff] %v1104_v25   ;;  %v755_v40 = vmax.f32 %v723_v32, 0.0  ;;  %v756_v41 = vmax.f32 %v724_v33, 0.0  ;;  %v727_v42 = vadd.f32 %v1396_v59, %v691_v28  ;;  %v728_v43 = vadd.f32 %v1396_v59, %v692_v29  ;;  %v702_v4 = vld [vmem:[#allocation2 + $0xd0] sm:$0xff]  ;;  %v704_v10 = vld [vmem:[#allocation2 + $0x28] sm:$0xff]  ;;  %v705_v15 = vld [vmem:[#allocation2 + $0xa0] sm:$0xff] }
 0x120   : > { %1177 = vst [vmem:[%s1365_s7 + $0x10] sm:$0xff] %v1109_v30   ;;  %v1119_v46 = vpack.c.bf16 %v754_v36, %v753_v35  ;;  %v757_v47 = vmax.f32 %v725_v37, 0.0  ;;  %v758_v48 = vmax.f32 %v726_v38, 0.0  ;;  %v729_v49 = vadd.f32 %v1396_v59, %v693_v34  ;;  %v703_v9 = vld [vmem:[#allocation2 + $0x10] sm:$0xff]  ;;  %v706_v16 = vld [vmem:[#allocation2 + $0xf8] sm:$0xff]  ;;  %v707_v21 = vld [vmem:[#allocation2 + $0x20] sm:$0xff] }
 0x121   : > { %1178 = vst [vmem:[%s1365_s7 + $0x18] sm:$0xff] %v1114_v31   ;;  %v1124_v52 = vpack.c.bf16 %v756_v41, %v755_v40  ;;  %v759_v53 = vmax.f32 %v727_v42, 0.0  ;;  %v760_v54 = vmax.f32 %v728_v43, 0.0  ;;  %v730_v55 = vadd.f32 %v1396_v59, %v694_v39  ;;  %v708_v22 = vld [vmem:[#allocation2 + $0x98] sm:$0xff] }
 0x122   : > { %1179 = vst [vmem:[%s1365_s7 + $0x20] sm:$0xff] %v1119_v46   ;;  %v1129_v58 = vpack.c.bf16 %v758_v48, %v757_v47  ;;  %v761_v60 = vmax.f32 %v729_v49, 0.0  ;;  %v731_v61 = vadd.f32 %v1396_v59, %v695_v44  ;;  %v732_v62 = vadd.f32 %v1396_v59, %v696_v45 }
 0x123   : > { %1180 = vst [vmem:[%s1365_s7 + $0x28] sm:$0xff] %v1124_v52   ;;  %v1134_v0 = vpack.c.bf16 %v760_v54, %v759_v53  ;;  %v762_v1 = vmax.f32 %v730_v55, 0.0  ;;  %v733_v2 = vadd.f32 %v1396_v59, %v697_v50  ;;  %v734_v3 = vadd.f32 %v1396_v59, %v698_v51 }
 0x124   : > { %1181 = vst [vmem:[%s1365_s7 + $0x30] sm:$0xff] %v1129_v58   ;;  %v763_v5 = vmax.f32 %v731_v61, 0.0  ;;  %v764_v6 = vmax.f32 %v732_v62, 0.0  ;;  %v735_v7 = vadd.f32 %v1396_v59, %v699_v56  ;;  %v736_v8 = vadd.f32 %v1396_v59, %v700_v57 }
 0x125   : > { %1182 = vst [vmem:[%s1365_s7 + $0x38] sm:$0xff] %v1134_v0   ;;  %v1139_v11 = vpack.c.bf16 %v762_v1, %v761_v60  ;;  %v765_v12 = vmax.f32 %v733_v2, 0.0  ;;  %v766_v13 = vmax.f32 %v734_v3, 0.0  ;;  %v737_v14 = vadd.f32 %v1396_v59, %v701_v63 }
 0x126   : > { %v1144_v17 = vpack.c.bf16 %v764_v6, %v763_v5  ;;  %v767_v18 = vmax.f32 %v735_v7, 0.0  ;;  %v768_v19 = vmax.f32 %v736_v8, 0.0  ;;  %v738_v20 = vadd.f32 %v1396_v59, %v702_v4 }
 0x127   : > { %1183 = vst [vmem:[%s1365_s7 + $0x40] sm:$0xff] %v1139_v11   ;;  %v1149_v23 = vpack.c.bf16 %v766_v13, %v765_v12  ;;  %v769_v24 = vmax.f32 %v737_v14, 0.0  ;;  %v739_v25 = vadd.f32 %v1396_v59, %v703_v9  ;;  %v740_v26 = vadd.f32 %v1396_v59, %v704_v10 }
 0x128   : > { %1184 = vst [vmem:[%s1365_s7 + $0x48] sm:$0xff] %v1144_v17   ;;  %v1154_v27 = vpack.c.bf16 %v768_v19, %v767_v18  ;;  %v770_v28 = vmax.f32 %v738_v20, 0.0  ;;  %v741_v29 = vadd.f32 %v1396_v59, %v705_v15  ;;  %v742_v30 = vadd.f32 %v1396_v59, %v706_v16 }
 0x129   : > { %1185 = vst [vmem:[%s1365_s7 + $0x50] sm:$0xff] %v1149_v23   ;;  %v771_v31 = vmax.f32 %v739_v25, 0.0  ;;  %v772_v32 = vmax.f32 %v740_v26, 0.0  ;;  %v743_v33 = vadd.f32 %v1396_v59, %v707_v21  ;;  %v744_v34 = vadd.f32 %v1396_v59, %v708_v22 }
 0x12a   : > { %1186 = vst [vmem:[%s1365_s7 + $0x58] sm:$0xff] %v1154_v27   ;;  %v1159_v35 = vpack.c.bf16 %v770_v28, %v769_v24  ;;  %v773_v36 = vmax.f32 %v741_v29, 0.0  ;;  %v774_v37 = vmax.f32 %v742_v30, 0.0 }
 0x12b   : > { %v1164_v38 = vpack.c.bf16 %v772_v32, %v771_v31  ;;  %v775_v39 = vmax.f32 %v743_v33, 0.0  ;;  %v776_v40 = vmax.f32 %v744_v34, 0.0 }
 0x12c   : > { %1187 = vst [vmem:[%s1365_s7 + $0x60] sm:$0xff] %v1159_v35   ;;  %v1169_v41 = vpack.c.bf16 %v774_v37, %v773_v36 }
 0x12d   : > { %1188 = vst [vmem:[%s1365_s7 + $0x68] sm:$0xff] %v1164_v38   ;;  %v1174_v42 = vpack.c.bf16 %v776_v40, %v775_v39 }
 0x12e   : > { %1189 = vst [vmem:[%s1365_s7 + $0x70] sm:$0xff] %v1169_v41  }
 0x12f   : > { %1190 = vst [vmem:[%s1365_s7 + $0x78] sm:$0xff] %v1174_v42  }
 0x130 PF: > { %s13_s16 = sadd.s32 1, %s1295_s16   ;;  %s1465_s12 = smov %s1287_s14 }
 0x131   : > { %p10_p9 = scmp.ge.s32.totalorder %s13_s16, 74   ;;  %s1466_s13 = smov %s1291_s15 }
 0x132   : > { %s1467_s14 = smov %s1470_s17  ;;  %s1468_s15 = smov %s1474_s18 }
 0x133   :  { %12 = sbr.rel (!%p10_p9) target bundleno = 3 (0x3), region = 76 }

// kernel: vgg_network_forward.24
= control target key start
LH: loop header
LB: loop body
LE: loop exit
PB: predicated region body
PF: predicated region fallthrough
CT: control target
= control target key end

     0   :  { %s479_s6 = smov 0   ;;  %s481_s7 = smov 0   ;;  %s540_s0 = inlined_call_operand.vmem [shape: bf16[2,16,8,256], index: 0, kind: input, shape index: {}]   ;;  %s541_s1 = inlined_call_operand.vmem [shape: bf16[2,8,8,128], index: 1, kind: output, shape index: {}]  }
   0x1   :  { %s483_s8 = smov 0  }
   0x2 LB: > { %s23_s9 = sadd.s32 1, %s463_s7  ;;  %p389_p0 = scmp.ge.s32.totalorder %s467_s8, 1  ;;  %s467_s8 = sphi %s483_s8, %s11_s8   ;;  %s463_s7 = sphi %s481_s7, %s543_s7   ;;  %s459_s6 = sphi %s479_s6, %s542_s6  }
   0x3   : > { %p25_p1 = scmp.ge.s32.totalorder %s23_s9, 2  ;;  %p109_p2 = scmp.lt.s32.totalorder %s467_s8, 3 }
   0x5   : > { %s545_s9 = smov (%p25_p1, %s23_s9), 0  ;;  %p110_p3 = pnand %p389_p0, %p109_p2 }
   0x6   : > { %p139_p4 = scmp.lt.s32.totalorder (!%p110_p3), %s459_s6, 1 }
   0x7   : > { %113 = sbr.rel (%p110_p3) target bundleno = 47 (0x2f), region = 24 }
   0xc   : > { %s547_s6 = smov (!%p139_p4, %s459_s6), 1 }
   0xd   : > { %s396_s10 = sshll.u32 %s547_s6, 7  ;;  %s397_s14 = sshll.u32 %s547_s6, 5 }
   0xe   : > { %s503_s13 = scalar_lea.vmem %s540_s0, %s396_s10  ;;  %s523_s17 = scalar_lea.vmem %s541_s1, %s397_s14 }
   0xf   : > { %v159_v0 = vld [vmem:[%s503_s13] sm:$0xff]  ;;  %v160_v1 = vld [vmem:[%s503_s13 + $0x8] sm:$0xff]  ;;  %v161_v2 = vld [vmem:[%s503_s13 + $0x10] sm:$0xff] }
  0x10   : > { %v162_v3 = vld [vmem:[%s503_s13 + $0x18] sm:$0xff]  ;;  %v175_v4 = vunpack.c.l.bf16 %v159_v0  ;;  %v176_v5 = vunpack.c.h.bf16 %v159_v0  ;;  %v177_v6 = vunpack.c.l.bf16 %v161_v2  ;;  %v178_v7 = vunpack.c.h.bf16 %v161_v2  ;;  %v163_v8 = vld [vmem:[%s503_s13 + $0x20] sm:$0xff]  ;;  %v164_v13 = vld [vmem:[%s503_s13 + $0x28] sm:$0xff] }
  0x11   : > { %v191_v9 = vunpack.c.l.bf16 %v160_v1  ;;  %v192_v10 = vunpack.c.h.bf16 %v160_v1  ;;  %v193_v11 = vunpack.c.l.bf16 %v162_v3  ;;  %v194_v12 = vunpack.c.h.bf16 %v162_v3  ;;  %v165_v14 = vld [vmem:[%s503_s13 + $0x30] sm:$0xff]  ;;  %v166_v15 = vld [vmem:[%s503_s13 + $0x38] sm:$0xff]  ;;  %v167_v20 = vld [vmem:[%s503_s13 + $0x40] sm:$0xff] }
  0x12   : > { %v179_v16 = vunpack.c.l.bf16 %v163_v8  ;;  %v180_v17 = vunpack.c.h.bf16 %v163_v8  ;;  %v181_v18 = vunpack.c.l.bf16 %v165_v14  ;;  %v182_v19 = vunpack.c.h.bf16 %v165_v14  ;;  %v169_v29 = vld [vmem:[%s503_s13 + $0x50] sm:$0xff]  ;;  %v168_v32 = vld [vmem:[%s503_s13 + $0x48] sm:$0xff]  ;;  %v170_v39 = vld [vmem:[%s503_s13 + $0x58] sm:$0xff] }
  0x13   : > { %v207_v21 = vmax.f32 %v175_v4, %v191_v9  ;;  %v208_v22 = vmax.f32 %v176_v5, %v192_v10  ;;  %v209_v23 = vmax.f32 %v177_v6, %v193_v11  ;;  %v210_v24 = vmax.f32 %v178_v7, %v194_v12  ;;  %v171_v52 = vld [vmem:[%s503_s13 + $0x60] sm:$0xff]  ;;  %v173_v57 = vld [vmem:[%s503_s13 + $0x70] sm:$0xff]  ;;  %v172_v1 = vld [vmem:[%s503_s13 + $0x68] sm:$0xff] }
  0x14   : > { %v195_v25 = vunpack.c.l.bf16 %v164_v13  ;;  %v196_v26 = vunpack.c.h.bf16 %v164_v13  ;;  %v197_v27 = vunpack.c.l.bf16 %v166_v15  ;;  %v198_v28 = vunpack.c.h.bf16 %v166_v15  ;;  %v174_v2 = vld [vmem:[%s503_s13 + $0x78] sm:$0xff] }
  0x15   : > { %v223_v30 = vpack.c.bf16 %v208_v22, %v207_v21  ;;  %v224_v31 = vpack.c.bf16 %v210_v24, %v209_v23  ;;  %v183_v33 = vunpack.c.l.bf16 %v167_v20  ;;  %v184_v34 = vunpack.c.h.bf16 %v167_v20 }
  0x16   : > { %v211_v35 = vmax.f32 %v179_v16, %v195_v25  ;;  %v212_v36 = vmax.f32 %v180_v17, %v196_v26  ;;  %v213_v37 = vmax.f32 %v181_v18, %v197_v27  ;;  %v214_v38 = vmax.f32 %v182_v19, %v198_v28 }
  0x17   : > { %v247_v40 = vrot.slane %v223_v30, 4  ;;  %v248_v41 = vrot.slane %v224_v31, 4  ;;  %v185_v42 = vunpack.c.l.bf16 %v169_v29  ;;  %v186_v43 = vunpack.c.h.bf16 %v169_v29 }
  0x18   : > { %v225_v44 = vpack.c.bf16 %v212_v36, %v211_v35  ;;  %v226_v45 = vpack.c.bf16 %v214_v38, %v213_v37  ;;  %v199_v46 = vunpack.c.l.bf16 %v168_v32  ;;  %v200_v47 = vunpack.c.h.bf16 %v168_v32 }
  0x19   : > { %v263_v48 = vunpack.c.l.bf16 %v247_v40  ;;  %v264_v49 = vunpack.c.l.bf16 %v248_v41  ;;  %v201_v50 = vunpack.c.l.bf16 %v170_v39  ;;  %v202_v51 = vunpack.c.h.bf16 %v170_v39 }
  0x1a   : > { %v249_v53 = vrot.slane %v225_v44, 4  ;;  %v250_v54 = vrot.slane %v226_v45, 4  ;;  %v215_v55 = vmax.f32 %v183_v33, %v199_v46  ;;  %v216_v56 = vmax.f32 %v184_v34, %v200_v47 }
  0x1b   : > { %v271_v58 = vmax.f32 %v207_v21, %v263_v48  ;;  %v272_v59 = vmax.f32 %v209_v23, %v264_v49  ;;  %v217_v60 = vmax.f32 %v185_v42, %v201_v50  ;;  %v218_v61 = vmax.f32 %v186_v43, %v202_v51 }
  0x1c   : > { %v265_v62 = vunpack.c.l.bf16 %v249_v53  ;;  %v266_v63 = vunpack.c.l.bf16 %v250_v54  ;;  %v227_v0 = vpack.c.bf16 %v216_v56, %v215_v55  ;;  %v187_v3 = vunpack.c.l.bf16 %v171_v52 }
  0x1d   : > { %v401_v4 = vpack.c.bf16 %v272_v59, %v271_v58  ;;  %v228_v5 = vpack.c.bf16 %v218_v61, %v217_v60  ;;  %v188_v6 = vunpack.c.h.bf16 %v171_v52  ;;  %v189_v7 = vunpack.c.l.bf16 %v173_v57 }
  0x1e   : > { %v273_v8 = vmax.f32 %v211_v35, %v265_v62  ;;  %v274_v9 = vmax.f32 %v213_v37, %v266_v63  ;;  %v251_v10 = vrot.slane %v227_v0, 4  ;;  %v190_v11 = vunpack.c.h.bf16 %v173_v57 }
  0x1f   : > { %402 = vst [vmem:[%s523_s17] sm:$0xff] %v401_v4   ;;  %v252_v12 = vrot.slane %v228_v5, 4  ;;  %v203_v13 = vunpack.c.l.bf16 %v172_v1  ;;  %v204_v14 = vunpack.c.h.bf16 %v172_v1  ;;  %v205_v15 = vunpack.c.l.bf16 %v174_v2 }
  0x20   : > { %v406_v16 = vpack.c.bf16 %v274_v9, %v273_v8  ;;  %v267_v17 = vunpack.c.l.bf16 %v251_v10  ;;  %v206_v18 = vunpack.c.h.bf16 %v174_v2 }
  0x21   : > { %v268_v19 = vunpack.c.l.bf16 %v252_v12  ;;  %v219_v20 = vmax.f32 %v187_v3, %v203_v13  ;;  %v220_v21 = vmax.f32 %v188_v6, %v204_v14  ;;  %v221_v22 = vmax.f32 %v189_v7, %v205_v15 }
  0x22   : > { %418 = vst [vmem:[%s523_s17 + $0x8] sm:$0xff] %v406_v16   ;;  %v275_v23 = vmax.f32 %v215_v55, %v267_v17  ;;  %v222_v24 = vmax.f32 %v190_v11, %v206_v18 }
  0x23   : > { %v276_v25 = vmax.f32 %v217_v60, %v268_v19  ;;  %v229_v26 = vpack.c.bf16 %v220_v21, %v219_v20 }
  0x24   : > { %v230_v27 = vpack.c.bf16 %v222_v24, %v221_v22 }
  0x25   : > { %v411_v28 = vpack.c.bf16 %v276_v25, %v275_v23  ;;  %v253_v29 = vrot.slane %v229_v26, 4 }
  0x26   : > { %v254_v30 = vrot.slane %v230_v27, 4 }
  0x27   : > { %419 = vst [vmem:[%s523_s17 + $0x10] sm:$0xff] %v411_v28   ;;  %v269_v31 = vunpack.c.l.bf16 %v253_v29 }
  0x28   : > { %v270_v32 = vunpack.c.l.bf16 %v254_v30 }
  0x29   : > { %v277_v33 = vmax.f32 %v219_v20, %v269_v31 }
  0x2a   : > { %v278_v34 = vmax.f32 %v221_v22, %v270_v32 }
  0x2c   : > { %v416_v35 = vpack.c.bf16 %v278_v34, %v277_v33 }
  0x2e   : > { %420 = vst [vmem:[%s523_s17 + $0x18] sm:$0xff] %v416_v35  }
  0x2f PF: > { %s11_s8 = sadd.s32 1, %s467_s8   ;;  %s542_s6 = smov %s463_s7 }
  0x30   : > { %p8_p5 = scmp.ge.s32.totalorder %s11_s8, 4   ;;  %s543_s7 = smov %s545_s9 }
  0x32   :  { %10 = sbr.rel (!%p8_p5) target bundleno = 2 (0x2), region = 54 }

// kernel: vgg_network_forward.22
= control target key start
LH: loop header
LB: loop body
LE: loop exit
PB: predicated region body
PF: predicated region fallthrough
CT: control target
= control target key end

     0   :  { %s1318_s12 = smov 0   ;;  %s1320_s13 = smov 0   ;;  %s1461_s0 = inlined_call_operand.vmem [shape: bf16[9,512,128], index: 0, kind: input, shape index: {}]   ;;  %s1462_s1 = inlined_call_operand.vmem [shape: bf16[9,128,128], index: 1, kind: input, shape index: {}]   ;;  %s1463_s2 = inlined_call_operand.vmem [shape: f32[1,128], index: 2, kind: input, shape index: {}]   ;;  %s1464_s3 = inlined_call_operand.vmem [shape: bf16[512,128], index: 3, kind: output, shape index: {}]  }
   0x1   :  { %s1322_s14 = smov 0   ;;  %s1324_s15 = smov 0  }
   0x2   :  { %s1326_s16 = smov 0  }
   0x3 LB: > { %s25_s17 = sadd.s32 1, %s1287_s14  ;;  %s32_s18 = sadd.s32 1, %s1291_s15  ;;  %s1295_s16 = sphi %s1326_s16, %s13_s16   ;;  %s1291_s15 = sphi %s1324_s15, %s1468_s15   ;;  %s1287_s14 = sphi %s1322_s14, %s1467_s14   ;;  %s1283_s13 = sphi %s1320_s13, %s1466_s13   ;;  %s1279_s12 = sphi %s1318_s12, %s1465_s12  }
   0x4   : > { %p26_p0 = scmp.ge.s32.totalorder %s25_s17, 9  ;;  %p963_p1 = scmp.ge.s32.totalorder %s1295_s16, 1 }
   0x5   : > { %p188_p2 = scmp.lt.s32.totalorder %s1295_s16, 19 }
   0x6   : > { %s1470_s17 = smov (%p26_p0, %s25_s17), 0  ;;  %s1472_s18 = smov (!%p26_p0, %s32_s18), %s1291_s15 }
   0x7   : > { %p189_p3 = pnand %p963_p1, %p188_p2  ;;  %p34_p4 = scmp.ge.s32.totalorder %s1472_s18, 2 }
   0x8   : > { %s964_s19 = sshll.u32 (!%p189_p3), %s1283_s13, 5  ;;  %p231_p5 = scmp.lt.s32.totalorder (!%p189_p3), %s1279_s12, 8 }
   0x9   : > { %s1474_s18 = smov (%p34_p4, %s1472_s18), 0  ;;  %192 = sbr.rel (%p189_p3) target bundleno = 304 (0x130), region = 32 }
   0xa   : > { %p233_p6 = scmp.lt.s32.totalorder (!%p189_p3), %s964_s19, 63  ;;  %p971_p7 = scmp.ne.s32.totalorder (!%p189_p3), %s1279_s12, 0 }
   0xe   : > { %s232_s20 = scalar_select %p231_p5, %s1279_s12, 8 }
   0xf   : > { %s1476_s19 = smov (!%p233_p6, %s964_s19), 63  ;;  %263 = sbr.rel (%p971_p7) target bundleno = 53 (0x35), region = 36 }
  0x10   : > { %s965_s21 = sshll.u32 %s232_s20, 6  ;;  %s970_s27 = sshll.u32 %s1476_s19, 2 }
  0x11   : > { %s236_s22 = sadd.s32 %s965_s21, %s1476_s19  ;;  %s1355_s25 = scalar_lea.vmem %s1462_s1, %s965_s21 }
  0x12   : > { %s966_s26 = sshll.u32 %s236_s22, 2  ;;  %s1365_s6 = scalar_lea.vmem %s1464_s3, %s970_s27 }
  0x13   : > { %s1360_s30 = scalar_lea.vmem %s1461_s0, %s966_s26 }
  0x14   : > { %v1297_v0 = vmov 0.0  }
  0x15   : > { %264 = vst [vmem:[#allocation2 + $0xb0] sm:$0xff] %v1297_v0 }
  0x16   : > { %265 = vst [vmem:[#allocation2] sm:$0xff] %v1297_v0 }
  0x17   : > { %266 = vst [vmem:[#allocation2 + $0xd8] sm:$0xff] %v1297_v0 }
  0x18   : > { %267 = vst [vmem:[#allocation2 + $0x18] sm:$0xff] %v1297_v0 }
  0x19   : > { %268 = vst [vmem:[#allocation2 + $0x50] sm:$0xff] %v1297_v0 }
  0x1a   : > { %269 = vst [vmem:[#allocation2 + $0x68] sm:$0xff] %v1297_v0 }
  0x1b   : > { %270 = vst [vmem:[#allocation2 + $0x30] sm:$0xff] %v1297_v0 }
  0x1c   : > { %271 = vst [vmem:[#allocation2 + $0x48] sm:$0xff] %v1297_v0 }
  0x1d   : > { %272 = vst [vmem:[#allocation2 + $0x80] sm:$0xff] %v1297_v0 }
  0x1e   : > { %273 = vst [vmem:[#allocation2 + $0x88] sm:$0xff] %v1297_v0 }
  0x1f   : > { %274 = vst [vmem:[#allocation2 + $0xe8] sm:$0xff] %v1297_v0 }
  0x20   : > { %275 = vst [vmem:[#allocation2 + $0xb8] sm:$0xff] %v1297_v0 }
  0x21   : > { %276 = vst [vmem:[#allocation2 + $0x60] sm:$0xff] %v1297_v0 }
  0x22   : > { %277 = vst [vmem:[#allocation2 + $0xf0] sm:$0xff] %v1297_v0 }
  0x23   : > { %278 = vst [vmem:[#allocation2 + $0x8] sm:$0xff] %v1297_v0 }
  0x24   : > { %279 = vst [vmem:[#allocation2 + $0x78] sm:$0xff] %v1297_v0 }
  0x25   : > { %280 = vst [vmem:[#allocation2 + $0x38] sm:$0xff] %v1297_v0 }
  0x26   : > { %281 = vst [vmem:[#allocation2 + $0x58] sm:$0xff] %v1297_v0 }
  0x27   : > { %282 = vst [vmem:[#allocation2 + $0x40] sm:$0xff] %v1297_v0 }
  0x28   : > { %283 = vst [vmem:[#allocation2 + $0xc8] sm:$0xff] %v1297_v0 }
  0x29   : > { %284 = vst [vmem:[#allocation2 + $0xe0] sm:$0xff] %v1297_v0 }
  0x2a   : > { %285 = vst [vmem:[#allocation2 + $0x90] sm:$0xff] %v1297_v0 }
  0x2b   : > { %286 = vst [vmem:[#allocation2 + $0x70] sm:$0xff] %v1297_v0 }
  0x2c   : > { %287 = vst [vmem:[#allocation2 + $0xc0] sm:$0xff] %v1297_v0 }
  0x2d   : > { %288 = vst [vmem:[#allocation2 + $0xa8] sm:$0xff] %v1297_v0 }
  0x2e   : > { %289 = vst [vmem:[#allocation2 + $0xd0] sm:$0xff] %v1297_v0 }
  0x2f   : > { %290 = vst [vmem:[#allocation2 + $0x10] sm:$0xff] %v1297_v0 }
  0x30   : > { %291 = vst [vmem:[#allocation2 + $0x28] sm:$0xff] %v1297_v0 }
  0x31   : > { %292 = vst [vmem:[#allocation2 + $0xa0] sm:$0xff] %v1297_v0 }
  0x32   : > { %293 = vst [vmem:[#allocation2 + $0xf8] sm:$0xff] %v1297_v0 }
  0x33   : > { %294 = vst [vmem:[#allocation2 + $0x20] sm:$0xff] %v1297_v0 }
  0x34   : > { %295 = vst [vmem:[#allocation2 + $0x98] sm:$0xff] %v1297_v0 }
  0x35 PF: > { %v1095_v1 = vld [vmem:[%s1355_s25 + $0x38] sm:$0xff]  ;;  %v1094_v2 = vld [vmem:[%s1355_s25 + $0x30] sm:$0xff]  ;;  %v1093_v3 = vld [vmem:[%s1355_s25 + $0x28] sm:$0xff]  ;;  %p1068_p8 = scmp.ne.s32.totalorder %s1279_s12, 8 }
  0x36   : > { %520 = vmatpush.bf16.msra.mxu0 %v1095_v1  ;;  %1191 = vmatpush.bf16.msra.mxu1 %v1095_v1  ;;  %v1092_v4 = vld [vmem:[%s1355_s25 + $0x20] sm:$0xff]  ;;  %v1091_v5 = vld [vmem:[%s1355_s25 + $0x18] sm:$0xff]  ;;  %v1090_v6 = vld [vmem:[%s1355_s25 + $0x10] sm:$0xff] }
  0x37   : > { %1192 = vmatpush.bf16.msra.mxu2 %v1095_v1  ;;  %1193 = vmatpush.bf16.msra.mxu3 %v1095_v1  ;;  %v1089_v7 = vld [vmem:[%s1355_s25 + $0x8] sm:$0xff]  ;;  %v1088_v8 = vld [vmem:[%s1355_s25] sm:$0xff]  ;;  %v1074_v17 = vld [vmem:[%s1360_s30 + $0x10] sm:$0xff] }
  0x38   : > { %v1072_v9 = vld [vmem:[%s1360_s30] sm:$0xff]  ;;  %v1073_v13 = vld [vmem:[%s1360_s30 + $0x8] sm:$0xff]  ;;  %v1078_v18 = vld [vmem:[%s1360_s30 + $0x30] sm:$0xff] }
  0x39   : > { %v1076_v10 = vld [vmem:[%s1360_s30 + $0x20] sm:$0xff]  ;;  %v1077_v14 = vld [vmem:[%s1360_s30 + $0x28] sm:$0xff]  ;;  %v1082_v19 = vld [vmem:[%s1360_s30 + $0x50] sm:$0xff] }
  0x3a   : > { %521 = vmatpush.bf16.msra.mxu0 %v1094_v2  ;;  %1194 = vmatpush.bf16.msra.mxu1 %v1094_v2  ;;  %v1080_v11 = vld [vmem:[%s1360_s30 + $0x40] sm:$0xff]  ;;  %v1081_v15 = vld [vmem:[%s1360_s30 + $0x48] sm:$0xff]  ;;  %v1086_v20 = vld [vmem:[%s1360_s30 + $0x70] sm:$0xff] }
  0x3b   : > { %1195 = vmatpush.bf16.msra.mxu2 %v1094_v2  ;;  %1196 = vmatpush.bf16.msra.mxu3 %v1094_v2  ;;  %v1084_v12 = vld [vmem:[%s1360_s30 + $0x60] sm:$0xff]  ;;  %v1085_v16 = vld [vmem:[%s1360_s30 + $0x68] sm:$0xff]  ;;  %v1075_v21 = vld [vmem:[%s1360_s30 + $0x18] sm:$0xff] }
  0x3c   : > { %v1079_v22 = vld [vmem:[%s1360_s30 + $0x38] sm:$0xff]  ;;  %v296_v25 = vld [vmem:[#allocation2 + $0xb0] sm:$0xff]  ;;  %v304_v26 = vld [vmem:[#allocation2 + $0x80] sm:$0xff] }
  0x3d   : > { %v1083_v23 = vld [vmem:[%s1360_s30 + $0x58] sm:$0xff]  ;;  %v320_v32 = vld [vmem:[#allocation2 + $0xa8] sm:$0xff]  ;;  %v297_v33 = vld [vmem:[#allocation2] sm:$0xff] }
  0x3e   : > { %522 = vmatpush.bf16.msra.mxu0 %v1093_v3  ;;  %1197 = vmatpush.bf16.msra.mxu1 %v1093_v3  ;;  %v1087_v24 = vld [vmem:[%s1360_s30 + $0x78] sm:$0xff]  ;;  %v305_v34 = vld [vmem:[#allocation2 + $0x88] sm:$0xff]  ;;  %v321_v44 = vld [vmem:[#allocation2 + $0xd0] sm:$0xff] }
  0x3f   : > { %1198 = vmatpush.bf16.msra.mxu2 %v1093_v3  ;;  %1199 = vmatpush.bf16.msra.mxu3 %v1093_v3  ;;  %v312_v31 = vld [vmem:[#allocation2 + $0x38] sm:$0xff]  ;;  %v306_v46 = vld [vmem:[#allocation2 + $0xe8] sm:$0xff]  ;;  %v314_v55 = vld [vmem:[#allocation2 + $0x40] sm:$0xff] }
  0x40   : > { %v313_v43 = vld [vmem:[#allocation2 + $0x58] sm:$0xff]  ;;  %v322_v56 = vld [vmem:[#allocation2 + $0x10] sm:$0xff]  ;;  %v315_v3 = vld [vmem:[#allocation2 + $0xc8] sm:$0xff] }
  0x41   : > { %v298_v45 = vld [vmem:[#allocation2 + $0xd8] sm:$0xff] }
  0x42   : > { %523 = vmatpush.bf16.msra.mxu0 %v1092_v4  ;;  %1200 = vmatpush.bf16.msra.mxu1 %v1092_v4  ;;  %v299_v57 = vld [vmem:[#allocation2 + $0x18] sm:$0xff] }
  0x43   : > { %1201 = vmatpush.bf16.msra.mxu2 %v1092_v4  ;;  %1202 = vmatpush.bf16.msra.mxu3 %v1092_v4  ;;  %v307_v58 = vld [vmem:[#allocation2 + $0xb8] sm:$0xff]  ;;  %v323_v4 = vld [vmem:[#allocation2 + $0x28] sm:$0xff] }
  0x46   : > { %524 = vmatpush.bf16.msra.mxu0 %v1091_v5  ;;  %1203 = vmatpush.bf16.msra.mxu1 %v1091_v5 }
  0x47   : > { %1204 = vmatpush.bf16.msra.mxu2 %v1091_v5  ;;  %1205 = vmatpush.bf16.msra.mxu3 %v1091_v5  ;;  %v300_v5 = vld [vmem:[#allocation2 + $0x50] sm:$0xff] }
  0x4a   : > { %525 = vmatpush.bf16.msra.mxu0 %v1090_v6  ;;  %1206 = vmatpush.bf16.msra.mxu1 %v1090_v6 }
  0x4b   : > { %1207 = vmatpush.bf16.msra.mxu2 %v1090_v6  ;;  %1208 = vmatpush.bf16.msra.mxu3 %v1090_v6  ;;  %v308_v6 = vld [vmem:[#allocation2 + $0x60] sm:$0xff] }
  0x4e   : > { %526 = vmatpush.bf16.msra.mxu0 %v1089_v7  ;;  %1209 = vmatpush.bf16.msra.mxu1 %v1089_v7 }
  0x4f   : > { %1210 = vmatpush.bf16.msra.mxu2 %v1089_v7  ;;  %1211 = vmatpush.bf16.msra.mxu3 %v1089_v7 }
  0x52   : > { %527 = vmatpush.bf16.msra.mxu0 %v1088_v8  ;;  %1212 = vmatpush.bf16.msra.mxu1 %v1088_v8 }
  0x53   : > { %1213 = vmatpush.bf16.msra.mxu2 %v1088_v8  ;;  %1214 = vmatpush.bf16.msra.mxu3 %v1088_v8 }
  0x55   : > { %528 = vmatmul.bf16.vlgmr.msra.gmra.mxu0 %v1072_v9  ;;  %548 = vmatmul.bf16.vlgmr.msra.gmra.mxu1 %v1076_v10 }
  0x56   : > { %568 = vmatmul.bf16.vlgmr.msra.gmra.mxu2 %v1080_v11  ;;  %588 = vmatmul.bf16.vlgmr.msra.gmra.mxu3 %v1084_v12 }
  0x65   : > { %533 = vmatmul.bf16.gmra.mxu0 %v1073_v13  ;;  %553 = vmatmul.bf16.gmra.mxu1 %v1077_v14 }
  0x66   : > { %573 = vmatmul.bf16.gmra.mxu2 %v1081_v15  ;;  %593 = vmatmul.bf16.gmra.mxu3 %v1085_v16  ;;  %v316_v15 = vld [vmem:[#allocation2 + $0xe0] sm:$0xff] }
  0x67   : > { %v324_v16 = vld [vmem:[#allocation2 + $0xa0] sm:$0xff] }
  0x75   : > { %538 = vmatmul.bf16.gmra.mxu0 %v1074_v17  ;;  %558 = vmatmul.bf16.gmra.mxu1 %v1078_v18  ;;  %v301_v17 = vld [vmem:[#allocation2 + $0x68] sm:$0xff]  ;;  %v309_v18 = vld [vmem:[#allocation2 + $0xf0] sm:$0xff] }
  0x76   : > { %578 = vmatmul.bf16.gmra.mxu2 %v1082_v19  ;;  %598 = vmatmul.bf16.gmra.mxu3 %v1086_v20 }
  0x85   : > { %543 = vmatmul.bf16.gmra.mxu0 %v1075_v21  ;;  %563 = vmatmul.bf16.gmra.mxu1 %v1079_v22 }
  0x86   : > { %583 = vmatmul.bf16.gmra.mxu2 %v1083_v23  ;;  %603 = vmatmul.bf16.gmra.mxu3 %v1087_v24 }
  0xd2   : > { %v529_v27 = vpop.f32.mrf.mxu0  ;;  %v549_v28 = vpop.f32.mrf.mxu1 }
  0xd3   : > { %v609_v29 = vadd.f32 %v529_v27, %v296_v25  ;;  %v617_v30 = vadd.f32 %v549_v28, %v304_v26  ;;  %v317_v27 = vld [vmem:[#allocation2 + $0x90] sm:$0xff]  ;;  %v325_v28 = vld [vmem:[#allocation2 + $0xf8] sm:$0xff] }
  0xd5   : > { %641 = vst [vmem:[#allocation2 + $0xb0] sm:$0xff] %v609_v29  ;;  %v302_v29 = vld [vmem:[#allocation2 + $0x30] sm:$0xff] }
  0xd6   : > { %649 = vst [vmem:[#allocation2 + $0x80] sm:$0xff] %v617_v30  ;;  %v310_v30 = vld [vmem:[#allocation2 + $0x8] sm:$0xff] }
  0xd9   : > { %v569_v35 = vpop.f32.mrf.mxu2  ;;  %v589_v36 = vpop.f32.mrf.mxu3 }
  0xda   : > { %v625_v37 = vadd.f32 %v569_v35, %v312_v31  ;;  %v633_v38 = vadd.f32 %v589_v36, %v320_v32  ;;  %v531_v39 = vpop.f32.mrf.mxu0  ;;  %v551_v40 = vpop.f32.mrf.mxu1 }
  0xdb   : > { %v610_v41 = vadd.f32 %v531_v39, %v297_v33  ;;  %v618_v42 = vadd.f32 %v551_v40, %v305_v34  ;;  %v318_v39 = vld [vmem:[#allocation2 + $0x70] sm:$0xff]  ;;  %v326_v40 = vld [vmem:[#allocation2 + $0x20] sm:$0xff] }
  0xdc   : > { %657 = vst [vmem:[#allocation2 + $0x38] sm:$0xff] %v625_v37 }
  0xdd   : > { %665 = vst [vmem:[#allocation2 + $0xa8] sm:$0xff] %v633_v38 }
  0xde   : > { %642 = vst [vmem:[#allocation2] sm:$0xff] %v610_v41  ;;  %v303_v41 = vld [vmem:[#allocation2 + $0x48] sm:$0xff] }
  0xdf   : > { %650 = vst [vmem:[#allocation2 + $0x88] sm:$0xff] %v618_v42  ;;  %v311_v42 = vld [vmem:[#allocation2 + $0x78] sm:$0xff] }
  0xe1   : > { %v571_v47 = vpop.f32.mrf.mxu2  ;;  %v591_v48 = vpop.f32.mrf.mxu3 }
  0xe2   : > { %v626_v49 = vadd.f32 %v571_v47, %v313_v43  ;;  %v634_v50 = vadd.f32 %v591_v48, %v321_v44  ;;  %v534_v51 = vpop.f32.mrf.mxu0  ;;  %v554_v52 = vpop.f32.mrf.mxu1 }
  0xe3   : > { %v611_v53 = vadd.f32 %v534_v51, %v298_v45  ;;  %v619_v54 = vadd.f32 %v554_v52, %v306_v46  ;;  %v319_v51 = vld [vmem:[#allocation2 + $0xc0] sm:$0xff]  ;;  %v327_v52 = vld [vmem:[#allocation2 + $0x98] sm:$0xff] }
  0xe4   : > { %658 = vst [vmem:[#allocation2 + $0x58] sm:$0xff] %v626_v49 }
  0xe5   : > { %666 = vst [vmem:[#allocation2 + $0xd0] sm:$0xff] %v634_v50 }
  0xe6   : > { %643 = vst [vmem:[#allocation2 + $0xd8] sm:$0xff] %v611_v53 }
  0xe7   : > { %651 = vst [vmem:[#allocation2 + $0xe8] sm:$0xff] %v619_v54 }
  0xe9   : > { %v574_v59 = vpop.f32.mrf.mxu2  ;;  %v594_v60 = vpop.f32.mrf.mxu3 }
  0xea   : > { %v627_v61 = vadd.f32 %v574_v59, %v314_v55  ;;  %v635_v62 = vadd.f32 %v594_v60, %v322_v56  ;;  %v536_v63 = vpop.f32.mrf.mxu0  ;;  %v556_v0 = vpop.f32.mrf.mxu1 }
  0xeb   : > { %v612_v1 = vadd.f32 %v536_v63, %v299_v57  ;;  %v620_v2 = vadd.f32 %v556_v0, %v307_v58 }
  0xec   : > { %659 = vst [vmem:[#allocation2 + $0x40] sm:$0xff] %v627_v61 }
  0xed   : > { %667 = vst [vmem:[#allocation2 + $0x10] sm:$0xff] %v635_v62 }
  0xee   : > { %644 = vst [vmem:[#allocation2 + $0x18] sm:$0xff] %v612_v1 }
  0xef   : > { %652 = vst [vmem:[#allocation2 + $0xb8] sm:$0xff] %v620_v2 }
  0xf1   : > { %v576_v7 = vpop.f32.mrf.mxu2  ;;  %v596_v8 = vpop.f32.mrf.mxu3 }
  0xf2   : > { %v628_v9 = vadd.f32 %v576_v7, %v315_v3  ;;  %v636_v10 = vadd.f32 %v596_v8, %v323_v4  ;;  %v539_v11 = vpop.f32.mrf.mxu0  ;;  %v559_v12 = vpop.f32.mrf.mxu1 }
  0xf3   : > { %v613_v13 = vadd.f32 %v539_v11, %v300_v5  ;;  %v621_v14 = vadd.f32 %v559_v12, %v308_v6 }
  0xf4   : > { %660 = vst [vmem:[#allocation2 + $0xc8] sm:$0xff] %v628_v9 }
  0xf5   : > { %668 = vst [vmem:[#allocation2 + $0x28] sm:$0xff] %v636_v10 }
  0xf6   : > { %645 = vst [vmem:[#allocation2 + $0x50] sm:$0xff] %v613_v13 }
  0xf7   : > { %653 = vst [vmem:[#allocation2 + $0x60] sm:$0xff] %v621_v14 }
  0xf9   : > { %v579_v19 = vpop.f32.mrf.mxu2  ;;  %v599_v20 = vpop.f32.mrf.mxu3 }
  0xfa   : > { %v629_v21 = vadd.f32 %v579_v19, %v316_v15  ;;  %v637_v22 = vadd.f32 %v599_v20, %v324_v16  ;;  %v541_v23 = vpop.f32.mrf.mxu0  ;;  %v561_v24 = vpop.f32.mrf.mxu1 }
  0xfb   : > { %v614_v25 = vadd.f32 %v541_v23, %v301_v17  ;;  %v622_v26 = vadd.f32 %v561_v24, %v309_v18 }
  0xfc   : > { %661 = vst [vmem:[#allocation2 + $0xe0] sm:$0xff] %v629_v21 }
  0xfd   : > { %669 = vst [vmem:[#allocation2 + $0xa0] sm:$0xff] %v637_v22 }
  0xfe   : > { %646 = vst [vmem:[#allocation2 + $0x68] sm:$0xff] %v614_v25 }
  0xff   : > { %654 = vst [vmem:[#allocation2 + $0xf0] sm:$0xff] %v622_v26 }
 0x101   : > { %v581_v31 = vpop.f32.mrf.mxu2  ;;  %v601_v32 = vpop.f32.mrf.mxu3 }
 0x102   : > { %v630_v33 = vadd.f32 %v581_v31, %v317_v27  ;;  %v638_v34 = vadd.f32 %v601_v32, %v325_v28  ;;  %v544_v35 = vpop.f32.mrf.mxu0  ;;  %v564_v36 = vpop.f32.mrf.mxu1 }
 0x103   : > { %v615_v37 = vadd.f32 %v544_v35, %v302_v29  ;;  %v623_v38 = vadd.f32 %v564_v36, %v310_v30 }
 0x104   : > { %662 = vst [vmem:[#allocation2 + $0x90] sm:$0xff] %v630_v33 }
 0x105   : > { %670 = vst [vmem:[#allocation2 + $0xf8] sm:$0xff] %v638_v34 }
 0x106   : > { %647 = vst [vmem:[#allocation2 + $0x30] sm:$0xff] %v615_v37 }
 0x107   : > { %655 = vst [vmem:[#allocation2 + $0x8] sm:$0xff] %v623_v38 }
 0x109   : > { %v584_v43 = vpop.f32.mrf.mxu2  ;;  %v604_v44 = vpop.f32.mrf.mxu3 }
 0x10a   : > { %v631_v45 = vadd.f32 %v584_v43, %v318_v39  ;;  %v639_v46 = vadd.f32 %v604_v44, %v326_v40  ;;  %v546_v47 = vpop.f32.mrf.mxu0  ;;  %v566_v48 = vpop.f32.mrf.mxu1 }
 0x10b   : > { %v616_v49 = vadd.f32 %v546_v47, %v303_v41  ;;  %v624_v50 = vadd.f32 %v566_v48, %v311_v42 }
 0x10c   : > { %663 = vst [vmem:[#allocation2 + $0x70] sm:$0xff] %v631_v45 }
 0x10d   : > { %671 = vst [vmem:[#allocation2 + $0x20] sm:$0xff] %v639_v46 }
 0x10e   : > { %648 = vst [vmem:[#allocation2 + $0x48] sm:$0xff] %v616_v49 }
 0x10f   : > { %656 = vst [vmem:[#allocation2 + $0x78] sm:$0xff] %v624_v50 }
 0x111   : > { %v586_v53 = vpop.f32.mrf.mxu2  ;;  %v606_v54 = vpop.f32.mrf.mxu3  ;;  %676 = sbr.rel (%p1068_p8) target bundleno = 304 (0x130), region = 40 }
 0x112   : > { %v632_v55 = vadd.f32 %v586_v53, %v319_v51  ;;  %v640_v56 = vadd.f32 %v606_v54, %v327_v52 }
 0x114   : > { %664 = vst [vmem:[#allocation2 + $0xc0] sm:$0xff] %v632_v55 }
 0x115   : > { %672 = vst [vmem:[#allocation2 + $0x98] sm:$0xff] %v640_v56 }
 0x116   : > { %v677_v57 = vld [vmem:[#allocation2 + $0xb0] sm:$0xff]  ;;  %v678_v58 = vld [vmem:[#allocation2] sm:$0xff]  ;;  %v679_v60 = vld [vmem:[#allocation2 + $0xd8] sm:$0xff] }
 0x117   : > { %v1396_v59 = vld [vmem:[%s1463_s2] ss:$0 sm:$0xff]  ;;  %v680_v61 = vld [vmem:[#allocation2 + $0x18] sm:$0xff]  ;;  %v681_v62 = vld [vmem:[#allocation2 + $0x50] sm:$0xff] }
 0x118   : > { %v682_v63 = vld [vmem:[#allocation2 + $0x68] sm:$0xff]  ;;  %v683_v0 = vld [vmem:[#allocation2 + $0x30] sm:$0xff]  ;;  %v713_v1 = vadd.f32 %v1396_v59, %v677_v57  ;;  %v714_v2 = vadd.f32 %v1396_v59, %v678_v58  ;;  %v715_v3 = vadd.f32 %v1396_v59, %v679_v60  ;;  %v716_v4 = vadd.f32 %v1396_v59, %v680_v61  ;;  %v685_v10 = vld [vmem:[#allocation2 + $0x80] sm:$0xff] }
 0x119   : > { %v684_v5 = vld [vmem:[#allocation2 + $0x48] sm:$0xff]  ;;  %v717_v6 = vadd.f32 %v1396_v59, %v681_v62  ;;  %v718_v7 = vadd.f32 %v1396_v59, %v682_v63  ;;  %v719_v8 = vadd.f32 %v1396_v59, %v683_v0  ;;  %v688_v17 = vld [vmem:[#allocation2 + $0xb8] sm:$0xff]  ;;  %v689_v22 = vld [vmem:[#allocation2 + $0x60] sm:$0xff]  ;;  %v721_v26 = vadd.f32 %v1396_v59, %v685_v10 }
 0x11a   : > { %v720_v9 = vadd.f32 %v1396_v59, %v684_v5  ;;  %v686_v11 = vld [vmem:[#allocation2 + $0x88] sm:$0xff]  ;;  %v745_v12 = vmax.f32 %v713_v1, 0.0  ;;  %v746_v13 = vmax.f32 %v714_v2, 0.0  ;;  %v747_v14 = vmax.f32 %v715_v3, 0.0  ;;  %v690_v23 = vld [vmem:[#allocation2 + $0xf0] sm:$0xff]  ;;  %v692_v29 = vld [vmem:[#allocation2 + $0x78] sm:$0xff] }
 0x11b   : > { %v748_v15 = vmax.f32 %v716_v4, 0.0  ;;  %v687_v16 = vld [vmem:[#allocation2 + $0xe8] sm:$0xff]  ;;  %v749_v18 = vmax.f32 %v717_v6, 0.0  ;;  %v750_v19 = vmax.f32 %v718_v7, 0.0  ;;  %v751_v20 = vmax.f32 %v719_v8, 0.0  ;;  %v693_v34 = vld [vmem:[#allocation2 + $0x38] sm:$0xff] }
 0x11c   : > { %v752_v21 = vmax.f32 %v720_v9, 0.0  ;;  %v1099_v24 = vpack.c.bf16 %v746_v13, %v745_v12  ;;  %v722_v27 = vadd.f32 %v1396_v59, %v686_v11  ;;  %v691_v28 = vld [vmem:[#allocation2 + $0x8] sm:$0xff]  ;;  %v723_v32 = vadd.f32 %v1396_v59, %v687_v16  ;;  %v694_v39 = vld [vmem:[#allocation2 + $0x58] sm:$0xff]  ;;  %v695_v44 = vld [vmem:[#allocation2 + $0x40] sm:$0xff] }
 0x11d   : > { %v1104_v25 = vpack.c.bf16 %v748_v15, %v747_v14  ;;  %v1109_v30 = vpack.c.bf16 %v750_v19, %v749_v18  ;;  %v724_v33 = vadd.f32 %v1396_v59, %v688_v17  ;;  %v753_v35 = vmax.f32 %v721_v26, 0.0  ;;  %v696_v45 = vld [vmem:[#allocation2 + $0xc8] sm:$0xff]  ;;  %v697_v50 = vld [vmem:[#allocation2 + $0xe0] sm:$0xff]  ;;  %v698_v51 = vld [vmem:[#allocation2 + $0x90] sm:$0xff] }
 0x11e   : > { %v1114_v31 = vpack.c.bf16 %v752_v21, %v751_v20  ;;  %1100 = vst [vmem:[%s1365_s6] sm:$0xff] %v1099_v24   ;;  %v754_v36 = vmax.f32 %v722_v27, 0.0  ;;  %v725_v37 = vadd.f32 %v1396_v59, %v689_v22  ;;  %v726_v38 = vadd.f32 %v1396_v59, %v690_v23  ;;  %v699_v56 = vld [vmem:[#allocation2 + $0x70] sm:$0xff]  ;;  %v700_v57 = vld [vmem:[#allocation2 + $0xc0] sm:$0xff]  ;;  %v701_v63 = vld [vmem:[#allocation2 + $0xa8] sm:$0xff] }
 0x11f   : > { %1176 = vst [vmem:[%s1365_s6 + $0x8] sm:$0xff] %v1104_v25   ;;  %v755_v40 = vmax.f32 %v723_v32, 0.0  ;;  %v756_v41 = vmax.f32 %v724_v33, 0.0  ;;  %v727_v42 = vadd.f32 %v1396_v59, %v691_v28  ;;  %v728_v43 = vadd.f32 %v1396_v59, %v692_v29  ;;  %v702_v4 = vld [vmem:[#allocation2 + $0xd0] sm:$0xff]  ;;  %v704_v10 = vld [vmem:[#allocation2 + $0x28] sm:$0xff]  ;;  %v705_v15 = vld [vmem:[#allocation2 + $0xa0] sm:$0xff] }
 0x120   : > { %1177 = vst [vmem:[%s1365_s6 + $0x10] sm:$0xff] %v1109_v30   ;;  %v1119_v46 = vpack.c.bf16 %v754_v36, %v753_v35  ;;  %v757_v47 = vmax.f32 %v725_v37, 0.0  ;;  %v758_v48 = vmax.f32 %v726_v38, 0.0  ;;  %v729_v49 = vadd.f32 %v1396_v59, %v693_v34  ;;  %v703_v9 = vld [vmem:[#allocation2 + $0x10] sm:$0xff]  ;;  %v706_v16 = vld [vmem:[#allocation2 + $0xf8] sm:$0xff]  ;;  %v707_v21 = vld [vmem:[#allocation2 + $0x20] sm:$0xff] }
 0x121   : > { %1178 = vst [vmem:[%s1365_s6 + $0x18] sm:$0xff] %v1114_v31   ;;  %v1124_v52 = vpack.c.bf16 %v756_v41, %v755_v40  ;;  %v759_v53 = vmax.f32 %v727_v42, 0.0  ;;  %v760_v54 = vmax.f32 %v728_v43, 0.0  ;;  %v730_v55 = vadd.f32 %v1396_v59, %v694_v39  ;;  %v708_v22 = vld [vmem:[#allocation2 + $0x98] sm:$0xff] }
 0x122   : > { %1179 = vst [vmem:[%s1365_s6 + $0x20] sm:$0xff] %v1119_v46   ;;  %v1129_v58 = vpack.c.bf16 %v758_v48, %v757_v47  ;;  %v761_v60 = vmax.f32 %v729_v49, 0.0  ;;  %v731_v61 = vadd.f32 %v1396_v59, %v695_v44  ;;  %v732_v62 = vadd.f32 %v1396_v59, %v696_v45 }
 0x123   : > { %1180 = vst [vmem:[%s1365_s6 + $0x28] sm:$0xff] %v1124_v52   ;;  %v1134_v0 = vpack.c.bf16 %v760_v54, %v759_v53  ;;  %v762_v1 = vmax.f32 %v730_v55, 0.0  ;;  %v733_v2 = vadd.f32 %v1396_v59, %v697_v50  ;;  %v734_v3 = vadd.f32 %v1396_v59, %v698_v51 }
 0x124   : > { %1181 = vst [vmem:[%s1365_s6 + $0x30] sm:$0xff] %v1129_v58   ;;  %v763_v5 = vmax.f32 %v731_v61, 0.0  ;;  %v764_v6 = vmax.f32 %v732_v62, 0.0  ;;  %v735_v7 = vadd.f32 %v1396_v59, %v699_v56  ;;  %v736_v8 = vadd.f32 %v1396_v59, %v700_v57 }
 0x125   : > { %1182 = vst [vmem:[%s1365_s6 + $0x38] sm:$0xff] %v1134_v0   ;;  %v1139_v11 = vpack.c.bf16 %v762_v1, %v761_v60  ;;  %v765_v12 = vmax.f32 %v733_v2, 0.0  ;;  %v766_v13 = vmax.f32 %v734_v3, 0.0  ;;  %v737_v14 = vadd.f32 %v1396_v59, %v701_v63 }
 0x126   : > { %v1144_v17 = vpack.c.bf16 %v764_v6, %v763_v5  ;;  %v767_v18 = vmax.f32 %v735_v7, 0.0  ;;  %v768_v19 = vmax.f32 %v736_v8, 0.0  ;;  %v738_v20 = vadd.f32 %v1396_v59, %v702_v4 }
 0x127   : > { %1183 = vst [vmem:[%s1365_s6 + $0x40] sm:$0xff] %v1139_v11   ;;  %v1149_v23 = vpack.c.bf16 %v766_v13, %v765_v12  ;;  %v769_v24 = vmax.f32 %v737_v14, 0.0  ;;  %v739_v25 = vadd.f32 %v1396_v59, %v703_v9  ;;  %v740_v26 = vadd.f32 %v1396_v59, %v704_v10 }
 0x128   : > { %1184 = vst [vmem:[%s1365_s6 + $0x48] sm:$0xff] %v1144_v17   ;;  %v1154_v27 = vpack.c.bf16 %v768_v19, %v767_v18  ;;  %v770_v28 = vmax.f32 %v738_v20, 0.0  ;;  %v741_v29 = vadd.f32 %v1396_v59, %v705_v15  ;;  %v742_v30 = vadd.f32 %v1396_v59, %v706_v16 }
 0x129   : > { %1185 = vst [vmem:[%s1365_s6 + $0x50] sm:$0xff] %v1149_v23   ;;  %v771_v31 = vmax.f32 %v739_v25, 0.0  ;;  %v772_v32 = vmax.f32 %v740_v26, 0.0  ;;  %v743_v33 = vadd.f32 %v1396_v59, %v707_v21  ;;  %v744_v34 = vadd.f32 %v1396_v59, %v708_v22 }
 0x12a   : > { %1186 = vst [vmem:[%s1365_s6 + $0x58] sm:$0xff] %v1154_v27   ;;  %v1159_v35 = vpack.c.bf16 %v770_v28, %v769_v24  ;;  %v773_v36 = vmax.f32 %v741_v29, 0.0  ;;  %v774_v37 = vmax.f32 %v742_v30, 0.0 }
 0x12b   : > { %v1164_v38 = vpack.c.bf16 %v772_v32, %v771_v31  ;;  %v775_v39 = vmax.f32 %v743_v33, 0.0  ;;  %v776_v40 = vmax.f32 %v744_v34, 0.0 }
 0x12c   : > { %1187 = vst [vmem:[%s1365_s6 + $0x60] sm:$0xff] %v1159_v35   ;;  %v1169_v41 = vpack.c.bf16 %v774_v37, %v773_v36 }
 0x12d   : > { %1188 = vst [vmem:[%s1365_s6 + $0x68] sm:$0xff] %v1164_v38   ;;  %v1174_v42 = vpack.c.bf16 %v776_v40, %v775_v39 }
 0x12e   : > { %1189 = vst [vmem:[%s1365_s6 + $0x70] sm:$0xff] %v1169_v41  }
 0x12f   : > { %1190 = vst [vmem:[%s1365_s6 + $0x78] sm:$0xff] %v1174_v42  }
 0x130 PF: > { %s13_s16 = sadd.s32 1, %s1295_s16   ;;  %s1465_s12 = smov %s1287_s14 }
 0x131   : > { %p10_p9 = scmp.ge.s32.totalorder %s13_s16, 20   ;;  %s1466_s13 = smov %s1291_s15 }
 0x132   : > { %s1467_s14 = smov %s1470_s17  ;;  %s1468_s15 = smov %s1474_s18 }
 0x133   :  { %12 = sbr.rel (!%p10_p9) target bundleno = 3 (0x3), region = 76 }

// kernel: vgg_network_forward.25
= control target key start
LH: loop header
LB: loop body
LE: loop exit
PB: predicated region body
PF: predicated region fallthrough
CT: control target
= control target key end

     0   :  { %s1146_s12 = smov 0   ;;  %s1148_s13 = smov 0   ;;  %s1316_s0 = inlined_call_operand.vmem [shape: bf16[9,128,128], index: 0, kind: input, shape index: {}]   ;;  %s1317_s1 = inlined_call_operand.vmem [shape: bf16[9,128,256], index: 1, kind: input, shape index: {}]   ;;  %s1318_s2 = inlined_call_operand.vmem [shape: f32[1,256], index: 2, kind: input, shape index: {}]   ;;  %s1319_s3 = inlined_call_operand.vmem [shape: bf16[128,256], index: 3, kind: output, shape index: {}]  }
   0x1   :  { %s1150_s14 = smov 0  }
   0x2 LB: > { %s25_s15 = sadd.s32 1, %s1119_s13  ;;  %p927_p0 = scmp.ge.s32.totalorder %s1123_s14, 1  ;;  %s1123_s14 = sphi %s1150_s14, %s13_s14   ;;  %s1119_s13 = sphi %s1148_s13, %s1321_s13   ;;  %s1115_s12 = sphi %s1146_s12, %s1320_s12  }
   0x3   : > { %p26_p1 = scmp.ge.s32.totalorder %s25_s15, 9  ;;  %p192_p2 = scmp.lt.s32.totalorder %s1123_s14, 10 }
   0x5   : > { %s1323_s15 = smov (%p26_p1, %s25_s15), 0  ;;  %p193_p3 = pnand %p927_p0, %p192_p2 }
   0x6   : > { %p239_p4 = scmp.lt.s32.totalorder (!%p193_p3), %s1115_s12, 8  ;;  %p932_p5 = scmp.ne.s32.totalorder (!%p193_p3), %s1115_s12, 0 }
   0x7   : > { %196 = sbr.rel (%p193_p3) target bundleno = 305 (0x131), region = 32 }
   0xc   : > { %s240_s16 = scalar_select %p239_p4, %s1115_s12, 8 }
   0xd   : > { %278 = sbr.rel (%p932_p5) target bundleno = 51 (0x33), region = 36 }
   0xe   : > { %s1034_s17 = sshll.u32 %s240_s16, 6  ;;  %s1035_s18 = sshll.u32 %s240_s16, 7 }
   0xf   : > { %s1171_s21 = scalar_lea.vmem %s1316_s0, %s1034_s17  ;;  %s1176_s24 = scalar_lea.vmem %s1317_s1, %s1035_s18 }
  0x12   : > { %v1125_v0 = vmov 0.0  }
  0x13   : > { %279 = vst [vmem:[#allocation2 + $0xb0] sm:$0xff] %v1125_v0 }
  0x14   : > { %280 = vst [vmem:[#allocation2] sm:$0xff] %v1125_v0 }
  0x15   : > { %281 = vst [vmem:[#allocation2 + $0xd8] sm:$0xff] %v1125_v0 }
  0x16   : > { %282 = vst [vmem:[#allocation2 + $0x18] sm:$0xff] %v1125_v0 }
  0x17   : > { %283 = vst [vmem:[#allocation2 + $0x50] sm:$0xff] %v1125_v0 }
  0x18   : > { %284 = vst [vmem:[#allocation2 + $0x68] sm:$0xff] %v1125_v0 }
  0x19   : > { %285 = vst [vmem:[#allocation2 + $0x30] sm:$0xff] %v1125_v0 }
  0x1a   : > { %286 = vst [vmem:[#allocation2 + $0x48] sm:$0xff] %v1125_v0 }
  0x1b   : > { %287 = vst [vmem:[#allocation2 + $0x80] sm:$0xff] %v1125_v0 }
  0x1c   : > { %288 = vst [vmem:[#allocation2 + $0x88] sm:$0xff] %v1125_v0 }
  0x1d   : > { %289 = vst [vmem:[#allocation2 + $0xe8] sm:$0xff] %v1125_v0 }
  0x1e   : > { %290 = vst [vmem:[#allocation2 + $0xb8] sm:$0xff] %v1125_v0 }
  0x1f   : > { %291 = vst [vmem:[#allocation2 + $0x60] sm:$0xff] %v1125_v0 }
  0x20   : > { %292 = vst [vmem:[#allocation2 + $0xf0] sm:$0xff] %v1125_v0 }
  0x21   : > { %293 = vst [vmem:[#allocation2 + $0x8] sm:$0xff] %v1125_v0 }
  0x22   : > { %294 = vst [vmem:[#allocation2 + $0x78] sm:$0xff] %v1125_v0 }
  0x23   : > { %295 = vst [vmem:[#allocation2 + $0x38] sm:$0xff] %v1125_v0 }
  0x24   : > { %296 = vst [vmem:[#allocation2 + $0x58] sm:$0xff] %v1125_v0 }
  0x25   : > { %297 = vst [vmem:[#allocation2 + $0x40] sm:$0xff] %v1125_v0 }
  0x26   : > { %298 = vst [vmem:[#allocation2 + $0xc8] sm:$0xff] %v1125_v0 }
  0x27   : > { %299 = vst [vmem:[#allocation2 + $0xe0] sm:$0xff] %v1125_v0 }
  0x28   : > { %300 = vst [vmem:[#allocation2 + $0x90] sm:$0xff] %v1125_v0 }
  0x29   : > { %301 = vst [vmem:[#allocation2 + $0x70] sm:$0xff] %v1125_v0 }
  0x2a   : > { %302 = vst [vmem:[#allocation2 + $0xc0] sm:$0xff] %v1125_v0 }
  0x2b   : > { %303 = vst [vmem:[#allocation2 + $0xa8] sm:$0xff] %v1125_v0 }
  0x2c   : > { %304 = vst [vmem:[#allocation2 + $0xd0] sm:$0xff] %v1125_v0 }
  0x2d   : > { %305 = vst [vmem:[#allocation2 + $0x10] sm:$0xff] %v1125_v0 }
  0x2e   : > { %306 = vst [vmem:[#allocation2 + $0x28] sm:$0xff] %v1125_v0 }
  0x2f   : > { %307 = vst [vmem:[#allocation2 + $0xa0] sm:$0xff] %v1125_v0 }
  0x30   : > { %308 = vst [vmem:[#allocation2 + $0xf8] sm:$0xff] %v1125_v0 }
  0x31   : > { %309 = vst [vmem:[#allocation2 + $0x20] sm:$0xff] %v1125_v0 }
  0x32   : > { %310 = vst [vmem:[#allocation2 + $0x98] sm:$0xff] %v1125_v0 }
  0x33 PF: > { %v1023_v1 = vld [vmem:[%s1176_s24 + $0x70] sm:$0xf]  ;;  %v1059_v2 = vld [vmem:[%s1176_s24 + $0x74] sm:$0xf0]  ;;  %v1058_v3 = vld [vmem:[%s1176_s24 + $0x74] sm:$0xf] }
  0x34   : > { %v1024_v4 = vor.u32 %v1059_v2, %v1023_v1  ;;  %v1025_v5 = vld [vmem:[%s1176_s24 + $0x78] sm:$0xf0]  ;;  %v1015_v6 = vld [vmem:[%s1176_s24 + $0x60] sm:$0xf]  ;;  %v1057_v7 = vld [vmem:[%s1176_s24 + $0x64] sm:$0xf0] }
  0x35   : > { %v1028_v8 = vor.u32 %v1058_v3, %v1025_v5  ;;  %v1056_v9 = vld [vmem:[%s1176_s24 + $0x64] sm:$0xf]  ;;  %v1017_v10 = vld [vmem:[%s1176_s24 + $0x68] sm:$0xf0]  ;;  %v1016_v11 = vor.u32 %v1057_v7, %v1015_v6  ;;  %v1007_v13 = vld [vmem:[%s1176_s24 + $0x50] sm:$0xf] }
  0x36   : > { %503 = vmatpush.bf16.msra.mxu0 %v1024_v4  ;;  %1060 = vmatpush.bf16.msra.mxu2 %v1024_v4  ;;  %v1020_v12 = vor.u32 %v1056_v9, %v1017_v10  ;;  %v1055_v14 = vld [vmem:[%s1176_s24 + $0x54] sm:$0xf0]  ;;  %v1054_v15 = vld [vmem:[%s1176_s24 + $0x54] sm:$0xf]  ;;  %v1009_v16 = vld [vmem:[%s1176_s24 + $0x58] sm:$0xf0] }
  0x37   : > { %552 = vmatpush.bf16.msra.mxu1 %v1028_v8  ;;  %1068 = vmatpush.bf16.msra.mxu3 %v1028_v8  ;;  %v1008_v17 = vor.u32 %v1055_v14, %v1007_v13  ;;  %v1012_v18 = vor.u32 %v1054_v15, %v1009_v16  ;;  %v999_v19 = vld [vmem:[%s1176_s24 + $0x40] sm:$0xf]  ;;  %v1053_v20 = vld [vmem:[%s1176_s24 + $0x44] sm:$0xf0]  ;;  %v1052_v21 = vld [vmem:[%s1176_s24 + $0x44] sm:$0xf] }
  0x38   : > { %v1001_v22 = vld [vmem:[%s1176_s24 + $0x48] sm:$0xf0]  ;;  %v1000_v23 = vor.u32 %v1053_v20, %v999_v19  ;;  %v991_v25 = vld [vmem:[%s1176_s24 + $0x30] sm:$0xf]  ;;  %v1051_v26 = vld [vmem:[%s1176_s24 + $0x34] sm:$0xf0] }
  0x39   : > { %v1004_v24 = vor.u32 %v1052_v21, %v1001_v22  ;;  %v1050_v27 = vld [vmem:[%s1176_s24 + $0x34] sm:$0xf]  ;;  %v993_v28 = vld [vmem:[%s1176_s24 + $0x38] sm:$0xf0]  ;;  %v992_v29 = vor.u32 %v1051_v26, %v991_v25  ;;  %v983_v31 = vld [vmem:[%s1176_s24 + $0x20] sm:$0xf] }
  0x3a   : > { %504 = vmatpush.bf16.msra.mxu0 %v1016_v11  ;;  %1061 = vmatpush.bf16.msra.mxu2 %v1016_v11  ;;  %v996_v30 = vor.u32 %v1050_v27, %v993_v28  ;;  %v1049_v32 = vld [vmem:[%s1176_s24 + $0x24] sm:$0xf0]  ;;  %v1048_v33 = vld [vmem:[%s1176_s24 + $0x24] sm:$0xf]  ;;  %v985_v34 = vld [vmem:[%s1176_s24 + $0x28] sm:$0xf0] }
  0x3b   : > { %553 = vmatpush.bf16.msra.mxu1 %v1020_v12  ;;  %1069 = vmatpush.bf16.msra.mxu3 %v1020_v12  ;;  %v984_v35 = vor.u32 %v1049_v32, %v983_v31  ;;  %v988_v36 = vor.u32 %v1048_v33, %v985_v34  ;;  %v975_v37 = vld [vmem:[%s1176_s24 + $0x10] sm:$0xf]  ;;  %v1047_v38 = vld [vmem:[%s1176_s24 + $0x14] sm:$0xf0]  ;;  %v1046_v39 = vld [vmem:[%s1176_s24 + $0x14] sm:$0xf] }
  0x3c   : > { %v977_v40 = vld [vmem:[%s1176_s24 + $0x18] sm:$0xf0]  ;;  %v976_v41 = vor.u32 %v1047_v38, %v975_v37  ;;  %v967_v43 = vld [vmem:[%s1176_s24] sm:$0xf]  ;;  %v1045_v44 = vld [vmem:[%s1176_s24 + $0x4] sm:$0xf0] }
  0x3d   : > { %v980_v42 = vor.u32 %v1046_v39, %v977_v40  ;;  %v1044_v45 = vld [vmem:[%s1176_s24 + $0x4] sm:$0xf]  ;;  %v969_v46 = vld [vmem:[%s1176_s24 + $0x8] sm:$0xf0]  ;;  %v968_v47 = vor.u32 %v1045_v44, %v967_v43  ;;  %v1038_v53 = vld [vmem:[%s1171_s21 + $0x10] sm:$0xff]  ;;  %p1029_p6 = scmp.ne.s32.totalorder %s1115_s12, 8 }
  0x3e   : > { %505 = vmatpush.bf16.msra.mxu0 %v1008_v17  ;;  %1062 = vmatpush.bf16.msra.mxu2 %v1008_v17  ;;  %v972_v48 = vor.u32 %v1044_v45, %v969_v46  ;;  %v1036_v49 = vld [vmem:[%s1171_s21] sm:$0xff]  ;;  %v1037_v51 = vld [vmem:[%s1171_s21 + $0x8] sm:$0xff]  ;;  %v1042_v54 = vld [vmem:[%s1171_s21 + $0x30] sm:$0xff] }
  0x3f   : > { %554 = vmatpush.bf16.msra.mxu1 %v1012_v18  ;;  %1070 = vmatpush.bf16.msra.mxu3 %v1012_v18  ;;  %v1040_v50 = vld [vmem:[%s1171_s21 + $0x20] sm:$0xff]  ;;  %v1041_v52 = vld [vmem:[%s1171_s21 + $0x28] sm:$0xff]  ;;  %v1039_v55 = vld [vmem:[%s1171_s21 + $0x18] sm:$0xff] }
  0x40   : > { %v1043_v56 = vld [vmem:[%s1171_s21 + $0x38] sm:$0xff]  ;;  %v311_v57 = vld [vmem:[#allocation2 + $0xb0] sm:$0xff]  ;;  %v312_v58 = vld [vmem:[#allocation2] sm:$0xff] }
  0x41   : > { %v327_v63 = vld [vmem:[#allocation2 + $0x38] sm:$0xff]  ;;  %v329_v11 = vld [vmem:[#allocation2 + $0x40] sm:$0xff]  ;;  %v330_v12 = vld [vmem:[#allocation2 + $0xc8] sm:$0xff] }
  0x42   : > { %506 = vmatpush.bf16.msra.mxu0 %v1000_v23  ;;  %1063 = vmatpush.bf16.msra.mxu2 %v1000_v23  ;;  %v328_v0 = vld [vmem:[#allocation2 + $0x58] sm:$0xff]  ;;  %v315_v14 = vld [vmem:[#allocation2 + $0x50] sm:$0xff]  ;;  %v316_v17 = vld [vmem:[#allocation2 + $0x68] sm:$0xff] }
  0x43   : > { %555 = vmatpush.bf16.msra.mxu1 %v1004_v24  ;;  %1071 = vmatpush.bf16.msra.mxu3 %v1004_v24  ;;  %v313_v2 = vld [vmem:[#allocation2 + $0xd8] sm:$0xff]  ;;  %v331_v23 = vld [vmem:[#allocation2 + $0xe0] sm:$0xff]  ;;  %v332_v24 = vld [vmem:[#allocation2 + $0x90] sm:$0xff] }
  0x44   : > { %v314_v5 = vld [vmem:[#allocation2 + $0x18] sm:$0xff]  ;;  %v317_v26 = vld [vmem:[#allocation2 + $0x30] sm:$0xff]  ;;  %v319_v38 = vld [vmem:[#allocation2 + $0x80] sm:$0xff] }
  0x46   : > { %507 = vmatpush.bf16.msra.mxu0 %v992_v29  ;;  %1064 = vmatpush.bf16.msra.mxu2 %v992_v29  ;;  %v318_v29 = vld [vmem:[#allocation2 + $0x48] sm:$0xff] }
  0x47   : > { %556 = vmatpush.bf16.msra.mxu1 %v996_v30  ;;  %1072 = vmatpush.bf16.msra.mxu3 %v996_v30 }
  0x4a   : > { %508 = vmatpush.bf16.msra.mxu0 %v984_v35  ;;  %1065 = vmatpush.bf16.msra.mxu2 %v984_v35  ;;  %v333_v35 = vld [vmem:[#allocation2 + $0x70] sm:$0xff] }
  0x4b   : > { %557 = vmatpush.bf16.msra.mxu1 %v988_v36  ;;  %1073 = vmatpush.bf16.msra.mxu3 %v988_v36  ;;  %v334_v36 = vld [vmem:[#allocation2 + $0xc0] sm:$0xff] }
  0x4e   : > { %509 = vmatpush.bf16.msra.mxu0 %v976_v41  ;;  %1066 = vmatpush.bf16.msra.mxu2 %v976_v41  ;;  %v320_v41 = vld [vmem:[#allocation2 + $0x88] sm:$0xff] }
  0x4f   : > { %558 = vmatpush.bf16.msra.mxu1 %v980_v42  ;;  %1074 = vmatpush.bf16.msra.mxu3 %v980_v42 }
  0x52   : > { %510 = vmatpush.bf16.msra.mxu0 %v968_v47  ;;  %1067 = vmatpush.bf16.msra.mxu2 %v968_v47  ;;  %v335_v47 = vld [vmem:[#allocation2 + $0xa8] sm:$0xff] }
  0x53   : > { %559 = vmatpush.bf16.msra.mxu1 %v972_v48  ;;  %1075 = vmatpush.bf16.msra.mxu3 %v972_v48  ;;  %v336_v48 = vld [vmem:[#allocation2 + $0xd0] sm:$0xff] }
  0x55   : > { %511 = vmatmul.bf16.vlgmr.msra.gmra.mxu0 %v1036_v49  ;;  %531 = vmatmul.bf16.vlgmr.msra.gmra.mxu2 %v1040_v50 }
  0x56   : > { %560 = vmatmul.bf16.vlgmr.msra.gmra.mxu1 %v1036_v49  ;;  %580 = vmatmul.bf16.vlgmr.msra.gmra.mxu3 %v1040_v50  ;;  %v321_v50 = vld [vmem:[#allocation2 + $0xe8] sm:$0xff] }
  0x65   : > { %516 = vmatmul.bf16.gmra.mxu0 %v1037_v51  ;;  %536 = vmatmul.bf16.gmra.mxu2 %v1041_v52 }
  0x66   : > { %565 = vmatmul.bf16.gmra.mxu1 %v1037_v51  ;;  %585 = vmatmul.bf16.gmra.mxu3 %v1041_v52 }
  0x75   : > { %521 = vmatmul.bf16.gmra.mxu0 %v1038_v53  ;;  %541 = vmatmul.bf16.gmra.mxu2 %v1042_v54 }
  0x76   : > { %570 = vmatmul.bf16.gmra.mxu1 %v1038_v53  ;;  %590 = vmatmul.bf16.gmra.mxu3 %v1042_v54  ;;  %v322_v53 = vld [vmem:[#allocation2 + $0xb8] sm:$0xff] }
  0x85   : > { %526 = vmatmul.bf16.gmra.mxu0 %v1039_v55  ;;  %546 = vmatmul.bf16.gmra.mxu2 %v1043_v56 }
  0x86   : > { %575 = vmatmul.bf16.gmra.mxu1 %v1039_v55  ;;  %595 = vmatmul.bf16.gmra.mxu3 %v1043_v56 }
  0xd2   : > { %v512_v59 = vpop.f32.mrf.mxu0 }
  0xd3   : > { %v601_v60 = vadd.f32 %v512_v59, %v311_v57  ;;  %v561_v61 = vpop.f32.mrf.mxu1  ;;  %v337_v59 = vld [vmem:[#allocation2 + $0x10] sm:$0xff] }
  0xd4   : > { %v602_v62 = vadd.f32 %v561_v61, %v312_v58 }
  0xd5   : > { %633 = vst [vmem:[#allocation2 + $0xb0] sm:$0xff] %v601_v60  ;;  %v338_v60 = vld [vmem:[#allocation2 + $0x28] sm:$0xff] }
  0xd6   : > { %634 = vst [vmem:[#allocation2] sm:$0xff] %v602_v62  ;;  %v323_v62 = vld [vmem:[#allocation2 + $0x60] sm:$0xff] }
  0xd8   : > { %v532_v1 = vpop.f32.mrf.mxu2 }
  0xd9   : > { %v617_v3 = vadd.f32 %v532_v1, %v327_v63  ;;  %v581_v4 = vpop.f32.mrf.mxu3  ;;  %v324_v1 = vld [vmem:[#allocation2 + $0xf0] sm:$0xff] }
  0xda   : > { %v618_v6 = vadd.f32 %v581_v4, %v328_v0  ;;  %v514_v7 = vpop.f32.mrf.mxu0 }
  0xdb   : > { %649 = vst [vmem:[#allocation2 + $0x38] sm:$0xff] %v617_v3  ;;  %v603_v8 = vadd.f32 %v514_v7, %v313_v2  ;;  %v563_v9 = vpop.f32.mrf.mxu1  ;;  %v339_v7 = vld [vmem:[#allocation2 + $0xa0] sm:$0xff] }
  0xdc   : > { %650 = vst [vmem:[#allocation2 + $0x58] sm:$0xff] %v618_v6  ;;  %v604_v10 = vadd.f32 %v563_v9, %v314_v5 }
  0xdd   : > { %635 = vst [vmem:[#allocation2 + $0xd8] sm:$0xff] %v603_v8  ;;  %v340_v8 = vld [vmem:[#allocation2 + $0xf8] sm:$0xff] }
  0xde   : > { %636 = vst [vmem:[#allocation2 + $0x18] sm:$0xff] %v604_v10  ;;  %v325_v10 = vld [vmem:[#allocation2 + $0x8] sm:$0xff] }
  0xe0   : > { %v534_v13 = vpop.f32.mrf.mxu2 }
  0xe1   : > { %v619_v15 = vadd.f32 %v534_v13, %v329_v11  ;;  %v583_v16 = vpop.f32.mrf.mxu3  ;;  %v326_v13 = vld [vmem:[#allocation2 + $0x78] sm:$0xff] }
  0xe2   : > { %v620_v18 = vadd.f32 %v583_v16, %v330_v12  ;;  %v517_v19 = vpop.f32.mrf.mxu0 }
  0xe3   : > { %651 = vst [vmem:[#allocation2 + $0x40] sm:$0xff] %v619_v15  ;;  %v605_v20 = vadd.f32 %v517_v19, %v315_v14  ;;  %v566_v21 = vpop.f32.mrf.mxu1  ;;  %v341_v19 = vld [vmem:[#allocation2 + $0x20] sm:$0xff] }
  0xe4   : > { %652 = vst [vmem:[#allocation2 + $0xc8] sm:$0xff] %v620_v18  ;;  %v606_v22 = vadd.f32 %v566_v21, %v316_v17 }
  0xe5   : > { %637 = vst [vmem:[#allocation2 + $0x50] sm:$0xff] %v605_v20  ;;  %v342_v20 = vld [vmem:[#allocation2 + $0x98] sm:$0xff] }
  0xe6   : > { %638 = vst [vmem:[#allocation2 + $0x68] sm:$0xff] %v606_v22 }
  0xe8   : > { %v537_v25 = vpop.f32.mrf.mxu2 }
  0xe9   : > { %v621_v27 = vadd.f32 %v537_v25, %v331_v23  ;;  %v586_v28 = vpop.f32.mrf.mxu3 }
  0xea   : > { %v622_v30 = vadd.f32 %v586_v28, %v332_v24  ;;  %v519_v31 = vpop.f32.mrf.mxu0 }
  0xeb   : > { %653 = vst [vmem:[#allocation2 + $0xe0] sm:$0xff] %v621_v27  ;;  %v607_v32 = vadd.f32 %v519_v31, %v317_v26  ;;  %v568_v33 = vpop.f32.mrf.mxu1 }
  0xec   : > { %654 = vst [vmem:[#allocation2 + $0x90] sm:$0xff] %v622_v30  ;;  %v608_v34 = vadd.f32 %v568_v33, %v318_v29 }
  0xed   : > { %639 = vst [vmem:[#allocation2 + $0x30] sm:$0xff] %v607_v32 }
  0xee   : > { %640 = vst [vmem:[#allocation2 + $0x48] sm:$0xff] %v608_v34 }
  0xf0   : > { %v539_v37 = vpop.f32.mrf.mxu2 }
  0xf1   : > { %v623_v39 = vadd.f32 %v539_v37, %v333_v35  ;;  %v588_v40 = vpop.f32.mrf.mxu3 }
  0xf2   : > { %v624_v42 = vadd.f32 %v588_v40, %v334_v36  ;;  %v522_v43 = vpop.f32.mrf.mxu0 }
  0xf3   : > { %655 = vst [vmem:[#allocation2 + $0x70] sm:$0xff] %v623_v39  ;;  %v609_v44 = vadd.f32 %v522_v43, %v319_v38  ;;  %v571_v45 = vpop.f32.mrf.mxu1 }
  0xf4   : > { %656 = vst [vmem:[#allocation2 + $0xc0] sm:$0xff] %v624_v42  ;;  %v610_v46 = vadd.f32 %v571_v45, %v320_v41 }
  0xf5   : > { %641 = vst [vmem:[#allocation2 + $0x80] sm:$0xff] %v609_v44 }
  0xf6   : > { %642 = vst [vmem:[#allocation2 + $0x88] sm:$0xff] %v610_v46 }
  0xf8   : > { %v542_v49 = vpop.f32.mrf.mxu2 }
  0xf9   : > { %v625_v51 = vadd.f32 %v542_v49, %v335_v47  ;;  %v591_v52 = vpop.f32.mrf.mxu3 }
  0xfa   : > { %v626_v54 = vadd.f32 %v591_v52, %v336_v48  ;;  %v524_v55 = vpop.f32.mrf.mxu0 }
  0xfb   : > { %657 = vst [vmem:[#allocation2 + $0xa8] sm:$0xff] %v625_v51  ;;  %v611_v56 = vadd.f32 %v524_v55, %v321_v50  ;;  %v573_v57 = vpop.f32.mrf.mxu1 }
  0xfc   : > { %658 = vst [vmem:[#allocation2 + $0xd0] sm:$0xff] %v626_v54  ;;  %v612_v58 = vadd.f32 %v573_v57, %v322_v53 }
  0xfd   : > { %643 = vst [vmem:[#allocation2 + $0xe8] sm:$0xff] %v611_v56 }
  0xfe   : > { %644 = vst [vmem:[#allocation2 + $0xb8] sm:$0xff] %v612_v58 }
 0x100   : > { %v544_v61 = vpop.f32.mrf.mxu2 }
 0x101   : > { %v627_v63 = vadd.f32 %v544_v61, %v337_v59  ;;  %v593_v0 = vpop.f32.mrf.mxu3 }
 0x102   : > { %v628_v2 = vadd.f32 %v593_v0, %v338_v60  ;;  %v527_v3 = vpop.f32.mrf.mxu0 }
 0x103   : > { %659 = vst [vmem:[#allocation2 + $0x10] sm:$0xff] %v627_v63  ;;  %v613_v4 = vadd.f32 %v527_v3, %v323_v62  ;;  %v576_v5 = vpop.f32.mrf.mxu1 }
 0x104   : > { %660 = vst [vmem:[#allocation2 + $0x28] sm:$0xff] %v628_v2  ;;  %v614_v6 = vadd.f32 %v576_v5, %v324_v1 }
 0x105   : > { %645 = vst [vmem:[#allocation2 + $0x60] sm:$0xff] %v613_v4 }
 0x106   : > { %646 = vst [vmem:[#allocation2 + $0xf0] sm:$0xff] %v614_v6 }
 0x108   : > { %v547_v9 = vpop.f32.mrf.mxu2 }
 0x109   : > { %v629_v11 = vadd.f32 %v547_v9, %v339_v7  ;;  %v596_v12 = vpop.f32.mrf.mxu3 }
 0x10a   : > { %v630_v14 = vadd.f32 %v596_v12, %v340_v8  ;;  %v529_v15 = vpop.f32.mrf.mxu0 }
 0x10b   : > { %661 = vst [vmem:[#allocation2 + $0xa0] sm:$0xff] %v629_v11  ;;  %v615_v16 = vadd.f32 %v529_v15, %v325_v10  ;;  %v578_v17 = vpop.f32.mrf.mxu1 }
 0x10c   : > { %662 = vst [vmem:[#allocation2 + $0xf8] sm:$0xff] %v630_v14  ;;  %v616_v18 = vadd.f32 %v578_v17, %v326_v13 }
 0x10d   : > { %647 = vst [vmem:[#allocation2 + $0x8] sm:$0xff] %v615_v16 }
 0x10e   : > { %648 = vst [vmem:[#allocation2 + $0x78] sm:$0xff] %v616_v18 }
 0x110   : > { %v549_v21 = vpop.f32.mrf.mxu2  ;;  %668 = sbr.rel (%p1029_p6) target bundleno = 305 (0x131), region = 40 }
 0x111   : > { %v631_v22 = vadd.f32 %v549_v21, %v341_v19  ;;  %v598_v23 = vpop.f32.mrf.mxu3 }
 0x112   : > { %v632_v24 = vadd.f32 %v598_v23, %v342_v20 }
 0x113   : > { %663 = vst [vmem:[#allocation2 + $0x20] sm:$0xff] %v631_v22 }
 0x114   : > { %664 = vst [vmem:[#allocation2 + $0x98] sm:$0xff] %v632_v24 }
 0x115   : > { %v669_v25 = vld [vmem:[#allocation2 + $0xb0] sm:$0xff]  ;;  %v670_v26 = vld [vmem:[#allocation2] sm:$0xff]  ;;  %v671_v30 = vld [vmem:[#allocation2 + $0xd8] sm:$0xff] }
 0x116   : > { %v701_v27 = vld [vmem:[%s1318_s2] sm:$0x3]  ;;  %v672_v31 = vld [vmem:[#allocation2 + $0x18] sm:$0xff]  ;;  %v673_v32 = vld [vmem:[#allocation2 + $0x50] sm:$0xff] }
 0x117   : > { %v1223_v28 = vperm.slane %v701_v27, 0  ;;  %v1225_v29 = vperm.slane %v701_v27, 1  ;;  %v674_v33 = vld [vmem:[#allocation2 + $0x68] sm:$0xff]  ;;  %v675_v34 = vld [vmem:[#allocation2 + $0x30] sm:$0xff]  ;;  %v677_v44 = vld [vmem:[#allocation2 + $0x80] sm:$0xff] }
 0x118   : > { %v676_v35 = vld [vmem:[#allocation2 + $0x48] sm:$0xff]  ;;  %v680_v51 = vld [vmem:[#allocation2 + $0xb8] sm:$0xff]  ;;  %v681_v56 = vld [vmem:[#allocation2 + $0x60] sm:$0xff] }
 0x119   : > { %v707_v36 = vadd.f32 %v1223_v28, %v669_v25  ;;  %v708_v37 = vadd.f32 %v1225_v29, %v670_v26  ;;  %v709_v38 = vadd.f32 %v1223_v28, %v671_v30  ;;  %v710_v39 = vadd.f32 %v1225_v29, %v672_v31  ;;  %v678_v45 = vld [vmem:[#allocation2 + $0x88] sm:$0xff]  ;;  %v682_v57 = vld [vmem:[#allocation2 + $0xf0] sm:$0xff]  ;;  %v684_v63 = vld [vmem:[#allocation2 + $0x78] sm:$0xff] }
 0x11a   : > { %v711_v40 = vadd.f32 %v1223_v28, %v673_v32  ;;  %v712_v41 = vadd.f32 %v1225_v29, %v674_v33  ;;  %v713_v42 = vadd.f32 %v1223_v28, %v675_v34  ;;  %v714_v43 = vadd.f32 %v1225_v29, %v676_v35  ;;  %v679_v50 = vld [vmem:[#allocation2 + $0xe8] sm:$0xff]  ;;  %v685_v4 = vld [vmem:[#allocation2 + $0x38] sm:$0xff]  ;;  %v687_v14 = vld [vmem:[#allocation2 + $0x40] sm:$0xff] }
 0x11b   : > { %v739_v46 = vmax.f32 %v707_v36, 0.0  ;;  %v740_v47 = vmax.f32 %v708_v37, 0.0  ;;  %v741_v48 = vmax.f32 %v709_v38, 0.0  ;;  %v742_v49 = vmax.f32 %v710_v39, 0.0  ;;  %v683_v62 = vld [vmem:[#allocation2 + $0x8] sm:$0xff]  ;;  %v686_v9 = vld [vmem:[#allocation2 + $0x58] sm:$0xff] }
 0x11c   : > { %v743_v52 = vmax.f32 %v711_v40, 0.0  ;;  %v744_v53 = vmax.f32 %v712_v41, 0.0  ;;  %v745_v54 = vmax.f32 %v713_v42, 0.0  ;;  %v746_v55 = vmax.f32 %v714_v43, 0.0  ;;  %v688_v15 = vld [vmem:[#allocation2 + $0xc8] sm:$0xff]  ;;  %v689_v20 = vld [vmem:[#allocation2 + $0xe0] sm:$0xff] }
 0x11d   : > { %v771_v58 = vpack.c.bf16 %v740_v47, %v739_v46  ;;  %v772_v59 = vpack.c.bf16 %v742_v49, %v741_v48  ;;  %v715_v60 = vadd.f32 %v1223_v28, %v677_v44  ;;  %v716_v61 = vadd.f32 %v1225_v29, %v678_v45  ;;  %v690_v21 = vld [vmem:[#allocation2 + $0x90] sm:$0xff]  ;;  %v692_v27 = vld [vmem:[#allocation2 + $0xc0] sm:$0xff]  ;;  %v693_v34 = vld [vmem:[#allocation2 + $0xa8] sm:$0xff] }
 0x11e   : > { %v773_v0 = vpack.c.bf16 %v744_v53, %v743_v52  ;;  %v774_v1 = vpack.c.bf16 %v746_v55, %v745_v54  ;;  %v717_v2 = vadd.f32 %v1223_v28, %v679_v50  ;;  %v718_v3 = vadd.f32 %v1225_v29, %v680_v51  ;;  %v691_v26 = vld [vmem:[#allocation2 + $0x70] sm:$0xff]  ;;  %v696_v45 = vld [vmem:[#allocation2 + $0x28] sm:$0xff]  ;;  %v697_v50 = vld [vmem:[#allocation2 + $0xa0] sm:$0xff] }
 0x11f   : > { %787 = vst [vmem:[%s1319_s3] sm:$0xff] %v771_v58  ;;  %v747_v5 = vmax.f32 %v715_v60, 0.0  ;;  %v748_v6 = vmax.f32 %v716_v61, 0.0  ;;  %v719_v7 = vadd.f32 %v1223_v28, %v681_v56  ;;  %v720_v8 = vadd.f32 %v1225_v29, %v682_v57  ;;  %v694_v39 = vld [vmem:[#allocation2 + $0xd0] sm:$0xff]  ;;  %v698_v51 = vld [vmem:[#allocation2 + $0xf8] sm:$0xff]  ;;  %v699_v56 = vld [vmem:[#allocation2 + $0x20] sm:$0xff] }
 0x120   : > { %788 = vst [vmem:[%s1319_s3 + $0x8] sm:$0xff] %v772_v59  ;;  %v749_v10 = vmax.f32 %v717_v2, 0.0  ;;  %v750_v11 = vmax.f32 %v718_v3, 0.0  ;;  %v721_v12 = vadd.f32 %v1223_v28, %v683_v62  ;;  %v722_v13 = vadd.f32 %v1225_v29, %v684_v63  ;;  %v695_v44 = vld [vmem:[#allocation2 + $0x10] sm:$0xff]  ;;  %v700_v57 = vld [vmem:[#allocation2 + $0x98] sm:$0xff] }
 0x121   : > { %789 = vst [vmem:[%s1319_s3 + $0x10] sm:$0xff] %v773_v0  ;;  %v775_v16 = vpack.c.bf16 %v748_v6, %v747_v5  ;;  %v751_v17 = vmax.f32 %v719_v7, 0.0  ;;  %v752_v18 = vmax.f32 %v720_v8, 0.0  ;;  %v723_v19 = vadd.f32 %v1223_v28, %v685_v4 }
 0x122   : > { %790 = vst [vmem:[%s1319_s3 + $0x18] sm:$0xff] %v774_v1  ;;  %v776_v22 = vpack.c.bf16 %v750_v11, %v749_v10  ;;  %v753_v23 = vmax.f32 %v721_v12, 0.0  ;;  %v754_v24 = vmax.f32 %v722_v13, 0.0  ;;  %v724_v25 = vadd.f32 %v1225_v29, %v686_v9 }
 0x123   : > { %791 = vst [vmem:[%s1319_s3 + $0x20] sm:$0xff] %v775_v16  ;;  %v777_v30 = vpack.c.bf16 %v752_v18, %v751_v17  ;;  %v755_v31 = vmax.f32 %v723_v19, 0.0  ;;  %v725_v32 = vadd.f32 %v1223_v28, %v687_v14  ;;  %v726_v33 = vadd.f32 %v1225_v29, %v688_v15 }
 0x124   : > { %792 = vst [vmem:[%s1319_s3 + $0x28] sm:$0xff] %v776_v22  ;;  %v778_v35 = vpack.c.bf16 %v754_v24, %v753_v23  ;;  %v756_v36 = vmax.f32 %v724_v25, 0.0  ;;  %v727_v37 = vadd.f32 %v1223_v28, %v689_v20  ;;  %v728_v38 = vadd.f32 %v1225_v29, %v690_v21 }
 0x125   : > { %793 = vst [vmem:[%s1319_s3 + $0x30] sm:$0xff] %v777_v30  ;;  %v757_v40 = vmax.f32 %v725_v32, 0.0  ;;  %v758_v41 = vmax.f32 %v726_v33, 0.0  ;;  %v729_v42 = vadd.f32 %v1223_v28, %v691_v26  ;;  %v730_v43 = vadd.f32 %v1225_v29, %v692_v27 }
 0x126   : > { %794 = vst [vmem:[%s1319_s3 + $0x38] sm:$0xff] %v778_v35  ;;  %v779_v46 = vpack.c.bf16 %v756_v36, %v755_v31  ;;  %v759_v47 = vmax.f32 %v727_v37, 0.0  ;;  %v760_v48 = vmax.f32 %v728_v38, 0.0  ;;  %v731_v49 = vadd.f32 %v1223_v28, %v693_v34 }
 0x127   : > { %v780_v52 = vpack.c.bf16 %v758_v41, %v757_v40  ;;  %v761_v53 = vmax.f32 %v729_v42, 0.0  ;;  %v762_v54 = vmax.f32 %v730_v43, 0.0  ;;  %v732_v55 = vadd.f32 %v1225_v29, %v694_v39 }
 0x128   : > { %795 = vst [vmem:[%s1319_s3 + $0x40] sm:$0xff] %v779_v46  ;;  %v781_v58 = vpack.c.bf16 %v760_v48, %v759_v47  ;;  %v763_v59 = vmax.f32 %v731_v49, 0.0  ;;  %v733_v60 = vadd.f32 %v1223_v28, %v695_v44  ;;  %v734_v61 = vadd.f32 %v1225_v29, %v696_v45 }
 0x129   : > { %796 = vst [vmem:[%s1319_s3 + $0x48] sm:$0xff] %v780_v52  ;;  %v782_v62 = vpack.c.bf16 %v762_v54, %v761_v53  ;;  %v764_v63 = vmax.f32 %v732_v55, 0.0  ;;  %v735_v0 = vadd.f32 %v1223_v28, %v697_v50  ;;  %v736_v1 = vadd.f32 %v1225_v29, %v698_v51 }
 0x12a   : > { %797 = vst [vmem:[%s1319_s3 + $0x50] sm:$0xff] %v781_v58  ;;  %v765_v2 = vmax.f32 %v733_v60, 0.0  ;;  %v766_v3 = vmax.f32 %v734_v61, 0.0  ;;  %v737_v4 = vadd.f32 %v1223_v28, %v699_v56  ;;  %v738_v5 = vadd.f32 %v1225_v29, %v700_v57 }
 0x12b   : > { %798 = vst [vmem:[%s1319_s3 + $0x58] sm:$0xff] %v782_v62  ;;  %v783_v6 = vpack.c.bf16 %v764_v63, %v763_v59  ;;  %v767_v7 = vmax.f32 %v735_v0, 0.0  ;;  %v768_v8 = vmax.f32 %v736_v1, 0.0 }
 0x12c   : > { %v784_v9 = vpack.c.bf16 %v766_v3, %v765_v2  ;;  %v769_v10 = vmax.f32 %v737_v4, 0.0  ;;  %v770_v11 = vmax.f32 %v738_v5, 0.0 }
 0x12d   : > { %799 = vst [vmem:[%s1319_s3 + $0x60] sm:$0xff] %v783_v6  ;;  %v785_v12 = vpack.c.bf16 %v768_v8, %v767_v7 }
 0x12e   : > { %800 = vst [vmem:[%s1319_s3 + $0x68] sm:$0xff] %v784_v9  ;;  %v786_v28 = vpack.c.bf16 %v770_v11, %v769_v10 }
 0x12f   : > { %801 = vst [vmem:[%s1319_s3 + $0x70] sm:$0xff] %v785_v12 }
 0x130   : > { %802 = vst [vmem:[%s1319_s3 + $0x78] sm:$0xff] %v786_v28 }
 0x131 PF: > { %s13_s14 = sadd.s32 1, %s1123_s14   ;;  %s1320_s12 = smov %s1119_s13 }
 0x132   : > { %p10_p7 = scmp.ge.s32.totalorder %s13_s14, 11   ;;  %s1321_s13 = smov %s1323_s15 }
 0x134   :  { %12 = sbr.rel (!%p10_p7) target bundleno = 2 (0x2), region = 76 }

// kernel: vgg_network_forward.28
= control target key start
LH: loop header
LB: loop body
LE: loop exit
PB: predicated region body
PF: predicated region fallthrough
CT: control target
= control target key end

     0   :  { %s476_s6 = smov 0   ;;  %s478_s7 = smov 0   ;;  %s517_s0 = inlined_call_operand.vmem [shape: bf16[2,8,4,512], index: 0, kind: input, shape index: {}]   ;;  %s518_s1 = inlined_call_operand.vmem [shape: bf16[2,4,4,256], index: 1, kind: output, shape index: {}]  }
   0x1   :  { %s480_s8 = smov 0  }
   0x2 LB: > { %s23_s9 = sadd.s32 1, %s460_s7  ;;  %p409_p0 = scmp.ge.s32.totalorder %s464_s8, 1  ;;  %s464_s8 = sphi %s480_s8, %s11_s8   ;;  %s460_s7 = sphi %s478_s7, %s520_s7   ;;  %s456_s6 = sphi %s476_s6, %s519_s6  }
   0x3   : > { %p25_p1 = scmp.ge.s32.totalorder %s23_s9, 2  ;;  %p109_p2 = scmp.lt.s32.totalorder %s464_s8, 3 }
   0x5   : > { %s522_s9 = smov (%p25_p1, %s23_s9), 0  ;;  %p110_p3 = pnand %p409_p0, %p109_p2 }
   0x6   : > { %p140_p4 = scmp.lt.s32.totalorder (!%p110_p3), %s456_s6, 1 }
   0x7   : > { %113 = sbr.rel (%p110_p3) target bundleno = 50 (0x32), region = 24 }
   0xc   : > { %s524_s6 = smov (!%p140_p4, %s456_s6), 1  ;;  %vm288_vm0 = vcmask 1041408  }
   0xd   : > { %s416_s10 = sshll.u32 %s524_s6, 6  ;;  %s417_s14 = sshll.u32 %s524_s6, 4 }
   0xe   : > { %s148_s13 = scalar_lea.vmem %s517_s0, %s416_s10  ;;  %s159_s17 = scalar_lea.vmem %s518_s1, %s417_s14 }
   0xf   : > { %v161_v0 = vld [vmem:[%s148_s13] sm:$0xff]  ;;  %v162_v1 = vld [vmem:[%s148_s13 + $0x8] sm:$0xff]  ;;  %v163_v2 = vld [vmem:[%s148_s13 + $0x10] sm:$0xff] }
  0x10   : > { %v169_v3 = vunpack.c.l.bf16 %v161_v0  ;;  %v177_v4 = vunpack.c.l.bf16 %v162_v1  ;;  %v170_v5 = vunpack.c.h.bf16 %v161_v0  ;;  %v178_v6 = vunpack.c.h.bf16 %v162_v1  ;;  %v164_v7 = vld [vmem:[%s148_s13 + $0x18] sm:$0xff]  ;;  %v165_v12 = vld [vmem:[%s148_s13 + $0x20] sm:$0xff]  ;;  %v166_v13 = vld [vmem:[%s148_s13 + $0x28] sm:$0xff] }
  0x11   : > { %v171_v8 = vunpack.c.l.bf16 %v163_v2  ;;  %v179_v9 = vunpack.c.l.bf16 %v164_v7  ;;  %v172_v10 = vunpack.c.h.bf16 %v163_v2  ;;  %v180_v11 = vunpack.c.h.bf16 %v164_v7  ;;  %v167_v20 = vld [vmem:[%s148_s13 + $0x30] sm:$0xff]  ;;  %v168_v21 = vld [vmem:[%s148_s13 + $0x38] sm:$0xff] }
  0x12   : > { %v185_v14 = vmax.f32 %v169_v3, %v177_v4  ;;  %v186_v15 = vmax.f32 %v170_v5, %v178_v6  ;;  %v173_v18 = vunpack.c.l.bf16 %v165_v12  ;;  %v181_v19 = vunpack.c.l.bf16 %v166_v13 }
  0x13   : > { %v187_v16 = vmax.f32 %v171_v8, %v179_v9  ;;  %v188_v17 = vmax.f32 %v172_v10, %v180_v11  ;;  %v174_v22 = vunpack.c.h.bf16 %v165_v12  ;;  %v182_v23 = vunpack.c.h.bf16 %v166_v13 }
  0x14   : > { %201 = vst [vmem:[#allocation1] ss:$2 sm:$0xff] %v185_v14  ;;  %v175_v24 = vunpack.c.l.bf16 %v167_v20  ;;  %v183_v25 = vunpack.c.l.bf16 %v168_v21  ;;  %v189_v26 = vmax.f32 %v173_v18, %v181_v19  ;;  %v176_v27 = vunpack.c.h.bf16 %v167_v20 }
  0x15   : > { %203 = vst [vmem:[#allocation1 + $0x10] ss:$2 sm:$0xff] %v186_v15  ;;  %v184_v28 = vunpack.c.h.bf16 %v168_v21  ;;  %v190_v29 = vmax.f32 %v174_v22, %v182_v23 }
  0x16   : > { %209 = vst [vmem:[#allocation1 + $0x20] ss:$2 sm:$0xff] %v187_v16  ;;  %v191_v32 = vmax.f32 %v175_v24, %v183_v25 }
  0x17   : > { %211 = vst [vmem:[#allocation1 + $0x30] ss:$2 sm:$0xff] %v188_v17  ;;  %v192_v37 = vmax.f32 %v176_v27, %v184_v28 }
  0x1b   : > { %v204_v30 = vld.sshfl [vmem:[#allocation1] sm:$0xff pattern:$0x75316420]  ;;  %v205_v31 = vld.sshfl [vmem:[#allocation1 + $0x8] sm:$0xff pattern:$0x75316420] }
  0x1c   : > { %216 = vst [vmem:[#allocation1] ss:$2 sm:$0xff] %v189_v26  ;;  %v206_v33 = vld.sshfl [vmem:[#allocation1 + $0x10] sm:$0xff pattern:$0x75316420] }
  0x1d   : > { %v207_v34 = vld.sshfl [vmem:[#allocation1 + $0x18] sm:$0xff pattern:$0x75316420]  ;;  %v268_v35 = vmax.f32 %v204_v30, %v206_v33  ;;  %v212_v36 = vld.sshfl [vmem:[#allocation1 + $0x20] sm:$0xff pattern:$0x75316420] }
  0x1e   : > { %217 = vst [vmem:[#allocation1 + $0x10] ss:$2 sm:$0xff] %v190_v29  ;;  %v269_v38 = vmax.f32 %v205_v31, %v207_v34  ;;  %v213_v39 = vld.sshfl [vmem:[#allocation1 + $0x28] sm:$0xff pattern:$0x75316420] }
  0x1f   : > { %222 = vst [vmem:[#allocation1 + $0x20] ss:$2 sm:$0xff] %v191_v32  ;;  %v214_v40 = vld.sshfl [vmem:[#allocation1 + $0x30] sm:$0xff pattern:$0x75316420] }
  0x20   : > { %v215_v41 = vld.sshfl [vmem:[#allocation1 + $0x38] sm:$0xff pattern:$0x75316420]  ;;  %v270_v42 = vmax.f32 %v212_v36, %v214_v40  ;;  %v276_v43 = vpack.c.bf16 %v269_v38, %v268_v35 }
  0x21   : > { %223 = vst [vmem:[#allocation1 + $0x30] ss:$2 sm:$0xff] %v192_v37  ;;  %v271_v44 = vmax.f32 %v213_v39, %v215_v41 }
  0x22   : > { %v284_v45 = vrot.slane %v276_v43, 2 }
  0x23   : > { %v277_v46 = vpack.c.bf16 %v271_v44, %v270_v42  ;;  %v218_v47 = vld.sshfl [vmem:[#allocation1] sm:$0xff pattern:$0x75316420]  ;;  %v219_v49 = vld.sshfl [vmem:[#allocation1 + $0x8] sm:$0xff pattern:$0x75316420] }
  0x24   : > { %v291_v48 = vsel %vm288_vm0, %v276_v43, %v284_v45 }
  0x25   : > { %305 = vst [vmem:[%s159_s17] sm:$0xf] %v291_v48  ;;  %v285_v50 = vrot.slane %v277_v46, 2  ;;  %v220_v51 = vld.sshfl [vmem:[#allocation1 + $0x10] sm:$0xff pattern:$0x75316420] }
  0x26   : > { %v221_v52 = vld.sshfl [vmem:[#allocation1 + $0x18] sm:$0xff pattern:$0x75316420]  ;;  %v272_v53 = vmax.f32 %v218_v47, %v220_v51  ;;  %v224_v54 = vld.sshfl [vmem:[#allocation1 + $0x20] sm:$0xff pattern:$0x75316420] }
  0x27   : > { %v294_v55 = vsel %vm288_vm0, %v277_v46, %v285_v50  ;;  %v273_v56 = vmax.f32 %v219_v49, %v221_v52  ;;  %v225_v57 = vld.sshfl [vmem:[#allocation1 + $0x28] sm:$0xff pattern:$0x75316420] }
  0x28   : > { %306 = vst [vmem:[%s159_s17 + $0x4] sm:$0xf] %v294_v55  ;;  %v226_v58 = vld.sshfl [vmem:[#allocation1 + $0x30] sm:$0xff pattern:$0x75316420] }
  0x29   : > { %v278_v59 = vpack.c.bf16 %v273_v56, %v272_v53  ;;  %v227_v60 = vld.sshfl [vmem:[#allocation1 + $0x38] sm:$0xff pattern:$0x75316420]  ;;  %v274_v61 = vmax.f32 %v224_v54, %v226_v58 }
  0x2a   : > { %v275_v62 = vmax.f32 %v225_v57, %v227_v60 }
  0x2b   : > { %v286_v63 = vrot.slane %v278_v59, 2 }
  0x2c   : > { %v279_v0 = vpack.c.bf16 %v275_v62, %v274_v61 }
  0x2d   : > { %v297_v1 = vsel %vm288_vm0, %v278_v59, %v286_v63 }
  0x2e   : > { %307 = vst [vmem:[%s159_s17 + $0x8] sm:$0xf] %v297_v1  ;;  %v287_v2 = vrot.slane %v279_v0, 2 }
  0x30   : > { %v300_v3 = vsel %vm288_vm0, %v279_v0, %v287_v2 }
  0x31   : > { %308 = vst [vmem:[%s159_s17 + $0xc] sm:$0xf] %v300_v3 }
  0x32 PF: > { %s11_s8 = sadd.s32 1, %s464_s8   ;;  %s519_s6 = smov %s460_s7 }
  0x33   : > { %p8_p5 = scmp.ge.s32.totalorder %s11_s8, 4   ;;  %s520_s7 = smov %s522_s9 }
  0x35   :  { %10 = sbr.rel (!%p8_p5) target bundleno = 2 (0x2), region = 57 }

// kernel: vgg_network_forward.26
= control target key start
LH: loop header
LB: loop body
LE: loop exit
PB: predicated region body
PF: predicated region fallthrough
CT: control target
= control target key end

     0   :  { %s1482_s12 = smov 0   ;;  %s1484_s13 = smov 0   ;;  %s1708_s0 = inlined_call_operand.vmem [shape: bf16[9,128,256], index: 0, kind: input, shape index: {}]   ;;  %s1709_s1 = inlined_call_operand.vmem [shape: bf16[9,256,256], index: 1, kind: input, shape index: {}]   ;;  %s1710_s2 = inlined_call_operand.vmem [shape: f32[1,256], index: 2, kind: input, shape index: {}]   ;;  %s1711_s3 = inlined_call_operand.vmem [shape: bf16[128,256], index: 3, kind: output, shape index: {}]  }
   0x1   :  { %s1486_s14 = smov 0  }
   0x2 LB: > { %s25_s15 = sadd.s32 1, %s1455_s13  ;;  %p1159_p0 = scmp.ge.s32.totalorder %s1459_s14, 1  ;;  %s1459_s14 = sphi %s1486_s14, %s13_s14   ;;  %s1455_s13 = sphi %s1484_s13, %s1713_s13   ;;  %s1451_s12 = sphi %s1482_s12, %s1712_s12  }
   0x3   : > { %p26_p1 = scmp.ge.s32.totalorder %s25_s15, 9  ;;  %p193_p2 = scmp.lt.s32.totalorder %s1459_s14, 10 }
   0x5   : > { %s1715_s15 = smov (%p26_p1, %s25_s15), 0  ;;  %p194_p3 = pnand %p1159_p0, %p193_p2 }
   0x6   : > { %p241_p4 = scmp.lt.s32.totalorder (!%p194_p3), %s1451_s12, 8  ;;  %p1164_p5 = scmp.ne.s32.totalorder (!%p194_p3), %s1451_s12, 0 }
   0x7   : > { %197 = sbr.rel (%p194_p3) target bundleno = 372 (0x174), region = 32 }
   0xc   : > { %s242_s16 = scalar_select %p241_p4, %s1451_s12, 8 }
   0xd   : > { %281 = sbr.rel (%p1164_p5) target bundleno = 51 (0x33), region = 36 }
   0xe   : > { %s1362_s17 = sshll.u32 %s242_s16, 7  ;;  %s1363_s18 = sshll.u32 %s242_s16, 8 }
   0xf   : > { %s1507_s21 = scalar_lea.vmem %s1708_s0, %s1362_s17  ;;  %s1512_s24 = scalar_lea.vmem %s1709_s1, %s1363_s18 }
  0x12   : > { %v1461_v0 = vmov 0.0  }
  0x13   : > { %282 = vst [vmem:[#allocation2 + $0xb0] sm:$0xff] %v1461_v0 }
  0x14   : > { %283 = vst [vmem:[#allocation2] sm:$0xff] %v1461_v0 }
  0x15   : > { %284 = vst [vmem:[#allocation2 + $0xd8] sm:$0xff] %v1461_v0 }
  0x16   : > { %285 = vst [vmem:[#allocation2 + $0x18] sm:$0xff] %v1461_v0 }
  0x17   : > { %286 = vst [vmem:[#allocation2 + $0x50] sm:$0xff] %v1461_v0 }
  0x18   : > { %287 = vst [vmem:[#allocation2 + $0x68] sm:$0xff] %v1461_v0 }
  0x19   : > { %288 = vst [vmem:[#allocation2 + $0x30] sm:$0xff] %v1461_v0 }
  0x1a   : > { %289 = vst [vmem:[#allocation2 + $0x48] sm:$0xff] %v1461_v0 }
  0x1b   : > { %290 = vst [vmem:[#allocation2 + $0x80] sm:$0xff] %v1461_v0 }
  0x1c   : > { %291 = vst [vmem:[#allocation2 + $0x88] sm:$0xff] %v1461_v0 }
  0x1d   : > { %292 = vst [vmem:[#allocation2 + $0xe8] sm:$0xff] %v1461_v0 }
  0x1e   : > { %293 = vst [vmem:[#allocation2 + $0xb8] sm:$0xff] %v1461_v0 }
  0x1f   : > { %294 = vst [vmem:[#allocation2 + $0x60] sm:$0xff] %v1461_v0 }
  0x20   : > { %295 = vst [vmem:[#allocation2 + $0xf0] sm:$0xff] %v1461_v0 }
  0x21   : > { %296 = vst [vmem:[#allocation2 + $0x8] sm:$0xff] %v1461_v0 }
  0x22   : > { %297 = vst [vmem:[#allocation2 + $0x78] sm:$0xff] %v1461_v0 }
  0x23   : > { %298 = vst [vmem:[#allocation2 + $0x38] sm:$0xff] %v1461_v0 }
  0x24   : > { %299 = vst [vmem:[#allocation2 + $0x58] sm:$0xff] %v1461_v0 }
  0x25   : > { %300 = vst [vmem:[#allocation2 + $0x40] sm:$0xff] %v1461_v0 }
  0x26   : > { %301 = vst [vmem:[#allocation2 + $0xc8] sm:$0xff] %v1461_v0 }
  0x27   : > { %302 = vst [vmem:[#allocation2 + $0xe0] sm:$0xff] %v1461_v0 }
  0x28   : > { %303 = vst [vmem:[#allocation2 + $0x90] sm:$0xff] %v1461_v0 }
  0x29   : > { %304 = vst [vmem:[#allocation2 + $0x70] sm:$0xff] %v1461_v0 }
  0x2a   : > { %305 = vst [vmem:[#allocation2 + $0xc0] sm:$0xff] %v1461_v0 }
  0x2b   : > { %306 = vst [vmem:[#allocation2 + $0xa8] sm:$0xff] %v1461_v0 }
  0x2c   : > { %307 = vst [vmem:[#allocation2 + $0xd0] sm:$0xff] %v1461_v0 }
  0x2d   : > { %308 = vst [vmem:[#allocation2 + $0x10] sm:$0xff] %v1461_v0 }
  0x2e   : > { %309 = vst [vmem:[#allocation2 + $0x28] sm:$0xff] %v1461_v0 }
  0x2f   : > { %310 = vst [vmem:[#allocation2 + $0xa0] sm:$0xff] %v1461_v0 }
  0x30   : > { %311 = vst [vmem:[#allocation2 + $0xf8] sm:$0xff] %v1461_v0 }
  0x31   : > { %312 = vst [vmem:[#allocation2 + $0x20] sm:$0xff] %v1461_v0 }
  0x32   : > { %313 = vst [vmem:[#allocation2 + $0x98] sm:$0xff] %v1461_v0 }
  0x33 PF: > { %v1287_v1 = vld [vmem:[%s1512_s24 + $0x70] sm:$0xf]  ;;  %v1395_v2 = vld [vmem:[%s1512_s24 + $0x74] sm:$0xf0]  ;;  %v1394_v6 = vld [vmem:[%s1512_s24 + $0x74] sm:$0xf] }
  0x34   : > { %v1351_v3 = vld [vmem:[%s1512_s24 + $0xf0] sm:$0xf]  ;;  %v1288_v4 = vor.u32 %v1395_v2, %v1287_v1  ;;  %v1411_v5 = vld [vmem:[%s1512_s24 + $0xf4] sm:$0xf0]  ;;  %v1289_v7 = vld [vmem:[%s1512_s24 + $0x78] sm:$0xf0] }
  0x35   : > { %v1352_v8 = vor.u32 %v1411_v5, %v1351_v3  ;;  %v1292_v9 = vor.u32 %v1394_v6, %v1289_v7  ;;  %v1410_v10 = vld [vmem:[%s1512_s24 + $0xf4] sm:$0xf]  ;;  %v1353_v11 = vld [vmem:[%s1512_s24 + $0xf8] sm:$0xf0]  ;;  %v1279_v12 = vld [vmem:[%s1512_s24 + $0x60] sm:$0xf] }
  0x36   : > { %634 = vmatpush.bf16.msra.mxu0 %v1288_v4  ;;  %v1356_v13 = vor.u32 %v1410_v10, %v1353_v11  ;;  %v1393_v14 = vld [vmem:[%s1512_s24 + $0x64] sm:$0xf0]  ;;  %v1343_v15 = vld [vmem:[%s1512_s24 + $0xe0] sm:$0xf]  ;;  %v1392_v19 = vld [vmem:[%s1512_s24 + $0x64] sm:$0xf] }
  0x37   : > { %v1409_v16 = vld [vmem:[%s1512_s24 + $0xe4] sm:$0xf0]  ;;  %683 = vmatpush.bf16.msra.mxu1 %v1352_v8  ;;  %732 = vmatpush.bf16.msra.mxu2 %v1292_v9  ;;  %v1280_v17 = vor.u32 %v1393_v14, %v1279_v12  ;;  %v1281_v20 = vld [vmem:[%s1512_s24 + $0x68] sm:$0xf0]  ;;  %v1408_v21 = vld [vmem:[%s1512_s24 + $0xe4] sm:$0xf] }
  0x38   : > { %v1344_v18 = vor.u32 %v1409_v16, %v1343_v15  ;;  %781 = vmatpush.bf16.msra.mxu3 %v1356_v13  ;;  %v1284_v22 = vor.u32 %v1392_v19, %v1281_v20  ;;  %v1345_v23 = vld [vmem:[%s1512_s24 + $0xe8] sm:$0xf0]  ;;  %v1271_v24 = vld [vmem:[%s1512_s24 + $0x50] sm:$0xf]  ;;  %v1391_v25 = vld [vmem:[%s1512_s24 + $0x54] sm:$0xf0] }
  0x39   : > { %v1348_v26 = vor.u32 %v1408_v21, %v1345_v23  ;;  %v1335_v27 = vld [vmem:[%s1512_s24 + $0xd0] sm:$0xf]  ;;  %v1407_v28 = vld [vmem:[%s1512_s24 + $0xd4] sm:$0xf0]  ;;  %v1390_v29 = vld [vmem:[%s1512_s24 + $0x54] sm:$0xf]  ;;  %v1272_v30 = vor.u32 %v1391_v25, %v1271_v24 }
  0x3a   : > { %635 = vmatpush.bf16.msra.mxu0 %v1280_v17  ;;  %v1273_v31 = vld [vmem:[%s1512_s24 + $0x58] sm:$0xf0]  ;;  %v1406_v32 = vld [vmem:[%s1512_s24 + $0xd4] sm:$0xf]  ;;  %v1336_v34 = vor.u32 %v1407_v28, %v1335_v27  ;;  %v1263_v36 = vld [vmem:[%s1512_s24 + $0x40] sm:$0xf] }
  0x3b   : > { %v1337_v33 = vld [vmem:[%s1512_s24 + $0xd8] sm:$0xf0]  ;;  %684 = vmatpush.bf16.msra.mxu1 %v1344_v18  ;;  %733 = vmatpush.bf16.msra.mxu2 %v1284_v22  ;;  %v1276_v35 = vor.u32 %v1390_v29, %v1273_v31  ;;  %v1389_v37 = vld [vmem:[%s1512_s24 + $0x44] sm:$0xf0]  ;;  %v1327_v38 = vld [vmem:[%s1512_s24 + $0xc0] sm:$0xf] }
  0x3c   : > { %782 = vmatpush.bf16.msra.mxu3 %v1348_v26  ;;  %v1340_v39 = vor.u32 %v1406_v32, %v1337_v33  ;;  %v1405_v40 = vld [vmem:[%s1512_s24 + $0xc4] sm:$0xf0]  ;;  %v1388_v41 = vld [vmem:[%s1512_s24 + $0x44] sm:$0xf]  ;;  %v1265_v42 = vld [vmem:[%s1512_s24 + $0x48] sm:$0xf0]  ;;  %v1264_v45 = vor.u32 %v1389_v37, %v1263_v36 }
  0x3d   : > { %v1404_v43 = vld [vmem:[%s1512_s24 + $0xc4] sm:$0xf]  ;;  %v1329_v44 = vld [vmem:[%s1512_s24 + $0xc8] sm:$0xf0]  ;;  %v1328_v46 = vor.u32 %v1405_v40, %v1327_v38  ;;  %v1268_v47 = vor.u32 %v1388_v41, %v1265_v42  ;;  %v1255_v48 = vld [vmem:[%s1512_s24 + $0x30] sm:$0xf] }
  0x3e   : > { %636 = vmatpush.bf16.msra.mxu0 %v1272_v30  ;;  %v1387_v49 = vld [vmem:[%s1512_s24 + $0x34] sm:$0xf0]  ;;  %v1319_v50 = vld [vmem:[%s1512_s24 + $0xb0] sm:$0xf]  ;;  %v1332_v51 = vor.u32 %v1404_v43, %v1329_v44  ;;  %v1386_v53 = vld [vmem:[%s1512_s24 + $0x34] sm:$0xf] }
  0x3f   : > { %685 = vmatpush.bf16.msra.mxu1 %v1336_v34  ;;  %734 = vmatpush.bf16.msra.mxu2 %v1276_v35  ;;  %v1403_v52 = vld [vmem:[%s1512_s24 + $0xb4] sm:$0xf0]  ;;  %v1257_v54 = vld [vmem:[%s1512_s24 + $0x38] sm:$0xf0]  ;;  %v1402_v55 = vld [vmem:[%s1512_s24 + $0xb4] sm:$0xf]  ;;  %v1256_v57 = vor.u32 %v1387_v49, %v1255_v48 }
  0x40   : > { %783 = vmatpush.bf16.msra.mxu3 %v1340_v39  ;;  %v1321_v56 = vld [vmem:[%s1512_s24 + $0xb8] sm:$0xf0]  ;;  %v1320_v58 = vor.u32 %v1403_v52, %v1319_v50  ;;  %v1260_v59 = vor.u32 %v1386_v53, %v1257_v54  ;;  %v1247_v60 = vld [vmem:[%s1512_s24 + $0x20] sm:$0xf]  ;;  %v1385_v61 = vld [vmem:[%s1512_s24 + $0x24] sm:$0xf0] }
  0x41   : > { %v1311_v62 = vld [vmem:[%s1512_s24 + $0xa0] sm:$0xf]  ;;  %v1324_v63 = vor.u32 %v1402_v55, %v1321_v56  ;;  %v1401_v0 = vld [vmem:[%s1512_s24 + $0xa4] sm:$0xf0]  ;;  %v1384_v1 = vld [vmem:[%s1512_s24 + $0x24] sm:$0xf]  ;;  %v1248_v5 = vor.u32 %v1385_v61, %v1247_v60 }
  0x42   : > { %637 = vmatpush.bf16.msra.mxu0 %v1264_v45  ;;  %v1249_v2 = vld [vmem:[%s1512_s24 + $0x28] sm:$0xf0]  ;;  %v1400_v3 = vld [vmem:[%s1512_s24 + $0xa4] sm:$0xf]  ;;  %v1312_v6 = vor.u32 %v1401_v0, %v1311_v62  ;;  %v1239_v8 = vld [vmem:[%s1512_s24 + $0x10] sm:$0xf] }
  0x43   : > { %686 = vmatpush.bf16.msra.mxu1 %v1328_v46  ;;  %735 = vmatpush.bf16.msra.mxu2 %v1268_v47  ;;  %v1313_v4 = vld [vmem:[%s1512_s24 + $0xa8] sm:$0xf0]  ;;  %v1252_v7 = vor.u32 %v1384_v1, %v1249_v2  ;;  %v1383_v9 = vld [vmem:[%s1512_s24 + $0x14] sm:$0xf0]  ;;  %v1303_v10 = vld [vmem:[%s1512_s24 + $0x90] sm:$0xf] }
  0x44   : > { %784 = vmatpush.bf16.msra.mxu3 %v1332_v51  ;;  %v1316_v11 = vor.u32 %v1400_v3, %v1313_v4  ;;  %v1399_v12 = vld [vmem:[%s1512_s24 + $0x94] sm:$0xf0]  ;;  %v1382_v13 = vld [vmem:[%s1512_s24 + $0x14] sm:$0xf]  ;;  %v1241_v14 = vld [vmem:[%s1512_s24 + $0x18] sm:$0xf0]  ;;  %v1240_v17 = vor.u32 %v1383_v9, %v1239_v8 }
  0x45   : > { %v1398_v15 = vld [vmem:[%s1512_s24 + $0x94] sm:$0xf]  ;;  %v1305_v16 = vld [vmem:[%s1512_s24 + $0x98] sm:$0xf0]  ;;  %v1304_v18 = vor.u32 %v1399_v12, %v1303_v10  ;;  %v1244_v19 = vor.u32 %v1382_v13, %v1241_v14  ;;  %v1231_v20 = vld [vmem:[%s1512_s24] sm:$0xf] }
  0x46   : > { %638 = vmatpush.bf16.msra.mxu0 %v1256_v57  ;;  %v1381_v21 = vld [vmem:[%s1512_s24 + $0x4] sm:$0xf0]  ;;  %v1295_v22 = vld [vmem:[%s1512_s24 + $0x80] sm:$0xf]  ;;  %v1308_v23 = vor.u32 %v1398_v15, %v1305_v16  ;;  %v1380_v25 = vld [vmem:[%s1512_s24 + $0x4] sm:$0xf] }
  0x47   : > { %687 = vmatpush.bf16.msra.mxu1 %v1320_v58  ;;  %736 = vmatpush.bf16.msra.mxu2 %v1260_v59  ;;  %v1397_v24 = vld [vmem:[%s1512_s24 + $0x84] sm:$0xf0]  ;;  %v1233_v26 = vld [vmem:[%s1512_s24 + $0x8] sm:$0xf0]  ;;  %v1396_v27 = vld [vmem:[%s1512_s24 + $0x84] sm:$0xf]  ;;  %v1232_v29 = vor.u32 %v1381_v21, %v1231_v20 }
  0x48   : > { %785 = vmatpush.bf16.msra.mxu3 %v1324_v63  ;;  %v1297_v28 = vld [vmem:[%s1512_s24 + $0x88] sm:$0xf0]  ;;  %v1167_v30 = vld [vmem:[%s1507_s21] sm:$0xf]  ;;  %v1365_v31 = vld [vmem:[%s1507_s21 + $0x4] sm:$0xf0]  ;;  %v1296_v32 = vor.u32 %v1397_v24, %v1295_v22  ;;  %v1236_v33 = vor.u32 %v1380_v25, %v1233_v26 }
  0x49   : > { %v1364_v34 = vld [vmem:[%s1507_s21 + $0x4] sm:$0xf]  ;;  %v1169_v35 = vld [vmem:[%s1507_s21 + $0x8] sm:$0xf0]  ;;  %v1300_v36 = vor.u32 %v1396_v27, %v1297_v28  ;;  %v1168_v37 = vor.u32 %v1365_v31, %v1167_v30  ;;  %v1175_v39 = vld [vmem:[%s1507_s21 + $0x10] sm:$0xf] }
  0x4a   : > { %639 = vmatpush.bf16.msra.mxu0 %v1248_v5  ;;  %v1172_v38 = vor.u32 %v1364_v34, %v1169_v35  ;;  %v1367_v40 = vld [vmem:[%s1507_s21 + $0x14] sm:$0xf0]  ;;  %v1366_v41 = vld [vmem:[%s1507_s21 + $0x14] sm:$0xf]  ;;  %v1177_v42 = vld [vmem:[%s1507_s21 + $0x18] sm:$0xf0] }
  0x4b   : > { %688 = vmatpush.bf16.msra.mxu1 %v1312_v6  ;;  %737 = vmatpush.bf16.msra.mxu2 %v1252_v7  ;;  %v1176_v43 = vor.u32 %v1367_v40, %v1175_v39  ;;  %v1180_v44 = vor.u32 %v1366_v41, %v1177_v42  ;;  %v1183_v45 = vld [vmem:[%s1507_s21 + $0x20] sm:$0xf]  ;;  %v1369_v46 = vld [vmem:[%s1507_s21 + $0x24] sm:$0xf0]  ;;  %v1368_v47 = vld [vmem:[%s1507_s21 + $0x24] sm:$0xf] }
  0x4c   : > { %786 = vmatpush.bf16.msra.mxu3 %v1316_v11  ;;  %v1185_v48 = vld [vmem:[%s1507_s21 + $0x28] sm:$0xf0]  ;;  %v1184_v49 = vor.u32 %v1369_v46, %v1183_v45  ;;  %v1191_v51 = vld [vmem:[%s1507_s21 + $0x30] sm:$0xf]  ;;  %v1371_v52 = vld [vmem:[%s1507_s21 + $0x34] sm:$0xf0] }
  0x4d   : > { %v1188_v50 = vor.u32 %v1368_v47, %v1185_v48  ;;  %v1370_v53 = vld [vmem:[%s1507_s21 + $0x34] sm:$0xf]  ;;  %v1193_v54 = vld [vmem:[%s1507_s21 + $0x38] sm:$0xf0]  ;;  %v1192_v55 = vor.u32 %v1371_v52, %v1191_v51  ;;  %v1199_v57 = vld [vmem:[%s1507_s21 + $0x40] sm:$0xf] }
  0x4e   : > { %640 = vmatpush.bf16.msra.mxu0 %v1240_v17  ;;  %v1196_v56 = vor.u32 %v1370_v53, %v1193_v54  ;;  %v1373_v58 = vld [vmem:[%s1507_s21 + $0x44] sm:$0xf0]  ;;  %v1372_v59 = vld [vmem:[%s1507_s21 + $0x44] sm:$0xf]  ;;  %v1201_v60 = vld [vmem:[%s1507_s21 + $0x48] sm:$0xf0] }
  0x4f   : > { %689 = vmatpush.bf16.msra.mxu1 %v1304_v18  ;;  %738 = vmatpush.bf16.msra.mxu2 %v1244_v19  ;;  %v1200_v61 = vor.u32 %v1373_v58, %v1199_v57  ;;  %v1204_v62 = vor.u32 %v1372_v59, %v1201_v60  ;;  %v1207_v63 = vld [vmem:[%s1507_s21 + $0x50] sm:$0xf]  ;;  %v1375_v0 = vld [vmem:[%s1507_s21 + $0x54] sm:$0xf0]  ;;  %v1374_v1 = vld [vmem:[%s1507_s21 + $0x54] sm:$0xf] }
  0x50   : > { %787 = vmatpush.bf16.msra.mxu3 %v1308_v23  ;;  %v1209_v2 = vld [vmem:[%s1507_s21 + $0x58] sm:$0xf0]  ;;  %v1208_v3 = vor.u32 %v1375_v0, %v1207_v63  ;;  %v1215_v5 = vld [vmem:[%s1507_s21 + $0x60] sm:$0xf]  ;;  %v1377_v6 = vld [vmem:[%s1507_s21 + $0x64] sm:$0xf0] }
  0x51   : > { %v1212_v4 = vor.u32 %v1374_v1, %v1209_v2  ;;  %v1376_v7 = vld [vmem:[%s1507_s21 + $0x64] sm:$0xf]  ;;  %v1217_v8 = vld [vmem:[%s1507_s21 + $0x68] sm:$0xf0]  ;;  %v1216_v9 = vor.u32 %v1377_v6, %v1215_v5  ;;  %v1223_v11 = vld [vmem:[%s1507_s21 + $0x70] sm:$0xf] }
  0x52   : > { %641 = vmatpush.bf16.msra.mxu0 %v1232_v29  ;;  %v1220_v10 = vor.u32 %v1376_v7, %v1217_v8  ;;  %v1379_v12 = vld [vmem:[%s1507_s21 + $0x74] sm:$0xf0]  ;;  %v1378_v13 = vld [vmem:[%s1507_s21 + $0x74] sm:$0xf]  ;;  %v1225_v14 = vld [vmem:[%s1507_s21 + $0x78] sm:$0xf0] }
  0x53   : > { %690 = vmatpush.bf16.msra.mxu1 %v1296_v32  ;;  %739 = vmatpush.bf16.msra.mxu2 %v1236_v33  ;;  %v1224_v15 = vor.u32 %v1379_v12, %v1223_v11  ;;  %v1228_v16 = vor.u32 %v1378_v13, %v1225_v14  ;;  %v314_v18 = vld [vmem:[#allocation2 + $0xb0] sm:$0xff]  ;;  %v315_v23 = vld [vmem:[#allocation2] sm:$0xff]  ;;  %v316_v27 = vld [vmem:[#allocation2 + $0xd8] sm:$0xff]  ;;  %p1357_p6 = scmp.ne.s32.totalorder %s1451_s12, 8 }
  0x54   : > { %788 = vmatpush.bf16.msra.mxu3 %v1300_v36  ;;  %v317_v33 = vld [vmem:[#allocation2 + $0x18] sm:$0xff]  ;;  %v320_v47 = vld [vmem:[#allocation2 + $0x30] sm:$0xff]  ;;  %v321_v53 = vld [vmem:[#allocation2 + $0x48] sm:$0xff] }
  0x55   : > { %642 = vmatmul.bf16.vlgmr.msra.gmra.mxu0 %v1168_v37  ;;  %v322_v57 = vld [vmem:[#allocation2 + $0x80] sm:$0xff]  ;;  %v323_v63 = vld [vmem:[#allocation2 + $0x88] sm:$0xff] }
  0x56   : > { %691 = vmatmul.bf16.vlgmr.msra.gmra.mxu1 %v1172_v38  ;;  %740 = vmatmul.bf16.vlgmr.msra.gmra.mxu2 %v1168_v37  ;;  %v318_v37 = vld [vmem:[#allocation2 + $0x50] sm:$0xff]  ;;  %v326_v13 = vld [vmem:[#allocation2 + $0x60] sm:$0xff] }
  0x57   : > { %789 = vmatmul.bf16.vlgmr.msra.gmra.mxu3 %v1172_v38 }
  0x65   : > { %647 = vmatmul.bf16.gmra.mxu0 %v1176_v43 }
  0x66   : > { %696 = vmatmul.bf16.gmra.mxu1 %v1180_v44  ;;  %745 = vmatmul.bf16.gmra.mxu2 %v1176_v43  ;;  %v319_v43 = vld [vmem:[#allocation2 + $0x68] sm:$0xff] }
  0x67   : > { %794 = vmatmul.bf16.gmra.mxu3 %v1180_v44 }
  0x75   : > { %652 = vmatmul.bf16.gmra.mxu0 %v1184_v49 }
  0x76   : > { %701 = vmatmul.bf16.gmra.mxu1 %v1188_v50  ;;  %750 = vmatmul.bf16.gmra.mxu2 %v1184_v49 }
  0x77   : > { %799 = vmatmul.bf16.gmra.mxu3 %v1188_v50 }
  0x85   : > { %657 = vmatmul.bf16.gmra.mxu0 %v1192_v55 }
  0x86   : > { %706 = vmatmul.bf16.gmra.mxu1 %v1196_v56  ;;  %755 = vmatmul.bf16.gmra.mxu2 %v1192_v55 }
  0x87   : > { %804 = vmatmul.bf16.gmra.mxu3 %v1196_v56 }
  0x95   : > { %662 = vmatmul.bf16.gmra.mxu0 %v1200_v61 }
  0x96   : > { %711 = vmatmul.bf16.gmra.mxu1 %v1204_v62  ;;  %760 = vmatmul.bf16.gmra.mxu2 %v1200_v61 }
  0x97   : > { %809 = vmatmul.bf16.gmra.mxu3 %v1204_v62 }
  0xa5   : > { %667 = vmatmul.bf16.gmra.mxu0 %v1208_v3 }
  0xa6   : > { %716 = vmatmul.bf16.gmra.mxu1 %v1212_v4  ;;  %765 = vmatmul.bf16.gmra.mxu2 %v1208_v3  ;;  %v324_v3 = vld [vmem:[#allocation2 + $0xe8] sm:$0xff] }
  0xa7   : > { %814 = vmatmul.bf16.gmra.mxu3 %v1212_v4 }
  0xb5   : > { %672 = vmatmul.bf16.gmra.mxu0 %v1216_v9 }
  0xb6   : > { %721 = vmatmul.bf16.gmra.mxu1 %v1220_v10  ;;  %770 = vmatmul.bf16.gmra.mxu2 %v1216_v9  ;;  %v325_v9 = vld [vmem:[#allocation2 + $0xb8] sm:$0xff] }
  0xb7   : > { %819 = vmatmul.bf16.gmra.mxu3 %v1220_v10 }
  0xc5   : > { %677 = vmatmul.bf16.gmra.mxu0 %v1224_v15 }
  0xc6   : > { %726 = vmatmul.bf16.gmra.mxu1 %v1228_v16  ;;  %775 = vmatmul.bf16.gmra.mxu2 %v1224_v15 }
  0xc7   : > { %824 = vmatmul.bf16.gmra.mxu3 %v1228_v16 }
  0xd2   : > { %v643_v17 = vpop.f32.mrf.mxu0 }
  0xd3   : > { %v692_v19 = vpop.f32.mrf.mxu1 }
  0xd4   : > { %v693_v20 = vadd.f32 %v692_v19, %v643_v17  ;;  %v327_v19 = vld [vmem:[#allocation2 + $0xf0] sm:$0xff] }
  0xd6   : > { %v830_v21 = vadd.f32 %v693_v20, %v314_v18 }
  0xd8   : > { %862 = vst [vmem:[#allocation2 + $0xb0] sm:$0xff] %v830_v21 }
  0xd9   : > { %v741_v22 = vpop.f32.mrf.mxu2 }
  0xda   : > { %v790_v24 = vpop.f32.mrf.mxu3  ;;  %v645_v25 = vpop.f32.mrf.mxu0 }
  0xdb   : > { %v791_v26 = vadd.f32 %v790_v24, %v741_v22  ;;  %v694_v28 = vpop.f32.mrf.mxu1 }
  0xdc   : > { %v695_v29 = vadd.f32 %v694_v28, %v645_v25 }
  0xdd   : > { %v831_v30 = vadd.f32 %v791_v26, %v315_v23  ;;  %v328_v23 = vld [vmem:[#allocation2 + $0x8] sm:$0xff] }
  0xde   : > { %v832_v31 = vadd.f32 %v695_v29, %v316_v27  ;;  %v329_v29 = vld [vmem:[#allocation2 + $0x78] sm:$0xff] }
  0xdf   : > { %863 = vst [vmem:[#allocation2] sm:$0xff] %v831_v30 }
  0xe0   : > { %864 = vst [vmem:[#allocation2 + $0xd8] sm:$0xff] %v832_v31 }
  0xe1   : > { %v743_v32 = vpop.f32.mrf.mxu2 }
  0xe2   : > { %v792_v34 = vpop.f32.mrf.mxu3  ;;  %v648_v35 = vpop.f32.mrf.mxu0 }
  0xe3   : > { %v793_v36 = vadd.f32 %v792_v34, %v743_v32  ;;  %v697_v38 = vpop.f32.mrf.mxu1 }
  0xe4   : > { %v698_v39 = vadd.f32 %v697_v38, %v648_v35 }
  0xe5   : > { %v833_v40 = vadd.f32 %v793_v36, %v317_v33  ;;  %v330_v33 = vld [vmem:[#allocation2 + $0x38] sm:$0xff] }
  0xe6   : > { %v834_v41 = vadd.f32 %v698_v39, %v318_v37  ;;  %v331_v39 = vld [vmem:[#allocation2 + $0x58] sm:$0xff] }
  0xe7   : > { %865 = vst [vmem:[#allocation2 + $0x18] sm:$0xff] %v833_v40 }
  0xe8   : > { %866 = vst [vmem:[#allocation2 + $0x50] sm:$0xff] %v834_v41 }
  0xe9   : > { %v746_v42 = vpop.f32.mrf.mxu2 }
  0xea   : > { %v795_v44 = vpop.f32.mrf.mxu3  ;;  %v650_v45 = vpop.f32.mrf.mxu0 }
  0xeb   : > { %v796_v46 = vadd.f32 %v795_v44, %v746_v42  ;;  %v699_v48 = vpop.f32.mrf.mxu1 }
  0xec   : > { %v700_v49 = vadd.f32 %v699_v48, %v650_v45 }
  0xed   : > { %v835_v50 = vadd.f32 %v796_v46, %v319_v43  ;;  %v332_v43 = vld [vmem:[#allocation2 + $0x40] sm:$0xff] }
  0xee   : > { %v836_v51 = vadd.f32 %v700_v49, %v320_v47  ;;  %v333_v49 = vld [vmem:[#allocation2 + $0xc8] sm:$0xff] }
  0xef   : > { %867 = vst [vmem:[#allocation2 + $0x68] sm:$0xff] %v835_v50 }
  0xf0   : > { %868 = vst [vmem:[#allocation2 + $0x30] sm:$0xff] %v836_v51 }
  0xf1   : > { %v748_v52 = vpop.f32.mrf.mxu2 }
  0xf2   : > { %v797_v54 = vpop.f32.mrf.mxu3  ;;  %v653_v55 = vpop.f32.mrf.mxu0 }
  0xf3   : > { %v798_v56 = vadd.f32 %v797_v54, %v748_v52  ;;  %v702_v58 = vpop.f32.mrf.mxu1 }
  0xf4   : > { %v703_v59 = vadd.f32 %v702_v58, %v653_v55 }
  0xf5   : > { %v837_v60 = vadd.f32 %v798_v56, %v321_v53  ;;  %v334_v53 = vld [vmem:[#allocation2 + $0xe0] sm:$0xff] }
  0xf6   : > { %v838_v61 = vadd.f32 %v703_v59, %v322_v57  ;;  %v335_v59 = vld [vmem:[#allocation2 + $0x90] sm:$0xff] }
  0xf7   : > { %869 = vst [vmem:[#allocation2 + $0x48] sm:$0xff] %v837_v60 }
  0xf8   : > { %870 = vst [vmem:[#allocation2 + $0x80] sm:$0xff] %v838_v61 }
  0xf9   : > { %v751_v62 = vpop.f32.mrf.mxu2 }
  0xfa   : > { %v800_v0 = vpop.f32.mrf.mxu3  ;;  %v655_v1 = vpop.f32.mrf.mxu0 }
  0xfb   : > { %v801_v2 = vadd.f32 %v800_v0, %v751_v62  ;;  %v704_v4 = vpop.f32.mrf.mxu1 }
  0xfc   : > { %v705_v5 = vadd.f32 %v704_v4, %v655_v1 }
  0xfd   : > { %v839_v6 = vadd.f32 %v801_v2, %v323_v63  ;;  %v336_v63 = vld [vmem:[#allocation2 + $0x70] sm:$0xff] }
  0xfe   : > { %v840_v7 = vadd.f32 %v705_v5, %v324_v3  ;;  %v337_v5 = vld [vmem:[#allocation2 + $0xc0] sm:$0xff] }
  0xff   : > { %871 = vst [vmem:[#allocation2 + $0x88] sm:$0xff] %v839_v6 }
 0x100   : > { %872 = vst [vmem:[#allocation2 + $0xe8] sm:$0xff] %v840_v7 }
 0x101   : > { %v753_v8 = vpop.f32.mrf.mxu2 }
 0x102   : > { %v802_v10 = vpop.f32.mrf.mxu3  ;;  %v658_v11 = vpop.f32.mrf.mxu0 }
 0x103   : > { %v803_v12 = vadd.f32 %v802_v10, %v753_v8  ;;  %v707_v14 = vpop.f32.mrf.mxu1 }
 0x104   : > { %v708_v15 = vadd.f32 %v707_v14, %v658_v11 }
 0x105   : > { %v841_v16 = vadd.f32 %v803_v12, %v325_v9  ;;  %v338_v9 = vld [vmem:[#allocation2 + $0xa8] sm:$0xff] }
 0x106   : > { %v842_v17 = vadd.f32 %v708_v15, %v326_v13  ;;  %v339_v15 = vld [vmem:[#allocation2 + $0xd0] sm:$0xff] }
 0x107   : > { %873 = vst [vmem:[#allocation2 + $0xb8] sm:$0xff] %v841_v16 }
 0x108   : > { %874 = vst [vmem:[#allocation2 + $0x60] sm:$0xff] %v842_v17 }
 0x109   : > { %v756_v18 = vpop.f32.mrf.mxu2 }
 0x10a   : > { %v805_v20 = vpop.f32.mrf.mxu3  ;;  %v660_v21 = vpop.f32.mrf.mxu0 }
 0x10b   : > { %v806_v22 = vadd.f32 %v805_v20, %v756_v18  ;;  %v709_v24 = vpop.f32.mrf.mxu1 }
 0x10c   : > { %v710_v25 = vadd.f32 %v709_v24, %v660_v21 }
 0x10d   : > { %v843_v26 = vadd.f32 %v806_v22, %v327_v19  ;;  %v340_v19 = vld [vmem:[#allocation2 + $0x10] sm:$0xff] }
 0x10e   : > { %v844_v27 = vadd.f32 %v710_v25, %v328_v23  ;;  %v341_v25 = vld [vmem:[#allocation2 + $0x28] sm:$0xff] }
 0x10f   : > { %875 = vst [vmem:[#allocation2 + $0xf0] sm:$0xff] %v843_v26 }
 0x110   : > { %876 = vst [vmem:[#allocation2 + $0x8] sm:$0xff] %v844_v27 }
 0x111   : > { %v758_v28 = vpop.f32.mrf.mxu2 }
 0x112   : > { %v807_v30 = vpop.f32.mrf.mxu3  ;;  %v663_v31 = vpop.f32.mrf.mxu0 }
 0x113   : > { %v808_v32 = vadd.f32 %v807_v30, %v758_v28  ;;  %v712_v34 = vpop.f32.mrf.mxu1 }
 0x114   : > { %v713_v35 = vadd.f32 %v712_v34, %v663_v31 }
 0x115   : > { %v845_v36 = vadd.f32 %v808_v32, %v329_v29  ;;  %v342_v29 = vld [vmem:[#allocation2 + $0xa0] sm:$0xff] }
 0x116   : > { %v846_v37 = vadd.f32 %v713_v35, %v330_v33  ;;  %v343_v35 = vld [vmem:[#allocation2 + $0xf8] sm:$0xff] }
 0x117   : > { %877 = vst [vmem:[#allocation2 + $0x78] sm:$0xff] %v845_v36 }
 0x118   : > { %878 = vst [vmem:[#allocation2 + $0x38] sm:$0xff] %v846_v37 }
 0x119   : > { %v761_v38 = vpop.f32.mrf.mxu2 }
 0x11a   : > { %v810_v40 = vpop.f32.mrf.mxu3  ;;  %v665_v41 = vpop.f32.mrf.mxu0 }
 0x11b   : > { %v811_v42 = vadd.f32 %v810_v40, %v761_v38  ;;  %v714_v44 = vpop.f32.mrf.mxu1 }
 0x11c   : > { %v715_v45 = vadd.f32 %v714_v44, %v665_v41 }
 0x11d   : > { %v847_v46 = vadd.f32 %v811_v42, %v331_v39  ;;  %v344_v39 = vld [vmem:[#allocation2 + $0x20] sm:$0xff] }
 0x11e   : > { %v848_v47 = vadd.f32 %v715_v45, %v332_v43  ;;  %v345_v45 = vld [vmem:[#allocation2 + $0x98] sm:$0xff] }
 0x11f   : > { %879 = vst [vmem:[#allocation2 + $0x58] sm:$0xff] %v847_v46 }
 0x120   : > { %880 = vst [vmem:[#allocation2 + $0x40] sm:$0xff] %v848_v47 }
 0x121   : > { %v763_v48 = vpop.f32.mrf.mxu2 }
 0x122   : > { %v812_v50 = vpop.f32.mrf.mxu3  ;;  %v668_v51 = vpop.f32.mrf.mxu0 }
 0x123   : > { %v813_v52 = vadd.f32 %v812_v50, %v763_v48  ;;  %v717_v54 = vpop.f32.mrf.mxu1 }
 0x124   : > { %v718_v55 = vadd.f32 %v717_v54, %v668_v51 }
 0x125   : > { %v849_v56 = vadd.f32 %v813_v52, %v333_v49 }
 0x126   : > { %v850_v57 = vadd.f32 %v718_v55, %v334_v53 }
 0x127   : > { %881 = vst [vmem:[#allocation2 + $0xc8] sm:$0xff] %v849_v56 }
 0x128   : > { %882 = vst [vmem:[#allocation2 + $0xe0] sm:$0xff] %v850_v57 }
 0x129   : > { %v766_v58 = vpop.f32.mrf.mxu2 }
 0x12a   : > { %v815_v60 = vpop.f32.mrf.mxu3  ;;  %v670_v61 = vpop.f32.mrf.mxu0 }
 0x12b   : > { %v816_v62 = vadd.f32 %v815_v60, %v766_v58  ;;  %v719_v0 = vpop.f32.mrf.mxu1 }
 0x12c   : > { %v720_v1 = vadd.f32 %v719_v0, %v670_v61 }
 0x12d   : > { %v851_v2 = vadd.f32 %v816_v62, %v335_v59 }
 0x12e   : > { %v852_v3 = vadd.f32 %v720_v1, %v336_v63 }
 0x12f   : > { %883 = vst [vmem:[#allocation2 + $0x90] sm:$0xff] %v851_v2 }
 0x130   : > { %884 = vst [vmem:[#allocation2 + $0x70] sm:$0xff] %v852_v3 }
 0x131   : > { %v768_v4 = vpop.f32.mrf.mxu2 }
 0x132   : > { %v817_v6 = vpop.f32.mrf.mxu3  ;;  %v673_v7 = vpop.f32.mrf.mxu0 }
 0x133   : > { %v818_v8 = vadd.f32 %v817_v6, %v768_v4  ;;  %v722_v10 = vpop.f32.mrf.mxu1 }
 0x134   : > { %v723_v11 = vadd.f32 %v722_v10, %v673_v7 }
 0x135   : > { %v853_v12 = vadd.f32 %v818_v8, %v337_v5 }
 0x136   : > { %v854_v13 = vadd.f32 %v723_v11, %v338_v9 }
 0x137   : > { %885 = vst [vmem:[#allocation2 + $0xc0] sm:$0xff] %v853_v12 }
 0x138   : > { %886 = vst [vmem:[#allocation2 + $0xa8] sm:$0xff] %v854_v13 }
 0x139   : > { %v771_v14 = vpop.f32.mrf.mxu2 }
 0x13a   : > { %v820_v16 = vpop.f32.mrf.mxu3  ;;  %v675_v17 = vpop.f32.mrf.mxu0 }
 0x13b   : > { %v821_v18 = vadd.f32 %v820_v16, %v771_v14  ;;  %v724_v20 = vpop.f32.mrf.mxu1 }
 0x13c   : > { %v725_v21 = vadd.f32 %v724_v20, %v675_v17 }
 0x13d   : > { %v855_v22 = vadd.f32 %v821_v18, %v339_v15 }
 0x13e   : > { %v856_v23 = vadd.f32 %v725_v21, %v340_v19 }
 0x13f   : > { %887 = vst [vmem:[#allocation2 + $0xd0] sm:$0xff] %v855_v22 }
 0x140   : > { %888 = vst [vmem:[#allocation2 + $0x10] sm:$0xff] %v856_v23 }
 0x141   : > { %v773_v24 = vpop.f32.mrf.mxu2 }
 0x142   : > { %v822_v26 = vpop.f32.mrf.mxu3  ;;  %v678_v27 = vpop.f32.mrf.mxu0 }
 0x143   : > { %v823_v28 = vadd.f32 %v822_v26, %v773_v24  ;;  %v727_v30 = vpop.f32.mrf.mxu1 }
 0x144   : > { %v728_v31 = vadd.f32 %v727_v30, %v678_v27 }
 0x145   : > { %v857_v32 = vadd.f32 %v823_v28, %v341_v25 }
 0x146   : > { %v858_v33 = vadd.f32 %v728_v31, %v342_v29 }
 0x147   : > { %889 = vst [vmem:[#allocation2 + $0x28] sm:$0xff] %v857_v32 }
 0x148   : > { %890 = vst [vmem:[#allocation2 + $0xa0] sm:$0xff] %v858_v33 }
 0x149   : > { %v776_v34 = vpop.f32.mrf.mxu2 }
 0x14a   : > { %v825_v36 = vpop.f32.mrf.mxu3  ;;  %v680_v37 = vpop.f32.mrf.mxu0 }
 0x14b   : > { %v826_v38 = vadd.f32 %v825_v36, %v776_v34  ;;  %v729_v40 = vpop.f32.mrf.mxu1 }
 0x14c   : > { %v730_v41 = vadd.f32 %v729_v40, %v680_v37 }
 0x14d   : > { %v859_v42 = vadd.f32 %v826_v38, %v343_v35 }
 0x14e   : > { %v860_v43 = vadd.f32 %v730_v41, %v344_v39 }
 0x14f   : > { %891 = vst [vmem:[#allocation2 + $0xf8] sm:$0xff] %v859_v42 }
 0x150   : > { %892 = vst [vmem:[#allocation2 + $0x20] sm:$0xff] %v860_v43 }
 0x151   : > { %v778_v44 = vpop.f32.mrf.mxu2 }
 0x152   : > { %v827_v46 = vpop.f32.mrf.mxu3 }
 0x153   : > { %v828_v47 = vadd.f32 %v827_v46, %v778_v44  ;;  %897 = sbr.rel (%p1357_p6) target bundleno = 372 (0x174), region = 40 }
 0x155   : > { %v861_v48 = vadd.f32 %v828_v47, %v345_v45 }
 0x157   : > { %893 = vst [vmem:[#allocation2 + $0x98] sm:$0xff] %v861_v48 }
 0x158   : > { %v898_v49 = vld [vmem:[#allocation2 + $0xb0] sm:$0xff]  ;;  %v899_v50 = vld [vmem:[#allocation2] sm:$0xff]  ;;  %v900_v54 = vld [vmem:[#allocation2 + $0xd8] sm:$0xff] }
 0x159   : > { %v930_v51 = vld [vmem:[%s1710_s2] sm:$0x3]  ;;  %v901_v55 = vld [vmem:[#allocation2 + $0x18] sm:$0xff]  ;;  %v902_v56 = vld [vmem:[#allocation2 + $0x50] sm:$0xff] }
 0x15a   : > { %v1615_v52 = vperm.slane %v930_v51, 0  ;;  %v1617_v53 = vperm.slane %v930_v51, 1  ;;  %v903_v57 = vld [vmem:[#allocation2 + $0x68] sm:$0xff]  ;;  %v904_v58 = vld [vmem:[#allocation2 + $0x30] sm:$0xff]  ;;  %v906_v4 = vld [vmem:[#allocation2 + $0x80] sm:$0xff] }
 0x15b   : > { %v905_v59 = vld [vmem:[#allocation2 + $0x48] sm:$0xff]  ;;  %v909_v11 = vld [vmem:[#allocation2 + $0xb8] sm:$0xff]  ;;  %v910_v16 = vld [vmem:[#allocation2 + $0x60] sm:$0xff] }
 0x15c   : > { %v936_v60 = vadd.f32 %v1615_v52, %v898_v49  ;;  %v937_v61 = vadd.f32 %v1617_v53, %v899_v50  ;;  %v938_v62 = vadd.f32 %v1615_v52, %v900_v54  ;;  %v939_v63 = vadd.f32 %v1617_v53, %v901_v55  ;;  %v907_v5 = vld [vmem:[#allocation2 + $0x88] sm:$0xff]  ;;  %v911_v17 = vld [vmem:[#allocation2 + $0xf0] sm:$0xff]  ;;  %v913_v23 = vld [vmem:[#allocation2 + $0x78] sm:$0xff] }
 0x15d   : > { %v940_v0 = vadd.f32 %v1615_v52, %v902_v56  ;;  %v941_v1 = vadd.f32 %v1617_v53, %v903_v57  ;;  %v942_v2 = vadd.f32 %v1615_v52, %v904_v58  ;;  %v943_v3 = vadd.f32 %v1617_v53, %v905_v59  ;;  %v908_v10 = vld [vmem:[#allocation2 + $0xe8] sm:$0xff]  ;;  %v914_v28 = vld [vmem:[#allocation2 + $0x38] sm:$0xff]  ;;  %v916_v38 = vld [vmem:[#allocation2 + $0x40] sm:$0xff] }
 0x15e   : > { %v968_v6 = vmax.f32 %v936_v60, 0.0  ;;  %v969_v7 = vmax.f32 %v937_v61, 0.0  ;;  %v970_v8 = vmax.f32 %v938_v62, 0.0  ;;  %v971_v9 = vmax.f32 %v939_v63, 0.0  ;;  %v912_v22 = vld [vmem:[#allocation2 + $0x8] sm:$0xff]  ;;  %v915_v33 = vld [vmem:[#allocation2 + $0x58] sm:$0xff] }
 0x15f   : > { %v972_v12 = vmax.f32 %v940_v0, 0.0  ;;  %v973_v13 = vmax.f32 %v941_v1, 0.0  ;;  %v974_v14 = vmax.f32 %v942_v2, 0.0  ;;  %v975_v15 = vmax.f32 %v943_v3, 0.0  ;;  %v917_v39 = vld [vmem:[#allocation2 + $0xc8] sm:$0xff]  ;;  %v918_v44 = vld [vmem:[#allocation2 + $0xe0] sm:$0xff] }
 0x160   : > { %v1000_v18 = vpack.c.bf16 %v969_v7, %v968_v6  ;;  %v1001_v19 = vpack.c.bf16 %v971_v9, %v970_v8  ;;  %v944_v20 = vadd.f32 %v1615_v52, %v906_v4  ;;  %v945_v21 = vadd.f32 %v1617_v53, %v907_v5  ;;  %v919_v45 = vld [vmem:[#allocation2 + $0x90] sm:$0xff]  ;;  %v921_v51 = vld [vmem:[#allocation2 + $0xc0] sm:$0xff]  ;;  %v922_v58 = vld [vmem:[#allocation2 + $0xa8] sm:$0xff] }
 0x161   : > { %v1002_v24 = vpack.c.bf16 %v973_v13, %v972_v12  ;;  %v1003_v25 = vpack.c.bf16 %v975_v15, %v974_v14  ;;  %v946_v26 = vadd.f32 %v1615_v52, %v908_v10  ;;  %v947_v27 = vadd.f32 %v1617_v53, %v909_v11  ;;  %v920_v50 = vld [vmem:[#allocation2 + $0x70] sm:$0xff]  ;;  %v925_v5 = vld [vmem:[#allocation2 + $0x28] sm:$0xff]  ;;  %v926_v10 = vld [vmem:[#allocation2 + $0xa0] sm:$0xff] }
 0x162   : > { %1016 = vst [vmem:[%s1711_s3] sm:$0xff] %v1000_v18  ;;  %v976_v29 = vmax.f32 %v944_v20, 0.0  ;;  %v977_v30 = vmax.f32 %v945_v21, 0.0  ;;  %v948_v31 = vadd.f32 %v1615_v52, %v910_v16  ;;  %v949_v32 = vadd.f32 %v1617_v53, %v911_v17  ;;  %v923_v63 = vld [vmem:[#allocation2 + $0xd0] sm:$0xff]  ;;  %v927_v11 = vld [vmem:[#allocation2 + $0xf8] sm:$0xff]  ;;  %v928_v16 = vld [vmem:[#allocation2 + $0x20] sm:$0xff] }
 0x163   : > { %1017 = vst [vmem:[%s1711_s3 + $0x8] sm:$0xff] %v1001_v19  ;;  %v978_v34 = vmax.f32 %v946_v26, 0.0  ;;  %v979_v35 = vmax.f32 %v947_v27, 0.0  ;;  %v950_v36 = vadd.f32 %v1615_v52, %v912_v22  ;;  %v951_v37 = vadd.f32 %v1617_v53, %v913_v23  ;;  %v924_v4 = vld [vmem:[#allocation2 + $0x10] sm:$0xff]  ;;  %v929_v17 = vld [vmem:[#allocation2 + $0x98] sm:$0xff] }
 0x164   : > { %1018 = vst [vmem:[%s1711_s3 + $0x10] sm:$0xff] %v1002_v24  ;;  %v1004_v40 = vpack.c.bf16 %v977_v30, %v976_v29  ;;  %v980_v41 = vmax.f32 %v948_v31, 0.0  ;;  %v981_v42 = vmax.f32 %v949_v32, 0.0  ;;  %v952_v43 = vadd.f32 %v1615_v52, %v914_v28 }
 0x165   : > { %1019 = vst [vmem:[%s1711_s3 + $0x18] sm:$0xff] %v1003_v25  ;;  %v1005_v46 = vpack.c.bf16 %v979_v35, %v978_v34  ;;  %v982_v47 = vmax.f32 %v950_v36, 0.0  ;;  %v983_v48 = vmax.f32 %v951_v37, 0.0  ;;  %v953_v49 = vadd.f32 %v1617_v53, %v915_v33 }
 0x166   : > { %1020 = vst [vmem:[%s1711_s3 + $0x20] sm:$0xff] %v1004_v40  ;;  %v1006_v54 = vpack.c.bf16 %v981_v42, %v980_v41  ;;  %v984_v55 = vmax.f32 %v952_v43, 0.0  ;;  %v954_v56 = vadd.f32 %v1615_v52, %v916_v38  ;;  %v955_v57 = vadd.f32 %v1617_v53, %v917_v39 }
 0x167   : > { %1021 = vst [vmem:[%s1711_s3 + $0x28] sm:$0xff] %v1005_v46  ;;  %v1007_v59 = vpack.c.bf16 %v983_v48, %v982_v47  ;;  %v985_v60 = vmax.f32 %v953_v49, 0.0  ;;  %v956_v61 = vadd.f32 %v1615_v52, %v918_v44  ;;  %v957_v62 = vadd.f32 %v1617_v53, %v919_v45 }
 0x168   : > { %1022 = vst [vmem:[%s1711_s3 + $0x30] sm:$0xff] %v1006_v54  ;;  %v986_v0 = vmax.f32 %v954_v56, 0.0  ;;  %v987_v1 = vmax.f32 %v955_v57, 0.0  ;;  %v958_v2 = vadd.f32 %v1615_v52, %v920_v50  ;;  %v959_v3 = vadd.f32 %v1617_v53, %v921_v51 }
 0x169   : > { %1023 = vst [vmem:[%s1711_s3 + $0x38] sm:$0xff] %v1007_v59  ;;  %v1008_v6 = vpack.c.bf16 %v985_v60, %v984_v55  ;;  %v988_v7 = vmax.f32 %v956_v61, 0.0  ;;  %v989_v8 = vmax.f32 %v957_v62, 0.0  ;;  %v960_v9 = vadd.f32 %v1615_v52, %v922_v58 }
 0x16a   : > { %v1009_v12 = vpack.c.bf16 %v987_v1, %v986_v0  ;;  %v990_v13 = vmax.f32 %v958_v2, 0.0  ;;  %v991_v14 = vmax.f32 %v959_v3, 0.0  ;;  %v961_v15 = vadd.f32 %v1617_v53, %v923_v63 }
 0x16b   : > { %1024 = vst [vmem:[%s1711_s3 + $0x40] sm:$0xff] %v1008_v6  ;;  %v1010_v18 = vpack.c.bf16 %v989_v8, %v988_v7  ;;  %v992_v19 = vmax.f32 %v960_v9, 0.0  ;;  %v962_v20 = vadd.f32 %v1615_v52, %v924_v4  ;;  %v963_v21 = vadd.f32 %v1617_v53, %v925_v5 }
 0x16c   : > { %1025 = vst [vmem:[%s1711_s3 + $0x48] sm:$0xff] %v1009_v12  ;;  %v1011_v22 = vpack.c.bf16 %v991_v14, %v990_v13  ;;  %v993_v23 = vmax.f32 %v961_v15, 0.0  ;;  %v964_v24 = vadd.f32 %v1615_v52, %v926_v10  ;;  %v965_v25 = vadd.f32 %v1617_v53, %v927_v11 }
 0x16d   : > { %1026 = vst [vmem:[%s1711_s3 + $0x50] sm:$0xff] %v1010_v18  ;;  %v994_v26 = vmax.f32 %v962_v20, 0.0  ;;  %v995_v27 = vmax.f32 %v963_v21, 0.0  ;;  %v966_v28 = vadd.f32 %v1615_v52, %v928_v16  ;;  %v967_v29 = vadd.f32 %v1617_v53, %v929_v17 }
 0x16e   : > { %1027 = vst [vmem:[%s1711_s3 + $0x58] sm:$0xff] %v1011_v22  ;;  %v1012_v30 = vpack.c.bf16 %v993_v23, %v992_v19  ;;  %v996_v31 = vmax.f32 %v964_v24, 0.0  ;;  %v997_v32 = vmax.f32 %v965_v25, 0.0 }
 0x16f   : > { %v1013_v33 = vpack.c.bf16 %v995_v27, %v994_v26  ;;  %v998_v34 = vmax.f32 %v966_v28, 0.0  ;;  %v999_v35 = vmax.f32 %v967_v29, 0.0 }
 0x170   : > { %1028 = vst [vmem:[%s1711_s3 + $0x60] sm:$0xff] %v1012_v30  ;;  %v1014_v36 = vpack.c.bf16 %v997_v32, %v996_v31 }
 0x171   : > { %1029 = vst [vmem:[%s1711_s3 + $0x68] sm:$0xff] %v1013_v33  ;;  %v1015_v52 = vpack.c.bf16 %v999_v35, %v998_v34 }
 0x172   : > { %1030 = vst [vmem:[%s1711_s3 + $0x70] sm:$0xff] %v1014_v36 }
 0x173   : > { %1031 = vst [vmem:[%s1711_s3 + $0x78] sm:$0xff] %v1015_v52 }
 0x174 PF: > { %s13_s14 = sadd.s32 1, %s1459_s14   ;;  %s1712_s12 = smov %s1455_s13 }
 0x175   : > { %p10_p7 = scmp.ge.s32.totalorder %s13_s14, 11   ;;  %s1713_s13 = smov %s1715_s15 }
 0x177   :  { %12 = sbr.rel (!%p10_p7) target bundleno = 2 (0x2), region = 76 }

// kernel: vgg_network_forward.29
= control target key start
LH: loop header
LB: loop body
LE: loop exit
PB: predicated region body
PF: predicated region fallthrough
CT: control target
= control target key end

     0   :  { %s1315_s12 = smov 0   ;;  %s1317_s13 = smov 0   ;;  %s1612_s0 = inlined_call_operand.vmem [shape: bf16[9,32,256], index: 0, kind: input, shape index: {}]   ;;  %s1613_s1 = inlined_call_operand.vmem [shape: bf16[9,256,512], index: 1, kind: input, shape index: {}]   ;;  %s1614_s2 = inlined_call_operand.vmem [shape: f32[1,512], index: 2, kind: input, shape index: {}]   ;;  %s1615_s3 = inlined_call_operand.vmem [shape: bf16[32,512], index: 3, kind: output, shape index: {}]  }
   0x1   :  { %s1319_s14 = smov 0   ;;  %s1321_s15 = smov 0  }
   0x2   :  { %s1323_s16 = smov 0   ;;  %s1325_s17 = smov 0  }
   0x3   :  { %s1327_s18 = smov 0   ;;  %s1329_s19 = smov 0  }
   0x4   :  { %s1331_s20 = smov 0  }
   0x5 LB: > { %s25_s21 = sadd.s32 1, %s1284_s18  ;;  %s28_s22 = sadd.s32 1, %s1288_s19  ;;  %s1292_s20 = sphi %s1331_s20, %s13_s20   ;;  %s1288_s19 = sphi %s1329_s19, %s1625_s19   ;;  %s1284_s18 = sphi %s1327_s18, %s1624_s18   ;;  %s1280_s17 = sphi %s1325_s17, %s1623_s17   ;;  %s1276_s16 = sphi %s1323_s16, %s1622_s16   ;;  %s1272_s15 = sphi %s1321_s15, %s1621_s15   ;;  %s1268_s14 = sphi %s1319_s14, %s1620_s14   ;;  %s1264_s13 = sphi %s1317_s13, %s1619_s13   ;;  %s1260_s12 = sphi %s1315_s12, %s1618_s12  }
   0x6   : > { %p26_p0 = scmp.ge.s32.totalorder %s25_s21, 9  ;;  %p76_p1 = scmp.ne.s32.totalorder %s1272_s15, %s1268_s14 }
   0x7   : > { %s946_s23 = sadd.s32 4294967295, %s1292_s20   ;;  %p77_p2 = scmp.eq.s32.totalorder %s1292_s20, 0 }
   0x8   : > { %s1627_s21 = smov (%p26_p0, %s25_s21), 0  ;;  %s1629_s22 = smov (!%p26_p0, %s28_s22), %s1288_s19 }
   0x9   : > { %p30_p3 = scmp.ge.s32.totalorder %s1629_s22, 2  ;;  %s64_s24 = ssub.s32 %s1284_s18, %s1627_s21 }
   0xa   : > { %p1371_p4 = por %p77_p2, %p76_p1  ;;  %p133_p5 = scmp.ne.s32.totalorder %s1264_s13, %s1260_s12 }
   0xb   : > { %s1631_s22 = smov (%p30_p3, %s1629_s22), 0  ;;  %s69_s26 = sadd.s32 1, %s1272_s15 }
   0xc   : > { %p134_p6 = scmp.eq.s32.totalorder %s946_s23, 17  ;;  %s65_s27 = ssub.s32 %s1288_s19, %s1631_s22 }
   0xd   : > { %s123_s28 = sadd.s32 1, %s1264_s13  ;;  %s66_s29 = sor.u32 %s65_s27, %s64_s24 }
   0xe   : > { %p121_p7 = scmp.eq.s32.totalorder %s65_s27, 0  ;;  %p67_p8 = scmp.eq.s32.totalorder %s66_s29, 0 }
   0xf   : > { %p1383_p9 = por %p134_p6, %p133_p5  ;;  %p949_p10 = scmp.ge.s32.totalorder %s1292_s20, 18 }
  0x10   : > { %s1388_s4 = scalar_select %p121_p7, %s1264_s13, %s123_s28  }
  0x11   : > { %s1391_s5 = scalar_select %p67_p8, %s1272_s15, %s69_s26  }
  0x12   : > { %156 = sbr.rel (%p949_p10) target bundleno = 62 (0x3e), region = 16 }
  0x17   : > { %173 = sbr.rel (!%p1371_p4) target bundleno = 62 (0x3e), region = 24  ;;  %s175_s6 = sand.u32 (%p1371_p4), 1, %s1272_s15  }
  0x18   : > { %s951_s7 = sshll.u32 (%p1371_p4), %s1288_s19, 1  ;;  %s950_s8 = sshll.u32 (%p1371_p4), %s175_s6, 8 }
  0x19   : > { %s952_s9 = sshll.u32 (%p1371_p4), %s1284_s18, 7  ;;  %s1407_s25 = scalar_lea.vmem (%p1371_p4), [#allocation3], %s950_s8 }
  0x1a   : > { %s180_s10 = sadd.s32 (%p1371_p4), %s952_s9, %s951_s7 }
  0x1b   : > { %s953_s11 = sshll.u32 (%p1371_p4), %s180_s10, 2 }
  0x1c   : > { %s1402_s26 = scalar_lea.vmem %s1613_s1, %s953_s11 }
  0x1d   : > { %v273_v0 = vld [vmem:[%s1402_s26] sm:$0xff]  ;;  %v275_v1 = vld [vmem:[%s1402_s26 + $0x10] sm:$0xff] }
  0x1e   : > { %v277_v2 = vld [vmem:[%s1402_s26 + $0x20] sm:$0xff]  ;;  %274 = vst [vmem:[%s1407_s25] sm:$0xff] %v273_v0  ;;  %v279_v3 = vld [vmem:[%s1402_s26 + $0x30] sm:$0xff] }
  0x1f   : > { %276 = vst [vmem:[%s1407_s25 + $0x8] sm:$0xff] %v275_v1  ;;  %v281_v4 = vld [vmem:[%s1402_s26 + $0x40] sm:$0xff]  ;;  %v283_v5 = vld [vmem:[%s1402_s26 + $0x50] sm:$0xff] }
  0x20   : > { %278 = vst [vmem:[%s1407_s25 + $0x10] sm:$0xff] %v277_v2  ;;  %v285_v6 = vld [vmem:[%s1402_s26 + $0x60] sm:$0xff]  ;;  %v287_v7 = vld [vmem:[%s1402_s26 + $0x70] sm:$0xff] }
  0x21   : > { %280 = vst [vmem:[%s1407_s25 + $0x18] sm:$0xff] %v279_v3  ;;  %v289_v8 = vld [vmem:[%s1402_s26 + $0x80] sm:$0xff]  ;;  %v291_v9 = vld [vmem:[%s1402_s26 + $0x90] sm:$0xff] }
  0x22   : > { %282 = vst [vmem:[%s1407_s25 + $0x20] sm:$0xff] %v281_v4  ;;  %v293_v10 = vld [vmem:[%s1402_s26 + $0xa0] sm:$0xff]  ;;  %v295_v11 = vld [vmem:[%s1402_s26 + $0xb0] sm:$0xff] }
  0x23   : > { %284 = vst [vmem:[%s1407_s25 + $0x28] sm:$0xff] %v283_v5  ;;  %v297_v12 = vld [vmem:[%s1402_s26 + $0xc0] sm:$0xff]  ;;  %v299_v13 = vld [vmem:[%s1402_s26 + $0xd0] sm:$0xff] }
  0x24   : > { %286 = vst [vmem:[%s1407_s25 + $0x30] sm:$0xff] %v285_v6  ;;  %v301_v14 = vld [vmem:[%s1402_s26 + $0xe0] sm:$0xff]  ;;  %v303_v15 = vld [vmem:[%s1402_s26 + $0xf0] sm:$0xff] }
  0x25   : > { %288 = vst [vmem:[%s1407_s25 + $0x38] sm:$0xff] %v287_v7  ;;  %v305_v16 = vld [vmem:[%s1402_s26 + $0x100] sm:$0xff]  ;;  %v307_v17 = vld [vmem:[%s1402_s26 + $0x110] sm:$0xff] }
  0x26   : > { %290 = vst [vmem:[%s1407_s25 + $0x40] sm:$0xff] %v289_v8  ;;  %v309_v18 = vld [vmem:[%s1402_s26 + $0x120] sm:$0xff]  ;;  %v311_v19 = vld [vmem:[%s1402_s26 + $0x130] sm:$0xff] }
  0x27   : > { %292 = vst [vmem:[%s1407_s25 + $0x48] sm:$0xff] %v291_v9  ;;  %v313_v20 = vld [vmem:[%s1402_s26 + $0x140] sm:$0xff]  ;;  %v315_v21 = vld [vmem:[%s1402_s26 + $0x150] sm:$0xff] }
  0x28   : > { %294 = vst [vmem:[%s1407_s25 + $0x50] sm:$0xff] %v293_v10  ;;  %v317_v22 = vld [vmem:[%s1402_s26 + $0x160] sm:$0xff]  ;;  %v319_v23 = vld [vmem:[%s1402_s26 + $0x170] sm:$0xff] }
  0x29   : > { %296 = vst [vmem:[%s1407_s25 + $0x58] sm:$0xff] %v295_v11  ;;  %v321_v24 = vld [vmem:[%s1402_s26 + $0x180] sm:$0xff]  ;;  %v323_v25 = vld [vmem:[%s1402_s26 + $0x190] sm:$0xff] }
  0x2a   : > { %298 = vst [vmem:[%s1407_s25 + $0x60] sm:$0xff] %v297_v12  ;;  %v325_v26 = vld [vmem:[%s1402_s26 + $0x1a0] sm:$0xff]  ;;  %v327_v27 = vld [vmem:[%s1402_s26 + $0x1b0] sm:$0xff] }
  0x2b   : > { %300 = vst [vmem:[%s1407_s25 + $0x68] sm:$0xff] %v299_v13  ;;  %v329_v28 = vld [vmem:[%s1402_s26 + $0x1c0] sm:$0xff]  ;;  %v331_v29 = vld [vmem:[%s1402_s26 + $0x1d0] sm:$0xff] }
  0x2c   : > { %302 = vst [vmem:[%s1407_s25 + $0x70] sm:$0xff] %v301_v14  ;;  %v333_v30 = vld [vmem:[%s1402_s26 + $0x1e0] sm:$0xff]  ;;  %v335_v31 = vld [vmem:[%s1402_s26 + $0x1f0] sm:$0xff] }
  0x2d   : > { %304 = vst [vmem:[%s1407_s25 + $0x78] sm:$0xff] %v303_v15 }
  0x2e   : > { %306 = vst [vmem:[%s1407_s25 + $0x80] sm:$0xff] %v305_v16 }
  0x2f   : > { %308 = vst [vmem:[%s1407_s25 + $0x88] sm:$0xff] %v307_v17 }
  0x30   : > { %310 = vst [vmem:[%s1407_s25 + $0x90] sm:$0xff] %v309_v18 }
  0x31   : > { %312 = vst [vmem:[%s1407_s25 + $0x98] sm:$0xff] %v311_v19 }
  0x32   : > { %314 = vst [vmem:[%s1407_s25 + $0xa0] sm:$0xff] %v313_v20 }
  0x33   : > { %316 = vst [vmem:[%s1407_s25 + $0xa8] sm:$0xff] %v315_v21 }
  0x34   : > { %318 = vst [vmem:[%s1407_s25 + $0xb0] sm:$0xff] %v317_v22 }
  0x35   : > { %320 = vst [vmem:[%s1407_s25 + $0xb8] sm:$0xff] %v319_v23 }
  0x36   : > { %322 = vst [vmem:[%s1407_s25 + $0xc0] sm:$0xff] %v321_v24 }
  0x37   : > { %324 = vst [vmem:[%s1407_s25 + $0xc8] sm:$0xff] %v323_v25 }
  0x38   : > { %326 = vst [vmem:[%s1407_s25 + $0xd0] sm:$0xff] %v325_v26 }
  0x39   : > { %328 = vst [vmem:[%s1407_s25 + $0xd8] sm:$0xff] %v327_v27 }
  0x3a   : > { %330 = vst [vmem:[%s1407_s25 + $0xe0] sm:$0xff] %v329_v28 }
  0x3b   : > { %332 = vst [vmem:[%s1407_s25 + $0xe8] sm:$0xff] %v331_v29 }
  0x3c   : > { %334 = vst [vmem:[%s1407_s25 + $0xf0] sm:$0xff] %v333_v30 }
  0x3d   : > { %336 = vst [vmem:[%s1407_s25 + $0xf8] sm:$0xff] %v335_v31 }
  0x3e PF: > { %p954_p11 = scmp.ge.s32.totalorder %s1292_s20, 1  ;;  %p349_p12 = scmp.lt.s32.totalorder %s1292_s20, 19 }
  0x40   : > { %p350_p13 = pnand %p954_p11, %p349_p12 }
  0x41   : > { %s356_s27 = sand.u32 (!%p350_p13), 1, %s1268_s14   ;;  %s389_s28 = sand.u32 (!%p350_p13), 1, %s1260_s12  }
  0x42   : > { %353 = sbr.rel (%p350_p13) target bundleno = 305 (0x131), region = 66  ;;  %s955_s29 = sshll.u32 (!%p350_p13), %s356_s27, 8 }
  0x43   : > { %s956_s6 = sshll.u32 (!%p350_p13), %s389_s28, 5  ;;  %p393_p0 = scmp.lt.s32.totalorder (!%p350_p13), %s1276_s16, 8 }
  0x44   : > { %s959_s7 = sshll.u32 (!%p350_p13), %s1280_s17, 1  ;;  %s1488_s12 = scalar_lea.vmem (!%p350_p13), [#allocation3], %s955_s29 }
  0x45   : > { %p405_p1 = scmp.lt.s32.totalorder (!%p350_p13), %s959_s7, 3  ;;  %s1490_s25 = scalar_lea.vmem (!%p350_p13), [#allocation4], %s956_s6 }
  0x46   : > { %p960_p2 = scmp.ne.s32.totalorder (!%p350_p13), %s1276_s16, 0 }
  0x47   : > { %s394_s8 = scalar_select %p393_p0, %s1276_s16, 8 }
  0x48   : > { %s1633_s7 = smov (!%p405_p1, %s959_s7), 3  ;;  %414 = sbr.rel (%p960_p2) target bundleno = 86 (0x56), region = 74 }
  0x49   : > { %s1111_s9 = sshll.u32 %s394_s8, 5  ;;  %s407_s14 = scalar_lea.vmem %s1614_s2, %s1633_s7 }
  0x4a   : > { %s1482_s23 = scalar_lea.vmem %s1612_s0, %s1111_s9 }
  0x4d   : > { %v1294_v32 = vmov 0.0  }
  0x4e   : > { %415 = vst [vmem:[#allocation2 + $0x30] sm:$0xff] %v1294_v32 }
  0x4f   : > { %416 = vst [vmem:[#allocation2] sm:$0xff] %v1294_v32 }
  0x50   : > { %417 = vst [vmem:[#allocation2 + $0x18] sm:$0xff] %v1294_v32 }
  0x51   : > { %418 = vst [vmem:[#allocation2 + $0x10] sm:$0xff] %v1294_v32 }
  0x52   : > { %419 = vst [vmem:[#allocation2 + $0x8] sm:$0xff] %v1294_v32 }
  0x53   : > { %420 = vst [vmem:[#allocation2 + $0x20] sm:$0xff] %v1294_v32 }
  0x54   : > { %421 = vst [vmem:[#allocation2 + $0x28] sm:$0xff] %v1294_v32 }
  0x55   : > { %422 = vst [vmem:[#allocation2 + $0x38] sm:$0xff] %v1294_v32 }
  0x56 PF: > { %v1035_v33 = vld [vmem:[%s1488_s12 + $0x70] sm:$0xf]  ;;  %v1131_v34 = vld [vmem:[%s1488_s12 + $0x74] sm:$0xf0]  ;;  %v1130_v38 = vld [vmem:[%s1488_s12 + $0x74] sm:$0xf] }
  0x57   : > { %v1099_v35 = vld [vmem:[%s1488_s12 + $0xf0] sm:$0xf]  ;;  %v1036_v36 = vor.u32 %v1131_v34, %v1035_v33  ;;  %v1147_v37 = vld [vmem:[%s1488_s12 + $0xf4] sm:$0xf0]  ;;  %v1037_v39 = vld [vmem:[%s1488_s12 + $0x78] sm:$0xf0] }
  0x58   : > { %v1100_v40 = vor.u32 %v1147_v37, %v1099_v35  ;;  %v1040_v41 = vor.u32 %v1130_v38, %v1037_v39  ;;  %v1146_v42 = vld [vmem:[%s1488_s12 + $0xf4] sm:$0xf]  ;;  %v1101_v43 = vld [vmem:[%s1488_s12 + $0xf8] sm:$0xf0]  ;;  %v1027_v44 = vld [vmem:[%s1488_s12 + $0x60] sm:$0xf] }
  0x59   : > { %647 = vmatpush.bf16.msra.mxu0 %v1036_v36  ;;  %v1104_v45 = vor.u32 %v1146_v42, %v1101_v43  ;;  %v1129_v46 = vld [vmem:[%s1488_s12 + $0x64] sm:$0xf0]  ;;  %v1091_v47 = vld [vmem:[%s1488_s12 + $0xe0] sm:$0xf]  ;;  %v1128_v51 = vld [vmem:[%s1488_s12 + $0x64] sm:$0xf] }
  0x5a   : > { %v1145_v48 = vld [vmem:[%s1488_s12 + $0xe4] sm:$0xf0]  ;;  %666 = vmatpush.bf16.msra.mxu1 %v1100_v40  ;;  %685 = vmatpush.bf16.msra.mxu2 %v1040_v41  ;;  %v1028_v49 = vor.u32 %v1129_v46, %v1027_v44  ;;  %v1029_v52 = vld [vmem:[%s1488_s12 + $0x68] sm:$0xf0]  ;;  %v1144_v53 = vld [vmem:[%s1488_s12 + $0xe4] sm:$0xf] }
  0x5b   : > { %v1092_v50 = vor.u32 %v1145_v48, %v1091_v47  ;;  %704 = vmatpush.bf16.msra.mxu3 %v1104_v45  ;;  %v1032_v54 = vor.u32 %v1128_v51, %v1029_v52  ;;  %v1093_v55 = vld [vmem:[%s1488_s12 + $0xe8] sm:$0xf0]  ;;  %v1019_v56 = vld [vmem:[%s1488_s12 + $0x50] sm:$0xf]  ;;  %v1127_v57 = vld [vmem:[%s1488_s12 + $0x54] sm:$0xf0] }
  0x5c   : > { %v1096_v58 = vor.u32 %v1144_v53, %v1093_v55  ;;  %v1083_v59 = vld [vmem:[%s1488_s12 + $0xd0] sm:$0xf]  ;;  %v1143_v60 = vld [vmem:[%s1488_s12 + $0xd4] sm:$0xf0]  ;;  %v1126_v61 = vld [vmem:[%s1488_s12 + $0x54] sm:$0xf]  ;;  %v1020_v62 = vor.u32 %v1127_v57, %v1019_v56 }
  0x5d   : > { %648 = vmatpush.bf16.msra.mxu0 %v1028_v49  ;;  %v1021_v63 = vld [vmem:[%s1488_s12 + $0x58] sm:$0xf0]  ;;  %v1142_v0 = vld [vmem:[%s1488_s12 + $0xd4] sm:$0xf]  ;;  %v1084_v2 = vor.u32 %v1143_v60, %v1083_v59  ;;  %v1011_v4 = vld [vmem:[%s1488_s12 + $0x40] sm:$0xf] }
  0x5e   : > { %v1085_v1 = vld [vmem:[%s1488_s12 + $0xd8] sm:$0xf0]  ;;  %667 = vmatpush.bf16.msra.mxu1 %v1092_v50  ;;  %686 = vmatpush.bf16.msra.mxu2 %v1032_v54  ;;  %v1024_v3 = vor.u32 %v1126_v61, %v1021_v63  ;;  %v1125_v5 = vld [vmem:[%s1488_s12 + $0x44] sm:$0xf0]  ;;  %v1075_v6 = vld [vmem:[%s1488_s12 + $0xc0] sm:$0xf] }
  0x5f   : > { %705 = vmatpush.bf16.msra.mxu3 %v1096_v58  ;;  %v1088_v7 = vor.u32 %v1142_v0, %v1085_v1  ;;  %v1141_v8 = vld [vmem:[%s1488_s12 + $0xc4] sm:$0xf0]  ;;  %v1124_v9 = vld [vmem:[%s1488_s12 + $0x44] sm:$0xf]  ;;  %v1013_v10 = vld [vmem:[%s1488_s12 + $0x48] sm:$0xf0]  ;;  %v1012_v13 = vor.u32 %v1125_v5, %v1011_v4 }
  0x60   : > { %v1140_v11 = vld [vmem:[%s1488_s12 + $0xc4] sm:$0xf]  ;;  %v1077_v12 = vld [vmem:[%s1488_s12 + $0xc8] sm:$0xf0]  ;;  %v1076_v14 = vor.u32 %v1141_v8, %v1075_v6  ;;  %v1016_v15 = vor.u32 %v1124_v9, %v1013_v10  ;;  %v1003_v16 = vld [vmem:[%s1488_s12 + $0x30] sm:$0xf] }
  0x61   : > { %649 = vmatpush.bf16.msra.mxu0 %v1020_v62  ;;  %v1123_v17 = vld [vmem:[%s1488_s12 + $0x34] sm:$0xf0]  ;;  %v1067_v18 = vld [vmem:[%s1488_s12 + $0xb0] sm:$0xf]  ;;  %v1080_v19 = vor.u32 %v1140_v11, %v1077_v12  ;;  %v1122_v21 = vld [vmem:[%s1488_s12 + $0x34] sm:$0xf] }
  0x62   : > { %668 = vmatpush.bf16.msra.mxu1 %v1084_v2  ;;  %687 = vmatpush.bf16.msra.mxu2 %v1024_v3  ;;  %v1139_v20 = vld [vmem:[%s1488_s12 + $0xb4] sm:$0xf0]  ;;  %v1005_v22 = vld [vmem:[%s1488_s12 + $0x38] sm:$0xf0]  ;;  %v1138_v23 = vld [vmem:[%s1488_s12 + $0xb4] sm:$0xf]  ;;  %v1004_v25 = vor.u32 %v1123_v17, %v1003_v16 }
  0x63   : > { %706 = vmatpush.bf16.msra.mxu3 %v1088_v7  ;;  %v1069_v24 = vld [vmem:[%s1488_s12 + $0xb8] sm:$0xf0]  ;;  %v1068_v26 = vor.u32 %v1139_v20, %v1067_v18  ;;  %v1008_v27 = vor.u32 %v1122_v21, %v1005_v22  ;;  %v995_v28 = vld [vmem:[%s1488_s12 + $0x20] sm:$0xf]  ;;  %v1121_v29 = vld [vmem:[%s1488_s12 + $0x24] sm:$0xf0] }
  0x64   : > { %v1059_v30 = vld [vmem:[%s1488_s12 + $0xa0] sm:$0xf]  ;;  %v1072_v31 = vor.u32 %v1138_v23, %v1069_v24  ;;  %v1137_v32 = vld [vmem:[%s1488_s12 + $0xa4] sm:$0xf0]  ;;  %v1120_v33 = vld [vmem:[%s1488_s12 + $0x24] sm:$0xf]  ;;  %v996_v37 = vor.u32 %v1121_v29, %v995_v28 }
  0x65   : > { %650 = vmatpush.bf16.msra.mxu0 %v1012_v13  ;;  %v997_v34 = vld [vmem:[%s1488_s12 + $0x28] sm:$0xf0]  ;;  %v1136_v35 = vld [vmem:[%s1488_s12 + $0xa4] sm:$0xf]  ;;  %v1060_v38 = vor.u32 %v1137_v32, %v1059_v30  ;;  %v987_v40 = vld [vmem:[%s1488_s12 + $0x10] sm:$0xf] }
  0x66   : > { %669 = vmatpush.bf16.msra.mxu1 %v1076_v14  ;;  %688 = vmatpush.bf16.msra.mxu2 %v1016_v15  ;;  %v1061_v36 = vld [vmem:[%s1488_s12 + $0xa8] sm:$0xf0]  ;;  %v1000_v39 = vor.u32 %v1120_v33, %v997_v34  ;;  %v1119_v41 = vld [vmem:[%s1488_s12 + $0x14] sm:$0xf0]  ;;  %v1051_v42 = vld [vmem:[%s1488_s12 + $0x90] sm:$0xf] }
  0x67   : > { %707 = vmatpush.bf16.msra.mxu3 %v1080_v19  ;;  %v1064_v43 = vor.u32 %v1136_v35, %v1061_v36  ;;  %v1135_v44 = vld [vmem:[%s1488_s12 + $0x94] sm:$0xf0]  ;;  %v1118_v45 = vld [vmem:[%s1488_s12 + $0x14] sm:$0xf]  ;;  %v989_v46 = vld [vmem:[%s1488_s12 + $0x18] sm:$0xf0]  ;;  %v988_v49 = vor.u32 %v1119_v41, %v987_v40 }
  0x68   : > { %v1134_v47 = vld [vmem:[%s1488_s12 + $0x94] sm:$0xf]  ;;  %v1053_v48 = vld [vmem:[%s1488_s12 + $0x98] sm:$0xf0]  ;;  %v1052_v50 = vor.u32 %v1135_v44, %v1051_v42  ;;  %v992_v51 = vor.u32 %v1118_v45, %v989_v46  ;;  %v979_v52 = vld [vmem:[%s1488_s12] sm:$0xf] }
  0x69   : > { %651 = vmatpush.bf16.msra.mxu0 %v1004_v25  ;;  %v1117_v53 = vld [vmem:[%s1488_s12 + $0x4] sm:$0xf0]  ;;  %v1043_v54 = vld [vmem:[%s1488_s12 + $0x80] sm:$0xf]  ;;  %v1056_v55 = vor.u32 %v1134_v47, %v1053_v48  ;;  %v1116_v57 = vld [vmem:[%s1488_s12 + $0x4] sm:$0xf] }
  0x6a   : > { %670 = vmatpush.bf16.msra.mxu1 %v1068_v26  ;;  %689 = vmatpush.bf16.msra.mxu2 %v1008_v27  ;;  %v1133_v56 = vld [vmem:[%s1488_s12 + $0x84] sm:$0xf0]  ;;  %v981_v58 = vld [vmem:[%s1488_s12 + $0x8] sm:$0xf0]  ;;  %v1132_v59 = vld [vmem:[%s1488_s12 + $0x84] sm:$0xf]  ;;  %v980_v61 = vor.u32 %v1117_v53, %v979_v52 }
  0x6b   : > { %708 = vmatpush.bf16.msra.mxu3 %v1072_v31  ;;  %v1045_v60 = vld [vmem:[%s1488_s12 + $0x88] sm:$0xf0]  ;;  %v963_v62 = vld [vmem:[%s1482_s23] sm:$0xf]  ;;  %v1113_v63 = vld [vmem:[%s1482_s23 + $0x4] sm:$0xf0]  ;;  %v1044_v0 = vor.u32 %v1133_v56, %v1043_v54  ;;  %v984_v1 = vor.u32 %v1116_v57, %v981_v58 }
  0x6c   : > { %v1112_v2 = vld [vmem:[%s1482_s23 + $0x4] sm:$0xf]  ;;  %v965_v3 = vld [vmem:[%s1482_s23 + $0x8] sm:$0xf0]  ;;  %v1048_v4 = vor.u32 %v1132_v59, %v1045_v60  ;;  %v964_v5 = vor.u32 %v1113_v63, %v963_v62  ;;  %v971_v7 = vld [vmem:[%s1482_s23 + $0x10] sm:$0xf] }
  0x6d   : > { %652 = vmatpush.bf16.msra.mxu0 %v996_v37  ;;  %v968_v6 = vor.u32 %v1112_v2, %v965_v3  ;;  %v1115_v8 = vld [vmem:[%s1482_s23 + $0x14] sm:$0xf0]  ;;  %v1114_v9 = vld [vmem:[%s1482_s23 + $0x14] sm:$0xf]  ;;  %v973_v10 = vld [vmem:[%s1482_s23 + $0x18] sm:$0xf0] }
  0x6e   : > { %671 = vmatpush.bf16.msra.mxu1 %v1060_v38  ;;  %690 = vmatpush.bf16.msra.mxu2 %v1000_v39  ;;  %v972_v11 = vor.u32 %v1115_v8, %v971_v7  ;;  %v976_v12 = vor.u32 %v1114_v9, %v973_v10  ;;  %v423_v14 = vld [vmem:[#allocation2 + $0x30] sm:$0xff]  ;;  %v424_v19 = vld [vmem:[#allocation2] sm:$0xff]  ;;  %v425_v23 = vld [vmem:[#allocation2 + $0x18] sm:$0xff]  ;;  %p1105_p3 = scmp.ne.s32.totalorder %s1276_s16, 8 }
  0x6f   : > { %709 = vmatpush.bf16.msra.mxu3 %v1064_v43  ;;  %v426_v29 = vld [vmem:[#allocation2 + $0x10] sm:$0xff]  ;;  %v427_v33 = vld [vmem:[#allocation2 + $0x8] sm:$0xff]  ;;  %v428_v39 = vld [vmem:[#allocation2 + $0x20] sm:$0xff] }
  0x70   : > { %v429_v43 = vld [vmem:[#allocation2 + $0x28] sm:$0xff] }
  0x71   : > { %653 = vmatpush.bf16.msra.mxu0 %v988_v49  ;;  %v430_v49 = vld [vmem:[#allocation2 + $0x38] sm:$0xff] }
  0x72   : > { %672 = vmatpush.bf16.msra.mxu1 %v1052_v50  ;;  %691 = vmatpush.bf16.msra.mxu2 %v992_v51 }
  0x73   : > { %710 = vmatpush.bf16.msra.mxu3 %v1056_v55 }
  0x75   : > { %654 = vmatpush.bf16.msra.mxu0 %v980_v61 }
  0x76   : > { %673 = vmatpush.bf16.msra.mxu1 %v1044_v0  ;;  %692 = vmatpush.bf16.msra.mxu2 %v984_v1 }
  0x77   : > { %711 = vmatpush.bf16.msra.mxu3 %v1048_v4 }
  0x78   : > { %655 = vmatmul.bf16.vlgmr.msra.gmra.mxu0 %v964_v5 }
  0x79   : > { %674 = vmatmul.bf16.vlgmr.msra.gmra.mxu1 %v968_v6  ;;  %693 = vmatmul.bf16.vlgmr.msra.gmra.mxu2 %v964_v5 }
  0x7a   : > { %712 = vmatmul.bf16.vlgmr.msra.gmra.mxu3 %v968_v6 }
  0x88   : > { %660 = vmatmul.bf16.gmra.mxu0 %v972_v11 }
  0x89   : > { %679 = vmatmul.bf16.gmra.mxu1 %v976_v12  ;;  %698 = vmatmul.bf16.gmra.mxu2 %v972_v11 }
  0x8a   : > { %717 = vmatmul.bf16.gmra.mxu3 %v976_v12 }
  0xf5   : > { %v656_v13 = vpop.f32.mrf.mxu0 }
  0xf6   : > { %v675_v15 = vpop.f32.mrf.mxu1 }
  0xf7   : > { %v676_v16 = vadd.f32 %v675_v15, %v656_v13 }
  0xf9   : > { %v723_v17 = vadd.f32 %v676_v16, %v423_v14 }
  0xfb   : > { %731 = vst [vmem:[#allocation2 + $0x30] sm:$0xff] %v723_v17 }
  0xfc   : > { %v694_v18 = vpop.f32.mrf.mxu2 }
  0xfd   : > { %v713_v20 = vpop.f32.mrf.mxu3  ;;  %v658_v21 = vpop.f32.mrf.mxu0 }
  0xfe   : > { %v714_v22 = vadd.f32 %v713_v20, %v694_v18  ;;  %v677_v24 = vpop.f32.mrf.mxu1 }
  0xff   : > { %v678_v25 = vadd.f32 %v677_v24, %v658_v21 }
 0x100   : > { %v724_v26 = vadd.f32 %v714_v22, %v424_v19 }
 0x101   : > { %v725_v27 = vadd.f32 %v678_v25, %v425_v23 }
 0x102   : > { %732 = vst [vmem:[#allocation2] sm:$0xff] %v724_v26 }
 0x103   : > { %733 = vst [vmem:[#allocation2 + $0x18] sm:$0xff] %v725_v27 }
 0x104   : > { %v696_v28 = vpop.f32.mrf.mxu2 }
 0x105   : > { %v715_v30 = vpop.f32.mrf.mxu3  ;;  %v661_v31 = vpop.f32.mrf.mxu0 }
 0x106   : > { %v716_v32 = vadd.f32 %v715_v30, %v696_v28  ;;  %v680_v34 = vpop.f32.mrf.mxu1 }
 0x107   : > { %v681_v35 = vadd.f32 %v680_v34, %v661_v31 }
 0x108   : > { %v726_v36 = vadd.f32 %v716_v32, %v426_v29 }
 0x109   : > { %v727_v37 = vadd.f32 %v681_v35, %v427_v33 }
 0x10a   : > { %734 = vst [vmem:[#allocation2 + $0x10] sm:$0xff] %v726_v36 }
 0x10b   : > { %735 = vst [vmem:[#allocation2 + $0x8] sm:$0xff] %v727_v37 }
 0x10c   : > { %v699_v38 = vpop.f32.mrf.mxu2 }
 0x10d   : > { %v718_v40 = vpop.f32.mrf.mxu3  ;;  %v663_v41 = vpop.f32.mrf.mxu0 }
 0x10e   : > { %v719_v42 = vadd.f32 %v718_v40, %v699_v38  ;;  %v682_v44 = vpop.f32.mrf.mxu1 }
 0x10f   : > { %v683_v45 = vadd.f32 %v682_v44, %v663_v41 }
 0x110   : > { %v728_v46 = vadd.f32 %v719_v42, %v428_v39 }
 0x111   : > { %v729_v47 = vadd.f32 %v683_v45, %v429_v43 }
 0x112   : > { %736 = vst [vmem:[#allocation2 + $0x20] sm:$0xff] %v728_v46 }
 0x113   : > { %737 = vst [vmem:[#allocation2 + $0x28] sm:$0xff] %v729_v47 }
 0x114   : > { %v701_v48 = vpop.f32.mrf.mxu2 }
 0x115   : > { %v720_v50 = vpop.f32.mrf.mxu3 }
 0x116   : > { %v721_v51 = vadd.f32 %v720_v50, %v701_v48  ;;  %742 = sbr.rel (%p1105_p3) target bundleno = 297 (0x129), region = 78 }
 0x118   : > { %v730_v52 = vadd.f32 %v721_v51, %v430_v49 }
 0x11a   : > { %738 = vst [vmem:[#allocation2 + $0x38] sm:$0xff] %v730_v52 }
 0x11b   : > { %v743_v53 = vld [vmem:[#allocation2 + $0x30] sm:$0xff]  ;;  %v744_v54 = vld [vmem:[#allocation2] sm:$0xff]  ;;  %v745_v58 = vld [vmem:[#allocation2 + $0x18] sm:$0xff] }
 0x11c   : > { %v751_v55 = vld [vmem:[%s407_s14] sm:$0x3]  ;;  %v746_v59 = vld [vmem:[#allocation2 + $0x10] sm:$0xff]  ;;  %v747_v60 = vld [vmem:[#allocation2 + $0x8] sm:$0xff] }
 0x11d   : > { %v753_v56 = vperm.slane %v751_v55, 0  ;;  %v754_v57 = vperm.slane %v751_v55, 1  ;;  %v748_v61 = vld [vmem:[#allocation2 + $0x20] sm:$0xff]  ;;  %v749_v62 = vld [vmem:[#allocation2 + $0x28] sm:$0xff] }
 0x11f   : > { %v757_v0 = vadd.f32 %v753_v56, %v743_v53  ;;  %v758_v1 = vadd.f32 %v754_v57, %v744_v54  ;;  %v759_v2 = vadd.f32 %v753_v56, %v745_v58  ;;  %v760_v3 = vadd.f32 %v754_v57, %v746_v59 }
 0x120   : > { %v761_v4 = vadd.f32 %v753_v56, %v747_v60  ;;  %v762_v5 = vadd.f32 %v754_v57, %v748_v61  ;;  %v763_v6 = vadd.f32 %v753_v56, %v749_v62 }
 0x121   : > { %v750_v63 = vld [vmem:[#allocation2 + $0x38] sm:$0xff]  ;;  %v765_v8 = vmax.f32 %v757_v0, 0.0  ;;  %v766_v9 = vmax.f32 %v758_v1, 0.0  ;;  %v767_v10 = vmax.f32 %v759_v2, 0.0  ;;  %v768_v11 = vmax.f32 %v760_v3, 0.0 }
 0x122   : > { %v764_v7 = vadd.f32 %v754_v57, %v750_v63  ;;  %v769_v12 = vmax.f32 %v761_v4, 0.0  ;;  %v770_v13 = vmax.f32 %v762_v5, 0.0  ;;  %v771_v14 = vmax.f32 %v763_v6, 0.0 }
 0x123   : > { %v773_v16 = vpack.c.bf16 %v766_v9, %v765_v8  ;;  %v774_v17 = vpack.c.bf16 %v768_v11, %v767_v10 }
 0x124   : > { %v772_v15 = vmax.f32 %v764_v7, 0.0  ;;  %v775_v18 = vpack.c.bf16 %v770_v13, %v769_v12 }
 0x125   : > { %777 = vst [vmem:[%s1490_s25] sm:$0xff] %v773_v16 }
 0x126   : > { %v776_v19 = vpack.c.bf16 %v772_v15, %v771_v14  ;;  %778 = vst [vmem:[%s1490_s25 + $0x8] sm:$0xff] %v774_v17 }
 0x127   : > { %779 = vst [vmem:[%s1490_s25 + $0x10] sm:$0xff] %v775_v18 }
 0x128   : > { %780 = vst [vmem:[%s1490_s25 + $0x18] sm:$0xff] %v776_v19 }
 0x129 PF: > { %787 = sbr.rel (!%p1383_p9) target bundleno = 305 (0x131), region = 82  ;;  %s1148_s16 = sshll.u32 (%p1383_p9), %s1280_s17, 3 }
 0x12a   : > { %s793_s7 = scalar_lea.vmem (%p1383_p9), %s1615_s3, %s1148_s16 }
 0x12c   : > { %v828_v20 = vld [vmem:[%s1490_s25] sm:$0xff] (%p1383_p9) }
 0x12d   : > { %v830_v21 = vld [vmem:[%s1490_s25 + $0x8] sm:$0xff] (%p1383_p9)  ;;  %829 = vst [vmem:[%s793_s7] sm:$0xff] (%p1383_p9), %v828_v20 }
 0x12e   : > { %v832_v22 = vld [vmem:[%s1490_s25 + $0x10] sm:$0xff]  ;;  %831 = vst [vmem:[%s793_s7 + $0x10] sm:$0xff] %v830_v21 }
 0x12f   : > { %v834_v23 = vld [vmem:[%s1490_s25 + $0x18] sm:$0xff]  ;;  %833 = vst [vmem:[%s793_s7 + $0x20] sm:$0xff] %v832_v22 }
 0x130   : > { %835 = vst [vmem:[%s793_s7 + $0x30] sm:$0xff] %v834_v23 }
 0x131 PF: > { %s13_s20 = sadd.s32 1, %s1292_s20   ;;  %s1618_s12 = smov %s1264_s13 }
 0x132   : > { %p10_p4 = scmp.ge.s32.totalorder %s13_s20, 20   ;;  %s1619_s13 = smov %s1388_s4 }
 0x133   : > { %s1620_s14 = smov %s1272_s15  ;;  %s1621_s15 = smov %s1391_s5 }
 0x134   : > { %s1622_s16 = smov %s1284_s18  ;;  %s1623_s17 = smov %s1288_s19 }
 0x135   : > { %s1624_s18 = smov %s1627_s21  ;;  %s1625_s19 = smov %s1631_s22 }
 0x136   :  { %12 = sbr.rel (!%p10_p4) target bundleno = 5 (0x5), region = 157 }

// kernel: vgg_network_forward.30
= control target key start
LH: loop header
LB: loop body
LE: loop exit
PB: predicated region body
PF: predicated region fallthrough
CT: control target
= control target key end

     0   :  { %s1915_s12 = smov 0   ;;  %s1917_s13 = smov 0   ;;  %s2376_s0 = inlined_call_operand.vmem [shape: bf16[9,32,512], index: 0, kind: input, shape index: {}]   ;;  %s2377_s1 = inlined_call_operand.vmem [shape: bf16[9,512,512], index: 1, kind: input, shape index: {}]   ;;  %s2378_s2 = inlined_call_operand.vmem [shape: f32[1,512], index: 2, kind: input, shape index: {}]   ;;  %s2379_s3 = inlined_call_operand.vmem [shape: bf16[32,512], index: 3, kind: output, shape index: {}]  }
   0x1   :  { %s1919_s14 = smov 0   ;;  %s1921_s15 = smov 0  }
   0x2   :  { %s1923_s16 = smov 0   ;;  %s1925_s17 = smov 0  }
   0x3   :  { %s1927_s18 = smov 0   ;;  %s1929_s19 = smov 0  }
   0x4   :  { %s1931_s20 = smov 0  }
   0x5 LB: > { %s25_s21 = sadd.s32 1, %s1884_s18  ;;  %s28_s22 = sadd.s32 1, %s1888_s19  ;;  %s1892_s20 = sphi %s1931_s20, %s13_s20   ;;  %s1888_s19 = sphi %s1929_s19, %s2389_s19   ;;  %s1884_s18 = sphi %s1927_s18, %s2388_s18   ;;  %s1880_s17 = sphi %s1925_s17, %s2387_s17   ;;  %s1876_s16 = sphi %s1923_s16, %s2386_s16   ;;  %s1872_s15 = sphi %s1921_s15, %s2385_s15   ;;  %s1868_s14 = sphi %s1919_s14, %s2384_s14   ;;  %s1864_s13 = sphi %s1917_s13, %s2383_s13   ;;  %s1860_s12 = sphi %s1915_s12, %s2382_s12  }
   0x6   : > { %p26_p0 = scmp.ge.s32.totalorder %s25_s21, 9  ;;  %p76_p1 = scmp.ne.s32.totalorder %s1872_s15, %s1868_s14 }
   0x7   : > { %s1366_s23 = sadd.s32 4294967295, %s1892_s20   ;;  %p77_p2 = scmp.eq.s32.totalorder %s1892_s20, 0 }
   0x8   : > { %s2391_s21 = smov (%p26_p0, %s25_s21), 0  ;;  %s2393_s22 = smov (!%p26_p0, %s28_s22), %s1888_s19 }
   0x9   : > { %p30_p3 = scmp.ge.s32.totalorder %s2393_s22, 2  ;;  %s64_s24 = ssub.s32 %s1884_s18, %s2391_s21 }
   0xa   : > { %p1971_p4 = por %p77_p2, %p76_p1  ;;  %p133_p5 = scmp.ne.s32.totalorder %s1864_s13, %s1860_s12 }
   0xb   : > { %s2395_s22 = smov (%p30_p3, %s2393_s22), 0  ;;  %s69_s26 = sadd.s32 1, %s1872_s15 }
   0xc   : > { %p134_p6 = scmp.eq.s32.totalorder %s1366_s23, 17  ;;  %s65_s27 = ssub.s32 %s1888_s19, %s2395_s22 }
   0xd   : > { %s123_s28 = sadd.s32 1, %s1864_s13  ;;  %s66_s29 = sor.u32 %s65_s27, %s64_s24 }
   0xe   : > { %p121_p7 = scmp.eq.s32.totalorder %s65_s27, 0  ;;  %p67_p8 = scmp.eq.s32.totalorder %s66_s29, 0 }
   0xf   : > { %p1983_p9 = por %p134_p6, %p133_p5  ;;  %p1369_p10 = scmp.ge.s32.totalorder %s1892_s20, 18 }
  0x10   : > { %s1988_s4 = scalar_select %p121_p7, %s1864_s13, %s123_s28  }
  0x11   : > { %s1991_s5 = scalar_select %p67_p8, %s1872_s15, %s69_s26  }
  0x12   : > { %156 = sbr.rel (%p1369_p10) target bundleno = 94 (0x5e), region = 16 }
  0x17   : > { %173 = sbr.rel (!%p1971_p4) target bundleno = 94 (0x5e), region = 24  ;;  %s175_s6 = sand.u32 (%p1971_p4), 1, %s1872_s15  }
  0x18   : > { %s1371_s7 = sshll.u32 (%p1971_p4), %s1888_s19, 1  ;;  %s1370_s8 = sshll.u32 (%p1971_p4), %s175_s6, 9 }
  0x19   : > { %s1372_s9 = sshll.u32 (%p1971_p4), %s1884_s18, 8  ;;  %s2007_s25 = scalar_lea.vmem (%p1971_p4), [#allocation3], %s1370_s8 }
  0x1a   : > { %s180_s10 = sadd.s32 (%p1971_p4), %s1372_s9, %s1371_s7 }
  0x1b   : > { %s1373_s11 = sshll.u32 (%p1971_p4), %s180_s10, 2 }
  0x1c   : > { %s2002_s26 = scalar_lea.vmem %s2377_s1, %s1373_s11 }
  0x1d   : > { %v337_v0 = vld [vmem:[%s2002_s26] sm:$0xff]  ;;  %v339_v1 = vld [vmem:[%s2002_s26 + $0x10] sm:$0xff] }
  0x1e   : > { %v341_v2 = vld [vmem:[%s2002_s26 + $0x20] sm:$0xff]  ;;  %338 = vst [vmem:[%s2007_s25] sm:$0xff] %v337_v0  ;;  %v343_v3 = vld [vmem:[%s2002_s26 + $0x30] sm:$0xff] }
  0x1f   : > { %340 = vst [vmem:[%s2007_s25 + $0x8] sm:$0xff] %v339_v1  ;;  %v345_v4 = vld [vmem:[%s2002_s26 + $0x40] sm:$0xff]  ;;  %v347_v5 = vld [vmem:[%s2002_s26 + $0x50] sm:$0xff] }
  0x20   : > { %342 = vst [vmem:[%s2007_s25 + $0x10] sm:$0xff] %v341_v2  ;;  %v349_v6 = vld [vmem:[%s2002_s26 + $0x60] sm:$0xff]  ;;  %v351_v7 = vld [vmem:[%s2002_s26 + $0x70] sm:$0xff] }
  0x21   : > { %344 = vst [vmem:[%s2007_s25 + $0x18] sm:$0xff] %v343_v3  ;;  %v353_v8 = vld [vmem:[%s2002_s26 + $0x80] sm:$0xff]  ;;  %v355_v9 = vld [vmem:[%s2002_s26 + $0x90] sm:$0xff] }
  0x22   : > { %346 = vst [vmem:[%s2007_s25 + $0x20] sm:$0xff] %v345_v4  ;;  %v357_v10 = vld [vmem:[%s2002_s26 + $0xa0] sm:$0xff]  ;;  %v359_v11 = vld [vmem:[%s2002_s26 + $0xb0] sm:$0xff] }
  0x23   : > { %348 = vst [vmem:[%s2007_s25 + $0x28] sm:$0xff] %v347_v5  ;;  %v361_v12 = vld [vmem:[%s2002_s26 + $0xc0] sm:$0xff]  ;;  %v363_v13 = vld [vmem:[%s2002_s26 + $0xd0] sm:$0xff] }
  0x24   : > { %350 = vst [vmem:[%s2007_s25 + $0x30] sm:$0xff] %v349_v6  ;;  %v365_v14 = vld [vmem:[%s2002_s26 + $0xe0] sm:$0xff]  ;;  %v367_v15 = vld [vmem:[%s2002_s26 + $0xf0] sm:$0xff] }
  0x25   : > { %352 = vst [vmem:[%s2007_s25 + $0x38] sm:$0xff] %v351_v7  ;;  %v369_v16 = vld [vmem:[%s2002_s26 + $0x100] sm:$0xff]  ;;  %v371_v17 = vld [vmem:[%s2002_s26 + $0x110] sm:$0xff] }
  0x26   : > { %354 = vst [vmem:[%s2007_s25 + $0x40] sm:$0xff] %v353_v8  ;;  %v373_v18 = vld [vmem:[%s2002_s26 + $0x120] sm:$0xff]  ;;  %v375_v19 = vld [vmem:[%s2002_s26 + $0x130] sm:$0xff] }
  0x27   : > { %356 = vst [vmem:[%s2007_s25 + $0x48] sm:$0xff] %v355_v9  ;;  %v377_v20 = vld [vmem:[%s2002_s26 + $0x140] sm:$0xff]  ;;  %v379_v21 = vld [vmem:[%s2002_s26 + $0x150] sm:$0xff] }
  0x28   : > { %358 = vst [vmem:[%s2007_s25 + $0x50] sm:$0xff] %v357_v10  ;;  %v381_v22 = vld [vmem:[%s2002_s26 + $0x160] sm:$0xff]  ;;  %v383_v23 = vld [vmem:[%s2002_s26 + $0x170] sm:$0xff] }
  0x29   : > { %360 = vst [vmem:[%s2007_s25 + $0x58] sm:$0xff] %v359_v11  ;;  %v385_v24 = vld [vmem:[%s2002_s26 + $0x180] sm:$0xff]  ;;  %v387_v25 = vld [vmem:[%s2002_s26 + $0x190] sm:$0xff] }
  0x2a   : > { %362 = vst [vmem:[%s2007_s25 + $0x60] sm:$0xff] %v361_v12  ;;  %v389_v26 = vld [vmem:[%s2002_s26 + $0x1a0] sm:$0xff]  ;;  %v391_v27 = vld [vmem:[%s2002_s26 + $0x1b0] sm:$0xff] }
  0x2b   : > { %364 = vst [vmem:[%s2007_s25 + $0x68] sm:$0xff] %v363_v13  ;;  %v393_v28 = vld [vmem:[%s2002_s26 + $0x1c0] sm:$0xff]  ;;  %v395_v29 = vld [vmem:[%s2002_s26 + $0x1d0] sm:$0xff] }
  0x2c   : > { %366 = vst [vmem:[%s2007_s25 + $0x70] sm:$0xff] %v365_v14  ;;  %v397_v30 = vld [vmem:[%s2002_s26 + $0x1e0] sm:$0xff]  ;;  %v399_v31 = vld [vmem:[%s2002_s26 + $0x1f0] sm:$0xff] }
  0x2d   : > { %368 = vst [vmem:[%s2007_s25 + $0x78] sm:$0xff] %v367_v15  ;;  %v401_v32 = vld [vmem:[%s2002_s26 + $0x200] sm:$0xff]  ;;  %v403_v33 = vld [vmem:[%s2002_s26 + $0x210] sm:$0xff] }
  0x2e   : > { %370 = vst [vmem:[%s2007_s25 + $0x80] sm:$0xff] %v369_v16  ;;  %v405_v34 = vld [vmem:[%s2002_s26 + $0x220] sm:$0xff]  ;;  %v407_v35 = vld [vmem:[%s2002_s26 + $0x230] sm:$0xff] }
  0x2f   : > { %372 = vst [vmem:[%s2007_s25 + $0x88] sm:$0xff] %v371_v17  ;;  %v409_v36 = vld [vmem:[%s2002_s26 + $0x240] sm:$0xff]  ;;  %v411_v37 = vld [vmem:[%s2002_s26 + $0x250] sm:$0xff] }
  0x30   : > { %374 = vst [vmem:[%s2007_s25 + $0x90] sm:$0xff] %v373_v18  ;;  %v413_v38 = vld [vmem:[%s2002_s26 + $0x260] sm:$0xff]  ;;  %v415_v39 = vld [vmem:[%s2002_s26 + $0x270] sm:$0xff] }
  0x31   : > { %376 = vst [vmem:[%s2007_s25 + $0x98] sm:$0xff] %v375_v19  ;;  %v417_v40 = vld [vmem:[%s2002_s26 + $0x280] sm:$0xff]  ;;  %v419_v41 = vld [vmem:[%s2002_s26 + $0x290] sm:$0xff] }
  0x32   : > { %378 = vst [vmem:[%s2007_s25 + $0xa0] sm:$0xff] %v377_v20  ;;  %v421_v42 = vld [vmem:[%s2002_s26 + $0x2a0] sm:$0xff]  ;;  %v423_v43 = vld [vmem:[%s2002_s26 + $0x2b0] sm:$0xff] }
  0x33   : > { %380 = vst [vmem:[%s2007_s25 + $0xa8] sm:$0xff] %v379_v21  ;;  %v425_v44 = vld [vmem:[%s2002_s26 + $0x2c0] sm:$0xff]  ;;  %v427_v45 = vld [vmem:[%s2002_s26 + $0x2d0] sm:$0xff] }
  0x34   : > { %382 = vst [vmem:[%s2007_s25 + $0xb0] sm:$0xff] %v381_v22  ;;  %v429_v46 = vld [vmem:[%s2002_s26 + $0x2e0] sm:$0xff]  ;;  %v431_v47 = vld [vmem:[%s2002_s26 + $0x2f0] sm:$0xff] }
  0x35   : > { %384 = vst [vmem:[%s2007_s25 + $0xb8] sm:$0xff] %v383_v23  ;;  %v433_v48 = vld [vmem:[%s2002_s26 + $0x300] sm:$0xff]  ;;  %v435_v49 = vld [vmem:[%s2002_s26 + $0x310] sm:$0xff] }
  0x36   : > { %386 = vst [vmem:[%s2007_s25 + $0xc0] sm:$0xff] %v385_v24  ;;  %v437_v50 = vld [vmem:[%s2002_s26 + $0x320] sm:$0xff]  ;;  %v439_v51 = vld [vmem:[%s2002_s26 + $0x330] sm:$0xff] }
  0x37   : > { %388 = vst [vmem:[%s2007_s25 + $0xc8] sm:$0xff] %v387_v25  ;;  %v441_v52 = vld [vmem:[%s2002_s26 + $0x340] sm:$0xff]  ;;  %v443_v53 = vld [vmem:[%s2002_s26 + $0x350] sm:$0xff] }
  0x38   : > { %390 = vst [vmem:[%s2007_s25 + $0xd0] sm:$0xff] %v389_v26  ;;  %v445_v54 = vld [vmem:[%s2002_s26 + $0x360] sm:$0xff]  ;;  %v447_v55 = vld [vmem:[%s2002_s26 + $0x370] sm:$0xff] }
  0x39   : > { %392 = vst [vmem:[%s2007_s25 + $0xd8] sm:$0xff] %v391_v27  ;;  %v449_v56 = vld [vmem:[%s2002_s26 + $0x380] sm:$0xff]  ;;  %v451_v57 = vld [vmem:[%s2002_s26 + $0x390] sm:$0xff] }
  0x3a   : > { %394 = vst [vmem:[%s2007_s25 + $0xe0] sm:$0xff] %v393_v28  ;;  %v453_v58 = vld [vmem:[%s2002_s26 + $0x3a0] sm:$0xff]  ;;  %v455_v59 = vld [vmem:[%s2002_s26 + $0x3b0] sm:$0xff] }
  0x3b   : > { %396 = vst [vmem:[%s2007_s25 + $0xe8] sm:$0xff] %v395_v29  ;;  %v457_v60 = vld [vmem:[%s2002_s26 + $0x3c0] sm:$0xff]  ;;  %v459_v61 = vld [vmem:[%s2002_s26 + $0x3d0] sm:$0xff] }
  0x3c   : > { %398 = vst [vmem:[%s2007_s25 + $0xf0] sm:$0xff] %v397_v30  ;;  %v461_v62 = vld [vmem:[%s2002_s26 + $0x3e0] sm:$0xff]  ;;  %v463_v63 = vld [vmem:[%s2002_s26 + $0x3f0] sm:$0xff] }
  0x3d   : > { %400 = vst [vmem:[%s2007_s25 + $0xf8] sm:$0xff] %v399_v31 }
  0x3e   : > { %402 = vst [vmem:[%s2007_s25 + $0x100] sm:$0xff] %v401_v32 }
  0x3f   : > { %404 = vst [vmem:[%s2007_s25 + $0x108] sm:$0xff] %v403_v33 }
  0x40   : > { %406 = vst [vmem:[%s2007_s25 + $0x110] sm:$0xff] %v405_v34 }
  0x41   : > { %408 = vst [vmem:[%s2007_s25 + $0x118] sm:$0xff] %v407_v35 }
  0x42   : > { %410 = vst [vmem:[%s2007_s25 + $0x120] sm:$0xff] %v409_v36 }
  0x43   : > { %412 = vst [vmem:[%s2007_s25 + $0x128] sm:$0xff] %v411_v37 }
  0x44   : > { %414 = vst [vmem:[%s2007_s25 + $0x130] sm:$0xff] %v413_v38 }
  0x45   : > { %416 = vst [vmem:[%s2007_s25 + $0x138] sm:$0xff] %v415_v39 }
  0x46   : > { %418 = vst [vmem:[%s2007_s25 + $0x140] sm:$0xff] %v417_v40 }
  0x47   : > { %420 = vst [vmem:[%s2007_s25 + $0x148] sm:$0xff] %v419_v41 }
  0x48   : > { %422 = vst [vmem:[%s2007_s25 + $0x150] sm:$0xff] %v421_v42 }
  0x49   : > { %424 = vst [vmem:[%s2007_s25 + $0x158] sm:$0xff] %v423_v43 }
  0x4a   : > { %426 = vst [vmem:[%s2007_s25 + $0x160] sm:$0xff] %v425_v44 }
  0x4b   : > { %428 = vst [vmem:[%s2007_s25 + $0x168] sm:$0xff] %v427_v45 }
  0x4c   : > { %430 = vst [vmem:[%s2007_s25 + $0x170] sm:$0xff] %v429_v46 }
  0x4d   : > { %432 = vst [vmem:[%s2007_s25 + $0x178] sm:$0xff] %v431_v47 }
  0x4e   : > { %434 = vst [vmem:[%s2007_s25 + $0x180] sm:$0xff] %v433_v48 }
  0x4f   : > { %436 = vst [vmem:[%s2007_s25 + $0x188] sm:$0xff] %v435_v49 }
  0x50   : > { %438 = vst [vmem:[%s2007_s25 + $0x190] sm:$0xff] %v437_v50 }
  0x51   : > { %440 = vst [vmem:[%s2007_s25 + $0x198] sm:$0xff] %v439_v51 }
  0x52   : > { %442 = vst [vmem:[%s2007_s25 + $0x1a0] sm:$0xff] %v441_v52 }
  0x53   : > { %444 = vst [vmem:[%s2007_s25 + $0x1a8] sm:$0xff] %v443_v53 }
  0x54   : > { %446 = vst [vmem:[%s2007_s25 + $0x1b0] sm:$0xff] %v445_v54 }
  0x55   : > { %448 = vst [vmem:[%s2007_s25 + $0x1b8] sm:$0xff] %v447_v55 }
  0x56   : > { %450 = vst [vmem:[%s2007_s25 + $0x1c0] sm:$0xff] %v449_v56 }
  0x57   : > { %452 = vst [vmem:[%s2007_s25 + $0x1c8] sm:$0xff] %v451_v57 }
  0x58   : > { %454 = vst [vmem:[%s2007_s25 + $0x1d0] sm:$0xff] %v453_v58 }
  0x59   : > { %456 = vst [vmem:[%s2007_s25 + $0x1d8] sm:$0xff] %v455_v59 }
  0x5a   : > { %458 = vst [vmem:[%s2007_s25 + $0x1e0] sm:$0xff] %v457_v60 }
  0x5b   : > { %460 = vst [vmem:[%s2007_s25 + $0x1e8] sm:$0xff] %v459_v61 }
  0x5c   : > { %462 = vst [vmem:[%s2007_s25 + $0x1f0] sm:$0xff] %v461_v62 }
  0x5d   : > { %464 = vst [vmem:[%s2007_s25 + $0x1f8] sm:$0xff] %v463_v63 }
  0x5e PF: > { %p1374_p11 = scmp.ge.s32.totalorder %s1892_s20, 1  ;;  %p477_p12 = scmp.lt.s32.totalorder %s1892_s20, 19 }
  0x60   : > { %p478_p13 = pnand %p1374_p11, %p477_p12 }
  0x61   : > { %s484_s27 = sand.u32 (!%p478_p13), 1, %s1868_s14   ;;  %s517_s28 = sand.u32 (!%p478_p13), 1, %s1860_s12  }
  0x62   : > { %481 = sbr.rel (%p478_p13) target bundleno = 371 (0x173), region = 66  ;;  %s1375_s29 = sshll.u32 (!%p478_p13), %s484_s27, 9 }
  0x63   : > { %s1376_s6 = sshll.u32 (!%p478_p13), %s517_s28, 5  ;;  %p521_p0 = scmp.lt.s32.totalorder (!%p478_p13), %s1876_s16, 8 }
  0x64   : > { %s1379_s7 = sshll.u32 (!%p478_p13), %s1880_s17, 1  ;;  %s2152_s12 = scalar_lea.vmem (!%p478_p13), [#allocation3], %s1375_s29 }
  0x65   : > { %p533_p1 = scmp.lt.s32.totalorder (!%p478_p13), %s1379_s7, 3  ;;  %s2154_s25 = scalar_lea.vmem (!%p478_p13), [#allocation4], %s1376_s6 }
  0x66   : > { %p1380_p2 = scmp.ne.s32.totalorder (!%p478_p13), %s1876_s16, 0 }
  0x67   : > { %s522_s8 = scalar_select %p521_p0, %s1876_s16, 8 }
  0x68   : > { %s2397_s7 = smov (!%p533_p1, %s1379_s7), 3  ;;  %542 = sbr.rel (%p1380_p2) target bundleno = 118 (0x76), region = 74 }
  0x69   : > { %s1675_s9 = sshll.u32 %s522_s8, 6  ;;  %s535_s14 = scalar_lea.vmem %s2378_s2, %s2397_s7 }
  0x6a   : > { %s2146_s23 = scalar_lea.vmem %s2376_s0, %s1675_s9 }
  0x6d   : > { %v1894_v0 = vmov 0.0  }
  0x6e   : > { %543 = vst [vmem:[#allocation2 + $0x30] sm:$0xff] %v1894_v0 }
  0x6f   : > { %544 = vst [vmem:[#allocation2] sm:$0xff] %v1894_v0 }
  0x70   : > { %545 = vst [vmem:[#allocation2 + $0x18] sm:$0xff] %v1894_v0 }
  0x71   : > { %546 = vst [vmem:[#allocation2 + $0x10] sm:$0xff] %v1894_v0 }
  0x72   : > { %547 = vst [vmem:[#allocation2 + $0x8] sm:$0xff] %v1894_v0 }
  0x73   : > { %548 = vst [vmem:[#allocation2 + $0x20] sm:$0xff] %v1894_v0 }
  0x74   : > { %549 = vst [vmem:[#allocation2 + $0x28] sm:$0xff] %v1894_v0 }
  0x75   : > { %550 = vst [vmem:[#allocation2 + $0x38] sm:$0xff] %v1894_v0 }
  0x76 PF: > { %v1471_v1 = vld [vmem:[%s2152_s12 + $0x70] sm:$0xf]  ;;  %v1699_v2 = vld [vmem:[%s2152_s12 + $0x74] sm:$0xf0]  ;;  %v1463_v12 = vld [vmem:[%s2152_s12 + $0x60] sm:$0xf] }
  0x77   : > { %v1535_v3 = vld [vmem:[%s2152_s12 + $0xf0] sm:$0xf]  ;;  %v1472_v4 = vor.u32 %v1699_v2, %v1471_v1  ;;  %v1715_v5 = vld [vmem:[%s2152_s12 + $0xf4] sm:$0xf0]  ;;  %v1697_v14 = vld [vmem:[%s2152_s12 + $0x64] sm:$0xf0] }
  0x78   : > { %v1599_v6 = vld [vmem:[%s2152_s12 + $0x170] sm:$0xf]  ;;  %v1731_v7 = vld [vmem:[%s2152_s12 + $0x174] sm:$0xf0]  ;;  %v1536_v8 = vor.u32 %v1715_v5, %v1535_v3  ;;  %v1527_v15 = vld [vmem:[%s2152_s12 + $0xe0] sm:$0xf]  ;;  %v1464_v17 = vor.u32 %v1697_v14, %v1463_v12 }
  0x79   : > { %v1600_v9 = vor.u32 %v1731_v7, %v1599_v6  ;;  %v1663_v10 = vld [vmem:[%s2152_s12 + $0x1f0] sm:$0xf]  ;;  %v1747_v11 = vld [vmem:[%s2152_s12 + $0x1f4] sm:$0xf0]  ;;  %991 = vmatpush.bf16.msra.mxu0 %v1472_v4  ;;  %v1713_v16 = vld [vmem:[%s2152_s12 + $0xe4] sm:$0xf0] }
  0x7a   : > { %v1664_v13 = vor.u32 %v1747_v11, %v1663_v10  ;;  %1010 = vmatpush.bf16.msra.mxu1 %v1536_v8  ;;  %v1528_v18 = vor.u32 %v1713_v16, %v1527_v15  ;;  %v1591_v19 = vld [vmem:[%s2152_s12 + $0x160] sm:$0xf]  ;;  %v1729_v20 = vld [vmem:[%s2152_s12 + $0x164] sm:$0xf0]  ;;  %v1455_v24 = vld [vmem:[%s2152_s12 + $0x50] sm:$0xf] }
  0x7b   : > { %1029 = vmatpush.bf16.msra.mxu2 %v1600_v9  ;;  %v1655_v21 = vld [vmem:[%s2152_s12 + $0x1e0] sm:$0xf]  ;;  %v1592_v22 = vor.u32 %v1729_v20, %v1591_v19  ;;  %v1745_v23 = vld [vmem:[%s2152_s12 + $0x1e4] sm:$0xf0]  ;;  %v1695_v25 = vld [vmem:[%s2152_s12 + $0x54] sm:$0xf0] }
  0x7c   : > { %1048 = vmatpush.bf16.msra.mxu3 %v1664_v13  ;;  %v1656_v26 = vor.u32 %v1745_v23, %v1655_v21  ;;  %v1519_v27 = vld [vmem:[%s2152_s12 + $0xd0] sm:$0xf]  ;;  %v1711_v28 = vld [vmem:[%s2152_s12 + $0xd4] sm:$0xf0]  ;;  %v1456_v30 = vor.u32 %v1695_v25, %v1455_v24  ;;  %v1447_v36 = vld [vmem:[%s2152_s12 + $0x40] sm:$0xf] }
  0x7d   : > { %v1583_v29 = vld [vmem:[%s2152_s12 + $0x150] sm:$0xf]  ;;  %992 = vmatpush.bf16.msra.mxu0 %v1464_v17  ;;  %v1727_v31 = vld [vmem:[%s2152_s12 + $0x154] sm:$0xf0]  ;;  %v1520_v34 = vor.u32 %v1711_v28, %v1519_v27  ;;  %v1693_v37 = vld [vmem:[%s2152_s12 + $0x44] sm:$0xf0] }
  0x7e   : > { %v1647_v32 = vld [vmem:[%s2152_s12 + $0x1d0] sm:$0xf]  ;;  %v1743_v33 = vld [vmem:[%s2152_s12 + $0x1d4] sm:$0xf0]  ;;  %1011 = vmatpush.bf16.msra.mxu1 %v1528_v18  ;;  %v1584_v35 = vor.u32 %v1727_v31, %v1583_v29  ;;  %v1511_v38 = vld [vmem:[%s2152_s12 + $0xc0] sm:$0xf]  ;;  %v1448_v45 = vor.u32 %v1693_v37, %v1447_v36 }
  0x7f   : > { %1030 = vmatpush.bf16.msra.mxu2 %v1592_v22  ;;  %v1648_v39 = vor.u32 %v1743_v33, %v1647_v32  ;;  %v1709_v40 = vld [vmem:[%s2152_s12 + $0xc4] sm:$0xf0]  ;;  %v1575_v41 = vld [vmem:[%s2152_s12 + $0x140] sm:$0xf]  ;;  %v1439_v48 = vld [vmem:[%s2152_s12 + $0x30] sm:$0xf] }
  0x80   : > { %1049 = vmatpush.bf16.msra.mxu3 %v1656_v26  ;;  %v1725_v42 = vld [vmem:[%s2152_s12 + $0x144] sm:$0xf0]  ;;  %v1639_v43 = vld [vmem:[%s2152_s12 + $0x1c0] sm:$0xf]  ;;  %v1512_v46 = vor.u32 %v1709_v40, %v1511_v38  ;;  %v1691_v49 = vld [vmem:[%s2152_s12 + $0x34] sm:$0xf0] }
  0x81   : > { %v1741_v44 = vld [vmem:[%s2152_s12 + $0x1c4] sm:$0xf0]  ;;  %993 = vmatpush.bf16.msra.mxu0 %v1456_v30  ;;  %v1576_v47 = vor.u32 %v1725_v42, %v1575_v41  ;;  %v1503_v50 = vld [vmem:[%s2152_s12 + $0xb0] sm:$0xf]  ;;  %v1707_v52 = vld [vmem:[%s2152_s12 + $0xb4] sm:$0xf0]  ;;  %v1440_v57 = vor.u32 %v1691_v49, %v1439_v48 }
  0x82   : > { %1012 = vmatpush.bf16.msra.mxu1 %v1520_v34  ;;  %v1640_v51 = vor.u32 %v1741_v44, %v1639_v43  ;;  %v1567_v53 = vld [vmem:[%s2152_s12 + $0x130] sm:$0xf]  ;;  %v1723_v54 = vld [vmem:[%s2152_s12 + $0x134] sm:$0xf0]  ;;  %v1504_v58 = vor.u32 %v1707_v52, %v1503_v50  ;;  %v1431_v60 = vld [vmem:[%s2152_s12 + $0x20] sm:$0xf] }
  0x83   : > { %1031 = vmatpush.bf16.msra.mxu2 %v1584_v35  ;;  %v1631_v55 = vld [vmem:[%s2152_s12 + $0x1b0] sm:$0xf]  ;;  %v1739_v56 = vld [vmem:[%s2152_s12 + $0x1b4] sm:$0xf0]  ;;  %v1568_v59 = vor.u32 %v1723_v54, %v1567_v53  ;;  %v1689_v61 = vld [vmem:[%s2152_s12 + $0x24] sm:$0xf0] }
  0x84   : > { %1050 = vmatpush.bf16.msra.mxu3 %v1648_v39  ;;  %v1495_v62 = vld [vmem:[%s2152_s12 + $0xa0] sm:$0xf]  ;;  %v1632_v63 = vor.u32 %v1739_v56, %v1631_v55  ;;  %v1705_v0 = vld [vmem:[%s2152_s12 + $0xa4] sm:$0xf0]  ;;  %v1432_v5 = vor.u32 %v1689_v61, %v1431_v60  ;;  %v1423_v8 = vld [vmem:[%s2152_s12 + $0x10] sm:$0xf] }
  0x85   : > { %994 = vmatpush.bf16.msra.mxu0 %v1448_v45  ;;  %v1559_v1 = vld [vmem:[%s2152_s12 + $0x120] sm:$0xf]  ;;  %v1721_v2 = vld [vmem:[%s2152_s12 + $0x124] sm:$0xf0]  ;;  %v1496_v6 = vor.u32 %v1705_v0, %v1495_v62  ;;  %v1687_v9 = vld [vmem:[%s2152_s12 + $0x14] sm:$0xf0] }
  0x86   : > { %1013 = vmatpush.bf16.msra.mxu1 %v1512_v46  ;;  %v1623_v3 = vld [vmem:[%s2152_s12 + $0x1a0] sm:$0xf]  ;;  %v1737_v4 = vld [vmem:[%s2152_s12 + $0x1a4] sm:$0xf0]  ;;  %v1560_v7 = vor.u32 %v1721_v2, %v1559_v1  ;;  %v1487_v10 = vld [vmem:[%s2152_s12 + $0x90] sm:$0xf]  ;;  %v1424_v18 = vor.u32 %v1687_v9, %v1423_v8 }
  0x87   : > { %1032 = vmatpush.bf16.msra.mxu2 %v1576_v47  ;;  %v1624_v11 = vor.u32 %v1737_v4, %v1623_v3  ;;  %v1703_v12 = vld [vmem:[%s2152_s12 + $0x94] sm:$0xf0]  ;;  %v1551_v13 = vld [vmem:[%s2152_s12 + $0x110] sm:$0xf]  ;;  %v1415_v17 = vld [vmem:[%s2152_s12] sm:$0xf] }
  0x88   : > { %1051 = vmatpush.bf16.msra.mxu3 %v1640_v51  ;;  %v1719_v14 = vld [vmem:[%s2152_s12 + $0x114] sm:$0xf0]  ;;  %v1615_v15 = vld [vmem:[%s2152_s12 + $0x190] sm:$0xf]  ;;  %v1685_v19 = vld [vmem:[%s2152_s12 + $0x4] sm:$0xf0]  ;;  %v1488_v22 = vor.u32 %v1703_v12, %v1487_v10 }
  0x89   : > { %995 = vmatpush.bf16.msra.mxu0 %v1440_v57  ;;  %v1735_v16 = vld [vmem:[%s2152_s12 + $0x194] sm:$0xf0]  ;;  %v1479_v20 = vld [vmem:[%s2152_s12 + $0x80] sm:$0xf]  ;;  %v1701_v21 = vld [vmem:[%s2152_s12 + $0x84] sm:$0xf0]  ;;  %v1552_v23 = vor.u32 %v1719_v14, %v1551_v13  ;;  %v1416_v35 = vor.u32 %v1685_v19, %v1415_v17 }
  0x8a   : > { %1014 = vmatpush.bf16.msra.mxu1 %v1504_v58  ;;  %v1543_v24 = vld [vmem:[%s2152_s12 + $0x100] sm:$0xf]  ;;  %v1717_v25 = vld [vmem:[%s2152_s12 + $0x104] sm:$0xf0]  ;;  %v1616_v27 = vor.u32 %v1735_v16, %v1615_v15  ;;  %v1678_v30 = vld [vmem:[%s2146_s23 + $0xc] sm:$0xf0]  ;;  %v1480_v39 = vor.u32 %v1701_v21, %v1479_v20 }
  0x8b   : > { %1033 = vmatpush.bf16.msra.mxu2 %v1568_v59  ;;  %v1607_v26 = vld [vmem:[%s2152_s12 + $0x180] sm:$0xf]  ;;  %v1733_v28 = vld [vmem:[%s2152_s12 + $0x184] sm:$0xf0]  ;;  %v1676_v31 = vld [vmem:[%s2146_s23 + $0x4] sm:$0xf]  ;;  %v1544_v40 = vor.u32 %v1717_v25, %v1543_v24 }
  0x8c   : > { %1052 = vmatpush.bf16.msra.mxu3 %v1632_v63  ;;  %v1383_v29 = vld [vmem:[%s2146_s23] sm:$0xf]  ;;  %v1385_v32 = vld [vmem:[%s2146_s23 + $0x10] sm:$0xf0]  ;;  %v1601_v34 = vld [vmem:[%s2152_s12 + $0x178] sm:$0xf0]  ;;  %v1608_v44 = vor.u32 %v1733_v28, %v1607_v26 }
  0x8d   : > { %996 = vmatpush.bf16.msra.mxu0 %v1432_v5  ;;  %v1730_v33 = vld [vmem:[%s2152_s12 + $0x174] sm:$0xf]  ;;  %v1391_v36 = vld [vmem:[%s2146_s23 + $0x8] sm:$0xf]  ;;  %v1537_v38 = vld [vmem:[%s2152_s12 + $0xf8] sm:$0xf0]  ;;  %v2236_v49 = vor.u32 %v1678_v30, %v1383_v29  ;;  %v2241_v54 = vor.u32 %v1676_v31, %v1385_v32 }
  0x8e   : > { %1015 = vmatpush.bf16.msra.mxu1 %v1496_v6  ;;  %v1714_v37 = vld [vmem:[%s2152_s12 + $0xf4] sm:$0xf]  ;;  %v1679_v41 = vld [vmem:[%s2146_s23 + $0x14] sm:$0xf0]  ;;  %v1677_v42 = vld [vmem:[%s2146_s23 + $0xc] sm:$0xf]  ;;  %v1604_v45 = vor.u32 %v1730_v33, %v1601_v34 }
  0x8f   : > { %1034 = vmatpush.bf16.msra.mxu2 %v1560_v7  ;;  %v1393_v43 = vld [vmem:[%s2146_s23 + $0x18] sm:$0xf0]  ;;  %v1698_v46 = vld [vmem:[%s2152_s12 + $0x74] sm:$0xf]  ;;  %v1540_v50 = vor.u32 %v1714_v37, %v1537_v38  ;;  %v1728_v52 = vld [vmem:[%s2152_s12 + $0x164] sm:$0xf]  ;;  %v2243_v55 = vor.u32 %v1679_v41, %v1391_v36 }
  0x90   : > { %1053 = vmatpush.bf16.msra.mxu3 %v1624_v11  ;;  %v1473_v47 = vld [vmem:[%s2152_s12 + $0x78] sm:$0xf0]  ;;  %v1746_v48 = vld [vmem:[%s2152_s12 + $0x1f4] sm:$0xf]  ;;  %v1593_v53 = vld [vmem:[%s2152_s12 + $0x168] sm:$0xf0]  ;;  %v2247_v58 = vor.u32 %v1677_v42, %v1393_v43 }
  0x91   : > { %997 = vmatpush.bf16.msra.mxu0 %v1424_v18  ;;  %v1665_v51 = vld [vmem:[%s2152_s12 + $0x1f8] sm:$0xf0]  ;;  %v1712_v56 = vld [vmem:[%s2152_s12 + $0xe4] sm:$0xf]  ;;  %v1529_v57 = vld [vmem:[%s2152_s12 + $0xe8] sm:$0xf0]  ;;  %v1476_v59 = vor.u32 %v1698_v46, %v1473_v47  ;;  %v1596_v61 = vor.u32 %v1728_v52, %v1593_v53 }
  0x92   : > { %1016 = vmatpush.bf16.msra.mxu1 %v1488_v22  ;;  %v1668_v60 = vor.u32 %v1746_v48, %v1665_v51  ;;  %v1696_v62 = vld [vmem:[%s2152_s12 + $0x64] sm:$0xf]  ;;  %v1465_v63 = vld [vmem:[%s2152_s12 + $0x68] sm:$0xf0]  ;;  %v1532_v1 = vor.u32 %v1712_v56, %v1529_v57  ;;  %v1726_v3 = vld [vmem:[%s2152_s12 + $0x154] sm:$0xf] }
  0x93   : > { %1035 = vmatpush.bf16.msra.mxu2 %v1552_v23  ;;  %v1744_v0 = vld [vmem:[%s2152_s12 + $0x1e4] sm:$0xf]  ;;  %v1657_v2 = vld [vmem:[%s2152_s12 + $0x1e8] sm:$0xf0]  ;;  %v1585_v4 = vld [vmem:[%s2152_s12 + $0x158] sm:$0xf0]  ;;  %v1468_v7 = vor.u32 %v1696_v62, %v1465_v63 }
  0x94   : > { %1054 = vmatpush.bf16.msra.mxu3 %v1616_v27  ;;  %v1710_v5 = vld [vmem:[%s2152_s12 + $0xd4] sm:$0xf]  ;;  %v1521_v6 = vld [vmem:[%s2152_s12 + $0xd8] sm:$0xf0]  ;;  %v1660_v8 = vor.u32 %v1744_v0, %v1657_v2  ;;  %v1588_v9 = vor.u32 %v1726_v3, %v1585_v4  ;;  %v1724_v15 = vld [vmem:[%s2152_s12 + $0x144] sm:$0xf] }
  0x95   : > { %998 = vmatpush.bf16.msra.mxu0 %v1416_v35  ;;  %v1694_v10 = vld [vmem:[%s2152_s12 + $0x54] sm:$0xf]  ;;  %v1457_v11 = vld [vmem:[%s2152_s12 + $0x58] sm:$0xf0]  ;;  %v1524_v13 = vor.u32 %v1710_v5, %v1521_v6  ;;  %v1577_v16 = vld [vmem:[%s2152_s12 + $0x148] sm:$0xf0] }
  0x96   : > { %1017 = vmatpush.bf16.msra.mxu1 %v1480_v39  ;;  %v1742_v12 = vld [vmem:[%s2152_s12 + $0x1d4] sm:$0xf]  ;;  %v1649_v14 = vld [vmem:[%s2152_s12 + $0x1d8] sm:$0xf0]  ;;  %v1708_v17 = vld [vmem:[%s2152_s12 + $0xc4] sm:$0xf]  ;;  %v1460_v19 = vor.u32 %v1694_v10, %v1457_v11  ;;  %v1580_v24 = vor.u32 %v1724_v15, %v1577_v16 }
  0x97   : > { %1036 = vmatpush.bf16.msra.mxu2 %v1544_v40  ;;  %v1513_v18 = vld [vmem:[%s2152_s12 + $0xc8] sm:$0xf0]  ;;  %v1692_v20 = vld [vmem:[%s2152_s12 + $0x44] sm:$0xf]  ;;  %v1652_v23 = vor.u32 %v1742_v12, %v1649_v14  ;;  %v1399_v26 = vld [vmem:[%s2146_s23 + $0x20] sm:$0xf] }
  0x98   : > { %1055 = vmatpush.bf16.msra.mxu3 %v1608_v44  ;;  %999 = vmatmul.bf16.vlgmr.msra.gmra.mxu0 %v2236_v49  ;;  %v1449_v21 = vld [vmem:[%s2152_s12 + $0x48] sm:$0xf0]  ;;  %v1740_v22 = vld [vmem:[%s2152_s12 + $0x1c4] sm:$0xf]  ;;  %v1682_v27 = vld [vmem:[%s2146_s23 + $0x2c] sm:$0xf0]  ;;  %v1516_v28 = vor.u32 %v1708_v17, %v1513_v18 }
  0x99   : > { %1018 = vmatmul.bf16.vlgmr.msra.gmra.mxu1 %v2241_v54  ;;  %1067 = vmatpush.bf16.msrb.mxu0 %v1476_v59  ;;  %v1641_v25 = vld [vmem:[%s2152_s12 + $0x1c8] sm:$0xf0]  ;;  %v1680_v29 = vld [vmem:[%s2146_s23 + $0x24] sm:$0xf]  ;;  %v1401_v30 = vld [vmem:[%s2146_s23 + $0x30] sm:$0xf0]  ;;  %v1452_v36 = vor.u32 %v1692_v20, %v1449_v21 }
  0x9a   : > { %1086 = vmatpush.bf16.msrb.mxu1 %v1540_v50  ;;  %1037 = vmatmul.bf16.vlgmr.msra.gmra.mxu2 %v2243_v55  ;;  %v1722_v31 = vld [vmem:[%s2152_s12 + $0x134] sm:$0xf]  ;;  %v1569_v32 = vld [vmem:[%s2152_s12 + $0x138] sm:$0xf0]  ;;  %v1407_v33 = vld [vmem:[%s2146_s23 + $0x28] sm:$0xf]  ;;  %v1644_v40 = vor.u32 %v1740_v22, %v1641_v25  ;;  %v2293_v51 = vor.u32 %v1680_v29, %v1401_v30 }
  0x9b   : > { %1105 = vmatpush.bf16.msrb.mxu2 %v1604_v45  ;;  %1056 = vmatmul.bf16.vlgmr.msra.gmra.mxu3 %v2247_v58  ;;  %v1706_v34 = vld [vmem:[%s2152_s12 + $0xb4] sm:$0xf]  ;;  %v1505_v35 = vld [vmem:[%s2152_s12 + $0xb8] sm:$0xf0]  ;;  %v1683_v37 = vld [vmem:[%s2146_s23 + $0x34] sm:$0xf0]  ;;  %v1572_v41 = vor.u32 %v1722_v31, %v1569_v32  ;;  %v2288_v45 = vor.u32 %v1682_v27, %v1399_v26 }
  0x9c   : > { %1124 = vmatpush.bf16.msrb.mxu3 %v1668_v60  ;;  %v1681_v38 = vld [vmem:[%s2146_s23 + $0x2c] sm:$0xf]  ;;  %v1409_v39 = vld [vmem:[%s2146_s23 + $0x38] sm:$0xf0]  ;;  %v1690_v42 = vld [vmem:[%s2152_s12 + $0x34] sm:$0xf]  ;;  %v1508_v46 = vor.u32 %v1706_v34, %v1505_v35  ;;  %v2295_v52 = vor.u32 %v1683_v37, %v1407_v33 }
  0x9d   : > { %1068 = vmatpush.bf16.msrb.mxu0 %v1468_v7  ;;  %v1441_v43 = vld [vmem:[%s2152_s12 + $0x38] sm:$0xf0]  ;;  %v1738_v44 = vld [vmem:[%s2152_s12 + $0x1b4] sm:$0xf]  ;;  %v1720_v48 = vld [vmem:[%s2152_s12 + $0x124] sm:$0xf]  ;;  %v1412_v57 = vor.u32 %v1681_v38, %v1409_v39 }
  0x9e   : > { %1087 = vmatpush.bf16.msrb.mxu1 %v1532_v1  ;;  %v1633_v47 = vld [vmem:[%s2152_s12 + $0x1b8] sm:$0xf0]  ;;  %v1561_v50 = vld [vmem:[%s2152_s12 + $0x128] sm:$0xf0]  ;;  %v1704_v53 = vld [vmem:[%s2152_s12 + $0xa4] sm:$0xf]  ;;  %v1444_v59 = vor.u32 %v1690_v42, %v1441_v43 }
  0x9f   : > { %1106 = vmatpush.bf16.msrb.mxu2 %v1596_v61  ;;  %v1497_v56 = vld [vmem:[%s2152_s12 + $0xa8] sm:$0xf0]  ;;  %v1636_v60 = vor.u32 %v1738_v44, %v1633_v47  ;;  %v1564_v61 = vor.u32 %v1720_v48, %v1561_v50  ;;  %v1688_v62 = vld [vmem:[%s2152_s12 + $0x24] sm:$0xf]  ;;  %v1718_v3 = vld [vmem:[%s2152_s12 + $0x114] sm:$0xf] }
  0xa0   : > { %1125 = vmatpush.bf16.msrb.mxu3 %v1660_v8  ;;  %v1433_v63 = vld [vmem:[%s2152_s12 + $0x28] sm:$0xf0]  ;;  %v1736_v0 = vld [vmem:[%s2152_s12 + $0x1a4] sm:$0xf]  ;;  %v1500_v1 = vor.u32 %v1704_v53, %v1497_v56  ;;  %v1553_v4 = vld [vmem:[%s2152_s12 + $0x118] sm:$0xf0] }
  0xa1   : > { %1069 = vmatpush.bf16.msrb.mxu0 %v1460_v19  ;;  %v1625_v2 = vld [vmem:[%s2152_s12 + $0x1a8] sm:$0xf0]  ;;  %v1702_v5 = vld [vmem:[%s2152_s12 + $0x94] sm:$0xf]  ;;  %v1489_v6 = vld [vmem:[%s2152_s12 + $0x98] sm:$0xf0]  ;;  %v1436_v7 = vor.u32 %v1688_v62, %v1433_v63 }
  0xa2   : > { %1088 = vmatpush.bf16.msrb.mxu1 %v1524_v13  ;;  %v1628_v8 = vor.u32 %v1736_v0, %v1625_v2  ;;  %v1686_v10 = vld [vmem:[%s2152_s12 + $0x14] sm:$0xf]  ;;  %v1425_v11 = vld [vmem:[%s2152_s12 + $0x18] sm:$0xf0]  ;;  %v1492_v13 = vor.u32 %v1702_v5, %v1489_v6  ;;  %v1716_v15 = vld [vmem:[%s2152_s12 + $0x104] sm:$0xf] }
  0xa3   : > { %1107 = vmatpush.bf16.msrb.mxu2 %v1588_v9  ;;  %v1556_v9 = vor.u32 %v1718_v3, %v1553_v4  ;;  %v1734_v12 = vld [vmem:[%s2152_s12 + $0x194] sm:$0xf]  ;;  %v1617_v14 = vld [vmem:[%s2152_s12 + $0x198] sm:$0xf0]  ;;  %v1545_v16 = vld [vmem:[%s2152_s12 + $0x108] sm:$0xf0]  ;;  %v1428_v19 = vor.u32 %v1686_v10, %v1425_v11 }
  0xa4   : > { %1126 = vmatpush.bf16.msrb.mxu3 %v1652_v23  ;;  %v1700_v17 = vld [vmem:[%s2152_s12 + $0x84] sm:$0xf]  ;;  %v1481_v18 = vld [vmem:[%s2152_s12 + $0x88] sm:$0xf0]  ;;  %v1620_v20 = vor.u32 %v1734_v12, %v1617_v14  ;;  %v1548_v21 = vor.u32 %v1716_v15, %v1545_v16  ;;  %v551_v35 = vld [vmem:[#allocation2 + $0x30] sm:$0xff]  ;;  %p1669_p3 = scmp.ne.s32.totalorder %s1876_s16, 8 }
  0xa5   : > { %1070 = vmatpush.bf16.msrb.mxu0 %v1452_v36  ;;  %v1684_v22 = vld [vmem:[%s2152_s12 + $0x4] sm:$0xf]  ;;  %v1417_v23 = vld [vmem:[%s2152_s12 + $0x8] sm:$0xf0]  ;;  %v554_v16 = vld [vmem:[#allocation2 + $0x10] sm:$0xff] }
  0xa6   : > { %1089 = vmatpush.bf16.msrb.mxu1 %v1516_v28  ;;  %v1732_v25 = vld [vmem:[%s2152_s12 + $0x184] sm:$0xf]  ;;  %v1609_v26 = vld [vmem:[%s2152_s12 + $0x188] sm:$0xf0]  ;;  %v1420_v27 = vor.u32 %v1684_v22, %v1417_v23 }
  0xa7   : > { %1108 = vmatpush.bf16.msrb.mxu2 %v1580_v24  ;;  %v1484_v24 = vor.u32 %v1700_v17, %v1481_v18  ;;  %v1612_v28 = vor.u32 %v1732_v25, %v1609_v26  ;;  %v557_v62 = vld [vmem:[#allocation2 + $0x28] sm:$0xff]  ;;  %v556_v25 = vld [vmem:[#allocation2 + $0x20] sm:$0xff] }
  0xa8   : > { %1127 = vmatpush.bf16.msrb.mxu3 %v1644_v40  ;;  %1004 = vmatmul.bf16.gmra.mxu0 %v2288_v45 }
  0xa9   : > { %1023 = vmatmul.bf16.gmra.mxu1 %v2293_v51  ;;  %1071 = vmatpush.bf16.msrb.mxu0 %v1444_v59 }
  0xaa   : > { %1090 = vmatpush.bf16.msrb.mxu1 %v1508_v46  ;;  %1042 = vmatmul.bf16.gmra.mxu2 %v2295_v52 }
  0xab   : > { %1109 = vmatpush.bf16.msrb.mxu2 %v1572_v41  ;;  %1061 = vmatmul.bf16.gmra.mxu3 %v1412_v57  ;;  %v553_v41 = vld [vmem:[#allocation2 + $0x18] sm:$0xff] }
  0xac   : > { %1128 = vmatpush.bf16.msrb.mxu3 %v1636_v60 }
  0xad   : > { %1072 = vmatpush.bf16.msrb.mxu0 %v1436_v7 }
  0xae   : > { %1091 = vmatpush.bf16.msrb.mxu1 %v1500_v1 }
  0xaf   : > { %1110 = vmatpush.bf16.msrb.mxu2 %v1564_v61 }
  0xb0   : > { %1129 = vmatpush.bf16.msrb.mxu3 %v1628_v8 }
  0xb1   : > { %1073 = vmatpush.bf16.msrb.mxu0 %v1428_v19 }
  0xb2   : > { %1092 = vmatpush.bf16.msrb.mxu1 %v1492_v13 }
  0xb3   : > { %1111 = vmatpush.bf16.msrb.mxu2 %v1556_v9  ;;  %v552_v9 = vld [vmem:[#allocation2] sm:$0xff] }
  0xb4   : > { %1130 = vmatpush.bf16.msrb.mxu3 %v1620_v20 }
  0xb5   : > { %1074 = vmatpush.bf16.msrb.mxu0 %v1420_v27 }
  0xb6   : > { %1093 = vmatpush.bf16.msrb.mxu1 %v1484_v24 }
  0xb7   : > { %1112 = vmatpush.bf16.msrb.mxu2 %v1548_v21 }
  0xb8   : > { %1131 = vmatpush.bf16.msrb.mxu3 %v1612_v28  ;;  %1075 = vmatmul.bf16.vlgmr.msrb.gmra.mxu0 %v2236_v49 }
  0xb9   : > { %1094 = vmatmul.bf16.vlgmr.msrb.gmra.mxu1 %v2241_v54 }
  0xba   : > { %1113 = vmatmul.bf16.vlgmr.msrb.gmra.mxu2 %v2243_v55 }
  0xbb   : > { %1132 = vmatmul.bf16.vlgmr.msrb.gmra.mxu3 %v2247_v58 }
  0xc8   : > { %1080 = vmatmul.bf16.gmra.mxu0 %v2288_v45 }
  0xc9   : > { %1099 = vmatmul.bf16.gmra.mxu1 %v2293_v51  ;;  %v555_v51 = vld [vmem:[#allocation2 + $0x8] sm:$0xff] }
  0xca   : > { %1118 = vmatmul.bf16.gmra.mxu2 %v2295_v52 }
  0xcb   : > { %1137 = vmatmul.bf16.gmra.mxu3 %v1412_v57 }
 0x115   : > { %v1000_v29 = vpop.f32.mrf.mxu0 }
 0x116   : > { %v1019_v30 = vpop.f32.mrf.mxu1 }
 0x117   : > { %v1020_v31 = vadd.f32 %v1019_v30, %v1000_v29 }
 0x11d   : > { %v1038_v32 = vpop.f32.mrf.mxu2  ;;  %v1002_v49 = vpop.f32.mrf.mxu0 }
 0x11e   : > { %v1039_v33 = vadd.f32 %v1038_v32, %v1020_v31  ;;  %v1057_v34 = vpop.f32.mrf.mxu3  ;;  %v1021_v54 = vpop.f32.mrf.mxu1 }
 0x11f   : > { %v1022_v58 = vadd.f32 %v1021_v54, %v1002_v49 }
 0x120   : > { %v1058_v36 = vadd.f32 %v1057_v34, %v1039_v33  ;;  %v558_v33 = vld [vmem:[#allocation2 + $0x38] sm:$0xff] }
 0x122   : > { %v1143_v55 = vadd.f32 %v1058_v36, %v551_v35 }
 0x124   : > { %1151 = vst [vmem:[#allocation2 + $0x30] sm:$0xff] %v1143_v55 }
 0x125   : > { %v1040_v37 = vpop.f32.mrf.mxu2  ;;  %v1005_v40 = vpop.f32.mrf.mxu0 }
 0x126   : > { %v1041_v38 = vadd.f32 %v1040_v37, %v1022_v58  ;;  %v1059_v39 = vpop.f32.mrf.mxu3  ;;  %v1024_v42 = vpop.f32.mrf.mxu1 }
 0x127   : > { %v1025_v45 = vadd.f32 %v1024_v42, %v1005_v40 }
 0x128   : > { %v1060_v43 = vadd.f32 %v1059_v39, %v1041_v38 }
 0x12a   : > { %v1145_v44 = vadd.f32 %v1060_v43, %v553_v41 }
 0x12c   : > { %1153 = vst [vmem:[#allocation2 + $0x18] sm:$0xff] %v1145_v44 }
 0x12d   : > { %v1043_v46 = vpop.f32.mrf.mxu2  ;;  %v1007_v50 = vpop.f32.mrf.mxu0 }
 0x12e   : > { %v1044_v47 = vadd.f32 %v1043_v46, %v1025_v45  ;;  %v1062_v48 = vpop.f32.mrf.mxu3  ;;  %v1026_v52 = vpop.f32.mrf.mxu1 }
 0x12f   : > { %v1027_v57 = vadd.f32 %v1026_v52, %v1007_v50 }
 0x130   : > { %v1063_v53 = vadd.f32 %v1062_v48, %v1044_v47 }
 0x132   : > { %v1147_v56 = vadd.f32 %v1063_v53, %v555_v51 }
 0x134   : > { %1155 = vst [vmem:[#allocation2 + $0x8] sm:$0xff] %v1147_v56 }
 0x135   : > { %v1045_v59 = vpop.f32.mrf.mxu2  ;;  %v1076_v63 = vpop.f32.mrf.mxu0 }
 0x136   : > { %v1046_v60 = vadd.f32 %v1045_v59, %v1027_v57  ;;  %v1064_v61 = vpop.f32.mrf.mxu3  ;;  %v1095_v0 = vpop.f32.mrf.mxu1 }
 0x137   : > { %v1096_v3 = vadd.f32 %v1095_v0, %v1076_v63 }
 0x138   : > { %v1065_v1 = vadd.f32 %v1064_v61, %v1046_v60 }
 0x13a   : > { %v1149_v2 = vadd.f32 %v1065_v1, %v557_v62 }
 0x13c   : > { %1157 = vst [vmem:[#allocation2 + $0x28] sm:$0xff] %v1149_v2 }
 0x13d   : > { %v1114_v4 = vpop.f32.mrf.mxu2  ;;  %v1078_v7 = vpop.f32.mrf.mxu0 }
 0x13e   : > { %v1133_v5 = vpop.f32.mrf.mxu3  ;;  %v1115_v6 = vadd.f32 %v1114_v4, %v1096_v3  ;;  %v1097_v8 = vpop.f32.mrf.mxu1 }
 0x13f   : > { %v1098_v12 = vadd.f32 %v1097_v8, %v1078_v7 }
 0x140   : > { %v1134_v10 = vadd.f32 %v1133_v5, %v1115_v6 }
 0x142   : > { %v1144_v11 = vadd.f32 %v1134_v10, %v552_v9 }
 0x144   : > { %1152 = vst [vmem:[#allocation2] sm:$0xff] %v1144_v11 }
 0x145   : > { %v1116_v13 = vpop.f32.mrf.mxu2  ;;  %v1081_v17 = vpop.f32.mrf.mxu0 }
 0x146   : > { %v1135_v14 = vpop.f32.mrf.mxu3  ;;  %v1117_v15 = vadd.f32 %v1116_v13, %v1098_v12  ;;  %v1100_v18 = vpop.f32.mrf.mxu1 }
 0x147   : > { %v1101_v21 = vadd.f32 %v1100_v18, %v1081_v17 }
 0x148   : > { %v1136_v19 = vadd.f32 %v1135_v14, %v1117_v15 }
 0x14a   : > { %v1146_v20 = vadd.f32 %v1136_v19, %v554_v16 }
 0x14c   : > { %1154 = vst [vmem:[#allocation2 + $0x10] sm:$0xff] %v1146_v20 }
 0x14d   : > { %v1119_v22 = vpop.f32.mrf.mxu2  ;;  %v1083_v27 = vpop.f32.mrf.mxu0 }
 0x14e   : > { %v1138_v23 = vpop.f32.mrf.mxu3  ;;  %v1120_v24 = vadd.f32 %v1119_v22, %v1101_v21  ;;  %v1102_v28 = vpop.f32.mrf.mxu1 }
 0x14f   : > { %v1103_v30 = vadd.f32 %v1102_v28, %v1083_v27 }
 0x150   : > { %v1139_v26 = vadd.f32 %v1138_v23, %v1120_v24 }
 0x152   : > { %v1148_v29 = vadd.f32 %v1139_v26, %v556_v25 }
 0x154   : > { %1156 = vst [vmem:[#allocation2 + $0x20] sm:$0xff] %v1148_v29 }
 0x155   : > { %v1121_v31 = vpop.f32.mrf.mxu2 }
 0x156   : > { %v1122_v32 = vadd.f32 %v1121_v31, %v1103_v30  ;;  %v1140_v34 = vpop.f32.mrf.mxu3 }
 0x158   : > { %v1141_v49 = vadd.f32 %v1140_v34, %v1122_v32  ;;  %1162 = sbr.rel (%p1669_p3) target bundleno = 363 (0x16b), region = 78 }
 0x15a   : > { %v1150_v35 = vadd.f32 %v1141_v49, %v558_v33 }
 0x15c   : > { %1158 = vst [vmem:[#allocation2 + $0x38] sm:$0xff] %v1150_v35 }
 0x15d   : > { %v1163_v54 = vld [vmem:[#allocation2 + $0x30] sm:$0xff]  ;;  %v1164_v36 = vld [vmem:[#allocation2] sm:$0xff]  ;;  %v1165_v38 = vld [vmem:[#allocation2 + $0x18] sm:$0xff] }
 0x15e   : > { %v1171_v55 = vld [vmem:[%s535_s14] sm:$0x3]  ;;  %v1166_v39 = vld [vmem:[#allocation2 + $0x10] sm:$0xff]  ;;  %v1167_v40 = vld [vmem:[#allocation2 + $0x8] sm:$0xff] }
 0x15f   : > { %v1173_v58 = vperm.slane %v1171_v55, 0  ;;  %v1174_v37 = vperm.slane %v1171_v55, 1  ;;  %v1168_v41 = vld [vmem:[#allocation2 + $0x20] sm:$0xff]  ;;  %v1169_v42 = vld [vmem:[#allocation2 + $0x28] sm:$0xff] }
 0x161   : > { %v1177_v44 = vadd.f32 %v1173_v58, %v1163_v54  ;;  %v1178_v45 = vadd.f32 %v1174_v37, %v1164_v36  ;;  %v1179_v46 = vadd.f32 %v1173_v58, %v1165_v38  ;;  %v1180_v47 = vadd.f32 %v1174_v37, %v1166_v39 }
 0x162   : > { %v1181_v48 = vadd.f32 %v1173_v58, %v1167_v40  ;;  %v1182_v50 = vadd.f32 %v1174_v37, %v1168_v41  ;;  %v1183_v51 = vadd.f32 %v1173_v58, %v1169_v42 }
 0x163   : > { %v1170_v43 = vld [vmem:[#allocation2 + $0x38] sm:$0xff]  ;;  %v1185_v53 = vmax.f32 %v1177_v44, 0.0  ;;  %v1186_v56 = vmax.f32 %v1178_v45, 0.0  ;;  %v1187_v57 = vmax.f32 %v1179_v46, 0.0  ;;  %v1188_v59 = vmax.f32 %v1180_v47, 0.0 }
 0x164   : > { %v1184_v52 = vadd.f32 %v1174_v37, %v1170_v43  ;;  %v1189_v60 = vmax.f32 %v1181_v48, 0.0  ;;  %v1190_v61 = vmax.f32 %v1182_v50, 0.0  ;;  %v1191_v62 = vmax.f32 %v1183_v51, 0.0 }
 0x165   : > { %v1193_v0 = vpack.c.bf16 %v1186_v56, %v1185_v53  ;;  %v1194_v1 = vpack.c.bf16 %v1188_v59, %v1187_v57 }
 0x166   : > { %v1192_v63 = vmax.f32 %v1184_v52, 0.0  ;;  %v1195_v2 = vpack.c.bf16 %v1190_v61, %v1189_v60 }
 0x167   : > { %1197 = vst [vmem:[%s2154_s25] sm:$0xff] %v1193_v0 }
 0x168   : > { %v1196_v3 = vpack.c.bf16 %v1192_v63, %v1191_v62  ;;  %1198 = vst [vmem:[%s2154_s25 + $0x8] sm:$0xff] %v1194_v1 }
 0x169   : > { %1199 = vst [vmem:[%s2154_s25 + $0x10] sm:$0xff] %v1195_v2 }
 0x16a   : > { %1200 = vst [vmem:[%s2154_s25 + $0x18] sm:$0xff] %v1196_v3 }
 0x16b PF: > { %1207 = sbr.rel (!%p1983_p9) target bundleno = 371 (0x173), region = 82  ;;  %s1748_s16 = sshll.u32 (%p1983_p9), %s1880_s17, 3 }
 0x16c   : > { %s1213_s7 = scalar_lea.vmem (%p1983_p9), %s2379_s3, %s1748_s16 }
 0x16e   : > { %v1248_v4 = vld [vmem:[%s2154_s25] sm:$0xff] (%p1983_p9) }
 0x16f   : > { %v1250_v5 = vld [vmem:[%s2154_s25 + $0x8] sm:$0xff] (%p1983_p9)  ;;  %1249 = vst [vmem:[%s1213_s7] sm:$0xff] (%p1983_p9), %v1248_v4 }
 0x170   : > { %v1252_v6 = vld [vmem:[%s2154_s25 + $0x10] sm:$0xff]  ;;  %1251 = vst [vmem:[%s1213_s7 + $0x10] sm:$0xff] %v1250_v5 }
 0x171   : > { %v1254_v7 = vld [vmem:[%s2154_s25 + $0x18] sm:$0xff]  ;;  %1253 = vst [vmem:[%s1213_s7 + $0x20] sm:$0xff] %v1252_v6 }
 0x172   : > { %1255 = vst [vmem:[%s1213_s7 + $0x30] sm:$0xff] %v1254_v7 }
 0x173 PF: > { %s13_s20 = sadd.s32 1, %s1892_s20   ;;  %s2382_s12 = smov %s1864_s13 }
 0x174   : > { %p10_p4 = scmp.ge.s32.totalorder %s13_s20, 20   ;;  %s2383_s13 = smov %s1988_s4 }
 0x175   : > { %s2384_s14 = smov %s1872_s15  ;;  %s2385_s15 = smov %s1991_s5 }
 0x176   : > { %s2386_s16 = smov %s1884_s18  ;;  %s2387_s17 = smov %s1888_s19 }
 0x177   : > { %s2388_s18 = smov %s2391_s21  ;;  %s2389_s19 = smov %s2395_s22 }
 0x178   :  { %12 = sbr.rel (!%p10_p4) target bundleno = 5 (0x5), region = 157 }

// kernel: vgg_network_forward.32
= control target key start
LH: loop header
LB: loop body
LE: loop exit
PB: predicated region body
PF: predicated region fallthrough
CT: control target
= control target key end

     0   :  { %s434_s6 = smov 0   ;;  %s436_s7 = smov 0   ;;  %s477_s0 = inlined_call_operand.vmem [shape: bf16[2,4,2,1024], index: 0, kind: input, shape index: {}]   ;;  %s478_s1 = inlined_call_operand.vmem [shape: bf16[2,2,2,512], index: 1, kind: output, shape index: {}]  }
   0x1   :  { %s438_s8 = smov 0  }
   0x2 LB: > { %s23_s9 = sadd.s32 1, %s418_s7  ;;  %p371_p0 = scmp.ge.s32.totalorder %s422_s8, 1  ;;  %s422_s8 = sphi %s438_s8, %s11_s8   ;;  %s418_s7 = sphi %s436_s7, %s480_s7   ;;  %s414_s6 = sphi %s434_s6, %s479_s6  }
   0x3   : > { %p25_p1 = scmp.ge.s32.totalorder %s23_s9, 2  ;;  %p108_p2 = scmp.lt.s32.totalorder %s422_s8, 3 }
   0x5   : > { %s482_s9 = smov (%p25_p1, %s23_s9), 0  ;;  %p109_p3 = pnand %p371_p0, %p108_p2 }
   0x6   : > { %p137_p4 = scmp.lt.s32.totalorder (!%p109_p3), %s414_s6, 1 }
   0x7   : > { %112 = sbr.rel (%p109_p3) target bundleno = 51 (0x33), region = 24 }
   0xc   : > { %s484_s6 = smov (!%p137_p4, %s414_s6), 1  ;;  %vm259_vm0 = vcmask 1040384   ;;  %vm263_vm1 = vcmask 1042434   ;;  %vm267_vm2 = vcmask 1041408  }
   0xd   : > { %s372_s10 = sshll.u32 %s484_s6, 5  ;;  %s373_s14 = sshll.u32 %s484_s6, 3 }
   0xe   : > { %s144_s13 = scalar_lea.vmem %s477_s0, %s372_s10  ;;  %s154_s17 = scalar_lea.vmem %s478_s1, %s373_s14 }
   0xf   : > { %v156_v0 = vld [vmem:[%s144_s13] sm:$0xff]  ;;  %v157_v1 = vld [vmem:[%s144_s13 + $0x8] sm:$0xff]  ;;  %v158_v6 = vld [vmem:[%s144_s13 + $0x10] sm:$0xff] }
  0x10   : > { %v160_v2 = vunpack.c.l.bf16 %v156_v0  ;;  %v164_v3 = vunpack.c.l.bf16 %v157_v1  ;;  %v161_v4 = vunpack.c.h.bf16 %v156_v0  ;;  %v165_v5 = vunpack.c.h.bf16 %v157_v1  ;;  %v159_v7 = vld [vmem:[%s144_s13 + $0x18] sm:$0xff] }
  0x11   : > { %v162_v10 = vunpack.c.l.bf16 %v158_v6  ;;  %v166_v11 = vunpack.c.l.bf16 %v159_v7  ;;  %v163_v12 = vunpack.c.h.bf16 %v158_v6  ;;  %v167_v13 = vunpack.c.h.bf16 %v159_v7 }
  0x12   : > { %v168_v8 = vmax.f32 %v160_v2, %v164_v3  ;;  %v169_v9 = vmax.f32 %v161_v4, %v165_v5 }
  0x13   : > { %v170_v14 = vmax.f32 %v162_v10, %v166_v11  ;;  %v171_v17 = vmax.f32 %v163_v12, %v167_v13 }
  0x14   : > { %176 = vst [vmem:[#allocation1] ss:$4 sm:$0xff] %v168_v8 }
  0x15   : > { %178 = vst [vmem:[#allocation1 + $0x20] ss:$4 sm:$0xff] %v169_v9 }
  0x1b   : > { %v179_v15 = vld.sshfl [vmem:[#allocation1] sm:$0xff pattern:$0x73625140]  ;;  %v180_v16 = vld.sshfl [vmem:[#allocation1 + $0x8] sm:$0xff pattern:$0x73625140] }
  0x1c   : > { %v181_v18 = vld.sshfl [vmem:[#allocation1 + $0x10] sm:$0xff pattern:$0x73625140]  ;;  %v182_v19 = vld.sshfl [vmem:[#allocation1 + $0x18] sm:$0xff pattern:$0x73625140] }
  0x1d   : > { %187 = vst [vmem:[#allocation1] ss:$4 sm:$0xff] %v170_v14  ;;  %v183_v20 = vld.sshfl [vmem:[#allocation1 + $0x20] sm:$0xff pattern:$0x73625140] }
  0x1e   : > { %v184_v21 = vld.sshfl [vmem:[#allocation1 + $0x28] sm:$0xff pattern:$0x73625140]  ;;  %v185_v22 = vld.sshfl [vmem:[#allocation1 + $0x30] sm:$0xff pattern:$0x73625140]  ;;  %v237_v23 = vmax.f32 %v179_v15, %v183_v20 }
  0x1f   : > { %v186_v24 = vld.sshfl [vmem:[#allocation1 + $0x38] sm:$0xff pattern:$0x73625140]  ;;  %v239_v25 = vmax.f32 %v181_v18, %v185_v22  ;;  %v238_v26 = vmax.f32 %v180_v16, %v184_v21 }
  0x20   : > { %188 = vst [vmem:[#allocation1 + $0x20] ss:$4 sm:$0xff] %v171_v17  ;;  %v240_v27 = vmax.f32 %v182_v19, %v186_v24 }
  0x21   : > { %v245_v28 = vpack.c.bf16 %v238_v26, %v237_v23 }
  0x22   : > { %v246_v29 = vpack.c.bf16 %v240_v27, %v239_v25 }
  0x23   : > { %v253_v30 = vrot.slane %v245_v28, 3 }
  0x24   : > { %v254_v31 = vrot.slane %v246_v29, 6  ;;  %v255_v32 = vrot.slane %v246_v29, 1  ;;  %v189_v34 = vld.sshfl [vmem:[#allocation1] sm:$0xff pattern:$0x73625140] }
  0x25   : > { %v262_v33 = vsel %vm259_vm0, %v245_v28, %v253_v30  ;;  %v190_v35 = vld.sshfl [vmem:[#allocation1 + $0x8] sm:$0xff pattern:$0x73625140]  ;;  %v191_v37 = vld.sshfl [vmem:[#allocation1 + $0x10] sm:$0xff pattern:$0x73625140] }
  0x26   : > { %v266_v36 = vsel %vm263_vm1, %v254_v31, %v255_v32  ;;  %v192_v38 = vld.sshfl [vmem:[#allocation1 + $0x18] sm:$0xff pattern:$0x73625140] }
  0x27   : > { %v268_v39 = vsel %vm267_vm2, %v262_v33, %v266_v36  ;;  %v193_v40 = vld.sshfl [vmem:[#allocation1 + $0x20] sm:$0xff pattern:$0x73625140]  ;;  %v194_v41 = vld.sshfl [vmem:[#allocation1 + $0x28] sm:$0xff pattern:$0x73625140] }
  0x28   : > { %278 = vst [vmem:[%s154_s17] sm:$0xf] %v268_v39  ;;  %v195_v42 = vld.sshfl [vmem:[#allocation1 + $0x30] sm:$0xff pattern:$0x73625140]  ;;  %v241_v43 = vmax.f32 %v189_v34, %v193_v40  ;;  %v242_v44 = vmax.f32 %v190_v35, %v194_v41 }
  0x29   : > { %v196_v45 = vld.sshfl [vmem:[#allocation1 + $0x38] sm:$0xff pattern:$0x73625140]  ;;  %v243_v46 = vmax.f32 %v191_v37, %v195_v42 }
  0x2a   : > { %v244_v47 = vmax.f32 %v192_v38, %v196_v45  ;;  %v247_v48 = vpack.c.bf16 %v242_v44, %v241_v43 }
  0x2c   : > { %v248_v49 = vpack.c.bf16 %v244_v47, %v243_v46  ;;  %v256_v50 = vrot.slane %v247_v48, 3 }
  0x2e   : > { %v257_v51 = vrot.slane %v248_v49, 6  ;;  %v258_v52 = vrot.slane %v248_v49, 1  ;;  %v271_v53 = vsel %vm259_vm0, %v247_v48, %v256_v50 }
  0x30   : > { %v274_v54 = vsel %vm263_vm1, %v257_v51, %v258_v52 }
  0x31   : > { %v275_v55 = vsel %vm267_vm2, %v271_v53, %v274_v54 }
  0x32   : > { %279 = vst [vmem:[%s154_s17 + $0x4] sm:$0xf] %v275_v55 }
  0x33 PF: > { %s11_s8 = sadd.s32 1, %s422_s8   ;;  %s479_s6 = smov %s418_s7 }
  0x34   : > { %p8_p5 = scmp.ge.s32.totalorder %s11_s8, 4   ;;  %s480_s7 = smov %s482_s9 }
  0x36   :  { %10 = sbr.rel (!%p8_p5) target bundleno = 2 (0x2), region = 55 }

// kernel: vgg_network_forward.36
= control target key start
LH: loop header
LB: loop body
LE: loop exit
PB: predicated region body
PF: predicated region fallthrough
CT: control target
= control target key end

     0   :  { %s381_s6 = smov 0   ;;  %s383_s7 = smov 0   ;;  %s434_s0 = inlined_call_operand.vmem [shape: bf16[2,2,1,1024], index: 0, kind: input, shape index: {}]   ;;  %s435_s1 = inlined_call_operand.vmem [shape: bf16[2,1,1,512], index: 1, kind: output, shape index: {}]  }
   0x1   :  { %s385_s8 = smov 0  }
   0x2 LB: > { %s23_s9 = sadd.s32 1, %s365_s7  ;;  %p318_p0 = scmp.ge.s32.totalorder %s369_s8, 1  ;;  %s369_s8 = sphi %s385_s8, %s11_s8   ;;  %s365_s7 = sphi %s383_s7, %s441_s7   ;;  %s361_s6 = sphi %s381_s6, %s440_s6  }
   0x3   : > { %p25_p1 = scmp.ge.s32.totalorder %s23_s9, 2  ;;  %p108_p2 = scmp.lt.s32.totalorder %s369_s8, 3 }
   0x5   : > { %s443_s9 = smov (%p25_p1, %s23_s9), 0  ;;  %p109_p3 = pnand %p318_p0, %p108_p2 }
   0x6   : > { %p136_p4 = scmp.lt.s32.totalorder (!%p109_p3), %s361_s6, 1 }
   0x7   : > { %112 = sbr.rel (%p109_p3) target bundleno = 33 (0x21), region = 24 }
   0xc   : > { %s445_s6 = smov (!%p136_p4, %s361_s6), 1  ;;  %vm202_vm0 = vcmask 1040384   ;;  %vm214_vm1 = vsmask.f32 256  ;;  %vm216_vm2 = vcmask 1041409   ;;  %vm206_vm6 = vcmask 1042434  }
   0xd   : > { %s319_s10 = sshll.u32 %s445_s6, 4  ;;  %vm217_vm3 = vsmask.f32 1280  ;;  %vm406_vm4 = vmand %vm202_vm0, %vm214_vm1  ;;  %vm221_vm7 = vsmask.f32 2304  ;;  %s320_s14 = sshll.u32 %s445_s6, 2 }
   0xe   : > { %s143_s13 = scalar_lea.vmem %s434_s0, %s319_s10  ;;  %vm410_vm5 = vmand %vm216_vm2, %vm217_vm3  ;;  %vm224_vm10 = vcmask 1043459   ;;  %vm225_vm11 = vsmask.f32 3328  ;;  %s152_s17 = scalar_lea.vmem %s435_s1, %s320_s14  ;;  %vm210_vm14 = vcmask 1041408  }
   0xf   : > { %v153_v0 = vld [vmem:[%s143_s13] sm:$0xff]  ;;  %v154_v1 = vld [vmem:[%s143_s13 + $0x8] sm:$0xff]  ;;  %vm219_vm8 = vmor %vm410_vm5, %vm406_vm4 }
  0x10   : > { %v155_v2 = vunpack.c.l.bf16 %v153_v0  ;;  %v156_v3 = vunpack.c.h.bf16 %v153_v0  ;;  %v157_v4 = vunpack.c.l.bf16 %v154_v1  ;;  %v158_v5 = vunpack.c.h.bf16 %v154_v1  ;;  %vm222_vm9 = vmand %vm206_vm6, %vm221_vm7  ;;  %v228_v27 = vld [vmem:[%s152_s17] sm:$0xf] }
  0x11   : > { %vm223_vm12 = vmor %vm222_vm9, %vm219_vm8 }
  0x12   : > { %v159_v8 = vmax.f32 %v155_v2, %v157_v4  ;;  %v160_v9 = vmax.f32 %v156_v3, %v158_v5  ;;  %vm226_vm13 = vmand %vm224_vm10, %vm225_vm11 }
  0x13   : > { %vm227_vm15 = vmor %vm226_vm13, %vm223_vm12 }
  0x14   : > { %v163_v10 = vperm.slane %v159_v8, 0  ;;  %v164_v11 = vperm.slane %v159_v8, 2  ;;  %v165_v12 = vperm.slane %v159_v8, 4  ;;  %v166_v13 = vperm.slane %v159_v8, 6 }
  0x15   : > { %v167_v14 = vperm.slane %v160_v9, 0  ;;  %v168_v15 = vperm.slane %v160_v9, 2  ;;  %v169_v16 = vperm.slane %v160_v9, 4  ;;  %v170_v17 = vperm.slane %v160_v9, 6 }
  0x17   : > { %v191_v18 = vmax.f32 %v163_v10, %v167_v14  ;;  %v192_v19 = vmax.f32 %v164_v11, %v168_v15  ;;  %v193_v20 = vmax.f32 %v165_v12, %v169_v16  ;;  %v194_v21 = vmax.f32 %v166_v13, %v170_v17 }
  0x19   : > { %v195_v22 = vpack.c.bf16 %v192_v19, %v191_v18  ;;  %v196_v23 = vpack.c.bf16 %v194_v21, %v193_v20 }
  0x1b   : > { %v199_v24 = vrot.slane %v195_v22, 3  ;;  %v200_v25 = vrot.slane %v196_v23, 6  ;;  %v201_v26 = vrot.slane %v196_v23, 1 }
  0x1d   : > { %v205_v28 = vsel %vm202_vm0, %v195_v22, %v199_v24  ;;  %v209_v29 = vsel %vm206_vm6, %v200_v25, %v201_v26 }
  0x1e   : > { %v211_v30 = vsel %vm210_vm14, %v205_v28, %v209_v29 }
  0x1f   : > { %v229_v31 = vsel %vm227_vm15, %v211_v30, %v228_v27 }
  0x20   : > { %230 = vst [vmem:[%s152_s17] sm:$0xf] %v229_v31 }
  0x21 PF: > { %s11_s8 = sadd.s32 1, %s369_s8   ;;  %s440_s6 = smov %s365_s7 }
  0x22   : > { %p8_p5 = scmp.ge.s32.totalorder %s11_s8, 4   ;;  %s441_s7 = smov %s443_s9 }
  0x24   :  { %10 = sbr.rel (!%p8_p5) target bundleno = 2 (0x2), region = 54 }

// kernel: vgg_network_forward.37
= control target key start
LH: loop header
LB: loop body
LE: loop exit
PB: predicated region body
PF: predicated region fallthrough
CT: control target
= control target key end

     0   :  { %s277_s6 = smov 0   ;;  %s306_s0 = inlined_call_operand.vmem [shape: bf16[2,1,1,512], index: 0, kind: input, shape index: {}]   ;;  %s307_s1 = inlined_call_operand.vmem [shape: f32[2,1,512], index: 1, kind: output, shape index: {}]  }
   0x1 LB: > { %s236_s7 = sadd.s32 4294967295, %s264_s6   ;;  %p240_p0 = scmp.ge.s32.totalorder %s264_s6, 1  ;;  %s264_s6 = sphi %s277_s6, %s11_s6  }
   0x2   : > { %p86_p1 = scmp.lt.s32.totalorder %s264_s6, 3 }
   0x4   : > { %p87_p2 = pnand %p240_p0, %p86_p1 }
   0x5   : > { %p104_p3 = scmp.lt.s32.totalorder (!%p87_p2), %s236_s7, 1 }
   0x6   : > { %90 = sbr.rel (%p87_p2) target bundleno = 193 (0xc1), region = 24 }
   0xb   : > { %s309_s7 = smov (!%p104_p3, %s236_s7), 1  ;;  %vm124_vm0 = vcmask 1040384   ;;  %v266_v21 = vmov 269488144   ;;  %v178_v40 = vlaneseq  ;;  %vm173_vm7 = vcmask 1042434  }
   0xc   : > { %s241_s8 = sshll.u32 %s309_s7, 2  ;;  %v149_v22 = vunpack.c.l.s4 %v266_v21  ;;  %vm175_vm8 = vcmask 1041408  }
   0xd   : > { %s107_s11 = scalar_lea.vmem %s306_s0, %s241_s8  ;;  %s111_s14 = scalar_lea.vmem %s307_s1, %s241_s8  ;;  %vm180_vm9 = vcmp.lt.s32.totalorder %v178_v40, 512 }
   0xe   : > { %v112_v0 = vld [vmem:[%s107_s11] sm:$0xf]  ;;  %v150_v26 = vunpack.c.0.s8 %v149_v22 }
   0xf   : > { %v113_v1 = vunpack.c.l.bf16 %v112_v0 }
  0x11   : > { %v114_v2 = vmul.f32 %v113_v1, %v113_v1 }
  0x13   : > { %v116_v3 = vperm.slane %v114_v2, 0  ;;  %v117_v4 = vperm.slane %v114_v2, 2  ;;  %v118_v5 = vperm.slane %v114_v2, 4  ;;  %v119_v6 = vperm.slane %v114_v2, 6 }
  0x15   : > { %v125_v7 = vsel %vm124_vm0, %v116_v3, 0.0  ;;  %v126_v8 = vsel %vm124_vm0, %v117_v4, 0.0  ;;  %v128_v9 = vsel %vm124_vm0, %v118_v5, 0.0  ;;  %v130_v11 = vsel %vm124_vm0, %v119_v6, 0.0 }
  0x16   : > { %v127_v10 = vadd.f32 %v126_v8, %v125_v7 }
  0x18   : > { %v129_v12 = vadd.f32 %v128_v9, %v127_v10 }
  0x1a   : > { %v131_v13 = vadd.f32 %v130_v11, %v129_v12 }
  0x1c   : > { %132 = vadd.xlane.f32.xlu0 %v131_v13 }
  0x8f   : > { %v133_v14 = vpop.xlane.xlu0 %132 }
  0x90   : > { %254 = vrsqrt.f32 %v133_v14  ;;  %vm141_vm1 = vcmp.eq.f32.partialorder %v133_v14, inf  ;;  %v144_v24 = vand.u32 2147483648, %v133_v14  ;;  %vm143_vm2 = vcmp.eq.f32.partialorder %v133_v14, 0.0 }
  0x96   : > { %v255_v15 = vpop.eup %254 }
  0x97   : > { %v135_v16 = vmul.f32 %v255_v15, %v133_v14 }
  0x99   : > { %v136_v17 = vmul.f32 %v255_v15, %v135_v16 }
  0x9b   : > { %v137_v18 = vmul.f32 0.5, %v136_v17 }
  0x9d   : > { %v138_v19 = vsub.f32 1.5, %v137_v18 }
  0x9f   : > { %v139_v20 = vmul.f32 %v255_v15, %v138_v19 }
  0xa1   : > { %v140_v23 = vmul.f32 %v139_v20, %v133_v14 }
  0xa3   : > { %v142_v25 = vsel %vm141_vm1, %v133_v14, %v140_v23 }
  0xa4   : > { %v145_v27 = vsel %vm143_vm2, %v144_v24, %v142_v25 }
  0xa5   : > { %v146_v28 = vmax.f32 %v145_v27, 1e-12 }
  0xa7   : > { %v151_v29 = vperm.slane %v146_v28, %v150_v26 }
  0xa9   : > { %256 = vrcp.f32 %v151_v29  ;;  %v164_v33 = vand.u32 2147483648, %v151_v29  ;;  %v162_v35 = vand.u32 2147483647, %v151_v29  ;;  %vm158_vm4 = vweird.f32 %v151_v29 }
  0xab   : > { %v165_v37 = vor.u32 1.1754944e-38, %v164_v33  ;;  %vm163_vm6 = vcmp.eq.f32.partialorder %v162_v35, 8.507059e+37 }
  0xaf   : > { %v257_v30 = vpop.eup %256 }
  0xb0   : > { %v154_v31 = vmul.f32 %v257_v30, %v151_v29  ;;  %vm159_vm3 = vweird.f32 %v257_v30 }
  0xb1   : > { %vm160_vm5 = vmor %vm158_vm4, %vm159_vm3 }
  0xb2   : > { %v155_v32 = vsub.f32 1.0, %v154_v31 }
  0xb4   : > { %v156_v34 = vmul.f32 %v257_v30, %v155_v32 }
  0xb6   : > { %v157_v36 = vadd.f32 %v257_v30, %v156_v34 }
  0xb8   : > { %v161_v38 = vsel %vm160_vm5, %v257_v30, %v157_v36 }
  0xb9   : > { %v166_v39 = vsel %vm163_vm6, %v165_v37, %v161_v38 }
  0xba   : > { %v167_v41 = vmul.f32 %v166_v39, %v113_v1 }
  0xbc   : > { %v169_v42 = vrot.slane %v167_v41, 1  ;;  %v170_v43 = vrot.slane %v167_v41, 2  ;;  %v171_v44 = vrot.slane %v167_v41, 3 }
  0xbe   : > { %v172_v45 = vsel %vm124_vm0, %v167_v41, %v169_v42  ;;  %v174_v46 = vsel %vm173_vm7, %v170_v43, %v171_v44 }
  0xbf   : > { %v176_v47 = vsel %vm175_vm8, %v172_v45, %v174_v46 }
  0xc0   : > { %182 = vst.msk [vmem:[%s111_s14] sm:$0xf] %vm180_vm9, %v176_v47 }
  0xc1 PF: > { %s11_s6 = sadd.s32 1, %s264_s6  }
  0xc2   : > { %p8_p4 = scmp.ge.s32.totalorder %s11_s6, 4  }
  0xc4   :  { %10 = sbr.rel (!%p8_p4) target bundleno = 1 (0x1), region = 54 }

// kernel: vgg_network_forward.33
= control target key start
LH: loop header
LB: loop body
LE: loop exit
PB: predicated region body
PF: predicated region fallthrough
CT: control target
= control target key end

     0   :  { %s1681_s12 = smov 0   ;;  %s1683_s13 = smov 0   ;;  %s2073_s0 = inlined_call_operand.vmem [shape: bf16[9,8,512], index: 0, kind: input, shape index: {}]   ;;  %s2074_s1 = inlined_call_operand.vmem [shape: bf16[9,512,512], index: 1, kind: input, shape index: {}]   ;;  %s2075_s2 = inlined_call_operand.vmem [shape: f32[1,512], index: 2, kind: input, shape index: {}]   ;;  %s2076_s3 = inlined_call_operand.vmem [shape: bf16[8,512], index: 3, kind: output, shape index: {}]  }
   0x1   :  { %s1685_s14 = smov 0   ;;  %s1687_s15 = smov 0  }
   0x2   :  { %s1689_s16 = smov 0   ;;  %s1691_s17 = smov 0  }
   0x3   :  { %s1693_s18 = smov 0  }
   0x4 LB: > { %s25_s19 = sadd.s32 1, %s1650_s16  ;;  %s28_s20 = sadd.s32 1, %s1654_s17  ;;  %s1658_s18 = sphi %s1693_s18, %s13_s18   ;;  %s1654_s17 = sphi %s1691_s17, %s2082_s17   ;;  %s1650_s16 = sphi %s1689_s16, %s2081_s16   ;;  %s1646_s15 = sphi %s1687_s15, %s2080_s15   ;;  %s1642_s14 = sphi %s1685_s14, %s2079_s14   ;;  %s1638_s13 = sphi %s1683_s13, %s2078_s13   ;;  %s1634_s12 = sphi %s1681_s12, %s2077_s12  }
   0x5   : > { %p26_p0 = scmp.ge.s32.totalorder %s25_s19, 9  ;;  %p76_p1 = scmp.ne.s32.totalorder %s1638_s13, %s1634_s12 }
   0x6   : > { %p77_p2 = scmp.eq.s32.totalorder %s1658_s18, 0  ;;  %s69_s24 = sadd.s32 1, %s1638_s13 }
   0x7   : > { %s2084_s19 = smov (%p26_p0, %s25_s19), 0  ;;  %s2086_s20 = smov (!%p26_p0, %s28_s20), %s1654_s17 }
   0x8   : > { %p78_p3 = por %p77_p2, %p76_p1  ;;  %p30_p4 = scmp.ge.s32.totalorder %s2086_s20, 2 }
   0x9   : > { %s64_s21 = ssub.s32 %s1650_s16, %s2084_s19  ;;  %p1210_p6 = scmp.ge.s32.totalorder %s1658_s18, 18 }
   0xa   : > { %s2088_s20 = smov (%p30_p4, %s2086_s20), 0 }
   0xb   : > { %s65_s22 = ssub.s32 %s1654_s17, %s2088_s20  ;;  %156 = sbr.rel (%p1210_p6) target bundleno = 87 (0x57), region = 16 }
   0xc   : > { %s66_s23 = sor.u32 %s65_s22, %s64_s21 }
   0xd   : > { %p67_p5 = scmp.eq.s32.totalorder %s66_s23, 0 }
   0xf   : > { %s1732_s25 = scalar_select %p67_p5, %s1638_s13, %s69_s24  }
  0x10   : > { %171 = sbr.rel (!%p78_p3) target bundleno = 87 (0x57), region = 24  ;;  %s173_s26 = sand.u32 (%p78_p3), 1, %s1638_s13  }
  0x11   : > { %s1212_s27 = sshll.u32 (%p78_p3), %s1654_s17, 1  ;;  %s1211_s28 = sshll.u32 (%p78_p3), %s173_s26, 9 }
  0x12   : > { %s1213_s29 = sshll.u32 (%p78_p3), %s1650_s16, 8  ;;  %s1746_s8 = scalar_lea.vmem (%p78_p3), [#allocation3], %s1211_s28 }
  0x13   : > { %s178_s30 = sadd.s32 (%p78_p3), %s1213_s29, %s1212_s27 }
  0x14   : > { %s1214_s4 = sshll.u32 (%p78_p3), %s178_s30, 2 }
  0x15   : > { %s1741_s7 = scalar_lea.vmem %s2074_s1, %s1214_s4 }
  0x16   : > { %v335_v0 = vld [vmem:[%s1741_s7] sm:$0xff]  ;;  %v337_v1 = vld [vmem:[%s1741_s7 + $0x10] sm:$0xff] }
  0x17   : > { %v339_v2 = vld [vmem:[%s1741_s7 + $0x20] sm:$0xff]  ;;  %336 = vst [vmem:[%s1746_s8] sm:$0xff] %v335_v0  ;;  %v341_v3 = vld [vmem:[%s1741_s7 + $0x30] sm:$0xff] }
  0x18   : > { %338 = vst [vmem:[%s1746_s8 + $0x8] sm:$0xff] %v337_v1  ;;  %v343_v4 = vld [vmem:[%s1741_s7 + $0x40] sm:$0xff]  ;;  %v345_v5 = vld [vmem:[%s1741_s7 + $0x50] sm:$0xff] }
  0x19   : > { %340 = vst [vmem:[%s1746_s8 + $0x10] sm:$0xff] %v339_v2  ;;  %v347_v6 = vld [vmem:[%s1741_s7 + $0x60] sm:$0xff]  ;;  %v349_v7 = vld [vmem:[%s1741_s7 + $0x70] sm:$0xff] }
  0x1a   : > { %342 = vst [vmem:[%s1746_s8 + $0x18] sm:$0xff] %v341_v3  ;;  %v351_v8 = vld [vmem:[%s1741_s7 + $0x80] sm:$0xff]  ;;  %v353_v9 = vld [vmem:[%s1741_s7 + $0x90] sm:$0xff] }
  0x1b   : > { %344 = vst [vmem:[%s1746_s8 + $0x20] sm:$0xff] %v343_v4  ;;  %v355_v10 = vld [vmem:[%s1741_s7 + $0xa0] sm:$0xff]  ;;  %v357_v11 = vld [vmem:[%s1741_s7 + $0xb0] sm:$0xff] }
  0x1c   : > { %346 = vst [vmem:[%s1746_s8 + $0x28] sm:$0xff] %v345_v5  ;;  %v359_v12 = vld [vmem:[%s1741_s7 + $0xc0] sm:$0xff]  ;;  %v361_v13 = vld [vmem:[%s1741_s7 + $0xd0] sm:$0xff] }
  0x1d   : > { %348 = vst [vmem:[%s1746_s8 + $0x30] sm:$0xff] %v347_v6  ;;  %v363_v14 = vld [vmem:[%s1741_s7 + $0xe0] sm:$0xff]  ;;  %v365_v15 = vld [vmem:[%s1741_s7 + $0xf0] sm:$0xff] }
  0x1e   : > { %350 = vst [vmem:[%s1746_s8 + $0x38] sm:$0xff] %v349_v7  ;;  %v367_v16 = vld [vmem:[%s1741_s7 + $0x100] sm:$0xff]  ;;  %v369_v17 = vld [vmem:[%s1741_s7 + $0x110] sm:$0xff] }
  0x1f   : > { %352 = vst [vmem:[%s1746_s8 + $0x40] sm:$0xff] %v351_v8  ;;  %v371_v18 = vld [vmem:[%s1741_s7 + $0x120] sm:$0xff]  ;;  %v373_v19 = vld [vmem:[%s1741_s7 + $0x130] sm:$0xff] }
  0x20   : > { %354 = vst [vmem:[%s1746_s8 + $0x48] sm:$0xff] %v353_v9  ;;  %v375_v20 = vld [vmem:[%s1741_s7 + $0x140] sm:$0xff]  ;;  %v377_v21 = vld [vmem:[%s1741_s7 + $0x150] sm:$0xff] }
  0x21   : > { %356 = vst [vmem:[%s1746_s8 + $0x50] sm:$0xff] %v355_v10  ;;  %v379_v22 = vld [vmem:[%s1741_s7 + $0x160] sm:$0xff]  ;;  %v381_v23 = vld [vmem:[%s1741_s7 + $0x170] sm:$0xff] }
  0x22   : > { %358 = vst [vmem:[%s1746_s8 + $0x58] sm:$0xff] %v357_v11  ;;  %v383_v24 = vld [vmem:[%s1741_s7 + $0x180] sm:$0xff]  ;;  %v385_v25 = vld [vmem:[%s1741_s7 + $0x190] sm:$0xff] }
  0x23   : > { %360 = vst [vmem:[%s1746_s8 + $0x60] sm:$0xff] %v359_v12  ;;  %v387_v26 = vld [vmem:[%s1741_s7 + $0x1a0] sm:$0xff]  ;;  %v389_v27 = vld [vmem:[%s1741_s7 + $0x1b0] sm:$0xff] }
  0x24   : > { %362 = vst [vmem:[%s1746_s8 + $0x68] sm:$0xff] %v361_v13  ;;  %v391_v28 = vld [vmem:[%s1741_s7 + $0x1c0] sm:$0xff]  ;;  %v393_v29 = vld [vmem:[%s1741_s7 + $0x1d0] sm:$0xff] }
  0x25   : > { %364 = vst [vmem:[%s1746_s8 + $0x70] sm:$0xff] %v363_v14  ;;  %v395_v30 = vld [vmem:[%s1741_s7 + $0x1e0] sm:$0xff]  ;;  %v397_v31 = vld [vmem:[%s1741_s7 + $0x1f0] sm:$0xff] }
  0x26   : > { %366 = vst [vmem:[%s1746_s8 + $0x78] sm:$0xff] %v365_v15  ;;  %v399_v32 = vld [vmem:[%s1741_s7 + $0x200] sm:$0xff]  ;;  %v401_v33 = vld [vmem:[%s1741_s7 + $0x210] sm:$0xff] }
  0x27   : > { %368 = vst [vmem:[%s1746_s8 + $0x80] sm:$0xff] %v367_v16  ;;  %v403_v34 = vld [vmem:[%s1741_s7 + $0x220] sm:$0xff]  ;;  %v405_v35 = vld [vmem:[%s1741_s7 + $0x230] sm:$0xff] }
  0x28   : > { %370 = vst [vmem:[%s1746_s8 + $0x88] sm:$0xff] %v369_v17  ;;  %v407_v36 = vld [vmem:[%s1741_s7 + $0x240] sm:$0xff]  ;;  %v409_v37 = vld [vmem:[%s1741_s7 + $0x250] sm:$0xff] }
  0x29   : > { %372 = vst [vmem:[%s1746_s8 + $0x90] sm:$0xff] %v371_v18  ;;  %v411_v38 = vld [vmem:[%s1741_s7 + $0x260] sm:$0xff]  ;;  %v413_v39 = vld [vmem:[%s1741_s7 + $0x270] sm:$0xff] }
  0x2a   : > { %374 = vst [vmem:[%s1746_s8 + $0x98] sm:$0xff] %v373_v19  ;;  %v415_v40 = vld [vmem:[%s1741_s7 + $0x280] sm:$0xff]  ;;  %v417_v41 = vld [vmem:[%s1741_s7 + $0x290] sm:$0xff] }
  0x2b   : > { %376 = vst [vmem:[%s1746_s8 + $0xa0] sm:$0xff] %v375_v20  ;;  %v419_v42 = vld [vmem:[%s1741_s7 + $0x2a0] sm:$0xff]  ;;  %v421_v43 = vld [vmem:[%s1741_s7 + $0x2b0] sm:$0xff] }
  0x2c   : > { %378 = vst [vmem:[%s1746_s8 + $0xa8] sm:$0xff] %v377_v21  ;;  %v423_v44 = vld [vmem:[%s1741_s7 + $0x2c0] sm:$0xff]  ;;  %v425_v45 = vld [vmem:[%s1741_s7 + $0x2d0] sm:$0xff] }
  0x2d   : > { %380 = vst [vmem:[%s1746_s8 + $0xb0] sm:$0xff] %v379_v22  ;;  %v427_v46 = vld [vmem:[%s1741_s7 + $0x2e0] sm:$0xff]  ;;  %v429_v47 = vld [vmem:[%s1741_s7 + $0x2f0] sm:$0xff] }
  0x2e   : > { %382 = vst [vmem:[%s1746_s8 + $0xb8] sm:$0xff] %v381_v23  ;;  %v431_v48 = vld [vmem:[%s1741_s7 + $0x300] sm:$0xff]  ;;  %v433_v49 = vld [vmem:[%s1741_s7 + $0x310] sm:$0xff] }
  0x2f   : > { %384 = vst [vmem:[%s1746_s8 + $0xc0] sm:$0xff] %v383_v24  ;;  %v435_v50 = vld [vmem:[%s1741_s7 + $0x320] sm:$0xff]  ;;  %v437_v51 = vld [vmem:[%s1741_s7 + $0x330] sm:$0xff] }
  0x30   : > { %386 = vst [vmem:[%s1746_s8 + $0xc8] sm:$0xff] %v385_v25  ;;  %v439_v52 = vld [vmem:[%s1741_s7 + $0x340] sm:$0xff]  ;;  %v441_v53 = vld [vmem:[%s1741_s7 + $0x350] sm:$0xff] }
  0x31   : > { %388 = vst [vmem:[%s1746_s8 + $0xd0] sm:$0xff] %v387_v26  ;;  %v443_v54 = vld [vmem:[%s1741_s7 + $0x360] sm:$0xff]  ;;  %v445_v55 = vld [vmem:[%s1741_s7 + $0x370] sm:$0xff] }
  0x32   : > { %390 = vst [vmem:[%s1746_s8 + $0xd8] sm:$0xff] %v389_v27  ;;  %v447_v56 = vld [vmem:[%s1741_s7 + $0x380] sm:$0xff]  ;;  %v449_v57 = vld [vmem:[%s1741_s7 + $0x390] sm:$0xff] }
  0x33   : > { %392 = vst [vmem:[%s1746_s8 + $0xe0] sm:$0xff] %v391_v28  ;;  %v451_v58 = vld [vmem:[%s1741_s7 + $0x3a0] sm:$0xff]  ;;  %v453_v59 = vld [vmem:[%s1741_s7 + $0x3b0] sm:$0xff] }
  0x34   : > { %394 = vst [vmem:[%s1746_s8 + $0xe8] sm:$0xff] %v393_v29  ;;  %v455_v60 = vld [vmem:[%s1741_s7 + $0x3c0] sm:$0xff]  ;;  %v457_v61 = vld [vmem:[%s1741_s7 + $0x3d0] sm:$0xff] }
  0x35   : > { %396 = vst [vmem:[%s1746_s8 + $0xf0] sm:$0xff] %v395_v30  ;;  %v459_v62 = vld [vmem:[%s1741_s7 + $0x3e0] sm:$0xff]  ;;  %v461_v63 = vld [vmem:[%s1741_s7 + $0x3f0] sm:$0xff] }
  0x36   : > { %398 = vst [vmem:[%s1746_s8 + $0xf8] sm:$0xff] %v397_v31 }
  0x37   : > { %400 = vst [vmem:[%s1746_s8 + $0x100] sm:$0xff] %v399_v32 }
  0x38   : > { %402 = vst [vmem:[%s1746_s8 + $0x108] sm:$0xff] %v401_v33 }
  0x39   : > { %404 = vst [vmem:[%s1746_s8 + $0x110] sm:$0xff] %v403_v34 }
  0x3a   : > { %406 = vst [vmem:[%s1746_s8 + $0x118] sm:$0xff] %v405_v35 }
  0x3b   : > { %408 = vst [vmem:[%s1746_s8 + $0x120] sm:$0xff] %v407_v36 }
  0x3c   : > { %410 = vst [vmem:[%s1746_s8 + $0x128] sm:$0xff] %v409_v37 }
  0x3d   : > { %412 = vst [vmem:[%s1746_s8 + $0x130] sm:$0xff] %v411_v38 }
  0x3e   : > { %414 = vst [vmem:[%s1746_s8 + $0x138] sm:$0xff] %v413_v39 }
  0x3f   : > { %416 = vst [vmem:[%s1746_s8 + $0x140] sm:$0xff] %v415_v40 }
  0x40   : > { %418 = vst [vmem:[%s1746_s8 + $0x148] sm:$0xff] %v417_v41 }
  0x41   : > { %420 = vst [vmem:[%s1746_s8 + $0x150] sm:$0xff] %v419_v42 }
  0x42   : > { %422 = vst [vmem:[%s1746_s8 + $0x158] sm:$0xff] %v421_v43 }
  0x43   : > { %424 = vst [vmem:[%s1746_s8 + $0x160] sm:$0xff] %v423_v44 }
  0x44   : > { %426 = vst [vmem:[%s1746_s8 + $0x168] sm:$0xff] %v425_v45 }
  0x45   : > { %428 = vst [vmem:[%s1746_s8 + $0x170] sm:$0xff] %v427_v46 }
  0x46   : > { %430 = vst [vmem:[%s1746_s8 + $0x178] sm:$0xff] %v429_v47 }
  0x47   : > { %432 = vst [vmem:[%s1746_s8 + $0x180] sm:$0xff] %v431_v48 }
  0x48   : > { %434 = vst [vmem:[%s1746_s8 + $0x188] sm:$0xff] %v433_v49 }
  0x49   : > { %436 = vst [vmem:[%s1746_s8 + $0x190] sm:$0xff] %v435_v50 }
  0x4a   : > { %438 = vst [vmem:[%s1746_s8 + $0x198] sm:$0xff] %v437_v51 }
  0x4b   : > { %440 = vst [vmem:[%s1746_s8 + $0x1a0] sm:$0xff] %v439_v52 }
  0x4c   : > { %442 = vst [vmem:[%s1746_s8 + $0x1a8] sm:$0xff] %v441_v53 }
  0x4d   : > { %444 = vst [vmem:[%s1746_s8 + $0x1b0] sm:$0xff] %v443_v54 }
  0x4e   : > { %446 = vst [vmem:[%s1746_s8 + $0x1b8] sm:$0xff] %v445_v55 }
  0x4f   : > { %448 = vst [vmem:[%s1746_s8 + $0x1c0] sm:$0xff] %v447_v56 }
  0x50   : > { %450 = vst [vmem:[%s1746_s8 + $0x1c8] sm:$0xff] %v449_v57 }
  0x51   : > { %452 = vst [vmem:[%s1746_s8 + $0x1d0] sm:$0xff] %v451_v58 }
  0x52   : > { %454 = vst [vmem:[%s1746_s8 + $0x1d8] sm:$0xff] %v453_v59 }
  0x53   : > { %456 = vst [vmem:[%s1746_s8 + $0x1e0] sm:$0xff] %v455_v60 }
  0x54   : > { %458 = vst [vmem:[%s1746_s8 + $0x1e8] sm:$0xff] %v457_v61 }
  0x55   : > { %460 = vst [vmem:[%s1746_s8 + $0x1f0] sm:$0xff] %v459_v62 }
  0x56   : > { %462 = vst [vmem:[%s1746_s8 + $0x1f8] sm:$0xff] %v461_v63 }
  0x57 PF: > { %p1215_p7 = scmp.ge.s32.totalorder %s1658_s18, 1  ;;  %p475_p8 = scmp.lt.s32.totalorder %s1658_s18, 19 }
  0x59   : > { %p476_p9 = pnand %p1215_p7, %p475_p8 }
  0x5a   : > { %s482_s9 = sand.u32 (!%p476_p9), 1, %s1634_s12   ;;  %p522_p10 = scmp.lt.s32.totalorder (!%p476_p9), %s1642_s14, 8 }
  0x5b   : > { %479 = sbr.rel (%p476_p9) target bundleno = 326 (0x146), region = 66  ;;  %s1216_s10 = sshll.u32 (!%p476_p9), %s482_s9, 9 }
  0x5c   : > { %s1219_s11 = sshll.u32 (!%p476_p9), %s1646_s15, 1  ;;  %s1896_s5 = scalar_lea.vmem (!%p476_p9), [#allocation3], %s1216_s10 }
  0x5d   : > { %p533_p11 = scmp.lt.s32.totalorder (!%p476_p9), %s1219_s11, 3  ;;  %p1222_p12 = scmp.ne.s32.totalorder (!%p476_p9), %s1642_s14, 0 }
  0x60   : > { %s523_s21 = scalar_select %p522_p10, %s1642_s14, 8 }
  0x61   : > { %s2090_s11 = smov (!%p533_p11, %s1219_s11), 3  ;;  %550 = sbr.rel (%p1222_p12) target bundleno = 105 (0x69), region = 74 }
  0x62   : > { %s1482_s22 = sshll.u32 %s523_s21, 4  ;;  %s535_s29 = scalar_lea.vmem %s2075_s2, %s2090_s11 }
  0x63   : > { %s1884_s26 = scalar_lea.vmem %s2073_s0, %s1482_s22  ;;  %s1221_s12 = sshll.u32 %s2090_s11, 2 }
  0x64   : > { %s1894_s15 = scalar_lea.vmem %s2076_s3, %s1221_s12 }
  0x66   : > { %v1660_v0 = vmov 0.0  }
  0x67   : > { %551 = vst [vmem:[#allocation2] sm:$0xff] %v1660_v0 }
  0x68   : > { %552 = vst [vmem:[#allocation2 + $0x8] sm:$0xff] %v1660_v0 }
  0x69 PF: > { %v1281_v1 = vld [vmem:[%s1896_s5 + $0x70] sm:$0xf]  ;;  %v1498_v2 = vld [vmem:[%s1896_s5 + $0x74] sm:$0xf0]  ;;  %v1273_v12 = vld [vmem:[%s1896_s5 + $0x60] sm:$0xf] }
  0x6a   : > { %v1345_v3 = vld [vmem:[%s1896_s5 + $0xf0] sm:$0xf]  ;;  %v1282_v4 = vor.u32 %v1498_v2, %v1281_v1  ;;  %v1514_v5 = vld [vmem:[%s1896_s5 + $0xf4] sm:$0xf0]  ;;  %v1496_v14 = vld [vmem:[%s1896_s5 + $0x64] sm:$0xf0] }
  0x6b   : > { %v1409_v6 = vld [vmem:[%s1896_s5 + $0x170] sm:$0xf]  ;;  %v1530_v7 = vld [vmem:[%s1896_s5 + $0x174] sm:$0xf0]  ;;  %v1346_v8 = vor.u32 %v1514_v5, %v1345_v3  ;;  %v1337_v15 = vld [vmem:[%s1896_s5 + $0xe0] sm:$0xf]  ;;  %v1274_v17 = vor.u32 %v1496_v14, %v1273_v12 }
  0x6c   : > { %v1410_v9 = vor.u32 %v1530_v7, %v1409_v6  ;;  %v1473_v10 = vld [vmem:[%s1896_s5 + $0x1f0] sm:$0xf]  ;;  %v1546_v11 = vld [vmem:[%s1896_s5 + $0x1f4] sm:$0xf0]  ;;  %955 = vmatpush.bf16.msra.mxu0 %v1282_v4  ;;  %v1512_v16 = vld [vmem:[%s1896_s5 + $0xe4] sm:$0xf0] }
  0x6d   : > { %v1474_v13 = vor.u32 %v1546_v11, %v1473_v10  ;;  %968 = vmatpush.bf16.msra.mxu1 %v1346_v8  ;;  %v1338_v18 = vor.u32 %v1512_v16, %v1337_v15  ;;  %v1401_v19 = vld [vmem:[%s1896_s5 + $0x160] sm:$0xf]  ;;  %v1528_v20 = vld [vmem:[%s1896_s5 + $0x164] sm:$0xf0]  ;;  %v1265_v24 = vld [vmem:[%s1896_s5 + $0x50] sm:$0xf] }
  0x6e   : > { %981 = vmatpush.bf16.msra.mxu2 %v1410_v9  ;;  %v1465_v21 = vld [vmem:[%s1896_s5 + $0x1e0] sm:$0xf]  ;;  %v1402_v22 = vor.u32 %v1528_v20, %v1401_v19  ;;  %v1544_v23 = vld [vmem:[%s1896_s5 + $0x1e4] sm:$0xf0]  ;;  %v1494_v25 = vld [vmem:[%s1896_s5 + $0x54] sm:$0xf0] }
  0x6f   : > { %994 = vmatpush.bf16.msra.mxu3 %v1474_v13  ;;  %v1466_v26 = vor.u32 %v1544_v23, %v1465_v21  ;;  %v1329_v27 = vld [vmem:[%s1896_s5 + $0xd0] sm:$0xf]  ;;  %v1510_v28 = vld [vmem:[%s1896_s5 + $0xd4] sm:$0xf0]  ;;  %v1266_v30 = vor.u32 %v1494_v25, %v1265_v24  ;;  %v1257_v36 = vld [vmem:[%s1896_s5 + $0x40] sm:$0xf] }
  0x70   : > { %v1393_v29 = vld [vmem:[%s1896_s5 + $0x150] sm:$0xf]  ;;  %956 = vmatpush.bf16.msra.mxu0 %v1274_v17  ;;  %v1526_v31 = vld [vmem:[%s1896_s5 + $0x154] sm:$0xf0]  ;;  %v1330_v34 = vor.u32 %v1510_v28, %v1329_v27  ;;  %v1492_v37 = vld [vmem:[%s1896_s5 + $0x44] sm:$0xf0] }
  0x71   : > { %v1457_v32 = vld [vmem:[%s1896_s5 + $0x1d0] sm:$0xf]  ;;  %v1542_v33 = vld [vmem:[%s1896_s5 + $0x1d4] sm:$0xf0]  ;;  %969 = vmatpush.bf16.msra.mxu1 %v1338_v18  ;;  %v1394_v35 = vor.u32 %v1526_v31, %v1393_v29  ;;  %v1321_v38 = vld [vmem:[%s1896_s5 + $0xc0] sm:$0xf]  ;;  %v1258_v45 = vor.u32 %v1492_v37, %v1257_v36 }
  0x72   : > { %982 = vmatpush.bf16.msra.mxu2 %v1402_v22  ;;  %v1458_v39 = vor.u32 %v1542_v33, %v1457_v32  ;;  %v1508_v40 = vld [vmem:[%s1896_s5 + $0xc4] sm:$0xf0]  ;;  %v1385_v41 = vld [vmem:[%s1896_s5 + $0x140] sm:$0xf]  ;;  %v1249_v48 = vld [vmem:[%s1896_s5 + $0x30] sm:$0xf] }
  0x73   : > { %995 = vmatpush.bf16.msra.mxu3 %v1466_v26  ;;  %v1524_v42 = vld [vmem:[%s1896_s5 + $0x144] sm:$0xf0]  ;;  %v1449_v43 = vld [vmem:[%s1896_s5 + $0x1c0] sm:$0xf]  ;;  %v1322_v46 = vor.u32 %v1508_v40, %v1321_v38  ;;  %v1490_v49 = vld [vmem:[%s1896_s5 + $0x34] sm:$0xf0] }
  0x74   : > { %v1540_v44 = vld [vmem:[%s1896_s5 + $0x1c4] sm:$0xf0]  ;;  %957 = vmatpush.bf16.msra.mxu0 %v1266_v30  ;;  %v1386_v47 = vor.u32 %v1524_v42, %v1385_v41  ;;  %v1313_v50 = vld [vmem:[%s1896_s5 + $0xb0] sm:$0xf]  ;;  %v1506_v52 = vld [vmem:[%s1896_s5 + $0xb4] sm:$0xf0]  ;;  %v1250_v57 = vor.u32 %v1490_v49, %v1249_v48 }
  0x75   : > { %970 = vmatpush.bf16.msra.mxu1 %v1330_v34  ;;  %v1450_v51 = vor.u32 %v1540_v44, %v1449_v43  ;;  %v1377_v53 = vld [vmem:[%s1896_s5 + $0x130] sm:$0xf]  ;;  %v1522_v54 = vld [vmem:[%s1896_s5 + $0x134] sm:$0xf0]  ;;  %v1314_v58 = vor.u32 %v1506_v52, %v1313_v50  ;;  %v1241_v60 = vld [vmem:[%s1896_s5 + $0x20] sm:$0xf] }
  0x76   : > { %983 = vmatpush.bf16.msra.mxu2 %v1394_v35  ;;  %v1441_v55 = vld [vmem:[%s1896_s5 + $0x1b0] sm:$0xf]  ;;  %v1538_v56 = vld [vmem:[%s1896_s5 + $0x1b4] sm:$0xf0]  ;;  %v1378_v59 = vor.u32 %v1522_v54, %v1377_v53  ;;  %v1488_v61 = vld [vmem:[%s1896_s5 + $0x24] sm:$0xf0] }
  0x77   : > { %996 = vmatpush.bf16.msra.mxu3 %v1458_v39  ;;  %v1305_v62 = vld [vmem:[%s1896_s5 + $0xa0] sm:$0xf]  ;;  %v1442_v63 = vor.u32 %v1538_v56, %v1441_v55  ;;  %v1504_v0 = vld [vmem:[%s1896_s5 + $0xa4] sm:$0xf0]  ;;  %v1242_v5 = vor.u32 %v1488_v61, %v1241_v60  ;;  %v1233_v8 = vld [vmem:[%s1896_s5 + $0x10] sm:$0xf] }
  0x78   : > { %958 = vmatpush.bf16.msra.mxu0 %v1258_v45  ;;  %v1369_v1 = vld [vmem:[%s1896_s5 + $0x120] sm:$0xf]  ;;  %v1520_v2 = vld [vmem:[%s1896_s5 + $0x124] sm:$0xf0]  ;;  %v1306_v6 = vor.u32 %v1504_v0, %v1305_v62  ;;  %v1486_v9 = vld [vmem:[%s1896_s5 + $0x14] sm:$0xf0] }
  0x79   : > { %971 = vmatpush.bf16.msra.mxu1 %v1322_v46  ;;  %v1433_v3 = vld [vmem:[%s1896_s5 + $0x1a0] sm:$0xf]  ;;  %v1536_v4 = vld [vmem:[%s1896_s5 + $0x1a4] sm:$0xf0]  ;;  %v1370_v7 = vor.u32 %v1520_v2, %v1369_v1  ;;  %v1297_v10 = vld [vmem:[%s1896_s5 + $0x90] sm:$0xf]  ;;  %v1234_v17 = vor.u32 %v1486_v9, %v1233_v8 }
  0x7a   : > { %984 = vmatpush.bf16.msra.mxu2 %v1386_v47  ;;  %v1434_v11 = vor.u32 %v1536_v4, %v1433_v3  ;;  %v1502_v12 = vld [vmem:[%s1896_s5 + $0x94] sm:$0xf0]  ;;  %v1361_v13 = vld [vmem:[%s1896_s5 + $0x110] sm:$0xf]  ;;  %v1225_v18 = vld [vmem:[%s1896_s5] sm:$0xf] }
  0x7b   : > { %997 = vmatpush.bf16.msra.mxu3 %v1450_v51  ;;  %v1518_v14 = vld [vmem:[%s1896_s5 + $0x114] sm:$0xf0]  ;;  %v1425_v15 = vld [vmem:[%s1896_s5 + $0x190] sm:$0xf]  ;;  %v1484_v19 = vld [vmem:[%s1896_s5 + $0x4] sm:$0xf0]  ;;  %v1298_v21 = vor.u32 %v1502_v12, %v1297_v10 }
  0x7c   : > { %959 = vmatpush.bf16.msra.mxu0 %v1250_v57  ;;  %v1534_v16 = vld [vmem:[%s1896_s5 + $0x194] sm:$0xf0]  ;;  %v1289_v20 = vld [vmem:[%s1896_s5 + $0x80] sm:$0xf]  ;;  %v1362_v22 = vor.u32 %v1518_v14, %v1361_v13  ;;  %v1500_v23 = vld [vmem:[%s1896_s5 + $0x84] sm:$0xf0]  ;;  %v1226_v33 = vor.u32 %v1484_v19, %v1225_v18 }
  0x7d   : > { %972 = vmatpush.bf16.msra.mxu1 %v1314_v58  ;;  %v1353_v24 = vld [vmem:[%s1896_s5 + $0x100] sm:$0xf]  ;;  %v1516_v25 = vld [vmem:[%s1896_s5 + $0x104] sm:$0xf0]  ;;  %v1426_v26 = vor.u32 %v1534_v16, %v1425_v15  ;;  %v1497_v29 = vld [vmem:[%s1896_s5 + $0x74] sm:$0xf]  ;;  %v1290_v38 = vor.u32 %v1500_v23, %v1289_v20 }
  0x7e   : > { %985 = vmatpush.bf16.msra.mxu2 %v1378_v59  ;;  %v1417_v27 = vld [vmem:[%s1896_s5 + $0x180] sm:$0xf]  ;;  %v1532_v28 = vld [vmem:[%s1896_s5 + $0x184] sm:$0xf0]  ;;  %v1283_v30 = vld [vmem:[%s1896_s5 + $0x78] sm:$0xf0]  ;;  %v1354_v39 = vor.u32 %v1516_v25, %v1353_v24 }
  0x7f   : > { %998 = vmatpush.bf16.msra.mxu3 %v1442_v63  ;;  %v1513_v31 = vld [vmem:[%s1896_s5 + $0xf4] sm:$0xf]  ;;  %v556_v32 = vld [vmem:[%s1884_s26 + $0x8] sm:$0xff]  ;;  %v1418_v43 = vor.u32 %v1532_v28, %v1417_v27  ;;  %v1286_v44 = vor.u32 %v1497_v29, %v1283_v30  ;;  %v1495_v48 = vld [vmem:[%s1896_s5 + $0x64] sm:$0xf]  ;;  %p1479_p13 = scmp.ne.s32.totalorder %s1642_s14, 8 }
  0x80   : > { %960 = vmatpush.bf16.msra.mxu0 %v1242_v5  ;;  %v1347_v34 = vld [vmem:[%s1896_s5 + $0xf8] sm:$0xf0]  ;;  %v1529_v35 = vld [vmem:[%s1896_s5 + $0x174] sm:$0xf]  ;;  %v625_v37 = vunpack.c.l.b16 %v556_v32  ;;  %v626_v42 = vunpack.c.h.b16 %v556_v32  ;;  %v1275_v49 = vld [vmem:[%s1896_s5 + $0x68] sm:$0xf0] }
  0x81   : > { %973 = vmatpush.bf16.msra.mxu1 %v1306_v6  ;;  %v1411_v36 = vld [vmem:[%s1896_s5 + $0x178] sm:$0xf0]  ;;  %v1545_v40 = vld [vmem:[%s1896_s5 + $0x1f4] sm:$0xf]  ;;  %v1350_v46 = vor.u32 %v1513_v31, %v1347_v34  ;;  %v1511_v50 = vld [vmem:[%s1896_s5 + $0xe4] sm:$0xf]  ;;  %v1278_v62 = vor.u32 %v1495_v48, %v1275_v49 }
  0x82   : > { %986 = vmatpush.bf16.msra.mxu2 %v1370_v7  ;;  %v1475_v41 = vld [vmem:[%s1896_s5 + $0x1f8] sm:$0xf0]  ;;  %v555_v45 = vld [vmem:[%s1884_s26] sm:$0xff]  ;;  %v1414_v47 = vor.u32 %v1529_v35, %v1411_v36  ;;  %v1339_v54 = vld [vmem:[%s1896_s5 + $0xe8] sm:$0xf0]  ;;  %v1979_v57 = vpack.c.b16 %v625_v37, %v625_v37  ;;  %v1983_v60 = vpack.c.b16 %v626_v42, %v626_v42 }
  0x83   : > { %999 = vmatpush.bf16.msra.mxu3 %v1434_v11  ;;  %v623_v51 = vunpack.c.l.b16 %v555_v45  ;;  %v624_v52 = vunpack.c.h.b16 %v555_v45  ;;  %v1478_v53 = vor.u32 %v1545_v40, %v1475_v41  ;;  %v1527_v55 = vld [vmem:[%s1896_s5 + $0x164] sm:$0xf]  ;;  %v1403_v56 = vld [vmem:[%s1896_s5 + $0x168] sm:$0xf0]  ;;  %v1342_v0 = vor.u32 %v1511_v50, %v1339_v54  ;;  %v1493_v2 = vld [vmem:[%s1896_s5 + $0x54] sm:$0xf] }
  0x84   : > { %961 = vmatpush.bf16.msra.mxu0 %v1234_v17  ;;  %v1543_v58 = vld [vmem:[%s1896_s5 + $0x1e4] sm:$0xf]  ;;  %v1467_v59 = vld [vmem:[%s1896_s5 + $0x1e8] sm:$0xf0]  ;;  %v1406_v1 = vor.u32 %v1527_v55, %v1403_v56  ;;  %v1267_v3 = vld [vmem:[%s1896_s5 + $0x58] sm:$0xf0] }
  0x85   : > { %974 = vmatpush.bf16.msra.mxu1 %v1298_v21  ;;  %v1985_v61 = vpack.c.b16 %v623_v51, %v623_v51  ;;  %v1987_v63 = vpack.c.b16 %v624_v52, %v624_v52  ;;  %v1509_v4 = vld [vmem:[%s1896_s5 + $0xd4] sm:$0xf]  ;;  %v1470_v5 = vor.u32 %v1543_v58, %v1467_v59  ;;  %v1331_v6 = vld [vmem:[%s1896_s5 + $0xd8] sm:$0xf0]  ;;  %v1270_v11 = vor.u32 %v1493_v2, %v1267_v3  ;;  %v1491_v14 = vld [vmem:[%s1896_s5 + $0x44] sm:$0xf] }
  0x86   : > { %987 = vmatpush.bf16.msra.mxu2 %v1362_v22  ;;  %v1525_v7 = vld [vmem:[%s1896_s5 + $0x154] sm:$0xf]  ;;  %v1395_v8 = vld [vmem:[%s1896_s5 + $0x158] sm:$0xf0]  ;;  %v1334_v12 = vor.u32 %v1509_v4, %v1331_v6  ;;  %v1259_v15 = vld [vmem:[%s1896_s5 + $0x48] sm:$0xf0] }
  0x87   : > { %1000 = vmatpush.bf16.msra.mxu3 %v1426_v26  ;;  %v1541_v9 = vld [vmem:[%s1896_s5 + $0x1d4] sm:$0xf]  ;;  %v1459_v10 = vld [vmem:[%s1896_s5 + $0x1d8] sm:$0xf0]  ;;  %v1398_v13 = vor.u32 %v1525_v7, %v1395_v8  ;;  %v1507_v16 = vld [vmem:[%s1896_s5 + $0xc4] sm:$0xf]  ;;  %v1262_v23 = vor.u32 %v1491_v14, %v1259_v15 }
  0x88   : > { %962 = vmatpush.bf16.msra.mxu0 %v1226_v33  ;;  %v1462_v17 = vor.u32 %v1541_v9, %v1459_v10  ;;  %v1323_v18 = vld [vmem:[%s1896_s5 + $0xc8] sm:$0xf0]  ;;  %v1523_v19 = vld [vmem:[%s1896_s5 + $0x144] sm:$0xf]  ;;  %v1489_v26 = vld [vmem:[%s1896_s5 + $0x34] sm:$0xf] }
  0x89   : > { %975 = vmatpush.bf16.msra.mxu1 %v1290_v38  ;;  %v1387_v20 = vld [vmem:[%s1896_s5 + $0x148] sm:$0xf0]  ;;  %v1539_v21 = vld [vmem:[%s1896_s5 + $0x1c4] sm:$0xf]  ;;  %v1326_v24 = vor.u32 %v1507_v16, %v1323_v18  ;;  %v1251_v27 = vld [vmem:[%s1896_s5 + $0x38] sm:$0xf0] }
  0x8a   : > { %988 = vmatpush.bf16.msra.mxu2 %v1354_v39  ;;  %v1451_v22 = vld [vmem:[%s1896_s5 + $0x1c8] sm:$0xf0]  ;;  %v1390_v25 = vor.u32 %v1523_v19, %v1387_v20  ;;  %v1505_v28 = vld [vmem:[%s1896_s5 + $0xb4] sm:$0xf]  ;;  %v1315_v30 = vld [vmem:[%s1896_s5 + $0xb8] sm:$0xf0]  ;;  %v1254_v35 = vor.u32 %v1489_v26, %v1251_v27 }
  0x8b   : > { %1001 = vmatpush.bf16.msra.mxu3 %v1418_v43  ;;  %963 = vmatmul.bf16.vlgmr.msra.gmra.mxu0 %v1985_v61  ;;  %v1454_v29 = vor.u32 %v1539_v21, %v1451_v22  ;;  %v1521_v31 = vld [vmem:[%s1896_s5 + $0x134] sm:$0xf]  ;;  %v1379_v32 = vld [vmem:[%s1896_s5 + $0x138] sm:$0xf0]  ;;  %v1318_v36 = vor.u32 %v1505_v28, %v1315_v30  ;;  %v1487_v38 = vld [vmem:[%s1896_s5 + $0x24] sm:$0xf] }
  0x8c   : > { %1007 = vmatpush.bf16.msrb.mxu0 %v1286_v44  ;;  %976 = vmatmul.bf16.vlgmr.msra.gmra.mxu1 %v1987_v63  ;;  %v1537_v33 = vld [vmem:[%s1896_s5 + $0x1b4] sm:$0xf]  ;;  %v1443_v34 = vld [vmem:[%s1896_s5 + $0x1b8] sm:$0xf0]  ;;  %v1382_v37 = vor.u32 %v1521_v31, %v1379_v32  ;;  %v1243_v39 = vld [vmem:[%s1896_s5 + $0x28] sm:$0xf0] }
  0x8d   : > { %1020 = vmatpush.bf16.msrb.mxu1 %v1350_v46  ;;  %989 = vmatmul.bf16.vlgmr.msra.gmra.mxu2 %v1979_v57  ;;  %v1503_v40 = vld [vmem:[%s1896_s5 + $0xa4] sm:$0xf]  ;;  %v1446_v41 = vor.u32 %v1537_v33, %v1443_v34  ;;  %v1307_v42 = vld [vmem:[%s1896_s5 + $0xa8] sm:$0xf0]  ;;  %v1485_v50 = vld [vmem:[%s1896_s5 + $0x14] sm:$0xf] }
  0x8e   : > { %1033 = vmatpush.bf16.msrb.mxu2 %v1414_v47  ;;  %1002 = vmatmul.bf16.vlgmr.msra.gmra.mxu3 %v1983_v60  ;;  %v1519_v43 = vld [vmem:[%s1896_s5 + $0x124] sm:$0xf]  ;;  %v1371_v44 = vld [vmem:[%s1896_s5 + $0x128] sm:$0xf0]  ;;  %v1246_v47 = vor.u32 %v1487_v38, %v1243_v39  ;;  %v1310_v48 = vor.u32 %v1503_v40, %v1307_v42  ;;  %v1235_v51 = vld [vmem:[%s1896_s5 + $0x18] sm:$0xf0] }
  0x8f   : > { %1046 = vmatpush.bf16.msrb.mxu3 %v1478_v53  ;;  %v1535_v45 = vld [vmem:[%s1896_s5 + $0x1a4] sm:$0xf]  ;;  %v1435_v46 = vld [vmem:[%s1896_s5 + $0x1a8] sm:$0xf0]  ;;  %v1374_v49 = vor.u32 %v1519_v43, %v1371_v44  ;;  %v1501_v52 = vld [vmem:[%s1896_s5 + $0x94] sm:$0xf] }
  0x90   : > { %1008 = vmatpush.bf16.msrb.mxu0 %v1278_v62  ;;  %v1438_v53 = vor.u32 %v1535_v45, %v1435_v46  ;;  %v1299_v54 = vld [vmem:[%s1896_s5 + $0x98] sm:$0xf0]  ;;  %v1517_v55 = vld [vmem:[%s1896_s5 + $0x114] sm:$0xf]  ;;  %v1238_v62 = vor.u32 %v1485_v50, %v1235_v51  ;;  %v1483_v2 = vld [vmem:[%s1896_s5 + $0x4] sm:$0xf] }
  0x91   : > { %1021 = vmatpush.bf16.msrb.mxu1 %v1342_v0  ;;  %v1363_v56 = vld [vmem:[%s1896_s5 + $0x118] sm:$0xf0]  ;;  %v1533_v58 = vld [vmem:[%s1896_s5 + $0x194] sm:$0xf]  ;;  %v1302_v0 = vor.u32 %v1501_v52, %v1299_v54  ;;  %v1227_v3 = vld [vmem:[%s1896_s5 + $0x8] sm:$0xf0] }
  0x92   : > { %1034 = vmatpush.bf16.msrb.mxu2 %v1406_v1  ;;  %v1427_v59 = vld [vmem:[%s1896_s5 + $0x198] sm:$0xf0]  ;;  %v1366_v1 = vor.u32 %v1517_v55, %v1363_v56  ;;  %v1499_v4 = vld [vmem:[%s1896_s5 + $0x84] sm:$0xf]  ;;  %v1291_v6 = vld [vmem:[%s1896_s5 + $0x88] sm:$0xf0] }
  0x93   : > { %1047 = vmatpush.bf16.msrb.mxu3 %v1470_v5  ;;  %v1430_v5 = vor.u32 %v1533_v58, %v1427_v59  ;;  %v1515_v7 = vld [vmem:[%s1896_s5 + $0x104] sm:$0xf]  ;;  %v1355_v8 = vld [vmem:[%s1896_s5 + $0x108] sm:$0xf0]  ;;  %v553_v21 = vld [vmem:[#allocation2] sm:$0xff] }
  0x94   : > { %1009 = vmatpush.bf16.msrb.mxu0 %v1270_v11  ;;  %v1531_v9 = vld [vmem:[%s1896_s5 + $0x184] sm:$0xf]  ;;  %v1419_v10 = vld [vmem:[%s1896_s5 + $0x188] sm:$0xf0]  ;;  %v1230_v11 = vor.u32 %v1483_v2, %v1227_v3  ;;  %v554_v31 = vld [vmem:[#allocation2 + $0x8] sm:$0xff] }
  0x95   : > { %1022 = vmatpush.bf16.msrb.mxu1 %v1334_v12  ;;  %v1294_v12 = vor.u32 %v1499_v4, %v1291_v6  ;;  %v1422_v14 = vor.u32 %v1531_v9, %v1419_v10 }
  0x96   : > { %1035 = vmatpush.bf16.msrb.mxu2 %v1398_v13  ;;  %v1358_v13 = vor.u32 %v1515_v7, %v1355_v8 }
  0x97   : > { %1048 = vmatpush.bf16.msrb.mxu3 %v1462_v17 }
  0x98   : > { %1010 = vmatpush.bf16.msrb.mxu0 %v1262_v23 }
  0x99   : > { %1023 = vmatpush.bf16.msrb.mxu1 %v1326_v24 }
  0x9a   : > { %1036 = vmatpush.bf16.msrb.mxu2 %v1390_v25 }
  0x9b   : > { %1049 = vmatpush.bf16.msrb.mxu3 %v1454_v29 }
  0x9c   : > { %1011 = vmatpush.bf16.msrb.mxu0 %v1254_v35 }
  0x9d   : > { %1024 = vmatpush.bf16.msrb.mxu1 %v1318_v36 }
  0x9e   : > { %1037 = vmatpush.bf16.msrb.mxu2 %v1382_v37 }
  0x9f   : > { %1050 = vmatpush.bf16.msrb.mxu3 %v1446_v41 }
  0xa0   : > { %1012 = vmatpush.bf16.msrb.mxu0 %v1246_v47 }
  0xa1   : > { %1025 = vmatpush.bf16.msrb.mxu1 %v1310_v48 }
  0xa2   : > { %1038 = vmatpush.bf16.msrb.mxu2 %v1374_v49 }
  0xa3   : > { %1051 = vmatpush.bf16.msrb.mxu3 %v1438_v53 }
  0xa4   : > { %1013 = vmatpush.bf16.msrb.mxu0 %v1238_v62 }
  0xa5   : > { %1026 = vmatpush.bf16.msrb.mxu1 %v1302_v0 }
  0xa6   : > { %1039 = vmatpush.bf16.msrb.mxu2 %v1366_v1 }
  0xa7   : > { %1052 = vmatpush.bf16.msrb.mxu3 %v1430_v5 }
  0xa8   : > { %1014 = vmatpush.bf16.msrb.mxu0 %v1230_v11 }
  0xa9   : > { %1027 = vmatpush.bf16.msrb.mxu1 %v1294_v12 }
  0xaa   : > { %1040 = vmatpush.bf16.msrb.mxu2 %v1358_v13 }
  0xab   : > { %1053 = vmatpush.bf16.msrb.mxu3 %v1422_v14  ;;  %1015 = vmatmul.bf16.vlgmr.msrb.gmra.mxu0 %v1985_v61 }
  0xac   : > { %1028 = vmatmul.bf16.vlgmr.msrb.gmra.mxu1 %v1987_v63 }
  0xad   : > { %1041 = vmatmul.bf16.vlgmr.msrb.gmra.mxu2 %v1979_v57 }
  0xae   : > { %1054 = vmatmul.bf16.vlgmr.msrb.gmra.mxu3 %v1983_v60 }
 0x108   : > { %v964_v15 = vpop.f32.mrf.mxu0 }
 0x109   : > { %v977_v16 = vpop.f32.mrf.mxu1 }
 0x10a   : > { %v978_v17 = vadd.f32 %v977_v16, %v964_v15 }
 0x110   : > { %v990_v18 = vpop.f32.mrf.mxu2  ;;  %v966_v23 = vpop.f32.mrf.mxu0 }
 0x111   : > { %v991_v19 = vadd.f32 %v990_v18, %v978_v17  ;;  %v1003_v20 = vpop.f32.mrf.mxu3  ;;  %v979_v24 = vpop.f32.mrf.mxu1 }
 0x113   : > { %v1004_v22 = vadd.f32 %v1003_v20, %v991_v19 }
 0x115   : > { %v1059_v25 = vadd.f32 %v1004_v22, %v553_v21 }
 0x117   : > { %1061 = vst [vmem:[#allocation2] sm:$0xff] %v1059_v25 }
 0x118   : > { %v992_v26 = vpop.f32.mrf.mxu2 }
 0x119   : > { %v1005_v61 = vpop.f32.mrf.mxu3 }
 0x128   : > { %v1016_v27 = vpop.f32.mrf.mxu0 }
 0x129   : > { %v1029_v63 = vpop.f32.mrf.mxu1 }
 0x12a   : > { %v1030_v28 = vadd.f32 %v1029_v63, %v1016_v27 }
 0x130   : > { %v1042_v57 = vpop.f32.mrf.mxu2  ;;  %v1018_v30 = vpop.f32.mrf.mxu0 }
 0x131   : > { %v1043_v29 = vadd.f32 %v1042_v57, %v1030_v28  ;;  %v1055_v60 = vpop.f32.mrf.mxu3  ;;  %v1031_v32 = vpop.f32.mrf.mxu1 }
 0x133   : > { %v1056_v33 = vadd.f32 %v1055_v60, %v1043_v29 }
 0x135   : > { %v1060_v34 = vadd.f32 %v1056_v33, %v554_v31  ;;  %1066 = sbr.rel (%p1479_p13) target bundleno = 326 (0x146), region = 78 }
 0x137   : > { %1062 = vst [vmem:[#allocation2 + $0x8] sm:$0xff] %v1060_v34 }
 0x138   : > { %v1044_v35 = vpop.f32.mrf.mxu2 }
 0x139   : > { %v1057_v36 = vpop.f32.mrf.mxu3 }
 0x13a   : > { %v1067_v37 = vld [vmem:[#allocation2] sm:$0xff] }
 0x13b   : > { %v1069_v39 = vld [vmem:[%s535_s29] sm:$0x3] }
 0x13c   : > { %v1071_v40 = vperm.slane %v1069_v39, 0  ;;  %v1072_v41 = vperm.slane %v1069_v39, 1 }
 0x13e   : > { %v1068_v38 = vld [vmem:[#allocation2 + $0x8] sm:$0xff]  ;;  %v1075_v42 = vadd.f32 %v1071_v40, %v1067_v37 }
 0x13f   : > { %v1076_v43 = vadd.f32 %v1072_v41, %v1068_v38 }
 0x140   : > { %v1077_v44 = vmax.f32 %v1075_v42, 0.0 }
 0x141   : > { %v1078_v45 = vmax.f32 %v1076_v43, 0.0 }
 0x143   : > { %v1079_v46 = vpack.c.bf16 %v1078_v45, %v1077_v44 }
 0x145   : > { %1080 = vst [vmem:[%s1894_s15] sm:$0xff] %v1079_v46 }
 0x146 PF: > { %s13_s18 = sadd.s32 1, %s1658_s18   ;;  %s2077_s12 = smov %s1638_s13 }
 0x147   : > { %p10_p0 = scmp.ge.s32.totalorder %s13_s18, 20   ;;  %s2078_s13 = smov %s1732_s25 }
 0x148   : > { %s2079_s14 = smov %s1650_s16  ;;  %s2080_s15 = smov %s1654_s17 }
 0x149   : > { %s2081_s16 = smov %s2084_s19  ;;  %s2082_s17 = smov %s2088_s20 }
 0x14a   :  { %12 = sbr.rel (!%p10_p0) target bundleno = 4 (0x4), region = 119 }

</bundles_post_ra>
